<compile_context>
chip_gen: v6e
topology: v6e:2x2x1
jax: 0.10.0
libtpu: 0.0.40
codegen_flags: <defaults>
</compile_context>

<pallas_src>
import jax
import jax.numpy as jnp
from jax.experimental import pallas as pl
from jax.experimental.pallas import tpu as pltpu

EPS = 1e-5
LANES = 128


def _round_up(x, m):
    return (x + m - 1) // m * m


def resblock_kernel(xpad_ref, w1_ref, g1_ref, b1_ref, w2_ref, g2_ref, b2_ref,
                    out_ref, y1pad_ref):
    # xpad_ref : (N, H+2, W+2, C)  spatially (+1 halo) and channel (->C) padded input
    # w1_ref   : (9*C, C)          conv1 weight, im2col rows in (ky, kx, cin) order
    # w2_ref   : (9*C, C)          conv2 weight
    # g*/b*    : (1, C)            BN gamma / beta (channel padding = 0)
    # out_ref  : (N, H, W, C)      lane-dense output (C multiple of 128)
    # y1pad_ref: (N, H+2, W+2, C)  VMEM scratch: padded conv2 input
    N, HP, WP, C = xpad_ref.shape
    H, W = HP - 2, WP - 2
    M = N * H * W

    def im2col(src_ref):
        # one (M, 9*C) patch tensor -> a single MXU matmul per conv
        cols = [src_ref[:, ky:ky + H, kx:kx + W, :].reshape(M, C)
                for ky in range(3) for kx in range(3)]
        return jnp.concatenate(cols, axis=-1)

    def batchnorm(acc, g_ref, b_ref):
        mean = jnp.mean(acc, axis=0, keepdims=True)
        var = jnp.mean((acc - mean) ** 2, axis=0, keepdims=True)
        return (acc - mean) * jax.lax.rsqrt(var + EPS) * g_ref[...] + b_ref[...]

    # ---- conv1: single im2col matmul  (M, 9C) @ (9C, C) ----
    patches1 = im2col(xpad_ref)
    acc1 = jnp.dot(patches1, w1_ref[...], preferred_element_type=jnp.float32)

    # identity residual = centre tap (ky=1, kx=1): aligned lane slice, no extra DMA
    residual = patches1[:, 4 * C:5 * C]

    # ---- BN1 (batch stats, biased variance) + ReLU ----
    y1 = jnp.maximum(batchnorm(acc1, g1_ref, b1_ref), 0.0)

    # ---- conv2 input: zero only the 1-wide halo, store interior once ----
    zrow = jnp.zeros((N, 1, WP, C), jnp.float32)
    y1pad_ref[:, 0:1, :, :] = zrow
    y1pad_ref[:, HP - 1:HP, :, :] = zrow
    zcol = jnp.zeros((N, HP, 1, C), jnp.float32)
    y1pad_ref[:, :, 0:1, :] = zcol
    y1pad_ref[:, :, WP - 1:WP, :] = zcol
    y1pad_ref[:, 1:H + 1, 1:W + 1, :] = y1.reshape(N, H, W, C)

    # ---- conv2: single im2col matmul ----
    patches2 = im2col(y1pad_ref)
    acc2 = jnp.dot(patches2, w2_ref[...], preferred_element_type=jnp.float32)

    # ---- BN2 + residual add + ReLU, lane-dense store ----
    y2 = batchnorm(acc2, g2_ref, b2_ref)
    out = jnp.maximum(y2 + residual, 0.0)
    out_ref[...] = out.reshape(N, H, W, C).astype(out_ref.dtype)


def residual_block_forward(x_nchw, params):
    """x_nchw: (N, C, H, W) float32. Returns (N, C, H, W)."""
    w1, g1, b1, w2, g2, b2 = params
    N, Cin, H, W = x_nchw.shape
    Cout = w1.shape[-1]
    assert Cin == Cout, "identity residual path requires Cin == Cout"
    C = _round_up(max(Cin, Cout), LANES)

    # NCHW -> NHWC, then one combined pad: +1 spatial halo and channel pad to C.
    x = jnp.transpose(x_nchw, (0, 2, 3, 1))
    x_pad = jnp.pad(x, ((0, 0), (1, 1), (1, 1), (0, C - Cin)))

    def pack_w(w):
        wp = jnp.pad(w, ((0, 0), (0, 0),
                         (0, C - w.shape[2]), (0, C - w.shape[3])))
        return wp.reshape(9 * C, C)          # rows in (ky, kx, cin) order

    def pack_v(v):
        return jnp.pad(v, (0, C - v.shape[0])).reshape(1, C)

    vmem = pl.BlockSpec(memory_space=pltpu.MemorySpace.VMEM)
    out = pl.pallas_call(
        resblock_kernel,
        out_shape=jax.ShapeDtypeStruct((N, H, W, C), x.dtype),
        in_specs=[vmem] * 7,
        out_specs=vmem,
        scratch_shapes=[pltpu.VMEM((N, H + 2, W + 2, C), jnp.float32)],
        compiler_params=pltpu.CompilerParams(
            vmem_limit_bytes=32 * 1024 * 1024),
    )(x_pad, pack_w(w1), pack_v(g1), pack_v(b1),
      pack_w(w2), pack_v(g2), pack_v(b2))

    # drop channel padding, NHWC -> NCHW
    return jnp.transpose(out[..., :Cout], (0, 3, 1, 2))


def reference_forward(x_nchw, params):
    """Pure-JAX reference (same semantics) for verification."""
    w1, g1, b1, w2, g2, b2 = params
    x = jnp.transpose(x_nchw, (0, 2, 3, 1))
    dn = ('NHWC', 'HWIO', 'NHWC')

    def bn(y, g, b):
        m = jnp.mean(y, axis=(0, 1, 2))
        v = jnp.mean((y - m) ** 2, axis=(0, 1, 2))
        return (y - m) * jax.lax.rsqrt(v + EPS) * g + b

    y = jax.lax.conv_general_dilated(x, w1, (1, 1), 'SAME', dimension_numbers=dn)
    y = jnp.maximum(bn(y, g1, b1), 0.0)
    y = jax.lax.conv_general_dilated(y, w2, (1, 1), 'SAME', dimension_numbers=dn)
    y = bn(y, g2, b2)
    y = jnp.maximum(y + x, 0.0)
    return jnp.transpose(y, (0, 3, 1, 2))


if __name__ == "__main__":
    N, C, H, W = 2, 4, 16, 16      # in_features = out_features = 4
    key = jax.random.PRNGKey(0)
    kx, k1, k2, kg1, kb1, kg2, kb2 = jax.random.split(key, 7)

    x = jax.random.normal(kx, (N, C, H, W), jnp.float32)

    # Deterministic synthetic parameters (conv weights HWIO, no bias; BN affine).
    w1 = jax.random.normal(k1, (3, 3, C, C), jnp.float32) * 0.1
    w2 = jax.random.normal(k2, (3, 3, C, C), jnp.float32) * 0.1
    g1 = 1.0 + 0.1 * jax.random.normal(kg1, (C,), jnp.float32)
    b1 = 0.1 * jax.random.normal(kb1, (C,), jnp.float32)
    g2 = 1.0 + 0.1 * jax.random.normal(kg2, (C,), jnp.float32)
    b2 = 0.1 * jax.random.normal(kb2, (C,), jnp.float32)
    params = (w1, g1, b1, w2, g2, b2)

    out = jax.block_until_ready(residual_block_forward(x, params))
    ref = jax.block_until_ready(reference_forward(x, params))

    assert out.shape == (N, C, H, W), out.shape
    assert jnp.allclose(out, ref, rtol=1e-3, atol=1e-3), float(jnp.max(jnp.abs(out - ref)))
    print("KERNEL_OK")
</pallas_src>

<mosaic_0001>
module attributes {stable_mosaic.version = 11 : i64} {
  func.func @resblock_kernel(%arg0: memref<2x18x18x128xf32, #tpu.memory_space<vmem>>, %arg1: memref<1152x128xf32, #tpu.memory_space<vmem>>, %arg2: memref<1x128xf32, #tpu.memory_space<vmem>>, %arg3: memref<1x128xf32, #tpu.memory_space<vmem>>, %arg4: memref<1152x128xf32, #tpu.memory_space<vmem>>, %arg5: memref<1x128xf32, #tpu.memory_space<vmem>>, %arg6: memref<1x128xf32, #tpu.memory_space<vmem>>, %arg7: memref<2x16x16x128xf32, #tpu.memory_space<vmem>>, %arg8: memref<2x18x18x128xf32, #tpu.memory_space<vmem>>) attributes {dimension_semantics = [], scalar_prefetch = 0 : i64, scratch_operands = 1 : i64, tpu.core_type = #tpu.core_type<tc>} {
    %c0 = arith.constant 0 : index
    %c0_0 = arith.constant 0 : index
    %c0_1 = arith.constant 0 : index
    %c0_2 = arith.constant 0 : index
    %0 = vector.load %arg0[%c0, %c0_0, %c0_1, %c0_2] : memref<2x18x18x128xf32, #tpu.memory_space<vmem>>, vector<2x16x16x128xf32>
    %1 = vector.shape_cast %0 : vector<2x16x16x128xf32> to vector<512x128xf32>
    %c0_3 = arith.constant 0 : index
    %c0_4 = arith.constant 0 : index
    %c1 = arith.constant 1 : index
    %c0_5 = arith.constant 0 : index
    %2 = vector.load %arg0[%c0_3, %c0_4, %c1, %c0_5] : memref<2x18x18x128xf32, #tpu.memory_space<vmem>>, vector<2x16x16x128xf32>
    %3 = vector.shape_cast %2 : vector<2x16x16x128xf32> to vector<512x128xf32>
    %c0_6 = arith.constant 0 : index
    %c0_7 = arith.constant 0 : index
    %c2 = arith.constant 2 : index
    %c0_8 = arith.constant 0 : index
    %4 = vector.load %arg0[%c0_6, %c0_7, %c2, %c0_8] : memref<2x18x18x128xf32, #tpu.memory_space<vmem>>, vector<2x16x16x128xf32>
    %5 = vector.shape_cast %4 : vector<2x16x16x128xf32> to vector<512x128xf32>
    %c0_9 = arith.constant 0 : index
    %c1_10 = arith.constant 1 : index
    %c0_11 = arith.constant 0 : index
    %c0_12 = arith.constant 0 : index
    %6 = vector.load %arg0[%c0_9, %c1_10, %c0_11, %c0_12] : memref<2x18x18x128xf32, #tpu.memory_space<vmem>>, vector<2x16x16x128xf32>
    %7 = vector.shape_cast %6 : vector<2x16x16x128xf32> to vector<512x128xf32>
    %c0_13 = arith.constant 0 : index
    %c1_14 = arith.constant 1 : index
    %c1_15 = arith.constant 1 : index
    %c0_16 = arith.constant 0 : index
    %8 = vector.load %arg0[%c0_13, %c1_14, %c1_15, %c0_16] : memref<2x18x18x128xf32, #tpu.memory_space<vmem>>, vector<2x16x16x128xf32>
    %9 = vector.shape_cast %8 : vector<2x16x16x128xf32> to vector<512x128xf32>
    %c0_17 = arith.constant 0 : index
    %c1_18 = arith.constant 1 : index
    %c2_19 = arith.constant 2 : index
    %c0_20 = arith.constant 0 : index
    %10 = vector.load %arg0[%c0_17, %c1_18, %c2_19, %c0_20] : memref<2x18x18x128xf32, #tpu.memory_space<vmem>>, vector<2x16x16x128xf32>
    %11 = vector.shape_cast %10 : vector<2x16x16x128xf32> to vector<512x128xf32>
    %c0_21 = arith.constant 0 : index
    %c2_22 = arith.constant 2 : index
    %c0_23 = arith.constant 0 : index
    %c0_24 = arith.constant 0 : index
    %12 = vector.load %arg0[%c0_21, %c2_22, %c0_23, %c0_24] : memref<2x18x18x128xf32, #tpu.memory_space<vmem>>, vector<2x16x16x128xf32>
    %13 = vector.shape_cast %12 : vector<2x16x16x128xf32> to vector<512x128xf32>
    %c0_25 = arith.constant 0 : index
    %c2_26 = arith.constant 2 : index
    %c1_27 = arith.constant 1 : index
    %c0_28 = arith.constant 0 : index
    %14 = vector.load %arg0[%c0_25, %c2_26, %c1_27, %c0_28] : memref<2x18x18x128xf32, #tpu.memory_space<vmem>>, vector<2x16x16x128xf32>
    %15 = vector.shape_cast %14 : vector<2x16x16x128xf32> to vector<512x128xf32>
    %c0_29 = arith.constant 0 : index
    %c2_30 = arith.constant 2 : index
    %c2_31 = arith.constant 2 : index
    %c0_32 = arith.constant 0 : index
    %16 = vector.load %arg0[%c0_29, %c2_30, %c2_31, %c0_32] : memref<2x18x18x128xf32, #tpu.memory_space<vmem>>, vector<2x16x16x128xf32>
    %17 = vector.shape_cast %16 : vector<2x16x16x128xf32> to vector<512x128xf32>
    %18 = tpu.concatenate %1, %3, %5, %7, %9, %11, %13, %15, %17 in 1 : vector<512x128xf32>, vector<512x128xf32>, vector<512x128xf32>, vector<512x128xf32>, vector<512x128xf32>, vector<512x128xf32>, vector<512x128xf32>, vector<512x128xf32>, vector<512x128xf32> -> vector<512x1152xf32>
    %c0_33 = arith.constant 0 : index
    %c0_34 = arith.constant 0 : index
    %19 = vector.load %arg1[%c0_33, %c0_34] : memref<1152x128xf32, #tpu.memory_space<vmem>>, vector<1152x128xf32>
    %cst = arith.constant dense<0.000000e+00> : vector<512x128xf32>
    %20 = tpu.matmul %18, %19, %cst {dimension_numbers = #tpu.dot_dimension_numbers<[1], [0], [0], [1], [0, 0, 1, 1], [], []>} : vector<512x1152xf32>, vector<1152x128xf32>, vector<512x128xf32> -> vector<512x128xf32>
    %21 = vector.extract_strided_slice %18 {offsets = [0, 512], sizes = [512, 128], strides = [1, 1]} : vector<512x1152xf32> to vector<512x128xf32>
    %cst_35 = arith.constant dense<0.000000e+00> : vector<128xf32>
    %22 = vector.multi_reduction <add>, %20, %cst_35 [0] : vector<512x128xf32> to vector<128xf32>
    %23 = vector.shape_cast %22 : vector<128xf32> to vector<1x128xf32>
    %cst_36 = arith.constant 5.120000e+02 : f32
    %24 = vector.broadcast %cst_36 : f32 to vector<1x128xf32>
    %25 = arith.divf %23, %24 : vector<1x128xf32>
    %26 = vector.broadcast %25 : vector<1x128xf32> to vector<512x128xf32>
    %27 = arith.subf %20, %26 : vector<512x128xf32>
    %28 = arith.mulf %27, %27 : vector<512x128xf32>
    %cst_37 = arith.constant dense<0.000000e+00> : vector<128xf32>
    %29 = vector.multi_reduction <add>, %28, %cst_37 [0] : vector<512x128xf32> to vector<128xf32>
    %30 = vector.shape_cast %29 : vector<128xf32> to vector<1x128xf32>
    %cst_38 = arith.constant 5.120000e+02 : f32
    %31 = vector.broadcast %cst_38 : f32 to vector<1x128xf32>
    %32 = arith.divf %30, %31 : vector<1x128xf32>
    %33 = vector.broadcast %25 : vector<1x128xf32> to vector<512x128xf32>
    %34 = arith.subf %20, %33 : vector<512x128xf32>
    %cst_39 = arith.constant 9.99999974E-6 : f32
    %35 = vector.broadcast %cst_39 : f32 to vector<1x128xf32>
    %36 = arith.addf %32, %35 : vector<1x128xf32>
    %37 = math.rsqrt %36 : vector<1x128xf32>
    %38 = vector.broadcast %37 : vector<1x128xf32> to vector<512x128xf32>
    %39 = arith.mulf %34, %38 : vector<512x128xf32>
    %c0_40 = arith.constant 0 : index
    %c0_41 = arith.constant 0 : index
    %40 = vector.load %arg2[%c0_40, %c0_41] : memref<1x128xf32, #tpu.memory_space<vmem>>, vector<1x128xf32>
    %41 = vector.broadcast %40 : vector<1x128xf32> to vector<512x128xf32>
    %42 = arith.mulf %39, %41 : vector<512x128xf32>
    %c0_42 = arith.constant 0 : index
    %c0_43 = arith.constant 0 : index
    %43 = vector.load %arg3[%c0_42, %c0_43] : memref<1x128xf32, #tpu.memory_space<vmem>>, vector<1x128xf32>
    %44 = vector.broadcast %43 : vector<1x128xf32> to vector<512x128xf32>
    %45 = arith.addf %42, %44 : vector<512x128xf32>
    %cst_44 = arith.constant 0.000000e+00 : f32
    %46 = vector.broadcast %cst_44 : f32 to vector<512x128xf32>
    %47 = arith.maximumf %45, %46 : vector<512x128xf32>
    %cst_45 = arith.constant 0.000000e+00 : f32
    %48 = vector.broadcast %cst_45 : f32 to vector<2x1x18x128xf32>
    %c0_46 = arith.constant 0 : index
    %c0_47 = arith.constant 0 : index
    %c0_48 = arith.constant 0 : index
    %c0_49 = arith.constant 0 : index
    %49 = vector.load %arg8[%c0_46, %c0_47, %c0_48, %c0_49] : memref<2x18x18x128xf32, #tpu.memory_space<vmem>>, vector<2x1x18x128xf32>
    tpu.vector_store %arg8[%c0_46, %c0_47, %c0_48, %c0_49], %48 {strides = array<i32>} : memref<2x18x18x128xf32, #tpu.memory_space<vmem>>, vector<2x1x18x128xf32>,
    %c0_50 = arith.constant 0 : index
    %c17 = arith.constant 17 : index
    %c0_51 = arith.constant 0 : index
    %c0_52 = arith.constant 0 : index
    %50 = vector.load %arg8[%c0_50, %c17, %c0_51, %c0_52] : memref<2x18x18x128xf32, #tpu.memory_space<vmem>>, vector<2x1x18x128xf32>
    tpu.vector_store %arg8[%c0_50, %c17, %c0_51, %c0_52], %48 {strides = array<i32>} : memref<2x18x18x128xf32, #tpu.memory_space<vmem>>, vector<2x1x18x128xf32>,
    %cst_53 = arith.constant 0.000000e+00 : f32
    %51 = vector.broadcast %cst_53 : f32 to vector<2x18x1x128xf32>
    %c0_54 = arith.constant 0 : index
    %c0_55 = arith.constant 0 : index
    %c0_56 = arith.constant 0 : index
    %c0_57 = arith.constant 0 : index
    %52 = vector.load %arg8[%c0_54, %c0_55, %c0_56, %c0_57] : memref<2x18x18x128xf32, #tpu.memory_space<vmem>>, vector<2x18x1x128xf32>
    tpu.vector_store %arg8[%c0_54, %c0_55, %c0_56, %c0_57], %51 {strides = array<i32>} : memref<2x18x18x128xf32, #tpu.memory_space<vmem>>, vector<2x18x1x128xf32>,
    %c0_58 = arith.constant 0 : index
    %c0_59 = arith.constant 0 : index
    %c17_60 = arith.constant 17 : index
    %c0_61 = arith.constant 0 : index
    %53 = vector.load %arg8[%c0_58, %c0_59, %c17_60, %c0_61] : memref<2x18x18x128xf32, #tpu.memory_space<vmem>>, vector<2x18x1x128xf32>
    tpu.vector_store %arg8[%c0_58, %c0_59, %c17_60, %c0_61], %51 {strides = array<i32>} : memref<2x18x18x128xf32, #tpu.memory_space<vmem>>, vector<2x18x1x128xf32>,
    %54 = vector.shape_cast %47 : vector<512x128xf32> to vector<2x16x16x128xf32>
    %c0_62 = arith.constant 0 : index
    %c1_63 = arith.constant 1 : index
    %c1_64 = arith.constant 1 : index
    %c0_65 = arith.constant 0 : index
    %55 = vector.load %arg8[%c0_62, %c1_63, %c1_64, %c0_65] : memref<2x18x18x128xf32, #tpu.memory_space<vmem>>, vector<2x16x16x128xf32>
    tpu.vector_store %arg8[%c0_62, %c1_63, %c1_64, %c0_65], %54 {strides = array<i32>} : memref<2x18x18x128xf32, #tpu.memory_space<vmem>>, vector<2x16x16x128xf32>,
    %c0_66 = arith.constant 0 : index
    %c0_67 = arith.constant 0 : index
    %c0_68 = arith.constant 0 : index
    %c0_69 = arith.constant 0 : index
    %56 = vector.load %arg8[%c0_66, %c0_67, %c0_68, %c0_69] : memref<2x18x18x128xf32, #tpu.memory_space<vmem>>, vector<2x16x16x128xf32>
    %57 = vector.shape_cast %56 : vector<2x16x16x128xf32> to vector<512x128xf32>
    %c0_70 = arith.constant 0 : index
    %c0_71 = arith.constant 0 : index
    %c1_72 = arith.constant 1 : index
    %c0_73 = arith.constant 0 : index
    %58 = vector.load %arg8[%c0_70, %c0_71, %c1_72, %c0_73] : memref<2x18x18x128xf32, #tpu.memory_space<vmem>>, vector<2x16x16x128xf32>
    %59 = vector.shape_cast %58 : vector<2x16x16x128xf32> to vector<512x128xf32>
    %c0_74 = arith.constant 0 : index
    %c0_75 = arith.constant 0 : index
    %c2_76 = arith.constant 2 : index
    %c0_77 = arith.constant 0 : index
    %60 = vector.load %arg8[%c0_74, %c0_75, %c2_76, %c0_77] : memref<2x18x18x128xf32, #tpu.memory_space<vmem>>, vector<2x16x16x128xf32>
    %61 = vector.shape_cast %60 : vector<2x16x16x128xf32> to vector<512x128xf32>
    %c0_78 = arith.constant 0 : index
    %c1_79 = arith.constant 1 : index
    %c0_80 = arith.constant 0 : index
    %c0_81 = arith.constant 0 : index
    %62 = vector.load %arg8[%c0_78, %c1_79, %c0_80, %c0_81] : memref<2x18x18x128xf32, #tpu.memory_space<vmem>>, vector<2x16x16x128xf32>
    %63 = vector.shape_cast %62 : vector<2x16x16x128xf32> to vector<512x128xf32>
    %c0_82 = arith.constant 0 : index
    %c1_83 = arith.constant 1 : index
    %c1_84 = arith.constant 1 : index
    %c0_85 = arith.constant 0 : index
    %64 = vector.load %arg8[%c0_82, %c1_83, %c1_84, %c0_85] : memref<2x18x18x128xf32, #tpu.memory_space<vmem>>, vector<2x16x16x128xf32>
    %65 = vector.shape_cast %64 : vector<2x16x16x128xf32> to vector<512x128xf32>
    %c0_86 = arith.constant 0 : index
    %c1_87 = arith.constant 1 : index
    %c2_88 = arith.constant 2 : index
    %c0_89 = arith.constant 0 : index
    %66 = vector.load %arg8[%c0_86, %c1_87, %c2_88, %c0_89] : memref<2x18x18x128xf32, #tpu.memory_space<vmem>>, vector<2x16x16x128xf32>
    %67 = vector.shape_cast %66 : vector<2x16x16x128xf32> to vector<512x128xf32>
    %c0_90 = arith.constant 0 : index
    %c2_91 = arith.constant 2 : index
    %c0_92 = arith.constant 0 : index
    %c0_93 = arith.constant 0 : index
    %68 = vector.load %arg8[%c0_90, %c2_91, %c0_92, %c0_93] : memref<2x18x18x128xf32, #tpu.memory_space<vmem>>, vector<2x16x16x128xf32>
    %69 = vector.shape_cast %68 : vector<2x16x16x128xf32> to vector<512x128xf32>
    %c0_94 = arith.constant 0 : index
    %c2_95 = arith.constant 2 : index
    %c1_96 = arith.constant 1 : index
    %c0_97 = arith.constant 0 : index
    %70 = vector.load %arg8[%c0_94, %c2_95, %c1_96, %c0_97] : memref<2x18x18x128xf32, #tpu.memory_space<vmem>>, vector<2x16x16x128xf32>
    %71 = vector.shape_cast %70 : vector<2x16x16x128xf32> to vector<512x128xf32>
    %c0_98 = arith.constant 0 : index
    %c2_99 = arith.constant 2 : index
    %c2_100 = arith.constant 2 : index
    %c0_101 = arith.constant 0 : index
    %72 = vector.load %arg8[%c0_98, %c2_99, %c2_100, %c0_101] : memref<2x18x18x128xf32, #tpu.memory_space<vmem>>, vector<2x16x16x128xf32>
    %73 = vector.shape_cast %72 : vector<2x16x16x128xf32> to vector<512x128xf32>
    %74 = tpu.concatenate %57, %59, %61, %63, %65, %67, %69, %71, %73 in 1 : vector<512x128xf32>, vector<512x128xf32>, vector<512x128xf32>, vector<512x128xf32>, vector<512x128xf32>, vector<512x128xf32>, vector<512x128xf32>, vector<512x128xf32>, vector<512x128xf32> -> vector<512x1152xf32>
    %c0_102 = arith.constant 0 : index
    %c0_103 = arith.constant 0 : index
    %75 = vector.load %arg4[%c0_102, %c0_103] : memref<1152x128xf32, #tpu.memory_space<vmem>>, vector<1152x128xf32>
    %cst_104 = arith.constant dense<0.000000e+00> : vector<512x128xf32>
    %76 = tpu.matmul %74, %75, %cst_104 {dimension_numbers = #tpu.dot_dimension_numbers<[1], [0], [0], [1], [0, 0, 1, 1], [], []>} : vector<512x1152xf32>, vector<1152x128xf32>, vector<512x128xf32> -> vector<512x128xf32>
    %cst_105 = arith.constant dense<0.000000e+00> : vector<128xf32>
    %77 = vector.multi_reduction <add>, %76, %cst_105 [0] : vector<512x128xf32> to vector<128xf32>
    %78 = vector.shape_cast %77 : vector<128xf32> to vector<1x128xf32>
    %cst_106 = arith.constant 5.120000e+02 : f32
    %79 = vector.broadcast %cst_106 : f32 to vector<1x128xf32>
    %80 = arith.divf %78, %79 : vector<1x128xf32>
    %81 = vector.broadcast %80 : vector<1x128xf32> to vector<512x128xf32>
    %82 = arith.subf %76, %81 : vector<512x128xf32>
    %83 = arith.mulf %82, %82 : vector<512x128xf32>
    %cst_107 = arith.constant dense<0.000000e+00> : vector<128xf32>
    %84 = vector.multi_reduction <add>, %83, %cst_107 [0] : vector<512x128xf32> to vector<128xf32>
    %85 = vector.shape_cast %84 : vector<128xf32> to vector<1x128xf32>
    %cst_108 = arith.constant 5.120000e+02 : f32
    %86 = vector.broadcast %cst_108 : f32 to vector<1x128xf32>
    %87 = arith.divf %85, %86 : vector<1x128xf32>
    %88 = vector.broadcast %80 : vector<1x128xf32> to vector<512x128xf32>
    %89 = arith.subf %76, %88 : vector<512x128xf32>
    %cst_109 = arith.constant 9.99999974E-6 : f32
    %90 = vector.broadcast %cst_109 : f32 to vector<1x128xf32>
    %91 = arith.addf %87, %90 : vector<1x128xf32>
    %92 = math.rsqrt %91 : vector<1x128xf32>
    %93 = vector.broadcast %92 : vector<1x128xf32> to vector<512x128xf32>
    %94 = arith.mulf %89, %93 : vector<512x128xf32>
    %c0_110 = arith.constant 0 : index
    %c0_111 = arith.constant 0 : index
    %95 = vector.load %arg5[%c0_110, %c0_111] : memref<1x128xf32, #tpu.memory_space<vmem>>, vector<1x128xf32>
    %96 = vector.broadcast %95 : vector<1x128xf32> to vector<512x128xf32>
    %97 = arith.mulf %94, %96 : vector<512x128xf32>
    %c0_112 = arith.constant 0 : index
    %c0_113 = arith.constant 0 : index
    %98 = vector.load %arg6[%c0_112, %c0_113] : memref<1x128xf32, #tpu.memory_space<vmem>>, vector<1x128xf32>
    %99 = vector.broadcast %98 : vector<1x128xf32> to vector<512x128xf32>
    %100 = arith.addf %97, %99 : vector<512x128xf32>
    %101 = arith.addf %100, %21 : vector<512x128xf32>
    %cst_114 = arith.constant 0.000000e+00 : f32
    %102 = vector.broadcast %cst_114 : f32 to vector<512x128xf32>
    %103 = arith.maximumf %101, %102 : vector<512x128xf32>
    %104 = vector.shape_cast %103 : vector<512x128xf32> to vector<2x16x16x128xf32>
    %c0_115 = arith.constant 0 : index
    %c0_116 = arith.constant 0 : index
    %c0_117 = arith.constant 0 : index
    %c0_118 = arith.constant 0 : index
    %105 = vector.load %arg7[%c0_115, %c0_116, %c0_117, %c0_118] : memref<2x16x16x128xf32, #tpu.memory_space<vmem>>, vector<2x16x16x128xf32>
    tpu.vector_store %arg7[%c0_115, %c0_116, %c0_117, %c0_118], %104 {strides = array<i32>} : memref<2x16x16x128xf32, #tpu.memory_space<vmem>>, vector<2x16x16x128xf32>,
    return
  }
}

</mosaic_0001>

<bundles_post_ra>
// kernel: tpu_custom_call.1
= control target key start
LH: loop header
LB: loop body
LE: loop exit
PB: predicated region body
PF: predicated region fallthrough
CT: control target
= control target key end

     0   :  { %12 = vsyncpa [#allocation4], 0  ;;  %s13909_s0 = inlined_call_operand.vmem [shape: f32[2,18,18,128], index: 0, kind: input, shape index: {}]   ;;  %s13910_s1 = inlined_call_operand.vmem [shape: f32[1152,128], index: 1, kind: input, shape index: {}]   ;;  %s13911_s2 = inlined_call_operand.vmem [shape: f32[1,128], index: 2, kind: input, shape index: {}]   ;;  %s13912_s3 = inlined_call_operand.vmem [shape: f32[1,128], index: 3, kind: input, shape index: {}]   ;;  %s13913_s4 = inlined_call_operand.hbm [shape: f32[1152,128], index: 4, kind: input, shape index: {}]   ;;  %s13914_s5 = inlined_call_operand.vmem [shape: f32[1,128], index: 5, kind: input, shape index: {}]   ;;  %s13915_s6 = inlined_call_operand.vmem [shape: f32[1,128], index: 6, kind: input, shape index: {}]   ;;  %s13916_s7 = inlined_call_operand.hbm [shape: f32[2,16,16,128], index: 7, kind: output, shape index: {}]  }
   0x1   :  { %13 = vsyncpa [#allocation5], 0  ;;  %s7637_s24 = smov [#allocation3]  }
   0x2   :  { %s27_s25 = sshll.u32 %s7637_s24, 4  ;;  %s28_s25 = int_to_ptr.vmem [resolvable:$true] %s27_s25 }
   0x3   :  { %s7601_s26 = scalar_lea.vmem %s28_s25, 18432  ;;  %p7606_p1 = scmp.lt.s32.totalorder %s28_s25, %s28_s25 }
   0x4   :  { %p7602_p0 = scmp.ne.s32.totalorder %s28_s25, %s7601_s26  ;;  %p7607_p2 = scmp.lt.s32.totalorder %s7601_s26, %s7601_s26 }
   0x6   :  { %p7608_p3 = por %p7607_p2, %p7606_p1 }
   0x8   :  { %p7609_p4 = pnand %p7608_p3, %p7602_p0 }
   0xa   :  { %7612 = shalt.err (!%p7609_p4)
}
   0xb   :  { %s7638_s27 = smov 128   ;;  %s7639_s28 = smov 8  }
   0xc   :  { %33 = dma.hbm_to_vmem [thread:$0]  %s13913_s4, 18432, %s28_s25, [#allocation4], %s7638_s27, %s7638_s27, %s7639_s28  }
   0xd   :  { %7633 = dma.done.wait [#allocation4], 18432  }
   0xe   :  { %7634 = vsyncadd [#allocation4], 4294948864  ;;  %v7640_v0 = vmov 0.0   ;;  %v634_v1 = vld [vmem:[%s13910_s1 + $0x78] sm:$0xff]  ;;  %v633_v3 = vld [vmem:[%s13910_s1 + $0x70] sm:$0xff] }
   0xf   :  { %763 = vmatprep.subr.mxu0 %v7640_v0  ;;  %3229 = vst [vmem:[#allocation2] sm:$0xff] %v7640_v0  ;;  %3230 = vst [vmem:[#allocation2 + $0x8] sm:$0xff] %v7640_v0  ;;  %1148 = vmatprep.subr.mxu1 %v7640_v0  ;;  %v666_v2 = vld [vmem:[%s13910_s1 + $0x178] sm:$0xff]  ;;  %v665_v4 = vld [vmem:[%s13910_s1 + $0x170] sm:$0xff] }
  0x10   :  { %3231 = vst [vmem:[#allocation2 + $0x10] sm:$0x3] %v7640_v0  ;;  %3232 = vst [vmem:[#allocation2 + $0x1b0] sm:$0xff] %v7640_v0  ;;  %764 = vmatpush1.msra.mxu0 %v634_v1  ;;  %1149 = vmatpush1.msra.mxu1 %v666_v2  ;;  %v632_v5 = vld [vmem:[%s13910_s1 + $0x68] sm:$0xff]  ;;  %v631_v7 = vld [vmem:[%s13910_s1 + $0x60] sm:$0xff] }
  0x11   :  { %3233 = vst [vmem:[#allocation2 + $0x1b8] sm:$0xff] %v7640_v0  ;;  %3234 = vst [vmem:[#allocation2 + $0x1c0] sm:$0x3] %v7640_v0  ;;  %765 = vmatprep.subr.mxu0 %v7640_v0  ;;  %1150 = vmatprep.subr.mxu1 %v7640_v0  ;;  %v664_v6 = vld [vmem:[%s13910_s1 + $0x168] sm:$0xff]  ;;  %v663_v8 = vld [vmem:[%s13910_s1 + $0x160] sm:$0xff] }
  0x12   :  { %3236 = vst [vmem:[#allocation2 + $0x198] sm:$0xff] %v7640_v0  ;;  %3237 = vst [vmem:[#allocation2 + $0x1a0] sm:$0xff] %v7640_v0  ;;  %766 = vmatpush1.msra.mxu0 %v633_v3  ;;  %1151 = vmatpush1.msra.mxu1 %v665_v4  ;;  %v630_v9 = vld [vmem:[%s13910_s1 + $0x58] sm:$0xff]  ;;  %v629_v11 = vld [vmem:[%s13910_s1 + $0x50] sm:$0xff] }
  0x13   :  { %3238 = vst [vmem:[#allocation2 + $0x1a8] sm:$0x3] %v7640_v0  ;;  %3239 = vst [vmem:[#allocation2 + $0x348] sm:$0xff] %v7640_v0  ;;  %767 = vmatprep.subr.mxu0 %v7640_v0  ;;  %1152 = vmatprep.subr.mxu1 %v7640_v0  ;;  %v662_v10 = vld [vmem:[%s13910_s1 + $0x158] sm:$0xff]  ;;  %v661_v12 = vld [vmem:[%s13910_s1 + $0x150] sm:$0xff] }
  0x14   :  { %3240 = vst [vmem:[#allocation2 + $0x350] sm:$0xff] %v7640_v0  ;;  %3241 = vst [vmem:[#allocation2 + $0x358] sm:$0x3] %v7640_v0  ;;  %768 = vmatpush1.msra.mxu0 %v632_v5  ;;  %1153 = vmatpush1.msra.mxu1 %v664_v6  ;;  %v628_v13 = vld [vmem:[%s13910_s1 + $0x48] sm:$0xff]  ;;  %v627_v15 = vld [vmem:[%s13910_s1 + $0x40] sm:$0xff] }
  0x15   :  { %3243 = vst [vmem:[#allocation2 + $0x18] sm:$0x1] %v7640_v0  ;;  %3244 = vst [vmem:[#allocation2 + $0x30] sm:$0x1] %v7640_v0  ;;  %769 = vmatprep.subr.mxu0 %v7640_v0  ;;  %1154 = vmatprep.subr.mxu1 %v7640_v0  ;;  %v660_v14 = vld [vmem:[%s13910_s1 + $0x148] sm:$0xff]  ;;  %v659_v16 = vld [vmem:[%s13910_s1 + $0x140] sm:$0xff] }
  0x16   :  { %3245 = vst [vmem:[#allocation2 + $0x48] sm:$0x1] %v7640_v0  ;;  %3246 = vst [vmem:[#allocation2 + $0x60] sm:$0x1] %v7640_v0  ;;  %770 = vmatpush1.msra.mxu0 %v631_v7  ;;  %1155 = vmatpush1.msra.mxu1 %v663_v8  ;;  %v626_v17 = vld [vmem:[%s13910_s1 + $0x38] sm:$0xff]  ;;  %v625_v19 = vld [vmem:[%s13910_s1 + $0x30] sm:$0xff] }
  0x17   :  { %3247 = vst [vmem:[#allocation2 + $0x78] sm:$0x1] %v7640_v0  ;;  %3248 = vst [vmem:[#allocation2 + $0x90] sm:$0x1] %v7640_v0  ;;  %771 = vmatprep.subr.mxu0 %v7640_v0  ;;  %1156 = vmatprep.subr.mxu1 %v7640_v0  ;;  %v658_v18 = vld [vmem:[%s13910_s1 + $0x138] sm:$0xff]  ;;  %v657_v20 = vld [vmem:[%s13910_s1 + $0x130] sm:$0xff] }
  0x18   :  { %3249 = vst [vmem:[#allocation2 + $0xa8] sm:$0x1] %v7640_v0  ;;  %3250 = vst [vmem:[#allocation2 + $0xc0] sm:$0x1] %v7640_v0  ;;  %772 = vmatpush1.msra.mxu0 %v630_v9  ;;  %1157 = vmatpush1.msra.mxu1 %v662_v10  ;;  %v624_v21 = vld [vmem:[%s13910_s1 + $0x28] sm:$0xff]  ;;  %v623_v23 = vld [vmem:[%s13910_s1 + $0x20] sm:$0xff] }
  0x19   :  { %3251 = vst [vmem:[#allocation2 + $0xd8] sm:$0x1] %v7640_v0  ;;  %3252 = vst [vmem:[#allocation2 + $0xf0] sm:$0x1] %v7640_v0  ;;  %773 = vmatprep.subr.mxu0 %v7640_v0  ;;  %1158 = vmatprep.subr.mxu1 %v7640_v0  ;;  %v656_v22 = vld [vmem:[%s13910_s1 + $0x128] sm:$0xff]  ;;  %v655_v24 = vld [vmem:[%s13910_s1 + $0x120] sm:$0xff] }
  0x1a   :  { %3253 = vst [vmem:[#allocation2 + $0x108] sm:$0x1] %v7640_v0  ;;  %3254 = vst [vmem:[#allocation2 + $0x120] sm:$0x1] %v7640_v0  ;;  %774 = vmatpush1.msra.mxu0 %v629_v11  ;;  %1159 = vmatpush1.msra.mxu1 %v661_v12  ;;  %v622_v25 = vld [vmem:[%s13910_s1 + $0x18] sm:$0xff]  ;;  %v621_v27 = vld [vmem:[%s13910_s1 + $0x10] sm:$0xff] }
  0x1b   :  { %3255 = vst [vmem:[#allocation2 + $0x138] sm:$0x1] %v7640_v0  ;;  %3256 = vst [vmem:[#allocation2 + $0x150] sm:$0x1] %v7640_v0  ;;  %775 = vmatprep.subr.mxu0 %v7640_v0  ;;  %1160 = vmatprep.subr.mxu1 %v7640_v0  ;;  %v654_v26 = vld [vmem:[%s13910_s1 + $0x118] sm:$0xff]  ;;  %v653_v28 = vld [vmem:[%s13910_s1 + $0x110] sm:$0xff] }
  0x1c   :  { %3257 = vst [vmem:[#allocation2 + $0x168] sm:$0x1] %v7640_v0  ;;  %3258 = vst [vmem:[#allocation2 + $0x180] sm:$0x1] %v7640_v0  ;;  %776 = vmatpush1.msra.mxu0 %v628_v13  ;;  %1161 = vmatpush1.msra.mxu1 %v660_v14  ;;  %v620_v29 = vld [vmem:[%s13910_s1 + $0x8] sm:$0xff]  ;;  %v619_v31 = vld [vmem:[%s13910_s1] sm:$0xff] }
  0x1d   :  { %3261 = vst [vmem:[#allocation2 + $0x1c8] sm:$0x1] %v7640_v0  ;;  %3262 = vst [vmem:[#allocation2 + $0x1e0] sm:$0x1] %v7640_v0  ;;  %777 = vmatprep.subr.mxu0 %v7640_v0  ;;  %1162 = vmatprep.subr.mxu1 %v7640_v0  ;;  %v652_v30 = vld [vmem:[%s13910_s1 + $0x108] sm:$0xff]  ;;  %v651_v32 = vld [vmem:[%s13910_s1 + $0x100] sm:$0xff] }
  0x1e   :  { %3263 = vst [vmem:[#allocation2 + $0x1f8] sm:$0x1] %v7640_v0  ;;  %3264 = vst [vmem:[#allocation2 + $0x210] sm:$0x1] %v7640_v0  ;;  %778 = vmatpush1.msra.mxu0 %v627_v15  ;;  %1163 = vmatpush1.msra.mxu1 %v659_v16  ;;  %v650_v33 = vld [vmem:[%s13910_s1 + $0xf8] sm:$0xff]  ;;  %v649_v35 = vld [vmem:[%s13910_s1 + $0xf0] sm:$0xff] }
  0x1f   :  { %3265 = vst [vmem:[#allocation2 + $0x228] sm:$0x1] %v7640_v0  ;;  %3266 = vst [vmem:[#allocation2 + $0x240] sm:$0x1] %v7640_v0  ;;  %779 = vmatprep.subr.mxu0 %v7640_v0  ;;  %1164 = vmatprep.subr.mxu1 %v7640_v0  ;;  %v682_v34 = vld [vmem:[%s13910_s1 + $0x1f8] sm:$0xff]  ;;  %v681_v36 = vld [vmem:[%s13910_s1 + $0x1f0] sm:$0xff] }
  0x20   :  { %3267 = vst [vmem:[#allocation2 + $0x258] sm:$0x1] %v7640_v0  ;;  %3268 = vst [vmem:[#allocation2 + $0x270] sm:$0x1] %v7640_v0  ;;  %780 = vmatpush1.msra.mxu0 %v626_v17  ;;  %1165 = vmatpush1.msra.mxu1 %v658_v18  ;;  %v648_v37 = vld [vmem:[%s13910_s1 + $0xe8] sm:$0xff]  ;;  %v647_v39 = vld [vmem:[%s13910_s1 + $0xe0] sm:$0xff] }
  0x21   :  { %3269 = vst [vmem:[#allocation2 + $0x288] sm:$0x1] %v7640_v0  ;;  %3270 = vst [vmem:[#allocation2 + $0x2a0] sm:$0x1] %v7640_v0  ;;  %781 = vmatprep.subr.mxu0 %v7640_v0  ;;  %1166 = vmatprep.subr.mxu1 %v7640_v0  ;;  %v680_v38 = vld [vmem:[%s13910_s1 + $0x1e8] sm:$0xff]  ;;  %v679_v40 = vld [vmem:[%s13910_s1 + $0x1e0] sm:$0xff] }
  0x22   :  { %3271 = vst [vmem:[#allocation2 + $0x2b8] sm:$0x1] %v7640_v0  ;;  %3272 = vst [vmem:[#allocation2 + $0x2d0] sm:$0x1] %v7640_v0  ;;  %782 = vmatpush1.msra.mxu0 %v625_v19  ;;  %1167 = vmatpush1.msra.mxu1 %v657_v20  ;;  %v646_v41 = vld [vmem:[%s13910_s1 + $0xd8] sm:$0xff]  ;;  %v645_v43 = vld [vmem:[%s13910_s1 + $0xd0] sm:$0xff] }
  0x23   :  { %3273 = vst [vmem:[#allocation2 + $0x2e8] sm:$0x1] %v7640_v0  ;;  %3274 = vst [vmem:[#allocation2 + $0x300] sm:$0x1] %v7640_v0  ;;  %783 = vmatprep.subr.mxu0 %v7640_v0  ;;  %1168 = vmatprep.subr.mxu1 %v7640_v0  ;;  %v678_v42 = vld [vmem:[%s13910_s1 + $0x1d8] sm:$0xff]  ;;  %v677_v44 = vld [vmem:[%s13910_s1 + $0x1d0] sm:$0xff] }
  0x24   :  { %3275 = vst [vmem:[#allocation2 + $0x318] sm:$0x1] %v7640_v0  ;;  %3276 = vst [vmem:[#allocation2 + $0x330] sm:$0x1] %v7640_v0  ;;  %784 = vmatpush1.msra.mxu0 %v624_v21  ;;  %1169 = vmatpush1.msra.mxu1 %v656_v22  ;;  %v644_v45 = vld [vmem:[%s13910_s1 + $0xc8] sm:$0xff]  ;;  %v643_v47 = vld [vmem:[%s13910_s1 + $0xc0] sm:$0xff] }
  0x25   :  { %3279 = vst [vmem:[#allocation2 + $0x29] sm:$0x1] %v7640_v0  ;;  %3280 = vst [vmem:[#allocation2 + $0x41] sm:$0x1] %v7640_v0  ;;  %785 = vmatprep.subr.mxu0 %v7640_v0  ;;  %1170 = vmatprep.subr.mxu1 %v7640_v0  ;;  %v676_v46 = vld [vmem:[%s13910_s1 + $0x1c8] sm:$0xff]  ;;  %v675_v48 = vld [vmem:[%s13910_s1 + $0x1c0] sm:$0xff] }
  0x26   :  { %3281 = vst [vmem:[#allocation2 + $0x59] sm:$0x1] %v7640_v0  ;;  %3282 = vst [vmem:[#allocation2 + $0x71] sm:$0x1] %v7640_v0  ;;  %786 = vmatpush1.msra.mxu0 %v623_v23  ;;  %1171 = vmatpush1.msra.mxu1 %v655_v24  ;;  %v642_v49 = vld [vmem:[%s13910_s1 + $0xb8] sm:$0xff]  ;;  %v641_v51 = vld [vmem:[%s13910_s1 + $0xb0] sm:$0xff] }
  0x27   :  { %3283 = vst [vmem:[#allocation2 + $0x89] sm:$0x1] %v7640_v0  ;;  %3284 = vst [vmem:[#allocation2 + $0xa1] sm:$0x1] %v7640_v0  ;;  %787 = vmatprep.subr.mxu0 %v7640_v0  ;;  %1172 = vmatprep.subr.mxu1 %v7640_v0  ;;  %v674_v50 = vld [vmem:[%s13910_s1 + $0x1b8] sm:$0xff]  ;;  %v673_v52 = vld [vmem:[%s13910_s1 + $0x1b0] sm:$0xff] }
  0x28   :  { %3285 = vst [vmem:[#allocation2 + $0xb9] sm:$0x1] %v7640_v0  ;;  %3286 = vst [vmem:[#allocation2 + $0xd1] sm:$0x1] %v7640_v0  ;;  %788 = vmatpush1.msra.mxu0 %v622_v25  ;;  %1173 = vmatpush1.msra.mxu1 %v654_v26  ;;  %v640_v53 = vld [vmem:[%s13910_s1 + $0xa8] sm:$0xff]  ;;  %v639_v55 = vld [vmem:[%s13910_s1 + $0xa0] sm:$0xff] }
  0x29   :  { %3287 = vst [vmem:[#allocation2 + $0xe9] sm:$0x1] %v7640_v0  ;;  %3288 = vst [vmem:[#allocation2 + $0x101] sm:$0x1] %v7640_v0  ;;  %789 = vmatprep.subr.mxu0 %v7640_v0  ;;  %1174 = vmatprep.subr.mxu1 %v7640_v0  ;;  %v672_v54 = vld [vmem:[%s13910_s1 + $0x1a8] sm:$0xff]  ;;  %v671_v56 = vld [vmem:[%s13910_s1 + $0x1a0] sm:$0xff] }
  0x2a   :  { %3289 = vst [vmem:[#allocation2 + $0x119] sm:$0x1] %v7640_v0  ;;  %3290 = vst [vmem:[#allocation2 + $0x131] sm:$0x1] %v7640_v0  ;;  %790 = vmatpush1.msra.mxu0 %v621_v27  ;;  %1175 = vmatpush1.msra.mxu1 %v653_v28  ;;  %v638_v57 = vld [vmem:[%s13910_s1 + $0x98] sm:$0xff]  ;;  %v637_v59 = vld [vmem:[%s13910_s1 + $0x90] sm:$0xff] }
  0x2b   :  { %3291 = vst [vmem:[#allocation2 + $0x149] sm:$0x1] %v7640_v0  ;;  %3292 = vst [vmem:[#allocation2 + $0x161] sm:$0x1] %v7640_v0  ;;  %791 = vmatprep.subr.mxu0 %v7640_v0  ;;  %1176 = vmatprep.subr.mxu1 %v7640_v0  ;;  %v670_v58 = vld [vmem:[%s13910_s1 + $0x198] sm:$0xff]  ;;  %v669_v60 = vld [vmem:[%s13910_s1 + $0x190] sm:$0xff] }
  0x2c   :  { %3293 = vst [vmem:[#allocation2 + $0x179] sm:$0x1] %v7640_v0  ;;  %3294 = vst [vmem:[#allocation2 + $0x191] sm:$0x1] %v7640_v0  ;;  %792 = vmatpush1.msra.mxu0 %v620_v29  ;;  %1177 = vmatpush1.msra.mxu1 %v652_v30  ;;  %v636_v61 = vld [vmem:[%s13910_s1 + $0x88] sm:$0xff]  ;;  %v635_v1 = vld [vmem:[%s13910_s1 + $0x80] sm:$0xff] }
  0x2d   :  { %3297 = vst [vmem:[#allocation2 + $0x1d9] sm:$0x1] %v7640_v0  ;;  %3298 = vst [vmem:[#allocation2 + $0x1f1] sm:$0x1] %v7640_v0  ;;  %793 = vmatprep.subr.mxu0 %v7640_v0  ;;  %1178 = vmatprep.subr.mxu1 %v7640_v0  ;;  %v668_v62 = vld [vmem:[%s13910_s1 + $0x188] sm:$0xff]  ;;  %v41_v2 = vld [vmem:[%s13909_s0] sm:$0xff] }
  0x2e   :  { %3299 = vst [vmem:[#allocation2 + $0x209] sm:$0x1] %v7640_v0  ;;  %3300 = vst [vmem:[#allocation2 + $0x221] sm:$0x1] %v7640_v0  ;;  %794 = vmatpush1.msra.mxu0 %v619_v31  ;;  %1179 = vmatpush1.msra.mxu1 %v651_v32  ;;  %v105_v63 = vld [vmem:[%s13909_s0 + $0x1] sm:$0xff]  ;;  %v6710_v4 = vld [vmem:[%s13909_s0 + $0x18] sm:$0xff] }
  0x2f   :  { %3301 = vst [vmem:[#allocation2 + $0x239] sm:$0x1] %v7640_v0  ;;  %3302 = vst [vmem:[#allocation2 + $0x251] sm:$0x1] %v7640_v0  ;;  %795 = vmatprep.subr.mxu0 %v7640_v0  ;;  %1180 = vmatprep.subr.mxu1 %v7640_v0  ;;  %v667_v3 = vld [vmem:[%s13910_s1 + $0x180] sm:$0xff]  ;;  %v698_v6 = vld [vmem:[%s13910_s1 + $0x278] sm:$0xff] }
  0x30   :  { %3303 = vst [vmem:[#allocation2 + $0x269] sm:$0x1] %v7640_v0  ;;  %3304 = vst [vmem:[#allocation2 + $0x281] sm:$0x1] %v7640_v0  ;;  %796 = vmatpush2.msra.mxu0 %v650_v33  ;;  %1181 = vmatpush2.msra.mxu1 %v682_v34  ;;  %v169_v5 = vld [vmem:[%s13909_s0 + $0x2] sm:$0xff]  ;;  %v107_v10 = vld [vmem:[%s13909_s0 + $0x19] sm:$0xff] }
  0x31   :  { %3305 = vst [vmem:[#allocation2 + $0x299] sm:$0x1] %v7640_v0  ;;  %3306 = vst [vmem:[#allocation2 + $0x2b1] sm:$0x1] %v7640_v0  ;;  %797 = vmatprep.subr.mxu0 %v7640_v0  ;;  %1182 = vmatprep.subr.mxu1 %v7640_v0  ;;  %v106_v7 = vld [vmem:[%s13909_s0 + $0x9] sm:$0xff]  ;;  %v6711_v8 = vld [vmem:[%s13909_s0 + $0x20] sm:$0xff] }
  0x32   :  { %3307 = vst [vmem:[#allocation2 + $0x2c9] sm:$0x1] %v7640_v0  ;;  %3308 = vst [vmem:[#allocation2 + $0x2e1] sm:$0x1] %v7640_v0  ;;  %798 = vmatpush2.msra.mxu0 %v649_v35  ;;  %1183 = vmatpush2.msra.mxu1 %v681_v36  ;;  %v42_v9 = vld [vmem:[%s13909_s0 + $0x8] sm:$0xff]  ;;  %v697_v11 = vld [vmem:[%s13910_s1 + $0x270] sm:$0xff] }
  0x33   :  { %3309 = vst [vmem:[#allocation2 + $0x2f9] sm:$0x1] %v7640_v0  ;;  %3310 = vst [vmem:[#allocation2 + $0x311] sm:$0x1] %v7640_v0  ;;  %799 = vmatprep.subr.mxu0 %v7640_v0  ;;  %1184 = vmatprep.subr.mxu1 %v7640_v0  ;;  %v170_v12 = vld [vmem:[%s13909_s0 + $0xa] sm:$0xff]  ;;  %v108_v15 = vld [vmem:[%s13909_s0 + $0x21] sm:$0xff] }
  0x34   :  { %3311 = vst [vmem:[#allocation2 + $0x329] sm:$0x1] %v7640_v0  ;;  %3312 = vst [vmem:[#allocation2 + $0x341] sm:$0x1] %v7640_v0  ;;  %800 = vmatpush2.msra.mxu0 %v648_v37  ;;  %1185 = vmatpush2.msra.mxu1 %v680_v38  ;;  %v6712_v13 = vld [vmem:[%s13909_s0 + $0x30] sm:$0xff]  ;;  %v696_v14 = vld [vmem:[%s13910_s1 + $0x268] sm:$0xff] }
  0x35   :  { %3242 = vst [vmem:[#allocation2] sm:$0x1] %v7640_v0  ;;  %3259 = vst [vmem:[#allocation2 + $0x198] sm:$0x1] %v7640_v0  ;;  %801 = vmatprep.subr.mxu0 %v7640_v0  ;;  %1186 = vmatprep.subr.mxu1 %v7640_v0  ;;  %v695_v16 = vld [vmem:[%s13910_s1 + $0x260] sm:$0xff]  ;;  %v6713_v18 = vld [vmem:[%s13909_s0 + $0x38] sm:$0xff] }
  0x36   :  { %3260 = vst [vmem:[#allocation2 + $0x1b0] sm:$0x1] %v7640_v0  ;;  %3277 = vst [vmem:[#allocation2 + $0x348] sm:$0x1] %v7640_v0  ;;  %802 = vmatpush2.msra.mxu0 %v647_v39  ;;  %1187 = vmatpush2.msra.mxu1 %v679_v40  ;;  %v171_v17 = vld [vmem:[%s13909_s0 + $0x1a] sm:$0xff]  ;;  %v109_v20 = vld [vmem:[%s13909_s0 + $0x31] sm:$0xff] }
  0x37   :  { %3278 = vst [vmem:[#allocation2 + $0x11] sm:$0x1] %v7640_v0  ;;  %3295 = vst [vmem:[#allocation2 + $0x1a9] sm:$0x1] %v7640_v0  ;;  %803 = vmatprep.subr.mxu0 %v7640_v0  ;;  %1188 = vmatprep.subr.mxu1 %v7640_v0  ;;  %v694_v19 = vld [vmem:[%s13910_s1 + $0x258] sm:$0xff]  ;;  %v693_v21 = vld [vmem:[%s13910_s1 + $0x250] sm:$0xff] }
  0x38   :  { %3296 = vst [vmem:[#allocation2 + $0x1c1] sm:$0x1] %v7640_v0  ;;  %3313 = vst [vmem:[#allocation2 + $0x359] sm:$0x1] %v7640_v0  ;;  %804 = vmatpush2.msra.mxu0 %v646_v41  ;;  %1189 = vmatpush2.msra.mxu1 %v678_v42  ;;  %v172_v22 = vld [vmem:[%s13909_s0 + $0x22] sm:$0xff]  ;;  %v110_v25 = vld [vmem:[%s13909_s0 + $0x39] sm:$0xff] }
  0x39   :  { %805 = vmatprep.subr.mxu0 %v7640_v0  ;;  %1190 = vmatprep.subr.mxu1 %v7640_v0  ;;  %v6714_v23 = vld [vmem:[%s13909_s0 + $0x48] sm:$0xff]  ;;  %v691_v26 = vld [vmem:[%s13910_s1 + $0x240] sm:$0xff]  ;;  %v173_v27 = vld [vmem:[%s13909_s0 + $0x32] sm:$0xff] }
  0x3a   :  { %806 = vmatpush2.msra.mxu0 %v645_v43  ;;  %1191 = vmatpush2.msra.mxu1 %v677_v44  ;;  %v692_v24 = vld [vmem:[%s13910_s1 + $0x248] sm:$0xff]  ;;  %v6715_v28 = vld [vmem:[%s13909_s0 + $0x50] sm:$0xff]  ;;  %v690_v29 = vld [vmem:[%s13910_s1 + $0x238] sm:$0xff] }
  0x3b   :  { %807 = vmatprep.subr.mxu0 %v7640_v0  ;;  %1192 = vmatprep.subr.mxu1 %v7640_v0  ;;  %v111_v30 = vld [vmem:[%s13909_s0 + $0x49] sm:$0xff]  ;;  %v174_v32 = vld [vmem:[%s13909_s0 + $0x3a] sm:$0xff]  ;;  %v112_v35 = vld [vmem:[%s13909_s0 + $0x51] sm:$0xff] }
  0x3c   :  { %808 = vmatpush2.msra.mxu0 %v644_v45  ;;  %1193 = vmatpush2.msra.mxu1 %v676_v46  ;;  %v689_v31 = vld [vmem:[%s13910_s1 + $0x230] sm:$0xff]  ;;  %v6716_v33 = vld [vmem:[%s13909_s0 + $0x60] sm:$0xff]  ;;  %v688_v34 = vld [vmem:[%s13910_s1 + $0x228] sm:$0xff] }
  0x3d   :  { %809 = vmatprep.subr.mxu0 %v7640_v0  ;;  %1194 = vmatprep.subr.mxu1 %v7640_v0  ;;  %v687_v36 = vld [vmem:[%s13910_s1 + $0x220] sm:$0xff]  ;;  %v175_v37 = vld [vmem:[%s13909_s0 + $0x4a] sm:$0xff]  ;;  %v686_v39 = vld [vmem:[%s13910_s1 + $0x218] sm:$0xff] }
  0x3e   :  { %810 = vmatpush2.msra.mxu0 %v643_v47  ;;  %1195 = vmatpush2.msra.mxu1 %v675_v48  ;;  %v6717_v38 = vld [vmem:[%s13909_s0 + $0x68] sm:$0xff]  ;;  %v685_v41 = vld [vmem:[%s13910_s1 + $0x210] sm:$0xff]  ;;  %v6718_v43 = vld [vmem:[%s13909_s0 + $0x78] sm:$0xff] }
  0x3f   :  { %811 = vmatprep.subr.mxu0 %v7640_v0  ;;  %1196 = vmatprep.subr.mxu1 %v7640_v0  ;;  %v113_v40 = vld [vmem:[%s13909_s0 + $0x61] sm:$0xff]  ;;  %v176_v42 = vld [vmem:[%s13909_s0 + $0x52] sm:$0xff]  ;;  %v114_v45 = vld [vmem:[%s13909_s0 + $0x69] sm:$0xff] }
  0x40   :  { %812 = vmatpush2.msra.mxu0 %v642_v49  ;;  %1197 = vmatpush2.msra.mxu1 %v674_v50  ;;  %v684_v44 = vld [vmem:[%s13910_s1 + $0x208] sm:$0xff]  ;;  %v683_v46 = vld [vmem:[%s13910_s1 + $0x200] sm:$0xff]  ;;  %v714_v49 = vld [vmem:[%s13910_s1 + $0x2f8] sm:$0xff] }
  0x41   :  { %813 = vmatprep.subr.mxu0 %v7640_v0  ;;  %1198 = vmatprep.subr.mxu1 %v7640_v0  ;;  %v177_v47 = vld [vmem:[%s13909_s0 + $0x62] sm:$0xff]  ;;  %v115_v50 = vld [vmem:[%s13909_s0 + $0x79] sm:$0xff] }
  0x42   :  { %814 = vmatpush2.msra.mxu0 %v641_v51  ;;  %1199 = vmatpush2.msra.mxu1 %v673_v52  ;;  %v6719_v48 = vld [vmem:[%s13909_s0 + $0x80] sm:$0xff]  ;;  %v730_v51 = vld [vmem:[%s13910_s1 + $0x378] sm:$0xff]  ;;  %v178_v52 = vld [vmem:[%s13909_s0 + $0x6a] sm:$0xff] }
  0x43   :  { %815 = vmatprep.subr.mxu0 %v7640_v0  ;;  %1200 = vmatprep.subr.mxu1 %v7640_v0 }
  0x44   :  { %816 = vmatpush2.msra.mxu0 %v640_v53  ;;  %1201 = vmatpush2.msra.mxu1 %v672_v54  ;;  %v6720_v53 = vld [vmem:[%s13909_s0 + $0x90] sm:$0xff] }
  0x45   :  { %817 = vmatprep.subr.mxu0 %v7640_v0  ;;  %1202 = vmatprep.subr.mxu1 %v7640_v0  ;;  %v713_v54 = vld [vmem:[%s13910_s1 + $0x2f0] sm:$0xff] }
  0x46   :  { %818 = vmatpush2.msra.mxu0 %v639_v55  ;;  %1203 = vmatpush2.msra.mxu1 %v671_v56  ;;  %v116_v55 = vld [vmem:[%s13909_s0 + $0x81] sm:$0xff]  ;;  %v729_v56 = vld [vmem:[%s13910_s1 + $0x370] sm:$0xff] }
  0x47   :  { %819 = vmatprep.subr.mxu0 %v7640_v0  ;;  %1204 = vmatprep.subr.mxu1 %v7640_v0 }
  0x48   :  { %820 = vmatpush2.msra.mxu0 %v638_v57  ;;  %1205 = vmatpush2.msra.mxu1 %v670_v58  ;;  %v179_v57 = vld [vmem:[%s13909_s0 + $0x7a] sm:$0xff] }
  0x49   :  { %821 = vmatprep.subr.mxu0 %v7640_v0  ;;  %1206 = vmatprep.subr.mxu1 %v7640_v0  ;;  %v6721_v58 = vld [vmem:[%s13909_s0 + $0x98] sm:$0xff] }
  0x4a   :  { %822 = vmatpush2.msra.mxu0 %v637_v59  ;;  %1207 = vmatpush2.msra.mxu1 %v669_v60  ;;  %v712_v59 = vld [vmem:[%s13910_s1 + $0x2e8] sm:$0xff]  ;;  %v117_v60 = vld [vmem:[%s13909_s0 + $0x91] sm:$0xff] }
  0x4b   :  { %823 = vmatprep.subr.mxu0 %v7640_v0  ;;  %1208 = vmatprep.subr.mxu1 %v7640_v0 }
  0x4c   :  { %824 = vmatpush2.msra.mxu0 %v636_v61  ;;  %1209 = vmatpush2.msra.mxu1 %v668_v62  ;;  %v728_v61 = vld [vmem:[%s13910_s1 + $0x368] sm:$0xff] }
  0x4d   :  { %825 = vmatprep.subr.mxu0 %v7640_v0  ;;  %827 = vmatprep.mubr.f32.mxu0 %v105_v63  ;;  %v180_v62 = vld [vmem:[%s13909_s0 + $0x82] sm:$0xff] }
  0x4e   :  { %826 = vmatpush2.msra.mxu0 %v635_v1  ;;  %1210 = vmatprep.subr.mxu1 %v7640_v0  ;;  %v6722_v63 = vld [vmem:[%s13909_s0 + $0xa8] sm:$0xff]  ;;  %v711_v1 = vld [vmem:[%s13910_s1 + $0x2e0] sm:$0xff] }
  0x4f   :  { %828 = vmatmul.mubr.f32.vlgmr.msra.gmra.mxu0 %v41_v2  ;;  %1211 = vmatpush2.msra.mxu1 %v667_v3  ;;  %v118_v2 = vld [vmem:[%s13909_s0 + $0x99] sm:$0xff] }
  0x50   :  { %1212 = vmatprep.mubr.f32.mxu1 %v6710_v4  ;;  %1533 = vmatprep.subr.mxu0 %v7640_v0  ;;  %v727_v3 = vld [vmem:[%s13910_s1 + $0x360] sm:$0xff] }
  0x51   :  { %1213 = vmatmul.mubr.f32.vlgmr.msra.gmra.mxu1 %v169_v5  ;;  %1534 = vmatpush1.msra.mxu0 %v698_v6  ;;  %v6723_v5 = vld [vmem:[%s13909_s0 + $0xb0] sm:$0xff]  ;;  %v710_v6 = vld [vmem:[%s13910_s1 + $0x2d8] sm:$0xff] }
  0x52   :  { %832 = vmatprep.mubr.f32.mxu0 %v106_v7  ;;  %1217 = vmatprep.mubr.f32.mxu1 %v6711_v8  ;;  %v119_v7 = vld [vmem:[%s13909_s0 + $0xa9] sm:$0xff] }
  0x53   :  { %833 = vmatmul.mubr.f32.gmra.mxu0 %v42_v9  ;;  %1535 = vmatprep.subr.mxu0 %v7640_v0  ;;  %v182_v9 = vld [vmem:[%s13909_s0 + $0x9a] sm:$0xff] }
  0x54   :  { %837 = vmatprep.mubr.f32.mxu0 %v107_v10  ;;  %1536 = vmatpush1.msra.mxu0 %v697_v11  ;;  %v6724_v10 = vld [vmem:[%s13909_s0 + $0xc0] sm:$0xff]  ;;  %v709_v11 = vld [vmem:[%s13910_s1 + $0x2d0] sm:$0xff] }
  0x55   :  { %1218 = vmatmul.mubr.f32.gmra.mxu1 %v170_v12  ;;  %1537 = vmatprep.subr.mxu0 %v7640_v0  ;;  %v120_v12 = vld [vmem:[%s13909_s0 + $0xb1] sm:$0xff] }
  0x56   :  { %1222 = vmatprep.mubr.f32.mxu1 %v6712_v13  ;;  %1538 = vmatpush1.msra.mxu0 %v696_v14  ;;  %v183_v14 = vld [vmem:[%s13909_s0 + $0xaa] sm:$0xff] }
  0x57   :  { %838 = vmatmul.mubr.f32.gmra.mxu0 %v6710_v4  ;;  %1539 = vmatprep.subr.mxu0 %v7640_v0  ;;  %v181_v4 = vld [vmem:[%s13909_s0 + $0x92] sm:$0xff] }
  0x58   :  { %842 = vmatprep.mubr.f32.mxu0 %v108_v15  ;;  %1540 = vmatpush1.msra.mxu0 %v695_v16  ;;  %v6725_v15 = vld [vmem:[%s13909_s0 + $0xc8] sm:$0xff] }
  0x59   :  { %1223 = vmatmul.mubr.f32.gmra.mxu1 %v171_v17  ;;  %1541 = vmatprep.subr.mxu0 %v7640_v0  ;;  %v708_v16 = vld [vmem:[%s13910_s1 + $0x2c8] sm:$0xff] }
  0x5a   :  { %1227 = vmatprep.mubr.f32.mxu1 %v6713_v18  ;;  %1542 = vmatpush1.msra.mxu0 %v694_v19  ;;  %v121_v17 = vld [vmem:[%s13909_s0 + $0xc1] sm:$0xff]  ;;  %v184_v19 = vld [vmem:[%s13909_s0 + $0xb2] sm:$0xff] }
  0x5b   :  { %843 = vmatmul.mubr.f32.gmra.mxu0 %v6711_v8  ;;  %1543 = vmatprep.subr.mxu0 %v7640_v0  ;;  %v726_v8 = vld [vmem:[%s13910_s1 + $0x358] sm:$0xff] }
  0x5c   :  { %847 = vmatprep.mubr.f32.mxu0 %v109_v20  ;;  %1544 = vmatpush1.msra.mxu0 %v693_v21  ;;  %v6726_v20 = vld [vmem:[%s13909_s0 + $0xd8] sm:$0xff]  ;;  %v707_v21 = vld [vmem:[%s13910_s1 + $0x2c0] sm:$0xff] }
  0x5d   :  { %1228 = vmatmul.mubr.f32.gmra.mxu1 %v172_v22  ;;  %1545 = vmatprep.subr.mxu0 %v7640_v0  ;;  %v122_v22 = vld [vmem:[%s13909_s0 + $0xc9] sm:$0xff] }
  0x5e   :  { %1232 = vmatprep.mubr.f32.mxu1 %v6714_v23  ;;  %1546 = vmatpush1.msra.mxu0 %v692_v24  ;;  %v185_v24 = vld [vmem:[%s13909_s0 + $0xc2] sm:$0xff] }
  0x5f   :  { %848 = vmatmul.mubr.f32.gmra.mxu0 %v6712_v13  ;;  %1547 = vmatprep.subr.mxu0 %v7640_v0  ;;  %v725_v13 = vld [vmem:[%s13910_s1 + $0x350] sm:$0xff] }
  0x60   :  { %852 = vmatprep.mubr.f32.mxu0 %v110_v25  ;;  %1548 = vmatpush1.msra.mxu0 %v691_v26  ;;  %v6727_v25 = vld [vmem:[%s13909_s0 + $0xe0] sm:$0xff] }
  0x61   :  { %1233 = vmatmul.mubr.f32.gmra.mxu1 %v173_v27  ;;  %1549 = vmatprep.subr.mxu0 %v7640_v0  ;;  %v123_v26 = vld [vmem:[%s13909_s0 + $0xd9] sm:$0xff]  ;;  %v186_v27 = vld [vmem:[%s13909_s0 + $0xca] sm:$0xff] }
  0x62   :  { %1237 = vmatprep.mubr.f32.mxu1 %v6715_v28  ;;  %1550 = vmatpush1.msra.mxu0 %v690_v29  ;;  %v6728_v29 = vld [vmem:[%s13909_s0 + $0xf0] sm:$0xff] }
  0x63   :  { %853 = vmatmul.mubr.f32.gmra.mxu0 %v6713_v18  ;;  %1551 = vmatprep.subr.mxu0 %v7640_v0  ;;  %v724_v18 = vld [vmem:[%s13910_s1 + $0x348] sm:$0xff] }
  0x64   :  { %857 = vmatprep.mubr.f32.mxu0 %v111_v30  ;;  %1552 = vmatpush1.msra.mxu0 %v689_v31  ;;  %v722_v30 = vld [vmem:[%s13910_s1 + $0x338] sm:$0xff]  ;;  %v124_v31 = vld [vmem:[%s13909_s0 + $0xe1] sm:$0xff] }
  0x65   :  { %1238 = vmatmul.mubr.f32.gmra.mxu1 %v174_v32  ;;  %1553 = vmatprep.subr.mxu0 %v7640_v0  ;;  %v187_v32 = vld [vmem:[%s13909_s0 + $0xda] sm:$0xff] }
  0x66   :  { %1242 = vmatprep.mubr.f32.mxu1 %v6716_v33  ;;  %1554 = vmatpush1.msra.mxu0 %v688_v34  ;;  %v8348_v34 = vld [vmem:[#allocation2 + $0x8] sm:$0xff] }
  0x67   :  { %858 = vmatmul.mubr.f32.gmra.mxu0 %v6714_v23  ;;  %1555 = vmatprep.subr.mxu0 %v7640_v0  ;;  %v723_v23 = vld [vmem:[%s13910_s1 + $0x340] sm:$0xff] }
  0x68   :  { %862 = vmatprep.mubr.f32.mxu0 %v112_v35  ;;  %1556 = vmatpush1.msra.mxu0 %v687_v36  ;;  %v188_v35 = vld [vmem:[%s13909_s0 + $0xe2] sm:$0xff]  ;;  %v705_v36 = vld [vmem:[%s13910_s1 + $0x2b0] sm:$0xff] }
  0x69   :  { %1243 = vmatmul.mubr.f32.gmra.mxu1 %v175_v37  ;;  %1557 = vmatprep.subr.mxu0 %v7640_v0  ;;  %v6730_v37 = vld [vmem:[%s13909_s0 + $0x108] sm:$0xff] }
  0x6a   :  { %1247 = vmatprep.mubr.f32.mxu1 %v6717_v38  ;;  %1558 = vmatpush1.msra.mxu0 %v686_v39  ;;  %v126_v39 = vld [vmem:[%s13909_s0 + $0xf9] sm:$0xff] }
  0x6b   :  { %863 = vmatmul.mubr.f32.gmra.mxu0 %v6715_v28  ;;  %1559 = vmatprep.subr.mxu0 %v7640_v0  ;;  %v706_v28 = vld [vmem:[%s13910_s1 + $0x2b8] sm:$0xff] }
  0x6c   :  { %867 = vmatprep.mubr.f32.mxu0 %v113_v40  ;;  %1560 = vmatpush1.msra.mxu0 %v685_v41  ;;  %v189_v40 = vld [vmem:[%s13909_s0 + $0xf2] sm:$0xff] }
  0x6d   :  { %1248 = vmatmul.mubr.f32.gmra.mxu1 %v176_v42  ;;  %1561 = vmatprep.subr.mxu0 %v7640_v0  ;;  %v6731_v41 = vld [vmem:[%s13909_s0 + $0x110] sm:$0xff] }
  0x6e   :  { %1252 = vmatprep.mubr.f32.mxu1 %v6718_v43  ;;  %1562 = vmatpush1.msra.mxu0 %v684_v44  ;;  %v127_v42 = vld [vmem:[%s13909_s0 + $0x109] sm:$0xff] }
  0x6f   :  { %868 = vmatmul.mubr.f32.gmra.mxu0 %v6716_v33  ;;  %1563 = vmatprep.subr.mxu0 %v7640_v0  ;;  %v6729_v33 = vld [vmem:[%s13909_s0 + $0xf8] sm:$0xff]  ;;  %v704_v44 = vld [vmem:[%s13910_s1 + $0x2a8] sm:$0xff] }
  0x70   :  { %872 = vmatprep.mubr.f32.mxu0 %v114_v45  ;;  %1564 = vmatpush1.msra.mxu0 %v683_v46  ;;  %v6732_v45 = vld [vmem:[%s13909_s0 + $0x120] sm:$0xff]  ;;  %v720_v46 = vld [vmem:[%s13910_s1 + $0x328] sm:$0xff] }
  0x71   :  { %1253 = vmatmul.mubr.f32.gmra.mxu1 %v177_v47  ;;  %1565 = vmatprep.subr.mxu0 %v7640_v0  ;;  %v128_v47 = vld [vmem:[%s13909_s0 + $0x111] sm:$0xff] }
  0x72   :  { %1257 = vmatprep.mubr.f32.mxu1 %v6719_v48  ;;  %1566 = vmatpush2.msra.mxu0 %v714_v49  ;;  %v6733_v49 = vld [vmem:[%s13909_s0 + $0x128] sm:$0xff] }
  0x73   :  { %873 = vmatmul.mubr.f32.gmra.mxu0 %v6717_v38  ;;  %1918 = vmatprep.subr.mxu1 %v7640_v0  ;;  %v721_v38 = vld [vmem:[%s13910_s1 + $0x330] sm:$0xff] }
  0x74   :  { %877 = vmatprep.mubr.f32.mxu0 %v115_v50  ;;  %1919 = vmatpush1.msra.mxu1 %v730_v51  ;;  %v129_v50 = vld [vmem:[%s13909_s0 + $0x121] sm:$0xff] }
  0x75   :  { %1258 = vmatmul.mubr.f32.gmra.mxu1 %v178_v52  ;;  %1567 = vmatprep.subr.mxu0 %v7640_v0  ;;  %v719_v51 = vld [vmem:[%s13910_s1 + $0x320] sm:$0xff]  ;;  %v192_v52 = vld [vmem:[%s13909_s0 + $0x112] sm:$0xff] }
  0x76   :  { %1262 = vmatprep.mubr.f32.mxu1 %v6720_v53  ;;  %1568 = vmatpush2.msra.mxu0 %v713_v54  ;;  %v6734_v54 = vld [vmem:[%s13909_s0 + $0x138] sm:$0xff] }
  0x77   :  { %878 = vmatmul.mubr.f32.gmra.mxu0 %v6718_v43  ;;  %1920 = vmatprep.subr.mxu1 %v7640_v0  ;;  %v190_v43 = vld [vmem:[%s13909_s0 + $0xfa] sm:$0xff] }
  0x78   :  { %882 = vmatprep.mubr.f32.mxu0 %v116_v55  ;;  %1921 = vmatpush1.msra.mxu1 %v729_v56  ;;  %v718_v55 = vld [vmem:[%s13910_s1 + $0x318] sm:$0xff]  ;;  %v130_v56 = vld [vmem:[%s13909_s0 + $0x129] sm:$0xff] }
  0x79   :  { %1263 = vmatmul.mubr.f32.gmra.mxu1 %v179_v57  ;;  %1569 = vmatprep.subr.mxu0 %v7640_v0  ;;  %v717_v57 = vld [vmem:[%s13910_s1 + $0x310] sm:$0xff] }
  0x7a   :  { %1267 = vmatprep.mubr.f32.mxu1 %v6721_v58  ;;  %1570 = vmatpush2.msra.mxu0 %v712_v59  ;;  %v6735_v59 = vld [vmem:[%s13909_s0 + $0x140] sm:$0xff] }
  0x7b   :  { %883 = vmatmul.mubr.f32.gmra.mxu0 %v6719_v48  ;;  %1922 = vmatprep.subr.mxu1 %v7640_v0  ;;  %v191_v48 = vld [vmem:[%s13909_s0 + $0x10a] sm:$0xff] }
  0x7c   :  { %887 = vmatprep.mubr.f32.mxu0 %v117_v60  ;;  %1923 = vmatpush1.msra.mxu1 %v728_v61  ;;  %v716_v60 = vld [vmem:[%s13910_s1 + $0x308] sm:$0xff]  ;;  %v131_v61 = vld [vmem:[%s13909_s0 + $0x139] sm:$0xff] }
  0x7d   :  { %1268 = vmatmul.mubr.f32.gmra.mxu1 %v180_v62  ;;  %1571 = vmatprep.subr.mxu0 %v7640_v0  ;;  %v194_v62 = vld [vmem:[%s13909_s0 + $0x12a] sm:$0xff] }
  0x7e   :  { %1272 = vmatprep.mubr.f32.mxu1 %v6722_v63  ;;  %1572 = vmatpush2.msra.mxu0 %v711_v1  ;;  %v6736_v1 = vld [vmem:[%s13909_s0 + $0x150] sm:$0xff] }
  0x7f   :  { %888 = vmatmul.mubr.f32.gmra.mxu0 %v6720_v53  ;;  %1924 = vmatprep.subr.mxu1 %v7640_v0  ;;  %v703_v53 = vld [vmem:[%s13910_s1 + $0x2a0] sm:$0xff] }
  0x80   :  { %892 = vmatprep.mubr.f32.mxu0 %v118_v2  ;;  %1925 = vmatpush1.msra.mxu1 %v727_v3  ;;  %v715_v2 = vld [vmem:[%s13910_s1 + $0x300] sm:$0xff] }
  0x81   :  { %1273 = vmatmul.mubr.f32.gmra.mxu1 %v181_v4  ;;  %1573 = vmatprep.subr.mxu0 %v7640_v0  ;;  %v132_v3 = vld [vmem:[%s13909_s0 + $0x141] sm:$0xff]  ;;  %v746_v4 = vld [vmem:[%s13910_s1 + $0x3f8] sm:$0xff] }
  0x82   :  { %1277 = vmatprep.mubr.f32.mxu1 %v6723_v5  ;;  %1574 = vmatpush2.msra.mxu0 %v710_v6  ;;  %v6737_v6 = vld [vmem:[%s13909_s0 + $0x158] sm:$0xff] }
  0x83   :  { %893 = vmatmul.mubr.f32.gmra.mxu0 %v6721_v58  ;;  %1926 = vmatprep.subr.mxu1 %v7640_v0  ;;  %v193_v58 = vld [vmem:[%s13909_s0 + $0x122] sm:$0xff] }
  0x84   :  { %897 = vmatprep.mubr.f32.mxu0 %v119_v7  ;;  %1927 = vmatpush1.msra.mxu1 %v726_v8  ;;  %v745_v7 = vld [vmem:[%s13910_s1 + $0x3f0] sm:$0xff] }
  0x85   :  { %1278 = vmatmul.mubr.f32.gmra.mxu1 %v182_v9  ;;  %1575 = vmatprep.subr.mxu0 %v7640_v0  ;;  %v133_v8 = vld [vmem:[%s13909_s0 + $0x151] sm:$0xff]  ;;  %v744_v9 = vld [vmem:[%s13910_s1 + $0x3e8] sm:$0xff] }
  0x86   :  { %1282 = vmatprep.mubr.f32.mxu1 %v6724_v10  ;;  %1576 = vmatpush2.msra.mxu0 %v709_v11  ;;  %v6738_v11 = vld [vmem:[%s13909_s0 + $0x168] sm:$0xff] }
  0x87   :  { %898 = vmatmul.mubr.f32.gmra.mxu0 %v6722_v63  ;;  %1928 = vmatprep.subr.mxu1 %v7640_v0  ;;  %v702_v63 = vld [vmem:[%s13910_s1 + $0x298] sm:$0xff] }
  0x88   :  { %902 = vmatprep.mubr.f32.mxu0 %v120_v12  ;;  %1929 = vmatpush1.msra.mxu1 %v725_v13  ;;  %v701_v12 = vld [vmem:[%s13910_s1 + $0x290] sm:$0xff]  ;;  %v743_v13 = vld [vmem:[%s13910_s1 + $0x3e0] sm:$0xff] }
  0x89   :  { %1283 = vmatmul.mubr.f32.gmra.mxu1 %v183_v14  ;;  %1577 = vmatprep.subr.mxu0 %v7640_v0  ;;  %v134_v14 = vld [vmem:[%s13909_s0 + $0x159] sm:$0xff] }
  0x8a   :  { %1287 = vmatprep.mubr.f32.mxu1 %v6725_v15  ;;  %1578 = vmatpush2.msra.mxu0 %v708_v16  ;;  %v6739_v16 = vld [vmem:[%s13909_s0 + $0x170] sm:$0xff] }
  0x8b   :  { %903 = vmatmul.mubr.f32.gmra.mxu0 %v6723_v5  ;;  %1930 = vmatprep.subr.mxu1 %v7640_v0  ;;  %v195_v5 = vld [vmem:[%s13909_s0 + $0x13a] sm:$0xff] }
  0x8c   :  { %907 = vmatprep.mubr.f32.mxu0 %v121_v17  ;;  %1931 = vmatpush1.msra.mxu1 %v724_v18  ;;  %v742_v17 = vld [vmem:[%s13910_s1 + $0x3d8] sm:$0xff]  ;;  %v135_v18 = vld [vmem:[%s13909_s0 + $0x169] sm:$0xff] }
  0x8d   :  { %1288 = vmatmul.mubr.f32.gmra.mxu1 %v184_v19  ;;  %1579 = vmatprep.subr.mxu0 %v7640_v0  ;;  %v741_v19 = vld [vmem:[%s13910_s1 + $0x3d0] sm:$0xff] }
  0x8e   :  { %1292 = vmatprep.mubr.f32.mxu1 %v6726_v20  ;;  %1580 = vmatpush2.msra.mxu0 %v707_v21  ;;  %v6740_v21 = vld [vmem:[%s13909_s0 + $0x180] sm:$0xff] }
  0x8f   :  { %908 = vmatmul.mubr.f32.gmra.mxu0 %v6724_v10  ;;  %1932 = vmatprep.subr.mxu1 %v7640_v0  ;;  %v196_v10 = vld [vmem:[%s13909_s0 + $0x142] sm:$0xff] }
  0x90   :  { %912 = vmatprep.mubr.f32.mxu0 %v122_v22  ;;  %1933 = vmatpush1.msra.mxu1 %v723_v23  ;;  %v740_v22 = vld [vmem:[%s13910_s1 + $0x3c8] sm:$0xff]  ;;  %v136_v23 = vld [vmem:[%s13909_s0 + $0x171] sm:$0xff] }
  0x91   :  { %1293 = vmatmul.mubr.f32.gmra.mxu1 %v185_v24  ;;  %1581 = vmatprep.subr.mxu0 %v7640_v0  ;;  %v700_v24 = vld [vmem:[%s13910_s1 + $0x288] sm:$0xff] }
  0x92   :  { %1297 = vmatprep.mubr.f32.mxu1 %v6727_v25  ;;  %1934 = vmatprep.subr.mxu1 %v7640_v0 }
  0x93   :  { %913 = vmatmul.mubr.f32.gmra.mxu0 %v6725_v15  ;;  %1935 = vmatpush1.msra.mxu1 %v722_v30  ;;  %v197_v15 = vld [vmem:[%s13909_s0 + $0x152] sm:$0xff] }
  0x94   :  { %917 = vmatprep.mubr.f32.mxu0 %v123_v26  ;;  %1582 = vmatpush2.msra.mxu0 %v706_v28  ;;  %v6741_v26 = vld [vmem:[%s13909_s0 + $0x188] sm:$0xff]  ;;  %v137_v28 = vld [vmem:[%s13909_s0 + $0x1b1] sm:$0xff] }
  0x95   :  { %1298 = vmatmul.mubr.f32.gmra.mxu1 %v186_v27  ;;  %1583 = vmatprep.subr.mxu0 %v7640_v0  ;;  %v125_v0 = vld [vmem:[%s13909_s0 + $0xf1] sm:$0xff]  ;;  %v739_v27 = vld [vmem:[%s13910_s1 + $0x3c0] sm:$0xff] }
  0x96   :  { %1302 = vmatprep.mubr.f32.mxu1 %v6728_v29  ;;  %1936 = vmatprep.subr.mxu1 %v8348_v34  ;;  %v200_v30 = vld [vmem:[%s13909_s0 + $0x172] sm:$0xff] }
  0x97   :  { %918 = vmatmul.mubr.f32.gmra.mxu0 %v6726_v20  ;;  %1937 = vmatpush1.msra.mxu1 %v721_v38  ;;  %v198_v20 = vld [vmem:[%s13909_s0 + $0x15a] sm:$0xff] }
  0x98   :  { %922 = vmatprep.mubr.f32.mxu0 %v124_v31  ;;  %1584 = vmatpush2.msra.mxu0 %v705_v36  ;;  %v6742_v31 = vld [vmem:[%s13909_s0 + $0x1c8] sm:$0xff]  ;;  %v201_v36 = vld [vmem:[%s13909_s0 + $0x1b2] sm:$0xff]  ;;  %v699_v38 = vld [vmem:[%s13910_s1 + $0x280] sm:$0xff] }
  0x99   :  { %1303 = vmatmul.mubr.f32.gmra.mxu1 %v187_v32  ;;  %1585 = vmatprep.subr.mxu0 %v8348_v34  ;;  %v737_v32 = vld [vmem:[%s13910_s1 + $0x3b0] sm:$0xff] }
  0x9a   :  { %1307 = vmatprep.mubr.f32.mxu1 %v6729_v33  ;;  %1938 = vmatprep.subr.mxu1 %v8348_v34 }
  0x9b   :  { %923 = vmatmul.mubr.f32.gmra.mxu0 %v6727_v25  ;;  %1939 = vmatpush1.msra.mxu1 %v720_v46  ;;  %v199_v25 = vld [vmem:[%s13909_s0 + $0x16a] sm:$0xff] }
  0x9c   :  { %927 = vmatprep.mubr.f32.mxu0 %v125_v0  ;;  %1586 = vmatpush2.msra.mxu0 %v704_v44  ;;  %v138_v0 = vld [vmem:[%s13909_s0 + $0x1b9] sm:$0xff]  ;;  %v140_v46 = vld [vmem:[%s13909_s0 + $0x1d1] sm:$0xff] }
  0x9d   :  { %1308 = vmatmul.mubr.f32.gmra.mxu1 %v188_v35  ;;  %1587 = vmatprep.subr.mxu0 %v8348_v34  ;;  %v736_v35 = vld [vmem:[%s13910_s1 + $0x3a8] sm:$0xff]  ;;  %v6744_v44 = vld [vmem:[%s13909_s0 + $0x1e0] sm:$0xff] }
  0x9e   :  { %1312 = vmatprep.mubr.f32.mxu1 %v6730_v37  ;;  %1940 = vmatprep.subr.mxu1 %v8348_v34 }
  0x9f   :  { %928 = vmatmul.mubr.f32.gmra.mxu0 %v6728_v29  ;;  %1941 = vmatpush1.msra.mxu1 %v719_v51  ;;  %v738_v29 = vld [vmem:[%s13910_s1 + $0x3b8] sm:$0xff]  ;;  %v141_v51 = vld [vmem:[%s13909_s0 + $0x1e1] sm:$0xff] }
  0xa0   :  { %932 = vmatprep.mubr.f32.mxu0 %v126_v39  ;;  %1942 = vmatprep.subr.mxu1 %v8348_v34  ;;  %v74_v39 = vld [vmem:[%s13909_s0 + $0x1b8] sm:$0xff] }
  0xa1   :  { %1313 = vmatmul.mubr.f32.gmra.mxu1 %v189_v40  ;;  %1588 = vmatpush2.msra.mxu0 %v703_v53  ;;  %v735_v40 = vld [vmem:[%s13910_s1 + $0x3a0] sm:$0xff]  ;;  %v204_v53 = vld [vmem:[%s13909_s0 + $0x1d2] sm:$0xff] }
  0xa2   :  { %1317 = vmatprep.mubr.f32.mxu1 %v6731_v41  ;;  %1589 = vmatprep.subr.mxu0 %v8348_v34 }
  0xa3   :  { %933 = vmatmul.mubr.f32.gmra.mxu0 %v6729_v33  ;;  %1943 = vmatpush1.msra.mxu1 %v718_v55  ;;  %v73_v33 = vld [vmem:[%s13909_s0 + $0x1b0] sm:$0xff] }
  0xa4   :  { %937 = vmatprep.mubr.f32.mxu0 %v127_v42  ;;  %1944 = vmatprep.subr.mxu1 %v8348_v34  ;;  %v202_v42 = vld [vmem:[%s13909_s0 + $0x1ba] sm:$0xff]  ;;  %v142_v55 = vld [vmem:[%s13909_s0 + $0x1e9] sm:$0xff] }
  0xa5   :  { %1318 = vmatmul.mubr.f32.gmra.mxu1 %v190_v43  ;;  %1590 = vmatpush2.msra.mxu0 %v702_v63  ;;  %v8594_v43 = vld [vmem:[%s13910_s1 + $0x478] sm:$0xff] }
  0xa6   :  { %1322 = vmatprep.mubr.f32.mxu1 %v6732_v45  ;;  %1945 = vmatpush1.msra.mxu1 %v717_v57  ;;  %v6747_v57 = vld [vmem:[%s13909_s0 + $0x200] sm:$0xff]  ;;  %v145_v63 = vld [vmem:[%s13909_s0 + $0x211] sm:$0xff] }
  0xa7   :  { %938 = vmatmul.mubr.f32.gmra.mxu0 %v6730_v37  ;;  %1946 = vmatprep.subr.mxu1 %v8348_v34  ;;  %v6743_v37 = vld [vmem:[%s13909_s0 + $0x1d0] sm:$0xff] }
  0xa8   :  { %942 = vmatprep.mubr.f32.mxu0 %v128_v47  ;;  %1947 = vmatpush1.msra.mxu1 %v716_v60  ;;  %v733_v47 = vld [vmem:[%s13910_s1 + $0x390] sm:$0xff]  ;;  %v144_v60 = vld [vmem:[%s13909_s0 + $0x201] sm:$0xff] }
  0xa9   :  { %1323 = vmatmul.mubr.f32.gmra.mxu1 %v191_v48  ;;  %1948 = vmatprep.subr.mxu1 %v8348_v34  ;;  %v203_v48 = vld [vmem:[%s13909_s0 + $0x1ca] sm:$0xff] }
  0xaa   :  { %1327 = vmatprep.mubr.f32.mxu1 %v6733_v49  ;;  %1591 = vmatprep.subr.mxu0 %v8348_v34 }
  0xab   :  { %943 = vmatmul.mubr.f32.gmra.mxu0 %v6731_v41  ;;  %1949 = vmatpush1.msra.mxu1 %v715_v2  ;;  %v139_v41 = vld [vmem:[%s13909_s0 + $0x1c9] sm:$0xff] }
  0xac   :  { %947 = vmatprep.mubr.f32.mxu0 %v129_v50  ;;  %1950 = vmatprep.subr.mxu1 %v8348_v34  ;;  %v732_v50 = vld [vmem:[%s13910_s1 + $0x388] sm:$0xff] }
  0xad   :  { %1328 = vmatmul.mubr.f32.gmra.mxu1 %v192_v52  ;;  %1592 = vmatpush2.msra.mxu0 %v701_v12  ;;  %v731_v52 = vld [vmem:[%s13910_s1 + $0x380] sm:$0xff]  ;;  %v6750_v2 = vld [vmem:[%s13909_s0 + $0x228] sm:$0xff] }
  0xae   :  { %1332 = vmatprep.mubr.f32.mxu1 %v6734_v54  ;;  %1951 = vmatpush2.msra.mxu1 %v746_v4  ;;  %v209_v4 = vld [vmem:[%s13909_s0 + $0x212] sm:$0xff]  ;;  %v149_v12 = vld [vmem:[%s13909_s0 + $0x241] sm:$0xff] }
  0xaf   :  { %948 = vmatmul.mubr.f32.gmra.mxu0 %v6732_v45  ;;  %1952 = vmatprep.subr.mxu1 %v8348_v34  ;;  %v734_v45 = vld [vmem:[%s13910_s1 + $0x398] sm:$0xff] }
  0xb0   :  { %952 = vmatprep.mubr.f32.mxu0 %v130_v56  ;;  %1953 = vmatpush2.msra.mxu1 %v745_v7  ;;  %v205_v56 = vld [vmem:[%s13909_s0 + $0x1e2] sm:$0xff]  ;;  %v210_v7 = vld [vmem:[%s13909_s0 + $0x21a] sm:$0xff] }
  0xb1   :  { %1333 = vmatmul.mubr.f32.gmra.mxu1 %v193_v58  ;;  %1954 = vmatprep.subr.mxu1 %v8348_v34  ;;  %v143_v58 = vld [vmem:[%s13909_s0 + $0x1f9] sm:$0xff] }
  0xb2   :  { %1337 = vmatprep.mubr.f32.mxu1 %v6735_v59  ;;  %1955 = vmatpush2.msra.mxu1 %v744_v9  ;;  %v148_v9 = vld [vmem:[%s13909_s0 + $0x231] sm:$0xff] }
  0xb3   :  { %953 = vmatmul.mubr.f32.gmra.mxu0 %v6733_v49  ;;  %1956 = vmatprep.subr.mxu1 %v8348_v34  ;;  %v6745_v49 = vld [vmem:[%s13909_s0 + $0x1e8] sm:$0xff] }
  0xb4   :  { %957 = vmatprep.mubr.f32.mxu0 %v131_v61  ;;  %1957 = vmatpush2.msra.mxu1 %v743_v13  ;;  %v207_v61 = vld [vmem:[%s13909_s0 + $0x1fa] sm:$0xff]  ;;  %v212_v13 = vld [vmem:[%s13909_s0 + $0x232] sm:$0xff] }
  0xb5   :  { %1338 = vmatmul.mubr.f32.gmra.mxu1 %v194_v62  ;;  %1958 = vmatprep.subr.mxu1 %v8348_v34  ;;  %v6749_v62 = vld [vmem:[%s13909_s0 + $0x218] sm:$0xff] }
  0xb6   :  { %1342 = vmatprep.mubr.f32.mxu1 %v6736_v1  ;;  %1593 = vmatprep.subr.mxu0 %v8348_v34 }
  0xb7   :  { %958 = vmatmul.mubr.f32.gmra.mxu0 %v6734_v54  ;;  %1959 = vmatpush2.msra.mxu1 %v742_v17  ;;  %v6746_v54 = vld [vmem:[%s13909_s0 + $0x1f8] sm:$0xff]  ;;  %v6755_v17 = vld [vmem:[%s13909_s0 + $0x260] sm:$0xff] }
  0xb8   :  { %962 = vmatprep.mubr.f32.mxu0 %v132_v3  ;;  %1960 = vmatprep.subr.mxu1 %v8348_v34  ;;  %v146_v3 = vld [vmem:[%s13909_s0 + $0x219] sm:$0xff] }
  0xb9   :  { %1343 = vmatmul.mubr.f32.gmra.mxu1 %v195_v5  ;;  %1594 = vmatpush2.msra.mxu0 %v700_v24  ;;  %v6751_v5 = vld [vmem:[%s13909_s0 + $0x230] sm:$0xff] }
  0xba   :  { %1347 = vmatprep.mubr.f32.mxu1 %v6737_v6  ;;  %1961 = vmatpush2.msra.mxu1 %v741_v19  ;;  %v214_v19 = vld [vmem:[%s13909_s0 + $0x24a] sm:$0xff] }
  0xbb   :  { %963 = vmatmul.mubr.f32.gmra.mxu0 %v6735_v59  ;;  %1962 = vmatprep.subr.mxu1 %v8348_v34  ;;  %v6748_v59 = vld [vmem:[%s13909_s0 + $0x210] sm:$0xff] }
  0xbc   :  { %967 = vmatprep.mubr.f32.mxu0 %v133_v8  ;;  %1963 = vmatpush2.msra.mxu1 %v740_v22  ;;  %v6752_v8 = vld [vmem:[%s13909_s0 + $0x240] sm:$0xff]  ;;  %v153_v24 = vld [vmem:[%s13909_s0 + $0x271] sm:$0xff] }
  0xbd   :  { %1348 = vmatmul.mubr.f32.gmra.mxu1 %v196_v10  ;;  %1964 = vmatprep.subr.mxu1 %v8348_v34  ;;  %v211_v10 = vld [vmem:[%s13909_s0 + $0x22a] sm:$0xff]  ;;  %v215_v22 = vld [vmem:[%s13909_s0 + $0x25a] sm:$0xff] }
  0xbe   :  { %1352 = vmatprep.mubr.f32.mxu1 %v6738_v11  ;;  %1595 = vmatprep.subr.mxu0 %v8348_v34 }
  0xbf   :  { %968 = vmatmul.mubr.f32.gmra.mxu0 %v6736_v1  ;;  %1965 = vmatpush2.msra.mxu1 %v739_v27  ;;  %v208_v1 = vld [vmem:[%s13909_s0 + $0x202] sm:$0xff]  ;;  %v154_v27 = vld [vmem:[%s13909_s0 + $0x279] sm:$0xff] }
  0xc0   :  { %972 = vmatprep.mubr.f32.mxu0 %v134_v14  ;;  %1966 = vmatprep.subr.mxu1 %v8348_v34  ;;  %v6754_v14 = vld [vmem:[%s13909_s0 + $0x258] sm:$0xff] }
  0xc1   :  { %1353 = vmatmul.mubr.f32.gmra.mxu1 %v197_v15  ;;  %1596 = vmatpush2.msra.mxu0 %v699_v38  ;;  %v150_v15 = vld [vmem:[%s13909_s0 + $0x249] sm:$0xff]  ;;  %v6760_v38 = vld [vmem:[%s13909_s0 + $0x2a0] sm:$0xff] }
  0xc2   :  { %1357 = vmatprep.mubr.f32.mxu1 %v6739_v16  ;;  %1967 = vmatpush2.msra.mxu1 %v738_v29 }
  0xc3   :  { %973 = vmatmul.mubr.f32.gmra.mxu0 %v6737_v6  ;;  %1968 = vmatprep.subr.mxu1 %v8348_v34  ;;  %v147_v6 = vld [vmem:[%s13909_s0 + $0x229] sm:$0xff] }
  0xc4   :  { %977 = vmatprep.mubr.f32.mxu0 %v135_v18  ;;  %1969 = vmatpush2.msra.mxu1 %v737_v32  ;;  %v151_v18 = vld [vmem:[%s13909_s0 + $0x259] sm:$0xff] }
  0xc5   :  { %1358 = vmatmul.mubr.f32.gmra.mxu1 %v198_v20  ;;  %1970 = vmatprep.subr.mxu1 %v8348_v34  ;;  %v6756_v20 = vld [vmem:[%s13909_s0 + $0x270] sm:$0xff] }
  0xc6   :  { %1362 = vmatprep.mubr.f32.mxu1 %v6740_v21  ;;  %1971 = vmatpush2.msra.mxu1 %v736_v35  ;;  %v152_v21 = vld [vmem:[%s13909_s0 + $0x261] sm:$0xff] }
  0xc7   :  { %978 = vmatmul.mubr.f32.gmra.mxu0 %v6738_v11  ;;  %1972 = vmatprep.subr.mxu1 %v8348_v34  ;;  %v6753_v11 = vld [vmem:[%s13909_s0 + $0x248] sm:$0xff]  ;;  %v218_v35 = vld [vmem:[%s13909_s0 + $0x27a] sm:$0xff] }
  0xc8   :  { %982 = vmatprep.mubr.f32.mxu0 %v136_v23  ;;  %1973 = vmatpush2.msra.mxu1 %v735_v40  ;;  %v6757_v23 = vld [vmem:[%s13909_s0 + $0x278] sm:$0xff] }
  0xc9   :  { %1363 = vmatmul.mubr.f32.gmra.mxu1 %v199_v25  ;;  %1974 = vmatprep.subr.mxu1 %v8348_v34  ;;  %v216_v25 = vld [vmem:[%s13909_s0 + $0x262] sm:$0xff] }
  0xca   :  { %1367 = vmatprep.mubr.f32.mxu1 %v6741_v26  ;;  %7258 = vmatprep.subr.mxu0 %v8594_v43  ;;  %v6758_v26 = vld [vmem:[%s13909_s0 + $0x288] sm:$0xff] }
  0xcb   :  { %983 = vmatmul.mubr.f32.gmra.mxu0 %v6739_v16  ;;  %1975 = vmatpush2.msra.mxu1 %v734_v45  ;;  %v213_v16 = vld [vmem:[%s13909_s0 + $0x242] sm:$0xff] }
  0xcc   :  { %987 = vmatprep.mubr.f32.mxu0 %v137_v28  ;;  %1976 = vmatprep.subr.mxu1 %v8348_v34  ;;  %v217_v28 = vld [vmem:[%s13909_s0 + $0x272] sm:$0xff] }
  0xcd   :  { %1368 = vmatmul.mubr.f32.gmra.mxu1 %v200_v30  ;;  %v6759_v30 = vld [vmem:[%s13909_s0 + $0x290] sm:$0xff] }
  0xce   :  { %1372 = vmatprep.mubr.f32.mxu1 %v6742_v31  ;;  %1977 = vmatpush2.msra.mxu1 %v733_v47  ;;  %v6761_v47 = vld [vmem:[%s13909_s0 + $0x2a8] sm:$0xff] }
  0xcf   :  { %988 = vmatmul.mubr.f32.gmra.mxu0 %v73_v33  ;;  %1978 = vmatprep.subr.mxu1 %v8348_v34  ;;  %v155_v33 = vld [vmem:[%s13909_s0 + $0x289] sm:$0xff] }
  0xd0   :  { %992 = vmatprep.mubr.f32.mxu0 %v138_v0  ;;  %1979 = vmatpush2.msra.mxu1 %v732_v50  ;;  %v157_v50 = vld [vmem:[%s13909_s0 + $0x2a1] sm:$0xff] }
  0xd1   :  { %1373 = vmatmul.mubr.f32.gmra.mxu1 %v201_v36  ;;  %1980 = vmatprep.subr.mxu1 %v8348_v34 }
  0xd2   :  { %1377 = vmatprep.mubr.f32.mxu1 %v6743_v37  ;;  %1981 = vmatpush2.msra.mxu1 %v731_v52  ;;  %v220_v52 = vld [vmem:[%s13909_s0 + $0x292] sm:$0xff] }
  0xd3   :  { %993 = vmatmul.mubr.f32.gmra.mxu0 %v74_v39  ;;  %4100 = vmatprep.subr.mxu1 %v8348_v34  ;;  %v206_v34 = vld [vmem:[%s13909_s0 + $0x1ea] sm:$0xff] }
  0xd4   :  { %997 = vmatprep.mubr.f32.mxu0 %v139_v41  ;;  %v156_v41 = vld [vmem:[%s13909_s0 + $0x291] sm:$0xff] }
  0xd5   :  { %1378 = vmatmul.mubr.f32.gmra.mxu1 %v202_v42 }
  0xd6   :  { %1382 = vmatprep.mubr.f32.mxu1 %v6744_v44 }
  0xd7   :  { %998 = vmatmul.mubr.f32.gmra.mxu0 %v6742_v31 }
  0xd8   :  { %1002 = vmatprep.mubr.f32.mxu0 %v140_v46 }
  0xd9   :  { %1383 = vmatmul.mubr.f32.gmra.mxu1 %v203_v48 }
  0xda   :  { %1387 = vmatprep.mubr.f32.mxu1 %v6745_v49 }
  0xdb   :  { %1003 = vmatmul.mubr.f32.gmra.mxu0 %v6743_v37 }
  0xdc   :  { %1007 = vmatprep.mubr.f32.mxu0 %v141_v51 }
  0xdd   :  { %1388 = vmatmul.mubr.f32.gmra.mxu1 %v204_v53 }
  0xde   :  { %1392 = vmatprep.mubr.f32.mxu1 %v6746_v54 }
  0xdf   :  { %1008 = vmatmul.mubr.f32.gmra.mxu0 %v6744_v44  ;;  %v219_v44 = vld [vmem:[%s13909_s0 + $0x28a] sm:$0xff] }
  0xe0   :  { %1012 = vmatprep.mubr.f32.mxu0 %v142_v55  ;;  %v6762_v55 = vld [vmem:[%s13909_s0 + $0x2b8] sm:$0xff] }
  0xe1   :  { %1393 = vmatmul.mubr.f32.gmra.mxu1 %v205_v56 }
  0xe2   :  { %1397 = vmatprep.mubr.f32.mxu1 %v6747_v57 }
  0xe3   :  { %1013 = vmatmul.mubr.f32.gmra.mxu0 %v6745_v49 }
  0xe4   :  { %1017 = vmatprep.mubr.f32.mxu0 %v143_v58  ;;  %v158_v58 = vld [vmem:[%s13909_s0 + $0x2a9] sm:$0xff] }
  0xe5   :  { %1398 = vmatmul.mubr.f32.gmra.mxu1 %v206_v34 }
  0xe6   :  { %1402 = vmatprep.mubr.f32.mxu1 %v6748_v59 }
  0xe7   :  { %1018 = vmatmul.mubr.f32.gmra.mxu0 %v6746_v54 }
  0xe8   :  { %1022 = vmatprep.mubr.f32.mxu0 %v144_v60 }
  0xe9   :  { %1403 = vmatmul.mubr.f32.gmra.mxu1 %v207_v61 }
  0xea   :  { %1407 = vmatprep.mubr.f32.mxu1 %v6749_v62 }
  0xeb   :  { %1023 = vmatmul.mubr.f32.gmra.mxu0 %v6747_v57 }
  0xec   :  { %1027 = vmatprep.mubr.f32.mxu0 %v145_v63 }
  0xed   :  { %1408 = vmatmul.mubr.f32.gmra.mxu1 %v208_v1 }
  0xee   :  { %1412 = vmatprep.mubr.f32.mxu1 %v6750_v2 }
  0xef   :  { %1028 = vmatmul.mubr.f32.gmra.mxu0 %v6748_v59  ;;  %v221_v59 = vld [vmem:[%s13909_s0 + $0x2a2] sm:$0xff] }
  0xf0   :  { %1032 = vmatprep.mubr.f32.mxu0 %v146_v3 }
  0xf1   :  { %1413 = vmatmul.mubr.f32.gmra.mxu1 %v209_v4  ;;  %v222_v4 = vld [vmem:[%s13909_s0 + $0x2aa] sm:$0xff] }
  0xf2   :  { %1417 = vmatprep.mubr.f32.mxu1 %v6751_v5 }
  0xf3   :  { %1033 = vmatmul.mubr.f32.gmra.mxu0 %v6749_v62  ;;  %v6763_v62 = vld [vmem:[%s13909_s0 + $0x2c0] sm:$0xff] }
  0xf4   :  { %1037 = vmatprep.mubr.f32.mxu0 %v147_v6 }
  0xf5   :  { %1418 = vmatmul.mubr.f32.gmra.mxu1 %v210_v7  ;;  %v6764_v7 = vld [vmem:[%s13909_s0 + $0x2d0] sm:$0xff] }
  0xf6   :  { %1422 = vmatprep.mubr.f32.mxu1 %v6752_v8 }
  0xf7   :  { %1038 = vmatmul.mubr.f32.gmra.mxu0 %v6750_v2  ;;  %v159_v2 = vld [vmem:[%s13909_s0 + $0x2b9] sm:$0xff] }
  0xf8   :  { %1042 = vmatprep.mubr.f32.mxu0 %v148_v9 }
  0xf9   :  { %1423 = vmatmul.mubr.f32.gmra.mxu1 %v211_v10  ;;  %v160_v10 = vld [vmem:[%s13909_s0 + $0x2c1] sm:$0xff] }
  0xfa   :  { %1427 = vmatprep.mubr.f32.mxu1 %v6753_v11 }
  0xfb   :  { %1043 = vmatmul.mubr.f32.gmra.mxu0 %v6751_v5 }
  0xfc   :  { %1047 = vmatprep.mubr.f32.mxu0 %v149_v12  ;;  %v223_v12 = vld [vmem:[%s13909_s0 + $0x2ba] sm:$0xff] }
  0xfd   :  { %1428 = vmatmul.mubr.f32.gmra.mxu1 %v212_v13 }
  0xfe   :  { %1432 = vmatprep.mubr.f32.mxu1 %v6754_v14 }
  0xff   :  { %1048 = vmatmul.mubr.f32.gmra.mxu0 %v6752_v8 }
 0x100   :  { %1052 = vmatprep.mubr.f32.mxu0 %v150_v15  ;;  %v6765_v15 = vld [vmem:[%s13909_s0 + $0x2d8] sm:$0xff] }
 0x101   :  { %1433 = vmatmul.mubr.f32.gmra.mxu1 %v213_v16 }
 0x102   :  { %1437 = vmatprep.mubr.f32.mxu1 %v6755_v17 }
 0x103   :  { %1053 = vmatmul.mubr.f32.gmra.mxu0 %v6753_v11 }
 0x104   :  { %1057 = vmatprep.mubr.f32.mxu0 %v151_v18  ;;  %v161_v18 = vld [vmem:[%s13909_s0 + $0x2d1] sm:$0xff] }
 0x105   :  { %1438 = vmatmul.mubr.f32.gmra.mxu1 %v214_v19 }
 0x106   :  { %1442 = vmatprep.mubr.f32.mxu1 %v6756_v20 }
 0x107   :  { %1058 = vmatmul.mubr.f32.gmra.mxu0 %v6754_v14 }
 0x108   :  { %1062 = vmatprep.mubr.f32.mxu0 %v152_v21 }
 0x109   :  { %1443 = vmatmul.mubr.f32.gmra.mxu1 %v215_v22 }
 0x10a   :  { %1447 = vmatprep.mubr.f32.mxu1 %v6757_v23 }
 0x10b   :  { %1063 = vmatmul.mubr.f32.gmra.mxu0 %v6755_v17 }
 0x10c   :  { %1067 = vmatprep.mubr.f32.mxu0 %v153_v24 }
 0x10d   :  { %1448 = vmatmul.mubr.f32.gmra.mxu1 %v216_v25 }
 0x10e   :  { %1452 = vmatprep.mubr.f32.mxu1 %v6758_v26 }
 0x10f   :  { %v829_v29 = vpop.f32.mrf.mxu0  ;;  %1068 = vmatmul.mubr.f32.gmra.mxu0 %v6756_v20  ;;  %v224_v20 = vld [vmem:[%s13909_s0 + $0x2c2] sm:$0xff] }
 0x110   :  { %1072 = vmatprep.mubr.f32.mxu0 %v154_v27 }
 0x111   :  { %v1214_v31 = vpop.f32.mrf.mxu1  ;;  %1453 = vmatmul.mubr.f32.gmra.mxu1 %v217_v28  ;;  %v831_v32 = vpop.f32.mrf.mxu0  ;;  %v225_v28 = vld [vmem:[%s13909_s0 + $0x2d2] sm:$0xff] }
 0x112   :  { %v8755_v0 = vadd.f32 %v1214_v31, %v829_v29  ;;  %1457 = vmatprep.mubr.f32.mxu1 %v6759_v30  ;;  %v6767_v31 = vld [vmem:[%s13909_s0 + $0x2f0] sm:$0xff] }
 0x113   :  { %v1216_v36 = vpop.f32.mrf.mxu1  ;;  %v834_v37 = vpop.f32.mrf.mxu0  ;;  %1073 = vmatmul.mubr.f32.gmra.mxu0 %v6757_v23  ;;  %v6766_v23 = vld [vmem:[%s13909_s0 + $0x2e8] sm:$0xff] }
 0x114   :  { %1077 = vmatprep.mubr.f32.mxu0 %v155_v33 }
 0x115   :  { %v1219_v39 = vpop.f32.mrf.mxu1  ;;  %1458 = vmatmul.mubr.f32.gmra.mxu1 %v218_v35  ;;  %v836_v40 = vpop.f32.mrf.mxu0  ;;  %v163_v35 = vld [vmem:[%s13909_s0 + $0x2e9] sm:$0xff] }
 0x116   :  { %v8766_v42 = vadd.f32 %v1219_v39, %v834_v37  ;;  %1462 = vmatprep.mubr.f32.mxu1 %v6760_v38  ;;  %v226_v37 = vld [vmem:[%s13909_s0 + $0x2da] sm:$0xff] }
 0x117   :  { %v1221_v45 = vpop.f32.mrf.mxu1  ;;  %v839_v46 = vpop.f32.mrf.mxu0  ;;  %1078 = vmatmul.mubr.f32.gmra.mxu0 %v6758_v26  ;;  %v162_v26 = vld [vmem:[%s13909_s0 + $0x2d9] sm:$0xff] }
 0x118   :  { %1082 = vmatprep.mubr.f32.mxu0 %v156_v41  ;;  %v6768_v40 = vld [vmem:[%s13909_s0 + $0x300] sm:$0xff]  ;;  %v164_v45 = vld [vmem:[%s13909_s0 + $0x2f1] sm:$0xff] }
 0x119   :  { %v1224_v48 = vpop.f32.mrf.mxu1  ;;  %1463 = vmatmul.mubr.f32.gmra.mxu1 %v219_v44  ;;  %v841_v49 = vpop.f32.mrf.mxu0 }
 0x11a   :  { %v8777_v51 = vadd.f32 %v1224_v48, %v839_v46  ;;  %1467 = vmatprep.mubr.f32.mxu1 %v6761_v47 }
 0x11b   :  { %v1226_v53 = vpop.f32.mrf.mxu1  ;;  %v844_v54 = vpop.f32.mrf.mxu0  ;;  %1083 = vmatmul.mubr.f32.gmra.mxu0 %v6759_v30 }
 0x11c   :  { %1087 = vmatprep.mubr.f32.mxu0 %v157_v50  ;;  %v6769_v50 = vld [vmem:[%s13909_s0 + $0x308] sm:$0xff] }
 0x11d   :  { %v1229_v56 = vpop.f32.mrf.mxu1  ;;  %1468 = vmatmul.mubr.f32.gmra.mxu1 %v220_v52  ;;  %v846_v57 = vpop.f32.mrf.mxu0 }
 0x11e   :  { %v8788_v34 = vadd.f32 %v1229_v56, %v844_v54  ;;  %1472 = vmatprep.mubr.f32.mxu1 %v6762_v55  ;;  %v165_v54 = vld [vmem:[%s13909_s0 + $0x301] sm:$0xff]  ;;  %v228_v56 = vld [vmem:[%s13909_s0 + $0x2f2] sm:$0xff] }
 0x11f   :  { %v1231_v60 = vpop.f32.mrf.mxu1  ;;  %v849_v61 = vpop.f32.mrf.mxu0  ;;  %1088 = vmatmul.mubr.f32.gmra.mxu0 %v6760_v38 }
 0x120   :  { %1092 = vmatprep.mubr.f32.mxu0 %v158_v58 }
 0x121   :  { %v1234_v63 = vpop.f32.mrf.mxu1  ;;  %1473 = vmatmul.mubr.f32.gmra.mxu1 %v221_v59  ;;  %v851_v1 = vpop.f32.mrf.mxu0  ;;  %v6770_v59 = vld [vmem:[%s13909_s0 + $0x318] sm:$0xff] }
 0x122   :  { %v8799_v3 = vadd.f32 %v1234_v63, %v849_v61  ;;  %1477 = vmatprep.mubr.f32.mxu1 %v6763_v62  ;;  %v229_v1 = vld [vmem:[%s13909_s0 + $0x302] sm:$0xff] }
 0x123   :  { %v1236_v5 = vpop.f32.mrf.mxu1  ;;  %v854_v6 = vpop.f32.mrf.mxu0  ;;  %1093 = vmatmul.mubr.f32.gmra.mxu0 %v6761_v47  ;;  %v227_v47 = vld [vmem:[%s13909_s0 + $0x2ea] sm:$0xff] }
 0x124   :  { %1097 = vmatprep.mubr.f32.mxu0 %v159_v2  ;;  %v6771_v5 = vld [vmem:[%s13909_s0 + $0x320] sm:$0xff] }
 0x125   :  { %v1239_v8 = vpop.f32.mrf.mxu1  ;;  %1478 = vmatmul.mubr.f32.gmra.mxu1 %v222_v4  ;;  %v856_v9 = vpop.f32.mrf.mxu0 }
 0x126   :  { %v8810_v11 = vadd.f32 %v1239_v8, %v854_v6  ;;  %1482 = vmatprep.mubr.f32.mxu1 %v6764_v7  ;;  %v167_v8 = vld [vmem:[%s13909_s0 + $0x319] sm:$0xff] }
 0x127   :  { %v1241_v13 = vpop.f32.mrf.mxu1  ;;  %v859_v14 = vpop.f32.mrf.mxu0  ;;  %1098 = vmatmul.mubr.f32.gmra.mxu0 %v6762_v55 }
 0x128   :  { %1102 = vmatprep.mubr.f32.mxu0 %v160_v10  ;;  %v230_v10 = vld [vmem:[%s13909_s0 + $0x30a] sm:$0xff] }
 0x129   :  { %v1244_v16 = vpop.f32.mrf.mxu1  ;;  %1483 = vmatmul.mubr.f32.gmra.mxu1 %v223_v12  ;;  %v861_v17 = vpop.f32.mrf.mxu0 }
 0x12a   :  { %v8821_v19 = vadd.f32 %v1244_v16, %v859_v14  ;;  %1487 = vmatprep.mubr.f32.mxu1 %v6765_v15  ;;  %v6772_v14 = vld [vmem:[%s13909_s0 + $0x330] sm:$0xff]  ;;  %v168_v17 = vld [vmem:[%s13909_s0 + $0x321] sm:$0xff] }
 0x12b   :  { %v1246_v21 = vpop.f32.mrf.mxu1  ;;  %v864_v22 = vpop.f32.mrf.mxu0  ;;  %1103 = vmatmul.mubr.f32.gmra.mxu0 %v6763_v62  ;;  %v166_v62 = vld [vmem:[%s13909_s0 + $0x309] sm:$0xff] }
 0x12c   :  { %1107 = vmatprep.mubr.f32.mxu0 %v161_v18 }
 0x12d   :  { %v1249_v24 = vpop.f32.mrf.mxu1  ;;  %1488 = vmatmul.mubr.f32.gmra.mxu1 %v224_v20  ;;  %v866_v25 = vpop.f32.mrf.mxu0  ;;  %v231_v20 = vld [vmem:[%s13909_s0 + $0x31a] sm:$0xff] }
 0x12e   :  { %v8832_v27 = vadd.f32 %v1249_v24, %v864_v22  ;;  %1492 = vmatprep.mubr.f32.mxu1 %v6766_v23 }
 0x12f   :  { %v1251_v29 = vpop.f32.mrf.mxu1  ;;  %v869_v30 = vpop.f32.mrf.mxu0  ;;  %1108 = vmatmul.mubr.f32.gmra.mxu0 %v6764_v7 }
 0x130   :  { %1112 = vmatprep.mubr.f32.mxu0 %v162_v26  ;;  %v6838_v26 = vld [vmem:[%s13909_s0 + $0x1a] sm:$0xff]  ;;  %v232_v29 = vld [vmem:[%s13909_s0 + $0x322] sm:$0xff] }
 0x131   :  { %v1254_v32 = vpop.f32.mrf.mxu1  ;;  %1493 = vmatmul.mubr.f32.gmra.mxu1 %v225_v28  ;;  %v871_v33 = vpop.f32.mrf.mxu0 }
 0x132   :  { %v8843_v36 = vadd.f32 %v1254_v32, %v869_v30  ;;  %1497 = vmatprep.mubr.f32.mxu1 %v6767_v31  ;;  %v6966_v32 = vld [vmem:[%s13909_s0 + $0x31] sm:$0xff]  ;;  %v6774_v33 = vld [vmem:[%s13909_s0 + $0x19] sm:$0xff] }
 0x133   :  { %v1256_v38 = vpop.f32.mrf.mxu1  ;;  %v874_v39 = vpop.f32.mrf.mxu0  ;;  %1113 = vmatmul.mubr.f32.gmra.mxu0 %v6765_v15 }
 0x134   :  { %1117 = vmatprep.mubr.f32.mxu0 %v163_v35  ;;  %v6839_v38 = vld [vmem:[%s13909_s0 + $0x22] sm:$0xff] }
 0x135   :  { %v1259_v41 = vpop.f32.mrf.mxu1  ;;  %1498 = vmatmul.mubr.f32.gmra.mxu1 %v226_v37  ;;  %v876_v44 = vpop.f32.mrf.mxu0 }
 0x136   :  { %v8854_v46 = vadd.f32 %v1259_v41, %v874_v39  ;;  %1502 = vmatprep.mubr.f32.mxu1 %v6768_v40  ;;  %v761_v41 = vld [vmem:[%s13910_s1 + $0x470] sm:$0xff] }
 0x137   :  { %v1261_v48 = vpop.f32.mrf.mxu1  ;;  %v879_v49 = vpop.f32.mrf.mxu0  ;;  %1118 = vmatmul.mubr.f32.gmra.mxu0 %v6766_v23  ;;  %v6773_v23 = vld [vmem:[%s13909_s0 + $0x338] sm:$0xff] }
 0x138   :  { %1122 = vmatprep.mubr.f32.mxu0 %v164_v45  ;;  %v6775_v48 = vld [vmem:[%s13909_s0 + $0x21] sm:$0xff] }
 0x139   :  { %v1264_v52 = vpop.f32.mrf.mxu1  ;;  %1503 = vmatmul.mubr.f32.gmra.mxu1 %v227_v47  ;;  %v881_v53 = vpop.f32.mrf.mxu0  ;;  %v6967_v47 = vld [vmem:[%s13909_s0 + $0x39] sm:$0xff] }
 0x13a   :  { %v8865_v55 = vadd.f32 %v1264_v52, %v879_v49  ;;  %1507 = vmatprep.mubr.f32.mxu1 %v6769_v50  ;;  %v760_v49 = vld [vmem:[%s13910_s1 + $0x468] sm:$0xff]  ;;  %v6840_v53 = vld [vmem:[%s13909_s0 + $0x32] sm:$0xff] }
 0x13b   :  { %v1266_v57 = vpop.f32.mrf.mxu1  ;;  %v884_v58 = vpop.f32.mrf.mxu0  ;;  %1123 = vmatmul.mubr.f32.gmra.mxu0 %v6767_v31 }
 0x13c   :  { %1127 = vmatprep.mubr.f32.mxu0 %v165_v54 }
 0x13d   :  { %v1269_v60 = vpop.f32.mrf.mxu1  ;;  %1508 = vmatmul.mubr.f32.gmra.mxu1 %v228_v56  ;;  %v886_v61 = vpop.f32.mrf.mxu0  ;;  %v759_v56 = vld [vmem:[%s13910_s1 + $0x460] sm:$0xff] }
 0x13e   :  { %v8876_v63 = vadd.f32 %v1269_v60, %v884_v58  ;;  %1512 = vmatprep.mubr.f32.mxu1 %v6770_v59  ;;  %v758_v60 = vld [vmem:[%s13910_s1 + $0x458] sm:$0xff] }
 0x13f   :  { %v1271_v2 = vpop.f32.mrf.mxu1  ;;  %v889_v4 = vpop.f32.mrf.mxu0  ;;  %1128 = vmatmul.mubr.f32.gmra.mxu0 %v6768_v40  ;;  %v6902_v40 = vld [vmem:[%s13909_s0 + $0x30] sm:$0xff] }
 0x140   :  { %1132 = vmatprep.mubr.f32.mxu0 %v166_v62 }
 0x141   :  { %v1274_v6 = vpop.f32.mrf.mxu1  ;;  %1513 = vmatmul.mubr.f32.gmra.mxu1 %v229_v1  ;;  %v891_v7 = vpop.f32.mrf.mxu0  ;;  %v6841_v1 = vld [vmem:[%s13909_s0 + $0x3a] sm:$0xff] }
 0x142   :  { %v8887_v9 = vadd.f32 %v1274_v6, %v889_v4  ;;  %1517 = vmatprep.mubr.f32.mxu1 %v6771_v5  ;;  %v6904_v4 = vld [vmem:[%s13909_s0 + $0x48] sm:$0xff] }
 0x143   :  { %v1276_v12 = vpop.f32.mrf.mxu1  ;;  %v894_v13 = vpop.f32.mrf.mxu0  ;;  %1133 = vmatmul.mubr.f32.gmra.mxu0 %v6769_v50 }
 0x144   :  { %1137 = vmatprep.mubr.f32.mxu0 %v167_v8  ;;  %v6969_v8 = vld [vmem:[%s13909_s0 + $0x51] sm:$0xff] }
 0x145   :  { %v1279_v15 = vpop.f32.mrf.mxu1  ;;  %1518 = vmatmul.mubr.f32.gmra.mxu1 %v230_v10  ;;  %v896_v16 = vpop.f32.mrf.mxu0  ;;  %v756_v10 = vld [vmem:[%s13910_s1 + $0x448] sm:$0xff] }
 0x146   :  { %v8898_v18 = vadd.f32 %v1279_v15, %v894_v13  ;;  %1522 = vmatprep.mubr.f32.mxu1 %v6772_v14  ;;  %v6842_v14 = vld [vmem:[%s13909_s0 + $0x4a] sm:$0xff] }
 0x147   :  { %v1281_v21 = vpop.f32.mrf.mxu1  ;;  %v899_v22 = vpop.f32.mrf.mxu0  ;;  %1138 = vmatmul.mubr.f32.gmra.mxu0 %v6770_v59  ;;  %v6968_v59 = vld [vmem:[%s13909_s0 + $0x49] sm:$0xff] }
 0x148   :  { %1142 = vmatprep.mubr.f32.mxu0 %v168_v17  ;;  %v6905_v16 = vld [vmem:[%s13909_s0 + $0x50] sm:$0xff]  ;;  %v755_v17 = vld [vmem:[%s13910_s1 + $0x440] sm:$0xff] }
 0x149   :  { %v1284_v24 = vpop.f32.mrf.mxu1  ;;  %1523 = vmatmul.mubr.f32.gmra.mxu1 %v231_v20  ;;  %v901_v25 = vpop.f32.mrf.mxu0 }
 0x14a   :  { %v8909_v28 = vadd.f32 %v1284_v24, %v899_v22  ;;  %1527 = vmatprep.mubr.f32.mxu1 %v6773_v23  ;;  %v6970_v22 = vld [vmem:[%s13909_s0 + $0x61] sm:$0xff]  ;;  %v754_v23 = vld [vmem:[%s13910_s1 + $0x438] sm:$0xff] }
 0x14b   :  { %v1286_v30 = vpop.f32.mrf.mxu1  ;;  %v904_v31 = vpop.f32.mrf.mxu0  ;;  %1143 = vmatmul.mubr.f32.gmra.mxu0 %v6771_v5  ;;  %v757_v5 = vld [vmem:[%s13910_s1 + $0x450] sm:$0xff] }
 0x14c   :  { %1597 = vmatprep.mubr.f32.mxu0 %v6838_v26  ;;  %v6843_v26 = vld [vmem:[%s13909_s0 + $0x52] sm:$0xff]  ;;  %v6906_v30 = vld [vmem:[%s13909_s0 + $0x60] sm:$0xff] }
 0x14d   :  { %v1289_v35 = vpop.f32.mrf.mxu1  ;;  %1528 = vmatmul.mubr.f32.gmra.mxu1 %v232_v29  ;;  %v906_v37 = vpop.f32.mrf.mxu0 }
 0x14e   :  { %v8923_v39 = vadd.f32 %v1289_v35, %v904_v31  ;;  %1982 = vmatprep.mubr.f32.mxu1 %v6966_v32  ;;  %v753_v35 = vld [vmem:[%s13910_s1 + $0x430] sm:$0xff] }
 0x14f   :  { %v1291_v44 = vpop.f32.mrf.mxu1  ;;  %v909_v45 = vpop.f32.mrf.mxu0  ;;  %1598 = vmatmul.mubr.f32.vlgmr.msra.gmra.mxu0 %v6774_v33  ;;  %v6971_v33 = vld [vmem:[%s13909_s0 + $0x69] sm:$0xff] }
 0x150   :  { %7259 = vmatpush3.msra.mxu0 %v8594_v43  ;;  %1602 = vmatprep.mubr.f32.mxu0 %v6839_v38  ;;  %v6903_v43 = vld [vmem:[%s13909_s0 + $0x38] sm:$0xff]  ;;  %v6907_v44 = vld [vmem:[%s13909_s0 + $0x68] sm:$0xff] }
 0x151   :  { %v1294_v50 = vpop.f32.mrf.mxu1  ;;  %v911_v52 = vpop.f32.mrf.mxu0  ;;  %1983 = vmatmul.mubr.f32.vlgmr.msra.gmra.mxu1 %v6902_v40  ;;  %7260 = vmatprep.subr.mxu0 %v761_v41  ;;  %v6844_v40 = vld [vmem:[%s13909_s0 + $0x62] sm:$0xff] }
 0x152   :  { %v8944_v54 = vadd.f32 %v1294_v50, %v909_v45  ;;  %1987 = vmatprep.mubr.f32.mxu1 %v6967_v47  ;;  %7261 = vmatpush3.msra.mxu0 %v761_v41  ;;  %v6845_v52 = vld [vmem:[%s13909_s0 + $0x6a] sm:$0xff] }
 0x153   :  { %v1296_v57 = vpop.f32.mrf.mxu1  ;;  %v914_v58 = vpop.f32.mrf.mxu0  ;;  %1603 = vmatmul.mubr.f32.gmra.mxu0 %v6775_v48  ;;  %7262 = vmatprep.subr.mxu0 %v760_v49  ;;  %v6972_v48 = vld [vmem:[%s13909_s0 + $0x79] sm:$0xff] }
 0x154   :  { %1607 = vmatprep.mubr.f32.mxu0 %v6840_v53  ;;  %7263 = vmatpush3.msra.mxu0 %v760_v49 }
 0x155   :  { %v1299_v61 = vpop.f32.mrf.mxu1  ;;  %v916_v62 = vpop.f32.mrf.mxu0  ;;  %1988 = vmatmul.mubr.f32.gmra.mxu1 %v6903_v43  ;;  %7264 = vmatprep.subr.mxu0 %v759_v56  ;;  %v6908_v43 = vld [vmem:[%s13909_s0 + $0x78] sm:$0xff] }
 0x156   :  { %v8961_v2 = vadd.f32 %v1299_v61, %v914_v58  ;;  %1992 = vmatprep.mubr.f32.mxu1 %v6968_v59  ;;  %7265 = vmatpush3.msra.mxu0 %v759_v56  ;;  %v6973_v58 = vld [vmem:[%s13909_s0 + $0x81] sm:$0xff] }
 0x157   :  { %v1301_v6 = vpop.f32.mrf.mxu1  ;;  %v919_v7 = vpop.f32.mrf.mxu0  ;;  %1608 = vmatmul.mubr.f32.gmra.mxu0 %v6966_v32  ;;  %7266 = vmatprep.subr.mxu0 %v758_v60  ;;  %v6846_v61 = vld [vmem:[%s13909_s0 + $0x7a] sm:$0xff] }
 0x158   :  { %1612 = vmatprep.mubr.f32.mxu0 %v6841_v1  ;;  %7267 = vmatpush3.msra.mxu0 %v758_v60  ;;  %v6909_v1 = vld [vmem:[%s13909_s0 + $0x80] sm:$0xff]  ;;  %v6974_v6 = vld [vmem:[%s13909_s0 + $0x91] sm:$0xff] }
 0x159   :  { %v1304_v12 = vpop.f32.mrf.mxu1  ;;  %v921_v13 = vpop.f32.mrf.mxu0  ;;  %1993 = vmatmul.mubr.f32.gmra.mxu1 %v6904_v4  ;;  %7268 = vmatprep.subr.mxu0 %v757_v5 }
 0x15a   :  { %v8978_v15 = vadd.f32 %v1304_v12, %v919_v7  ;;  %1997 = vmatprep.mubr.f32.mxu1 %v6969_v8  ;;  %7269 = vmatpush3.msra.mxu0 %v757_v5  ;;  %v6910_v13 = vld [vmem:[%s13909_s0 + $0x90] sm:$0xff] }
 0x15b   :  { %v1306_v20 = vpop.f32.mrf.mxu1  ;;  %v924_v21 = vpop.f32.mrf.mxu0  ;;  %1613 = vmatmul.mubr.f32.gmra.mxu0 %v6967_v47  ;;  %7270 = vmatprep.subr.mxu0 %v756_v10 }
 0x15c   :  { %1617 = vmatprep.mubr.f32.mxu0 %v6842_v14  ;;  %7271 = vmatpush3.msra.mxu0 %v756_v10  ;;  %v6847_v10 = vld [vmem:[%s13909_s0 + $0x82] sm:$0xff] }
 0x15d   :  { %v1309_v24 = vpop.f32.mrf.mxu1  ;;  %v926_v25 = vpop.f32.mrf.mxu0  ;;  %1998 = vmatmul.mubr.f32.gmra.mxu1 %v6905_v16  ;;  %7272 = vmatprep.subr.mxu0 %v755_v17  ;;  %v752_v20 = vld [vmem:[%s13910_s1 + $0x428] sm:$0xff] }
 0x15e   :  { %v8995_v29 = vadd.f32 %v1309_v24, %v924_v21  ;;  %2002 = vmatprep.mubr.f32.mxu1 %v6970_v22  ;;  %7273 = vmatpush3.msra.mxu0 %v755_v17  ;;  %v6975_v17 = vld [vmem:[%s13909_s0 + $0x99] sm:$0xff] }
 0x15f   :  { %v1311_v31 = vpop.f32.mrf.mxu1  ;;  %v929_v32 = vpop.f32.mrf.mxu0  ;;  %1618 = vmatmul.mubr.f32.gmra.mxu0 %v6968_v59  ;;  %7274 = vmatprep.subr.mxu0 %v754_v23  ;;  %v6911_v25 = vld [vmem:[%s13909_s0 + $0x98] sm:$0xff] }
 0x160   :  { %1622 = vmatprep.mubr.f32.mxu0 %v6843_v26  ;;  %7275 = vmatpush3.msra.mxu0 %v754_v23  ;;  %v6848_v23 = vld [vmem:[%s13909_s0 + $0x92] sm:$0xff]  ;;  %v6976_v31 = vld [vmem:[%s13909_s0 + $0xa9] sm:$0xff] }
 0x161   :  { %v1314_v37 = vpop.f32.mrf.mxu1  ;;  %v931_v38 = vpop.f32.mrf.mxu0  ;;  %2003 = vmatmul.mubr.f32.gmra.mxu1 %v6906_v30  ;;  %7276 = vmatprep.subr.mxu0 %v753_v35 }
 0x162   :  { %v9009_v41 = vadd.f32 %v1314_v37, %v929_v32  ;;  %2007 = vmatprep.mubr.f32.mxu1 %v6971_v33  ;;  %7277 = vmatpush3.msra.mxu0 %v753_v35  ;;  %v6849_v35 = vld [vmem:[%s13909_s0 + $0x9a] sm:$0xff]  ;;  %v6912_v38 = vld [vmem:[%s13909_s0 + $0xa8] sm:$0xff] }
 0x163   :  { %v1316_v45 = vpop.f32.mrf.mxu1  ;;  %v934_v47 = vpop.f32.mrf.mxu0  ;;  %1623 = vmatmul.mubr.f32.gmra.mxu0 %v6969_v8  ;;  %7278 = vmatprep.subr.mxu0 %v752_v20 }
 0x164   :  { %1627 = vmatprep.mubr.f32.mxu0 %v6844_v40  ;;  %7279 = vmatpush3.msra.mxu0 %v752_v20  ;;  %v6977_v45 = vld [vmem:[%s13909_s0 + $0xb1] sm:$0xff] }
 0x165   :  { %v1319_v49 = vpop.f32.mrf.mxu1  ;;  %v936_v50 = vpop.f32.mrf.mxu0  ;;  %2008 = vmatmul.mubr.f32.gmra.mxu1 %v6907_v44 }
 0x166   :  { %v9020_v53 = vadd.f32 %v1319_v49, %v934_v47  ;;  %2012 = vmatprep.mubr.f32.mxu1 %v6972_v48  ;;  %v6850_v49 = vld [vmem:[%s13909_s0 + $0xaa] sm:$0xff] }
 0x167   :  { %v1321_v56 = vpop.f32.mrf.mxu1  ;;  %v939_v57 = vpop.f32.mrf.mxu0  ;;  %1628 = vmatmul.mubr.f32.gmra.mxu0 %v6970_v22 }
 0x168   :  { %1632 = vmatprep.mubr.f32.mxu0 %v6845_v52  ;;  %v6913_v52 = vld [vmem:[%s13909_s0 + $0xb0] sm:$0xff] }
 0x169   :  { %v1324_v59 = vpop.f32.mrf.mxu1  ;;  %v941_v60 = vpop.f32.mrf.mxu0  ;;  %2013 = vmatmul.mubr.f32.gmra.mxu1 %v6908_v43 }
 0x16a   :  { %v9031_v62 = vadd.f32 %v1324_v59, %v939_v57  ;;  %2017 = vmatprep.mubr.f32.mxu1 %v6973_v58  ;;  %v6978_v57 = vld [vmem:[%s13909_s0 + $0xc1] sm:$0xff]  ;;  %v6851_v60 = vld [vmem:[%s13909_s0 + $0xb2] sm:$0xff] }
 0x16b   :  { %v1326_v4 = vpop.f32.mrf.mxu1  ;;  %v944_v5 = vpop.f32.mrf.mxu0  ;;  %1633 = vmatmul.mubr.f32.gmra.mxu0 %v6971_v33 }
 0x16c   :  { %1637 = vmatprep.mubr.f32.mxu0 %v6846_v61 }
 0x16d   :  { %v1329_v7 = vpop.f32.mrf.mxu1  ;;  %v946_v8 = vpop.f32.mrf.mxu0  ;;  %2018 = vmatmul.mubr.f32.gmra.mxu1 %v6909_v1  ;;  %v6914_v1 = vld [vmem:[%s13909_s0 + $0xc0] sm:$0xff] }
 0x16e   :  { %v9042_v12 = vadd.f32 %v1329_v7, %v944_v5  ;;  %2022 = vmatprep.mubr.f32.mxu1 %v6974_v6  ;;  %v751_v7 = vld [vmem:[%s13910_s1 + $0x420] sm:$0xff] }
 0x16f   :  { %v1331_v14 = vpop.f32.mrf.mxu1  ;;  %v949_v16 = vpop.f32.mrf.mxu0  ;;  %1638 = vmatmul.mubr.f32.gmra.mxu0 %v6972_v48  ;;  %7280 = vmatprep.subr.mxu0 %v751_v7 }
 0x170   :  { %1642 = vmatprep.mubr.f32.mxu0 %v6847_v10  ;;  %7281 = vmatpush3.msra.mxu0 %v751_v7  ;;  %v6856_v7 = vld [vmem:[%s13909_s0 + $0xf2] sm:$0xff] }
 0x171   :  { %v1334_v21 = vpop.f32.mrf.mxu1  ;;  %v951_v22 = vpop.f32.mrf.mxu0  ;;  %2023 = vmatmul.mubr.f32.gmra.mxu1 %v6910_v13  ;;  %v6852_v13 = vld [vmem:[%s13909_s0 + $0xc2] sm:$0xff] }
 0x172   :  { %v9056_v24 = vadd.f32 %v1334_v21, %v949_v16  ;;  %2027 = vmatprep.mubr.f32.mxu1 %v6975_v17  ;;  %v6915_v16 = vld [vmem:[%s13909_s0 + $0xc8] sm:$0xff]  ;;  %v6980_v21 = vld [vmem:[%s13909_s0 + $0xd9] sm:$0xff] }
 0x173   :  { %v1336_v26 = vpop.f32.mrf.mxu1  ;;  %v954_v30 = vpop.f32.mrf.mxu0  ;;  %1643 = vmatmul.mubr.f32.gmra.mxu0 %v6973_v58 }
 0x174   :  { %1647 = vmatprep.mubr.f32.mxu0 %v6848_v23 }
 0x175   :  { %v1339_v32 = vpop.f32.mrf.mxu1  ;;  %v956_v33 = vpop.f32.mrf.mxu0  ;;  %2028 = vmatmul.mubr.f32.gmra.mxu1 %v6911_v25  ;;  %v6853_v25 = vld [vmem:[%s13909_s0 + $0xca] sm:$0xff] }
 0x176   :  { %v9067_v37 = vadd.f32 %v1339_v32, %v954_v30  ;;  %2032 = vmatprep.mubr.f32.mxu1 %v6976_v31  ;;  %v6916_v30 = vld [vmem:[%s13909_s0 + $0xd8] sm:$0xff]  ;;  %v6981_v33 = vld [vmem:[%s13909_s0 + $0xe1] sm:$0xff] }
 0x177   :  { %v1341_v40 = vpop.f32.mrf.mxu1  ;;  %v959_v44 = vpop.f32.mrf.mxu0  ;;  %1648 = vmatmul.mubr.f32.gmra.mxu0 %v6974_v6  ;;  %v6979_v6 = vld [vmem:[%s13909_s0 + $0xc9] sm:$0xff] }
 0x178   :  { %1652 = vmatprep.mubr.f32.mxu0 %v6849_v35  ;;  %v6854_v40 = vld [vmem:[%s13909_s0 + $0xda] sm:$0xff] }
 0x179   :  { %v1344_v47 = vpop.f32.mrf.mxu1  ;;  %v961_v48 = vpop.f32.mrf.mxu0  ;;  %2033 = vmatmul.mubr.f32.gmra.mxu1 %v6912_v38 }
 0x17a   :  { %v9078_v50 = vadd.f32 %v1344_v47, %v959_v44  ;;  %2037 = vmatprep.mubr.f32.mxu1 %v6977_v45 }
 0x17b   :  { %v1346_v43 = vpop.f32.mrf.mxu1  ;;  %v964_v56 = vpop.f32.mrf.mxu0  ;;  %1653 = vmatmul.mubr.f32.gmra.mxu0 %v6975_v17 }
 0x17c   :  { %1657 = vmatprep.mubr.f32.mxu0 %v6850_v49  ;;  %v6982_v49 = vld [vmem:[%s13909_s0 + $0xf1] sm:$0xff] }
 0x17d   :  { %v1349_v58 = vpop.f32.mrf.mxu1  ;;  %v966_v59 = vpop.f32.mrf.mxu0  ;;  %2038 = vmatmul.mubr.f32.gmra.mxu1 %v6913_v52 }
 0x17e   :  { %v9089_v61 = vadd.f32 %v1349_v58, %v964_v56  ;;  %2042 = vmatprep.mubr.f32.mxu1 %v6978_v57  ;;  %v6855_v56 = vld [vmem:[%s13909_s0 + $0xe2] sm:$0xff]  ;;  %v6918_v58 = vld [vmem:[%s13909_s0 + $0xf0] sm:$0xff] }
 0x17f   :  { %v1351_v4 = vpop.f32.mrf.mxu1  ;;  %v969_v5 = vpop.f32.mrf.mxu0  ;;  %1658 = vmatmul.mubr.f32.gmra.mxu0 %v6976_v31 }
 0x180   :  { %1662 = vmatprep.mubr.f32.mxu0 %v6851_v60  ;;  %v750_v4 = vld [vmem:[%s13910_s1 + $0x418] sm:$0xff] }
 0x181   :  { %v1354_v8 = vpop.f32.mrf.mxu1  ;;  %v971_v10 = vpop.f32.mrf.mxu0  ;;  %2043 = vmatmul.mubr.f32.gmra.mxu1 %v6914_v1  ;;  %v6983_v1 = vld [vmem:[%s13909_s0 + $0xf9] sm:$0xff]  ;;  %7282 = vmatprep.subr.mxu0 %v750_v4 }
 0x182   :  { %v9103_v14 = vadd.f32 %v1354_v8, %v969_v5  ;;  %2047 = vmatprep.mubr.f32.mxu1 %v6979_v6  ;;  %v6919_v10 = vld [vmem:[%s13909_s0 + $0xf8] sm:$0xff]  ;;  %7283 = vmatpush3.msra.mxu0 %v750_v4  ;;  %v6987_v4 = vld [vmem:[%s13909_s0 + $0x129] sm:$0xff] }
 0x183   :  { %v1356_v17 = vpop.f32.mrf.mxu1  ;;  %v974_v20 = vpop.f32.mrf.mxu0  ;;  %1663 = vmatmul.mubr.f32.gmra.mxu0 %v6977_v45  ;;  %v6917_v45 = vld [vmem:[%s13909_s0 + $0xe0] sm:$0xff] }
 0x184   :  { %1667 = vmatprep.mubr.f32.mxu0 %v6852_v13  ;;  %v6984_v17 = vld [vmem:[%s13909_s0 + $0x109] sm:$0xff] }
 0x185   :  { %v1359_v22 = vpop.f32.mrf.mxu1  ;;  %v976_v23 = vpop.f32.mrf.mxu0  ;;  %2048 = vmatmul.mubr.f32.gmra.mxu1 %v6915_v16 }
 0x186   :  { %v9114_v26 = vadd.f32 %v1359_v22, %v974_v20  ;;  %2052 = vmatprep.mubr.f32.mxu1 %v6980_v21  ;;  %v6857_v22 = vld [vmem:[%s13909_s0 + $0xfa] sm:$0xff] }
 0x187   :  { %v1361_v31 = vpop.f32.mrf.mxu1  ;;  %v979_v32 = vpop.f32.mrf.mxu0  ;;  %1668 = vmatmul.mubr.f32.gmra.mxu0 %v6978_v57 }
 0x188   :  { %1672 = vmatprep.mubr.f32.mxu0 %v6853_v25  ;;  %v6920_v25 = vld [vmem:[%s13909_s0 + $0x108] sm:$0xff] }
 0x189   :  { %v1364_v35 = vpop.f32.mrf.mxu1  ;;  %v981_v38 = vpop.f32.mrf.mxu0  ;;  %2053 = vmatmul.mubr.f32.gmra.mxu1 %v6916_v30 }
 0x18a   :  { %v9125_v44 = vadd.f32 %v1364_v35, %v979_v32  ;;  %2057 = vmatprep.mubr.f32.mxu1 %v6981_v33  ;;  %v6985_v32 = vld [vmem:[%s13909_s0 + $0x111] sm:$0xff] }
 0x18b   :  { %v1366_v47 = vpop.f32.mrf.mxu1  ;;  %v984_v48 = vpop.f32.mrf.mxu0  ;;  %1673 = vmatmul.mubr.f32.gmra.mxu0 %v6979_v6  ;;  %v6858_v38 = vld [vmem:[%s13909_s0 + $0x10a] sm:$0xff] }
 0x18c   :  { %1677 = vmatprep.mubr.f32.mxu0 %v6854_v40 }
 0x18d   :  { %v1369_v52 = vpop.f32.mrf.mxu1  ;;  %v986_v43 = vpop.f32.mrf.mxu0  ;;  %2058 = vmatmul.mubr.f32.gmra.mxu1 %v6917_v45  ;;  %v6921_v45 = vld [vmem:[%s13909_s0 + $0x110] sm:$0xff] }
 0x18e   :  { %v9136_v57 = vadd.f32 %v1369_v52, %v984_v48  ;;  %2062 = vmatprep.mubr.f32.mxu1 %v6982_v49 }
 0x18f   :  { %v1371_v59 = vpop.f32.mrf.mxu1  ;;  %v989_v60 = vpop.f32.mrf.mxu0  ;;  %1678 = vmatmul.mubr.f32.gmra.mxu0 %v6980_v21 }
 0x190   :  { %1682 = vmatprep.mubr.f32.mxu0 %v6855_v56  ;;  %v6859_v56 = vld [vmem:[%s13909_s0 + $0x112] sm:$0xff]  ;;  %v6922_v59 = vld [vmem:[%s13909_s0 + $0x120] sm:$0xff] }
 0x191   :  { %v1374_v5 = vpop.f32.mrf.mxu1  ;;  %v991_v6 = vpop.f32.mrf.mxu0  ;;  %2063 = vmatmul.mubr.f32.gmra.mxu1 %v6918_v58 }
 0x192   :  { %v9150_v8 = vadd.f32 %v1374_v5, %v989_v60  ;;  %2067 = vmatprep.mubr.f32.mxu1 %v6983_v1  ;;  %v749_v5 = vld [vmem:[%s13910_s1 + $0x410] sm:$0xff] }
 0x193   :  { %v1376_v13 = vpop.f32.mrf.mxu1  ;;  %v994_v16 = vpop.f32.mrf.mxu0  ;;  %1683 = vmatmul.mubr.f32.gmra.mxu0 %v6981_v33  ;;  %7284 = vmatprep.subr.mxu0 %v749_v5 }
 0x194   :  { %1687 = vmatprep.mubr.f32.mxu0 %v6856_v7  ;;  %7285 = vmatpush3.msra.mxu0 %v749_v5  ;;  %v6863_v5 = vld [vmem:[%s13909_s0 + $0x142] sm:$0xff] }
 0x195   :  { %v1379_v20 = vpop.f32.mrf.mxu1  ;;  %v996_v21 = vpop.f32.mrf.mxu0  ;;  %2068 = vmatmul.mubr.f32.gmra.mxu1 %v6919_v10  ;;  %v6860_v10 = vld [vmem:[%s13909_s0 + $0x122] sm:$0xff] }
 0x196   :  { %v9161_v23 = vadd.f32 %v1379_v20, %v994_v16  ;;  %2072 = vmatprep.mubr.f32.mxu1 %v6984_v17  ;;  %v6923_v16 = vld [vmem:[%s13909_s0 + $0x128] sm:$0xff]  ;;  %v6988_v21 = vld [vmem:[%s13909_s0 + $0x139] sm:$0xff] }
 0x197   :  { %v1381_v30 = vpop.f32.mrf.mxu1  ;;  %v999_v31 = vpop.f32.mrf.mxu0  ;;  %1688 = vmatmul.mubr.f32.gmra.mxu0 %v6982_v49  ;;  %v6986_v49 = vld [vmem:[%s13909_s0 + $0x121] sm:$0xff] }
 0x198   :  { %1692 = vmatprep.mubr.f32.mxu0 %v6857_v22  ;;  %v6861_v30 = vld [vmem:[%s13909_s0 + $0x12a] sm:$0xff] }
 0x199   :  { %v1384_v33 = vpop.f32.mrf.mxu1  ;;  %v1001_v35 = vpop.f32.mrf.mxu0  ;;  %2073 = vmatmul.mubr.f32.gmra.mxu1 %v6920_v25 }
 0x19a   :  { %v9172_v40 = vadd.f32 %v1384_v33, %v999_v31  ;;  %2077 = vmatprep.mubr.f32.mxu1 %v6985_v32  ;;  %v6924_v33 = vld [vmem:[%s13909_s0 + $0x138] sm:$0xff] }
 0x19b   :  { %v1386_v47 = vpop.f32.mrf.mxu1  ;;  %v1004_v48 = vpop.f32.mrf.mxu0  ;;  %1693 = vmatmul.mubr.f32.gmra.mxu0 %v6983_v1 }
 0x19c   :  { %1697 = vmatprep.mubr.f32.mxu0 %v6858_v38  ;;  %v6989_v38 = vld [vmem:[%s13909_s0 + $0x141] sm:$0xff] }
 0x19d   :  { %v1389_v52 = vpop.f32.mrf.mxu1  ;;  %v1006_v43 = vpop.f32.mrf.mxu0  ;;  %2078 = vmatmul.mubr.f32.gmra.mxu1 %v6921_v45 }
 0x19e   :  { %v9183_v58 = vadd.f32 %v1389_v52, %v1004_v48  ;;  %2082 = vmatprep.mubr.f32.mxu1 %v6986_v49  ;;  %v6862_v48 = vld [vmem:[%s13909_s0 + $0x13a] sm:$0xff] }
 0x19f   :  { %v1391_v60 = vpop.f32.mrf.mxu1  ;;  %v1009_v1 = vpop.f32.mrf.mxu0  ;;  %1698 = vmatmul.mubr.f32.gmra.mxu0 %v6984_v17  ;;  %v6925_v43 = vld [vmem:[%s13909_s0 + $0x140] sm:$0xff] }
 0x1a0   :  { %1702 = vmatprep.mubr.f32.mxu0 %v6859_v56 }
 0x1a1   :  { %v1394_v6 = vpop.f32.mrf.mxu1  ;;  %v1011_v7 = vpop.f32.mrf.mxu0  ;;  %2083 = vmatmul.mubr.f32.gmra.mxu1 %v6922_v59  ;;  %v6990_v59 = vld [vmem:[%s13909_s0 + $0x151] sm:$0xff] }
 0x1a2   :  { %v9197_v13 = vadd.f32 %v1394_v6, %v1009_v1  ;;  %2087 = vmatprep.mubr.f32.mxu1 %v6987_v4  ;;  %v6926_v7 = vld [vmem:[%s13909_s0 + $0x150] sm:$0xff] }
 0x1a3   :  { %v1396_v17 = vpop.f32.mrf.mxu1  ;;  %v1014_v20 = vpop.f32.mrf.mxu0  ;;  %1703 = vmatmul.mubr.f32.gmra.mxu0 %v6985_v32 }
 0x1a4   :  { %1707 = vmatprep.mubr.f32.mxu0 %v6860_v10  ;;  %v748_v17 = vld [vmem:[%s13910_s1 + $0x408] sm:$0xff] }
 0x1a5   :  { %v1399_v22 = vpop.f32.mrf.mxu1  ;;  %v1016_v25 = vpop.f32.mrf.mxu0  ;;  %2088 = vmatmul.mubr.f32.gmra.mxu1 %v6923_v16  ;;  %v6991_v16 = vld [vmem:[%s13909_s0 + $0x159] sm:$0xff]  ;;  %7286 = vmatprep.subr.mxu0 %v748_v17 }
 0x1a6   :  { %v9208_v31 = vadd.f32 %v1399_v22, %v1014_v20  ;;  %2092 = vmatprep.mubr.f32.mxu1 %v6988_v21  ;;  %v6864_v25 = vld [vmem:[%s13909_s0 + $0x152] sm:$0xff]  ;;  %7287 = vmatpush3.msra.mxu0 %v748_v17 }
 0x1a7   :  { %v1401_v32 = vpop.f32.mrf.mxu1  ;;  %v1019_v35 = vpop.f32.mrf.mxu0  ;;  %1708 = vmatmul.mubr.f32.gmra.mxu0 %v6986_v49 }
 0x1a8   :  { %1712 = vmatprep.mubr.f32.mxu0 %v6861_v30 }
 0x1a9   :  { %v1404_v45 = vpop.f32.mrf.mxu1  ;;  %v1021_v47 = vpop.f32.mrf.mxu0  ;;  %2093 = vmatmul.mubr.f32.gmra.mxu1 %v6924_v33 }
 0x1aa   :  { %v9219_v52 = vadd.f32 %v1404_v45, %v1019_v35  ;;  %2097 = vmatprep.mubr.f32.mxu1 %v6989_v38  ;;  %v6992_v35 = vld [vmem:[%s13909_s0 + $0x169] sm:$0xff] }
 0x1ab   :  { %v1406_v49 = vpop.f32.mrf.mxu1  ;;  %v1024_v56 = vpop.f32.mrf.mxu0  ;;  %1713 = vmatmul.mubr.f32.gmra.mxu0 %v6987_v4 }
 0x1ac   :  { %1717 = vmatprep.mubr.f32.mxu0 %v6862_v48  ;;  %v6865_v48 = vld [vmem:[%s13909_s0 + $0x15a] sm:$0xff]  ;;  %v6928_v49 = vld [vmem:[%s13909_s0 + $0x168] sm:$0xff] }
 0x1ad   :  { %v1409_v60 = vpop.f32.mrf.mxu1  ;;  %v1026_v1 = vpop.f32.mrf.mxu0  ;;  %2098 = vmatmul.mubr.f32.gmra.mxu1 %v6925_v43 }
 0x1ae   :  { %v9230_v6 = vadd.f32 %v1409_v60, %v1024_v56  ;;  %2102 = vmatprep.mubr.f32.mxu1 %v6990_v59  ;;  %v6993_v60 = vld [vmem:[%s13909_s0 + $0x171] sm:$0xff] }
 0x1af   :  { %v1411_v4 = vpop.f32.mrf.mxu1  ;;  %v1029_v10 = vpop.f32.mrf.mxu0  ;;  %1718 = vmatmul.mubr.f32.gmra.mxu0 %v6988_v21  ;;  %v6927_v21 = vld [vmem:[%s13909_s0 + $0x158] sm:$0xff] }
 0x1b0   :  { %1722 = vmatprep.mubr.f32.mxu0 %v6863_v5 }
 0x1b1   :  { %v1414_v20 = vpop.f32.mrf.mxu1  ;;  %v1031_v22 = vpop.f32.mrf.mxu0  ;;  %2103 = vmatmul.mubr.f32.gmra.mxu1 %v6926_v7  ;;  %v6866_v7 = vld [vmem:[%s13909_s0 + $0x16a] sm:$0xff] }
 0x1b2   :  { %v9244_v30 = vadd.f32 %v1414_v20, %v1029_v10  ;;  %2107 = vmatprep.mubr.f32.mxu1 %v6991_v16  ;;  %v6929_v10 = vld [vmem:[%s13909_s0 + $0x170] sm:$0xff]  ;;  %v6994_v20 = vld [vmem:[%s13909_s0 + $0x181] sm:$0xff] }
 0x1b3   :  { %v1416_v33 = vpop.f32.mrf.mxu1  ;;  %v1034_v32 = vpop.f32.mrf.mxu0  ;;  %1723 = vmatmul.mubr.f32.gmra.mxu0 %v6989_v38 }
 0x1b4   :  { %1727 = vmatprep.mubr.f32.mxu0 %v6864_v25 }
 0x1b5   :  { %v1419_v45 = vpop.f32.mrf.mxu1  ;;  %v1036_v47 = vpop.f32.mrf.mxu0  ;;  %2108 = vmatmul.mubr.f32.gmra.mxu1 %v6927_v21  ;;  %v6867_v21 = vld [vmem:[%s13909_s0 + $0x172] sm:$0xff] }
 0x1b6   :  { %v9255_v43 = vadd.f32 %v1419_v45, %v1034_v32  ;;  %2112 = vmatprep.mubr.f32.mxu1 %v6992_v35  ;;  %v6930_v32 = vld [vmem:[%s13909_s0 + $0x180] sm:$0xff]  ;;  %v6995_v47 = vld [vmem:[%s13909_s0 + $0x189] sm:$0xff] }
 0x1b7   :  { %v1421_v38 = vpop.f32.mrf.mxu1  ;;  %v1039_v56 = vpop.f32.mrf.mxu0  ;;  %1728 = vmatmul.mubr.f32.gmra.mxu0 %v6990_v59 }
 0x1b8   :  { %1732 = vmatprep.mubr.f32.mxu0 %v6865_v48  ;;  %v747_v48 = vld [vmem:[%s13910_s1 + $0x400] sm:$0xff] }
 0x1b9   :  { %v1424_v1 = vpop.f32.mrf.mxu1  ;;  %v1041_v5 = vpop.f32.mrf.mxu0  ;;  %2113 = vmatmul.mubr.f32.gmra.mxu1 %v6928_v49  ;;  %7288 = vmatprep.subr.mxu0 %v747_v48 }
 0x1ba   :  { %v9266_v4 = vadd.f32 %v1424_v1, %v1039_v56  ;;  %2117 = vmatprep.mubr.f32.mxu1 %v6993_v60  ;;  %v6868_v56 = vld [vmem:[%s13909_s0 + $0x182] sm:$0xff]  ;;  %7289 = vmatpush3.msra.mxu0 %v747_v48 }
 0x1bb   :  { %v1426_v59 = vpop.f32.mrf.mxu1  ;;  %v1044_v17 = vpop.f32.mrf.mxu0  ;;  %1733 = vmatmul.mubr.f32.gmra.mxu0 %v6991_v16 }
 0x1bc   :  { %1737 = vmatprep.mubr.f32.mxu0 %v6866_v7  ;;  %v7524_v59 = vld [vmem:[#allocation2 + $0x8] sm:$0xff] }
 0x1bd   :  { %v1429_v22 = vpop.f32.mrf.mxu1  ;;  %v1046_v25 = vpop.f32.mrf.mxu0  ;;  %2118 = vmatmul.mubr.f32.gmra.mxu1 %v6929_v10  ;;  %v6996_v10 = vld [vmem:[%s13909_s0 + $0x199] sm:$0xff]  ;;  %4485 = vmatprep.subr.mxu0 %v7524_v59 }
 0x1be   :  { %v9277_v33 = vadd.f32 %v1429_v22, %v1044_v17  ;;  %2122 = vmatprep.mubr.f32.mxu1 %v6994_v20  ;;  %v6869_v25 = vld [vmem:[%s13909_s0 + $0x18a] sm:$0xff] }
 0x1bf   :  { %v1431_v16 = vpop.f32.mrf.mxu1  ;;  %v1049_v45 = vpop.f32.mrf.mxu0  ;;  %1738 = vmatmul.mubr.f32.gmra.mxu0 %v6992_v35  ;;  %v6931_v35 = vld [vmem:[%s13909_s0 + $0x188] sm:$0xff] }
 0x1c0   :  { %1742 = vmatprep.mubr.f32.mxu0 %v6867_v21 }
 0x1c1   :  { %v1434_v49 = vpop.f32.mrf.mxu1  ;;  %v1051_v38 = vpop.f32.mrf.mxu0  ;;  %2123 = vmatmul.mubr.f32.gmra.mxu1 %v6930_v32 }
 0x1c2   :  { %v9291_v1 = vadd.f32 %v1434_v49, %v1049_v45  ;;  %2127 = vmatprep.mubr.f32.mxu1 %v6995_v47  ;;  %v6997_v45 = vld [vmem:[%s13909_s0 + $0x1a1] sm:$0xff]  ;;  %v6870_v38 = vld [vmem:[%s13909_s0 + $0x1ca] sm:$0xff] }
 0x1c3   :  { %v1436_v5 = vpop.f32.mrf.mxu1  ;;  %v1054_v7 = vpop.f32.mrf.mxu0  ;;  %1743 = vmatmul.mubr.f32.gmra.mxu0 %v6993_v60  ;;  %v6932_v60 = vld [vmem:[%s13909_s0 + $0x198] sm:$0xff] }
 0x1c4   :  { %14012 = vst [vmem:[#allocation9_spill] sm:$0xff] %v9291_v1  ;;  %1747 = vmatprep.mubr.f32.mxu0 %v6868_v56 }
 0x1c5   :  { %v1439_v17 = vpop.f32.mrf.mxu1  ;;  %v1056_v22 = vpop.f32.mrf.mxu0  ;;  %2128 = vmatmul.mubr.f32.gmra.mxu1 %v6931_v35  ;;  %v6933_v35 = vld [vmem:[%s13909_s0 + $0x1a0] sm:$0xff] }
 0x1c6   :  { %v9302_v21 = vadd.f32 %v1439_v17, %v1054_v7  ;;  %2132 = vmatprep.mubr.f32.mxu1 %v6996_v10  ;;  %v6998_v7 = vld [vmem:[%s13909_s0 + $0x1e1] sm:$0xff]  ;;  %v6806_v10 = vld [vmem:[%s13909_s0 + $0x1c9] sm:$0xff]  ;;  %v6871_v22 = vld [vmem:[%s13909_s0 + $0x1d2] sm:$0xff] }
 0x1c7   :  { %v1441_v32 = vpop.f32.mrf.mxu1  ;;  %v1059_v16 = vpop.f32.mrf.mxu0  ;;  %1748 = vmatmul.mubr.f32.gmra.mxu0 %v6994_v20 }
 0x1c8   :  { %14013 = vst [vmem:[#allocation10_spill] sm:$0xff] %v9302_v21  ;;  %1752 = vmatprep.mubr.f32.mxu0 %v6869_v25 }
 0x1c9   :  { %v1444_v48 = vpop.f32.mrf.mxu1  ;;  %v1061_v49 = vpop.f32.mrf.mxu0  ;;  %2133 = vmatmul.mubr.f32.gmra.mxu1 %v6932_v60 }
 0x1ca   :  { %v9313_v56 = vadd.f32 %v1444_v48, %v1059_v16  ;;  %2137 = vmatprep.mubr.f32.mxu1 %v6997_v45  ;;  %v6999_v16 = vld [vmem:[%s13909_s0 + $0x1e9] sm:$0xff]  ;;  %v6807_v45 = vld [vmem:[%s13909_s0 + $0x1d1] sm:$0xff] }
 0x1cb   :  { %v1446_v20 = vpop.f32.mrf.mxu1  ;;  %v1064_v5 = vpop.f32.mrf.mxu0  ;;  %1753 = vmatmul.mubr.f32.gmra.mxu0 %v6995_v47  ;;  %v6934_v47 = vld [vmem:[%s13909_s0 + $0x1e0] sm:$0xff] }
 0x1cc   :  { %14014 = vst [vmem:[#allocation11_spill] sm:$0xff] %v9313_v56  ;;  %1757 = vmatprep.mubr.f32.mxu0 %v6870_v38  ;;  %v6872_v38 = vld [vmem:[%s13909_s0 + $0x1e2] sm:$0xff] }
 0x1cd   :  { %v1449_v59 = vpop.f32.mrf.mxu1  ;;  %v1066_v17 = vpop.f32.mrf.mxu0  ;;  %2138 = vmatmul.mubr.f32.gmra.mxu1 %v6933_v35  ;;  %v6935_v20 = vld [vmem:[%s13909_s0 + $0x1e8] sm:$0xff] }
 0x1ce   :  { %v9327_v25 = vadd.f32 %v1449_v59, %v1064_v5  ;;  %2142 = vmatprep.mubr.f32.mxu1 %v6998_v7  ;;  %v7000_v59 = vld [vmem:[%s13909_s0 + $0x1f9] sm:$0xff] }
 0x1cf   :  { %v1451_v60 = vpop.f32.mrf.mxu1  ;;  %v1069_v32 = vpop.f32.mrf.mxu0  ;;  %1758 = vmatmul.mubr.f32.gmra.mxu0 %v6806_v10 }
 0x1d0   :  { %14015 = vst [vmem:[#allocation12_spill] sm:$0xff] %v9327_v25  ;;  %1762 = vmatprep.mubr.f32.mxu0 %v6871_v22 }
 0x1d1   :  { %v1454_v48 = vpop.f32.mrf.mxu1  ;;  %v1071_v49 = vpop.f32.mrf.mxu0  ;;  %2143 = vmatmul.mubr.f32.gmra.mxu1 %v6934_v47  ;;  %v6873_v47 = vld [vmem:[%s13909_s0 + $0x1ea] sm:$0xff] }
 0x1d2   :  { %v9341_v35 = vadd.f32 %v1454_v48, %v1069_v32  ;;  %2147 = vmatprep.mubr.f32.mxu1 %v6999_v16  ;;  %v6936_v32 = vld [vmem:[%s13909_s0 + $0x1f8] sm:$0xff]  ;;  %v7001_v49 = vld [vmem:[%s13909_s0 + $0x201] sm:$0xff] }
 0x1d3   :  { %v1456_v5 = vpop.f32.mrf.mxu1  ;;  %v1074_v10 = vpop.f32.mrf.mxu0  ;;  %1763 = vmatmul.mubr.f32.gmra.mxu0 %v6807_v45 }
 0x1d4   :  { %14016 = vst [vmem:[#allocation13_spill] sm:$0xff] %v9341_v35  ;;  %1767 = vmatprep.mubr.f32.mxu0 %v6872_v38  ;;  %v6874_v5 = vld [vmem:[%s13909_s0 + $0x1fa] sm:$0xff] }
 0x1d5   :  { %v1459_v17 = vpop.f32.mrf.mxu1  ;;  %v1076_v22 = vpop.f32.mrf.mxu0  ;;  %2148 = vmatmul.mubr.f32.gmra.mxu1 %v6935_v20 }
 0x1d6   :  { %v9352_v60 = vadd.f32 %v1459_v17, %v1074_v10  ;;  %2152 = vmatprep.mubr.f32.mxu1 %v7000_v59  ;;  %v6937_v17 = vld [vmem:[%s13909_s0 + $0x200] sm:$0xff] }
 0x1d7   :  { %v1461_v45 = vpop.f32.mrf.mxu1  ;;  %v1079_v48 = vpop.f32.mrf.mxu0  ;;  %1768 = vmatmul.mubr.f32.gmra.mxu0 %v6998_v7 }
 0x1d8   :  { %14017 = vst [vmem:[#allocation14_spill] sm:$0xff] %v9352_v60  ;;  %1772 = vmatprep.mubr.f32.mxu0 %v6873_v47  ;;  %v7002_v47 = vld [vmem:[%s13909_s0 + $0x211] sm:$0xff] }
 0x1d9   :  { %v1464_v38 = vpop.f32.mrf.mxu1  ;;  %v1081_v20 = vpop.f32.mrf.mxu0  ;;  %2153 = vmatmul.mubr.f32.gmra.mxu1 %v6936_v32 }
 0x1da   :  { %v9363_v10 = vadd.f32 %v1464_v38, %v1079_v48  ;;  %2157 = vmatprep.mubr.f32.mxu1 %v7001_v49  ;;  %v6875_v48 = vld [vmem:[%s13909_s0 + $0x202] sm:$0xff]  ;;  %v6938_v20 = vld [vmem:[%s13909_s0 + $0x210] sm:$0xff] }
 0x1db   :  { %v1466_v7 = vpop.f32.mrf.mxu1  ;;  %v1084_v22 = vpop.f32.mrf.mxu0  ;;  %1773 = vmatmul.mubr.f32.gmra.mxu0 %v6999_v16 }
 0x1dc   :  { %14018 = vst [vmem:[#allocation15_spill] sm:$0xff] %v9363_v10  ;;  %1777 = vmatprep.mubr.f32.mxu0 %v6874_v5  ;;  %v7003_v5 = vld [vmem:[%s13909_s0 + $0x219] sm:$0xff] }
 0x1dd   :  { %v1469_v32 = vpop.f32.mrf.mxu1  ;;  %v1086_v45 = vpop.f32.mrf.mxu0  ;;  %2158 = vmatmul.mubr.f32.gmra.mxu1 %v6937_v17 }
 0x1de   :  { %v9374_v38 = vadd.f32 %v1469_v32, %v1084_v22  ;;  %2162 = vmatprep.mubr.f32.mxu1 %v7002_v47  ;;  %v6876_v22 = vld [vmem:[%s13909_s0 + $0x212] sm:$0xff] }
 0x1df   :  { %v1471_v16 = vpop.f32.mrf.mxu1  ;;  %v1089_v7 = vpop.f32.mrf.mxu0  ;;  %1778 = vmatmul.mubr.f32.gmra.mxu0 %v7000_v59 }
 0x1e0   :  { %14019 = vst [vmem:[#allocation16_spill] sm:$0xff] %v9374_v38  ;;  %1782 = vmatprep.mubr.f32.mxu0 %v6875_v48  ;;  %v6939_v16 = vld [vmem:[%s13909_s0 + $0x218] sm:$0xff]  ;;  %v7004_v48 = vld [vmem:[%s13909_s0 + $0x229] sm:$0xff] }
 0x1e1   :  { %v1474_v17 = vpop.f32.mrf.mxu1  ;;  %v1091_v45 = vpop.f32.mrf.mxu0  ;;  %2163 = vmatmul.mubr.f32.gmra.mxu1 %v6938_v20 }
 0x1e2   :  { %v9385_v32 = vadd.f32 %v1474_v17, %v1089_v7  ;;  %2167 = vmatprep.mubr.f32.mxu1 %v7003_v5  ;;  %v6877_v7 = vld [vmem:[%s13909_s0 + $0x21a] sm:$0xff] }
 0x1e3   :  { %v1476_v59 = vpop.f32.mrf.mxu1  ;;  %v1094_v38 = vpop.f32.mrf.mxu0  ;;  %1783 = vmatmul.mubr.f32.gmra.mxu0 %v7001_v49 }
 0x1e4   :  { %14020 = vst [vmem:[#allocation17_spill] sm:$0xff] %v9385_v32  ;;  %1787 = vmatprep.mubr.f32.mxu0 %v6876_v22  ;;  %v6940_v59 = vld [vmem:[%s13909_s0 + $0x228] sm:$0xff]  ;;  %v7005_v22 = vld [vmem:[%s13909_s0 + $0x231] sm:$0xff] }
 0x1e5   :  { %v1479_v20 = vpop.f32.mrf.mxu1  ;;  %v1096_v45 = vpop.f32.mrf.mxu0  ;;  %2168 = vmatmul.mubr.f32.gmra.mxu1 %v6939_v16 }
 0x1e6   :  { %v9396_v17 = vadd.f32 %v1479_v20, %v1094_v38  ;;  %2172 = vmatprep.mubr.f32.mxu1 %v7004_v48  ;;  %v6878_v38 = vld [vmem:[%s13909_s0 + $0x22a] sm:$0xff] }
 0x1e7   :  { %v1481_v49 = vpop.f32.mrf.mxu1  ;;  %v1099_v32 = vpop.f32.mrf.mxu0  ;;  %1788 = vmatmul.mubr.f32.gmra.mxu0 %v7002_v47 }
 0x1e8   :  { %14021 = vst [vmem:[#allocation18_spill] sm:$0xff] %v9396_v17  ;;  %1792 = vmatprep.mubr.f32.mxu0 %v6877_v7  ;;  %v6941_v49 = vld [vmem:[%s13909_s0 + $0x230] sm:$0xff]  ;;  %v7006_v7 = vld [vmem:[%s13909_s0 + $0x241] sm:$0xff] }
 0x1e9   :  { %v1484_v16 = vpop.f32.mrf.mxu1  ;;  %v1101_v45 = vpop.f32.mrf.mxu0  ;;  %2173 = vmatmul.mubr.f32.gmra.mxu1 %v6940_v59 }
 0x1ea   :  { %v9407_v20 = vadd.f32 %v1484_v16, %v1099_v32  ;;  %2177 = vmatprep.mubr.f32.mxu1 %v7005_v22  ;;  %v6879_v32 = vld [vmem:[%s13909_s0 + $0x232] sm:$0xff] }
 0x1eb   :  { %v1486_v47 = vpop.f32.mrf.mxu1  ;;  %v1104_v17 = vpop.f32.mrf.mxu0  ;;  %1793 = vmatmul.mubr.f32.gmra.mxu0 %v7003_v5 }
 0x1ec   :  { %14022 = vst [vmem:[#allocation19_spill] sm:$0xff] %v9407_v20  ;;  %1797 = vmatprep.mubr.f32.mxu0 %v6878_v38  ;;  %v6942_v47 = vld [vmem:[%s13909_s0 + $0x240] sm:$0xff]  ;;  %v7007_v38 = vld [vmem:[%s13909_s0 + $0x249] sm:$0xff] }
 0x1ed   :  { %v1489_v59 = vpop.f32.mrf.mxu1  ;;  %v1106_v45 = vpop.f32.mrf.mxu0  ;;  %2178 = vmatmul.mubr.f32.gmra.mxu1 %v6941_v49 }
 0x1ee   :  { %v9418_v16 = vadd.f32 %v1489_v59, %v1104_v17  ;;  %2182 = vmatprep.mubr.f32.mxu1 %v7006_v7  ;;  %v6880_v17 = vld [vmem:[%s13909_s0 + $0x242] sm:$0xff] }
 0x1ef   :  { %v1491_v5 = vpop.f32.mrf.mxu1  ;;  %v1109_v20 = vpop.f32.mrf.mxu0  ;;  %1798 = vmatmul.mubr.f32.gmra.mxu0 %v7004_v48 }
 0x1f0   :  { %14023 = vst [vmem:[#allocation20_spill] sm:$0xff] %v9418_v16  ;;  %1802 = vmatprep.mubr.f32.mxu0 %v6879_v32  ;;  %v6943_v5 = vld [vmem:[%s13909_s0 + $0x248] sm:$0xff]  ;;  %v7008_v32 = vld [vmem:[%s13909_s0 + $0x259] sm:$0xff] }
 0x1f1   :  { %v1494_v49 = vpop.f32.mrf.mxu1  ;;  %v1111_v45 = vpop.f32.mrf.mxu0  ;;  %2183 = vmatmul.mubr.f32.gmra.mxu1 %v6942_v47 }
 0x1f2   :  { %v9429_v59 = vadd.f32 %v1494_v49, %v1109_v20  ;;  %2187 = vmatprep.mubr.f32.mxu1 %v7007_v38  ;;  %v9440_v20 = vld [vmem:[%s13909_s0 + $0x24a] sm:$0xff] }
 0x1f3   :  { %v1496_v48 = vpop.f32.mrf.mxu1  ;;  %v1114_v16 = vpop.f32.mrf.mxu0  ;;  %1803 = vmatmul.mubr.f32.gmra.mxu0 %v7005_v22  ;;  %v6944_v22 = vld [vmem:[%s13909_s0 + $0x258] sm:$0xff] }
 0x1f4   :  { %14024 = vst [vmem:[#allocation21_spill] sm:$0xff] %v9429_v59  ;;  %1807 = vmatprep.mubr.f32.mxu0 %v6880_v17  ;;  %v7009_v17 = vld [vmem:[%s13909_s0 + $0x261] sm:$0xff] }
 0x1f5   :  { %v1499_v47 = vpop.f32.mrf.mxu1  ;;  %v1116_v45 = vpop.f32.mrf.mxu0  ;;  %2188 = vmatmul.mubr.f32.gmra.mxu1 %v6943_v5 }
 0x1f6   :  { %v9442_v49 = vadd.f32 %v1499_v47, %v1114_v16  ;;  %2192 = vmatprep.mubr.f32.mxu1 %v7008_v32  ;;  %v9454_v16 = vld [vmem:[%s13909_s0 + $0x25a] sm:$0xff] }
 0x1f7   :  { %v1501_v48 = vpop.f32.mrf.mxu1  ;;  %v1119_v59 = vpop.f32.mrf.mxu0  ;;  %1808 = vmatmul.mubr.f32.gmra.mxu0 %v7006_v7  ;;  %v6945_v7 = vld [vmem:[%s13909_s0 + $0x260] sm:$0xff] }
 0x1f8   :  { %14025 = vst [vmem:[#allocation22_spill] sm:$0xff] %v9442_v49  ;;  %1812 = vmatprep.mubr.f32.mxu0 %v9440_v20 }
 0x1f9   :  { %v1504_v5 = vpop.f32.mrf.mxu1  ;;  %v1121_v45 = vpop.f32.mrf.mxu0  ;;  %2193 = vmatmul.mubr.f32.gmra.mxu1 %v6944_v22 }
 0x1fa   :  { %v9456_v47 = vadd.f32 %v1504_v5, %v1119_v59  ;;  %2197 = vmatprep.mubr.f32.mxu1 %v7009_v17  ;;  %v7010_v45 = vld [vmem:[%s13909_s0 + $0x271] sm:$0xff]  ;;  %v9468_v59 = vld [vmem:[%s13909_s0 + $0x262] sm:$0xff] }
 0x1fb   :  { %v1506_v48 = vpop.f32.mrf.mxu1  ;;  %v1124_v49 = vpop.f32.mrf.mxu0  ;;  %1813 = vmatmul.mubr.f32.gmra.mxu0 %v7007_v38  ;;  %v6946_v38 = vld [vmem:[%s13909_s0 + $0x270] sm:$0xff] }
 0x1fc   :  { %14026 = vst [vmem:[#allocation23_spill] sm:$0xff] %v9456_v47  ;;  %1817 = vmatprep.mubr.f32.mxu0 %v9454_v16 }
 0x1fd   :  { %v1509_v22 = vpop.f32.mrf.mxu1  ;;  %v1126_v10 = vpop.f32.mrf.mxu0  ;;  %2198 = vmatmul.mubr.f32.gmra.mxu1 %v6945_v7 }
 0x1fe   :  { %v9470_v5 = vadd.f32 %v1509_v22, %v1124_v49  ;;  %2202 = vmatprep.mubr.f32.mxu1 %v7010_v45  ;;  %v7011_v10 = vld [vmem:[%s13909_s0 + $0x279] sm:$0xff] }
 0x1ff   :  { %v1511_v48 = vpop.f32.mrf.mxu1  ;;  %v1129_v47 = vpop.f32.mrf.mxu0  ;;  %1818 = vmatmul.mubr.f32.gmra.mxu0 %v7008_v32  ;;  %v9482_v49 = vld [vmem:[%s13909_s0 + $0x272] sm:$0xff] }
 0x200   :  { %14027 = vst [vmem:[#allocation24_spill] sm:$0xff] %v9470_v5  ;;  %1822 = vmatprep.mubr.f32.mxu0 %v9468_v59  ;;  %v6947_v32 = vld [vmem:[%s13909_s0 + $0x278] sm:$0xff] }
 0x201   :  { %v1514_v7 = vpop.f32.mrf.mxu1  ;;  %v1131_v60 = vpop.f32.mrf.mxu0  ;;  %2203 = vmatmul.mubr.f32.gmra.mxu1 %v6946_v38 }
 0x202   :  { %v9484_v22 = vadd.f32 %v1514_v7, %v1129_v47  ;;  %2207 = vmatprep.mubr.f32.mxu1 %v7011_v10  ;;  %v7012_v60 = vld [vmem:[%s13909_s0 + $0x289] sm:$0xff]  ;;  %v9496_v47 = vld [vmem:[%s13909_s0 + $0x27a] sm:$0xff] }
 0x203   :  { %v1516_v48 = vpop.f32.mrf.mxu1  ;;  %v1134_v5 = vpop.f32.mrf.mxu0  ;;  %1823 = vmatmul.mubr.f32.gmra.mxu0 %v7009_v17  ;;  %v6948_v17 = vld [vmem:[%s13909_s0 + $0x288] sm:$0xff] }
 0x204   :  { %14028 = vst [vmem:[#allocation25_spill] sm:$0xff] %v9484_v22  ;;  %1827 = vmatprep.mubr.f32.mxu0 %v9482_v49 }
 0x205   :  { %v1519_v38 = vpop.f32.mrf.mxu1  ;;  %v1136_v35 = vpop.f32.mrf.mxu0  ;;  %2208 = vmatmul.mubr.f32.gmra.mxu1 %v6947_v32 }
 0x206   :  { %v9498_v7 = vadd.f32 %v1519_v38, %v1134_v5  ;;  %2212 = vmatprep.mubr.f32.mxu1 %v7012_v60  ;;  %v7013_v35 = vld [vmem:[%s13909_s0 + $0x291] sm:$0xff] }
 0x207   :  { %v1521_v48 = vpop.f32.mrf.mxu1  ;;  %v1139_v22 = vpop.f32.mrf.mxu0  ;;  %1828 = vmatmul.mubr.f32.gmra.mxu0 %v7010_v45  ;;  %v9510_v5 = vld [vmem:[%s13909_s0 + $0x28a] sm:$0xff] }
 0x208   :  { %14029 = vst [vmem:[#allocation26_spill] sm:$0xff] %v9498_v7  ;;  %1832 = vmatprep.mubr.f32.mxu0 %v9496_v47  ;;  %v6949_v45 = vld [vmem:[%s13909_s0 + $0x290] sm:$0xff] }
 0x209   :  { %v1524_v32 = vpop.f32.mrf.mxu1  ;;  %v1141_v25 = vpop.f32.mrf.mxu0  ;;  %2213 = vmatmul.mubr.f32.gmra.mxu1 %v6948_v17 }
 0x20a   :  { %v9512_v38 = vadd.f32 %v1524_v32, %v1139_v22  ;;  %2217 = vmatprep.mubr.f32.mxu1 %v7013_v35  ;;  %v7014_v25 = vld [vmem:[%s13909_s0 + $0x2a1] sm:$0xff]  ;;  %v9524_v22 = vld [vmem:[%s13909_s0 + $0x292] sm:$0xff] }
 0x20b   :  { %v1526_v48 = vpop.f32.mrf.mxu1  ;;  %v1144_v7 = vpop.f32.mrf.mxu0  ;;  %1833 = vmatmul.mubr.f32.gmra.mxu0 %v7011_v10  ;;  %v6950_v10 = vld [vmem:[%s13909_s0 + $0x2a0] sm:$0xff] }
 0x20c   :  { %14030 = vst [vmem:[#allocation27_spill] sm:$0xff] %v9512_v38  ;;  %1837 = vmatprep.mubr.f32.mxu0 %v9510_v5 }
 0x20d   :  { %v1529_v17 = vpop.f32.mrf.mxu1  ;;  %v1146_v56 = vpop.f32.mrf.mxu0  ;;  %2218 = vmatmul.mubr.f32.gmra.mxu1 %v6949_v45 }
 0x20e   :  { %v9526_v32 = vadd.f32 %v1529_v17, %v1144_v7  ;;  %2222 = vmatprep.mubr.f32.mxu1 %v7014_v25  ;;  %v7015_v56 = vld [vmem:[%s13909_s0 + $0x2a9] sm:$0xff] }
 0x20f   :  { %v1531_v48 = vpop.f32.mrf.mxu1  ;;  %v1599_v38 = vpop.f32.mrf.mxu0  ;;  %1838 = vmatmul.mubr.f32.gmra.mxu0 %v7012_v60  ;;  %v9539_v7 = vld [vmem:[%s13909_s0 + $0x2a2] sm:$0xff] }
 0x210   :  { %14031 = vst [vmem:[#allocation28_spill] sm:$0xff] %v9526_v32  ;;  %v1600_v45 = vadd.f32 %v1599_v38, %v8755_v0  ;;  %1842 = vmatprep.mubr.f32.mxu0 %v9524_v22  ;;  %v6951_v60 = vld [vmem:[%s13909_s0 + $0x2a8] sm:$0xff] }
 0x211   :  { %v1601_v21 = vpop.f32.mrf.mxu0  ;;  %v1984_v1 = vpop.f32.mrf.mxu1  ;;  %2223 = vmatmul.mubr.f32.gmra.mxu1 %v6950_v10 }
 0x212   :  { %v9541_v17 = vadd.f32 %v1984_v1, %v1600_v45  ;;  %2227 = vmatprep.mubr.f32.mxu1 %v7015_v56  ;;  %v7016_v21 = vld [vmem:[%s13909_s0 + $0x2b9] sm:$0xff]  ;;  %v9554_v1 = vld [vmem:[%s13909_s0 + $0x2aa] sm:$0xff] }
 0x213   :  { %v1604_v48 = vpop.f32.mrf.mxu0  ;;  %1843 = vmatmul.mubr.f32.gmra.mxu0 %v7013_v35  ;;  %v1986_v0 = vpop.f32.mrf.mxu1  ;;  %v6952_v35 = vld [vmem:[%s13909_s0 + $0x2b8] sm:$0xff] }
 0x214   :  { %14032 = vst [vmem:[#allocation29_spill] sm:$0xff] %v9541_v17  ;;  %v1605_v38 = vadd.f32 %v1604_v48, %v8766_v42  ;;  %1847 = vmatprep.mubr.f32.mxu0 %v9539_v7  ;;  %v7017_v48 = vld [vmem:[%s13909_s0 + $0x2c1] sm:$0xff] }
 0x215   :  { %v1606_v10 = vpop.f32.mrf.mxu0  ;;  %v1989_v32 = vpop.f32.mrf.mxu1  ;;  %2228 = vmatmul.mubr.f32.gmra.mxu1 %v6951_v60 }
 0x216   :  { %v9556_v45 = vadd.f32 %v1989_v32, %v1605_v38  ;;  %2232 = vmatprep.mubr.f32.mxu1 %v7016_v21  ;;  %v9569_v32 = vld [vmem:[%s13909_s0 + $0x2ba] sm:$0xff] }
 0x217   :  { %v1609_v0 = vpop.f32.mrf.mxu0  ;;  %1848 = vmatmul.mubr.f32.gmra.mxu0 %v7014_v25  ;;  %v1991_v42 = vpop.f32.mrf.mxu1  ;;  %v6953_v25 = vld [vmem:[%s13909_s0 + $0x2c0] sm:$0xff] }
 0x218   :  { %14033 = vst [vmem:[#allocation30_spill] sm:$0xff] %v9556_v45  ;;  %v1610_v60 = vadd.f32 %v1609_v0, %v8777_v51  ;;  %1852 = vmatprep.mubr.f32.mxu0 %v9554_v1  ;;  %v7018_v0 = vld [vmem:[%s13909_s0 + $0x2d1] sm:$0xff] }
 0x219   :  { %v1611_v10 = vpop.f32.mrf.mxu0  ;;  %v1994_v17 = vpop.f32.mrf.mxu1  ;;  %2233 = vmatmul.mubr.f32.gmra.mxu1 %v6952_v35 }
 0x21a   :  { %v9571_v38 = vadd.f32 %v1994_v17, %v1610_v60  ;;  %2237 = vmatprep.mubr.f32.mxu1 %v7017_v48  ;;  %v9584_v17 = vld [vmem:[%s13909_s0 + $0x2c2] sm:$0xff] }
 0x21b   :  { %v1614_v42 = vpop.f32.mrf.mxu0  ;;  %1853 = vmatmul.mubr.f32.gmra.mxu0 %v7015_v56  ;;  %v1996_v51 = vpop.f32.mrf.mxu1  ;;  %v6954_v56 = vld [vmem:[%s13909_s0 + $0x2d0] sm:$0xff] }
 0x21c   :  { %14034 = vst [vmem:[#allocation31_spill] sm:$0xff] %v9571_v38  ;;  %v1615_v35 = vadd.f32 %v1614_v42, %v8788_v34  ;;  %1857 = vmatprep.mubr.f32.mxu0 %v9569_v32  ;;  %v7019_v42 = vld [vmem:[%s13909_s0 + $0x2d9] sm:$0xff] }
 0x21d   :  { %v1616_v10 = vpop.f32.mrf.mxu0  ;;  %v1999_v45 = vpop.f32.mrf.mxu1  ;;  %2238 = vmatmul.mubr.f32.gmra.mxu1 %v6953_v25 }
 0x21e   :  { %v9586_v60 = vadd.f32 %v1999_v45, %v1615_v35  ;;  %2242 = vmatprep.mubr.f32.mxu1 %v7018_v0  ;;  %v9599_v45 = vld [vmem:[%s13909_s0 + $0x2d2] sm:$0xff] }
 0x21f   :  { %v1619_v51 = vpop.f32.mrf.mxu0  ;;  %1858 = vmatmul.mubr.f32.gmra.mxu0 %v7016_v21  ;;  %v2001_v34 = vpop.f32.mrf.mxu1  ;;  %v6955_v21 = vld [vmem:[%s13909_s0 + $0x2d8] sm:$0xff] }
 0x220   :  { %14035 = vst [vmem:[#allocation32_spill] sm:$0xff] %v9586_v60  ;;  %v1620_v25 = vadd.f32 %v1619_v51, %v8799_v3  ;;  %1862 = vmatprep.mubr.f32.mxu0 %v9584_v17  ;;  %v7020_v51 = vld [vmem:[%s13909_s0 + $0x2e9] sm:$0xff] }
 0x221   :  { %v1621_v10 = vpop.f32.mrf.mxu0  ;;  %v2004_v38 = vpop.f32.mrf.mxu1  ;;  %2243 = vmatmul.mubr.f32.gmra.mxu1 %v6954_v56 }
 0x222   :  { %v9601_v35 = vadd.f32 %v2004_v38, %v1620_v25  ;;  %2247 = vmatprep.mubr.f32.mxu1 %v7019_v42  ;;  %v9614_v38 = vld [vmem:[%s13909_s0 + $0x2da] sm:$0xff] }
 0x223   :  { %v1624_v34 = vpop.f32.mrf.mxu0  ;;  %1863 = vmatmul.mubr.f32.gmra.mxu0 %v7017_v48  ;;  %v2006_v3 = vpop.f32.mrf.mxu1  ;;  %v6956_v48 = vld [vmem:[%s13909_s0 + $0x2e8] sm:$0xff] }
 0x224   :  { %14036 = vst [vmem:[#allocation33_spill] sm:$0xff] %v9601_v35  ;;  %v1625_v56 = vadd.f32 %v1624_v34, %v8810_v11  ;;  %1867 = vmatprep.mubr.f32.mxu0 %v9599_v45  ;;  %v7021_v34 = vld [vmem:[%s13909_s0 + $0x2f1] sm:$0xff] }
 0x225   :  { %v1626_v10 = vpop.f32.mrf.mxu0  ;;  %v2009_v60 = vpop.f32.mrf.mxu1  ;;  %2248 = vmatmul.mubr.f32.gmra.mxu1 %v6955_v21 }
 0x226   :  { %v9616_v25 = vadd.f32 %v2009_v60, %v1625_v56  ;;  %2252 = vmatprep.mubr.f32.mxu1 %v7020_v51  ;;  %v9629_v60 = vld [vmem:[%s13909_s0 + $0x2ea] sm:$0xff] }
 0x227   :  { %v1629_v3 = vpop.f32.mrf.mxu0  ;;  %1868 = vmatmul.mubr.f32.gmra.mxu0 %v7018_v0  ;;  %v2011_v11 = vpop.f32.mrf.mxu1  ;;  %v6957_v0 = vld [vmem:[%s13909_s0 + $0x2f0] sm:$0xff] }
 0x228   :  { %14037 = vst [vmem:[#allocation34_spill] sm:$0xff] %v9616_v25  ;;  %v1630_v21 = vadd.f32 %v1629_v3, %v8821_v19  ;;  %1872 = vmatprep.mubr.f32.mxu0 %v9614_v38  ;;  %v7022_v3 = vld [vmem:[%s13909_s0 + $0x301] sm:$0xff] }
 0x229   :  { %v1631_v10 = vpop.f32.mrf.mxu0  ;;  %v2014_v35 = vpop.f32.mrf.mxu1  ;;  %2253 = vmatmul.mubr.f32.gmra.mxu1 %v6956_v48 }
 0x22a   :  { %v9631_v56 = vadd.f32 %v2014_v35, %v1630_v21  ;;  %2257 = vmatprep.mubr.f32.mxu1 %v7021_v34  ;;  %v9644_v35 = vld [vmem:[%s13909_s0 + $0x2f2] sm:$0xff] }
 0x22b   :  { %v1634_v11 = vpop.f32.mrf.mxu0  ;;  %1873 = vmatmul.mubr.f32.gmra.mxu0 %v7019_v42  ;;  %v2016_v19 = vpop.f32.mrf.mxu1  ;;  %v6958_v42 = vld [vmem:[%s13909_s0 + $0x300] sm:$0xff] }
 0x22c   :  { %14038 = vst [vmem:[#allocation35_spill] sm:$0xff] %v9631_v56  ;;  %v1635_v48 = vadd.f32 %v1634_v11, %v8832_v27  ;;  %1877 = vmatprep.mubr.f32.mxu0 %v9629_v60  ;;  %v7023_v11 = vld [vmem:[%s13909_s0 + $0x309] sm:$0xff] }
 0x22d   :  { %v1636_v10 = vpop.f32.mrf.mxu0  ;;  %v2019_v25 = vpop.f32.mrf.mxu1  ;;  %2258 = vmatmul.mubr.f32.gmra.mxu1 %v6957_v0 }
 0x22e   :  { %v9646_v21 = vadd.f32 %v2019_v25, %v1635_v48  ;;  %2262 = vmatprep.mubr.f32.mxu1 %v7022_v3  ;;  %v9659_v25 = vld [vmem:[%s13909_s0 + $0x302] sm:$0xff] }
 0x22f   :  { %v1639_v19 = vpop.f32.mrf.mxu0  ;;  %1878 = vmatmul.mubr.f32.gmra.mxu0 %v7020_v51  ;;  %v2021_v27 = vpop.f32.mrf.mxu1  ;;  %v6959_v51 = vld [vmem:[%s13909_s0 + $0x308] sm:$0xff] }
 0x230   :  { %14039 = vst [vmem:[#allocation36_spill] sm:$0xff] %v9646_v21  ;;  %v1640_v0 = vadd.f32 %v1639_v19, %v8843_v36  ;;  %1882 = vmatprep.mubr.f32.mxu0 %v9644_v35  ;;  %v7024_v19 = vld [vmem:[%s13909_s0 + $0x319] sm:$0xff] }
 0x231   :  { %v1641_v10 = vpop.f32.mrf.mxu0  ;;  %v2024_v56 = vpop.f32.mrf.mxu1  ;;  %2263 = vmatmul.mubr.f32.gmra.mxu1 %v6958_v42 }
 0x232   :  { %v9661_v48 = vadd.f32 %v2024_v56, %v1640_v0  ;;  %2267 = vmatprep.mubr.f32.mxu1 %v7023_v11  ;;  %v9674_v56 = vld [vmem:[%s13909_s0 + $0x30a] sm:$0xff] }
 0x233   :  { %v1644_v27 = vpop.f32.mrf.mxu0  ;;  %1883 = vmatmul.mubr.f32.gmra.mxu0 %v7021_v34  ;;  %v2026_v36 = vpop.f32.mrf.mxu1  ;;  %v6960_v34 = vld [vmem:[%s13909_s0 + $0x318] sm:$0xff] }
 0x234   :  { %14040 = vst [vmem:[#allocation37_spill] sm:$0xff] %v9661_v48  ;;  %v1645_v42 = vadd.f32 %v1644_v27, %v8854_v46  ;;  %1887 = vmatprep.mubr.f32.mxu0 %v9659_v25  ;;  %v7025_v27 = vld [vmem:[%s13909_s0 + $0x321] sm:$0xff] }
 0x235   :  { %v1646_v10 = vpop.f32.mrf.mxu0  ;;  %v2029_v21 = vpop.f32.mrf.mxu1  ;;  %2268 = vmatmul.mubr.f32.gmra.mxu1 %v6959_v51 }
 0x236   :  { %v9676_v0 = vadd.f32 %v2029_v21, %v1645_v42  ;;  %2272 = vmatprep.mubr.f32.mxu1 %v7024_v19  ;;  %v9689_v21 = vld [vmem:[%s13909_s0 + $0x31a] sm:$0xff] }
 0x237   :  { %v1649_v36 = vpop.f32.mrf.mxu0  ;;  %1888 = vmatmul.mubr.f32.gmra.mxu0 %v7022_v3  ;;  %v2031_v46 = vpop.f32.mrf.mxu1  ;;  %v6961_v3 = vld [vmem:[%s13909_s0 + $0x320] sm:$0xff] }
 0x238   :  { %14041 = vst [vmem:[#allocation38_spill] sm:$0xff] %v9676_v0  ;;  %v1650_v51 = vadd.f32 %v1649_v36, %v8865_v55  ;;  %1892 = vmatprep.mubr.f32.mxu0 %v9674_v56  ;;  %v7026_v36 = vld [vmem:[%s13909_s0 + $0x331] sm:$0xff] }
 0x239   :  { %v1651_v10 = vpop.f32.mrf.mxu0  ;;  %v2034_v48 = vpop.f32.mrf.mxu1  ;;  %2273 = vmatmul.mubr.f32.gmra.mxu1 %v6960_v34 }
 0x23a   :  { %v9691_v42 = vadd.f32 %v2034_v48, %v1650_v51  ;;  %2277 = vmatprep.mubr.f32.mxu1 %v7025_v27  ;;  %v9704_v48 = vld [vmem:[%s13909_s0 + $0x322] sm:$0xff] }
 0x23b   :  { %v1654_v46 = vpop.f32.mrf.mxu0  ;;  %1893 = vmatmul.mubr.f32.gmra.mxu0 %v7023_v11  ;;  %v2036_v55 = vpop.f32.mrf.mxu1  ;;  %v6962_v11 = vld [vmem:[%s13909_s0 + $0x330] sm:$0xff] }
 0x23c   :  { %14042 = vst [vmem:[#allocation39_spill] sm:$0xff] %v9691_v42  ;;  %v1655_v34 = vadd.f32 %v1654_v46, %v8876_v63  ;;  %1897 = vmatprep.mubr.f32.mxu0 %v9689_v21  ;;  %v7027_v46 = vld [vmem:[%s13909_s0 + $0x339] sm:$0xff] }
 0x23d   :  { %v1656_v10 = vpop.f32.mrf.mxu0  ;;  %v2039_v0 = vpop.f32.mrf.mxu1  ;;  %2278 = vmatmul.mubr.f32.gmra.mxu1 %v6961_v3 }
 0x23e   :  { %v9706_v51 = vadd.f32 %v2039_v0, %v1655_v34  ;;  %2282 = vmatprep.mubr.f32.mxu1 %v7026_v36  ;;  %v9719_v0 = vld [vmem:[%s13909_s0 + $0x332] sm:$0xff] }
 0x23f   :  { %v1659_v55 = vpop.f32.mrf.mxu0  ;;  %1898 = vmatmul.mubr.f32.gmra.mxu0 %v7024_v19  ;;  %v2041_v63 = vpop.f32.mrf.mxu1  ;;  %v6963_v19 = vld [vmem:[%s13909_s0 + $0x338] sm:$0xff] }
 0x240   :  { %14043 = vst [vmem:[#allocation40_spill] sm:$0xff] %v9706_v51  ;;  %v1660_v3 = vadd.f32 %v1659_v55, %v8887_v9  ;;  %1902 = vmatprep.mubr.f32.mxu0 %v9704_v48  ;;  %v7028_v55 = vld [vmem:[%s13909_s0 + $0x349] sm:$0xff] }
 0x241   :  { %v1661_v10 = vpop.f32.mrf.mxu0  ;;  %v2044_v42 = vpop.f32.mrf.mxu1  ;;  %2283 = vmatmul.mubr.f32.gmra.mxu1 %v6962_v11 }
 0x242   :  { %v9721_v34 = vadd.f32 %v2044_v42, %v1660_v3  ;;  %2287 = vmatprep.mubr.f32.mxu1 %v7027_v46  ;;  %v9734_v42 = vld [vmem:[%s13909_s0 + $0x33a] sm:$0xff] }
 0x243   :  { %v1664_v63 = vpop.f32.mrf.mxu0  ;;  %1903 = vmatmul.mubr.f32.gmra.mxu0 %v7025_v27  ;;  %v2046_v9 = vpop.f32.mrf.mxu1  ;;  %v6964_v27 = vld [vmem:[%s13909_s0 + $0x348] sm:$0xff] }
 0x244   :  { %14044 = vst [vmem:[#allocation41_spill] sm:$0xff] %v9721_v34  ;;  %v1665_v11 = vadd.f32 %v1664_v63, %v8898_v18  ;;  %1907 = vmatprep.mubr.f32.mxu0 %v9719_v0  ;;  %v7029_v63 = vld [vmem:[%s13909_s0 + $0x351] sm:$0xff] }
 0x245   :  { %v1666_v10 = vpop.f32.mrf.mxu0  ;;  %v2049_v51 = vpop.f32.mrf.mxu1  ;;  %2288 = vmatmul.mubr.f32.gmra.mxu1 %v6963_v19 }
 0x246   :  { %v9736_v3 = vadd.f32 %v2049_v51, %v1665_v11  ;;  %2292 = vmatprep.mubr.f32.mxu1 %v7028_v55  ;;  %v7030_v51 = vld [vmem:[%s13909_s0 + $0x32] sm:$0xff] }
 0x247   :  { %v1669_v9 = vpop.f32.mrf.mxu0  ;;  %1908 = vmatmul.mubr.f32.gmra.mxu0 %v7026_v36  ;;  %v2051_v18 = vpop.f32.mrf.mxu1  ;;  %v6965_v36 = vld [vmem:[%s13909_s0 + $0x350] sm:$0xff] }
 0x248   :  { %v1670_v19 = vadd.f32 %v1669_v9, %v8909_v28  ;;  %1912 = vmatprep.mubr.f32.mxu0 %v9734_v42 }
 0x249   :  { %v1671_v10 = vpop.f32.mrf.mxu0  ;;  %v2054_v34 = vpop.f32.mrf.mxu1  ;;  %2293 = vmatmul.mubr.f32.gmra.mxu1 %v6964_v27  ;;  %v7031_v27 = vld [vmem:[%s13909_s0 + $0x3a] sm:$0xff] }
 0x24a   :  { %v9749_v55 = vadd.f32 %v2054_v34, %v1670_v19  ;;  %2297 = vmatprep.mubr.f32.mxu1 %v7029_v63  ;;  %v7032_v34 = vld [vmem:[%s13909_s0 + $0x4a] sm:$0xff] }
 0x24b   :  { %v1674_v11 = vpop.f32.mrf.mxu0  ;;  %1913 = vmatmul.mubr.f32.gmra.mxu0 %v7027_v46  ;;  %v2056_v18 = vpop.f32.mrf.mxu1 }
 0x24c   :  { %14045 = vst [vmem:[#allocation42_spill] sm:$0xff] %v9749_v55  ;;  %v1675_v28 = vadd.f32 %v1674_v11, %v8923_v39  ;;  %7290 = vmatprep.mubr.f32.mxu0 %v7030_v51  ;;  %v7033_v39 = vld [vmem:[%s13909_s0 + $0x52] sm:$0xff] }
 0x24d   :  { %v1676_v9 = vpop.f32.mrf.mxu0  ;;  %v2059_v10 = vpop.f32.mrf.mxu1  ;;  %2298 = vmatmul.mubr.f32.gmra.mxu1 %v6965_v36  ;;  %v7034_v36 = vld [vmem:[%s13909_s0 + $0x62] sm:$0xff] }
 0x24e   :  { %v9761_v63 = vadd.f32 %v2059_v10, %v1675_v28 }
 0x24f   :  { %v1679_v19 = vpop.f32.mrf.mxu0  ;;  %v2061_v55 = vpop.f32.mrf.mxu1  ;;  %7291 = vmatmul.mubr.f32.vlgmr.msra.gmra.mxu0 %v7031_v27 }
 0x250   :  { %v1680_v46 = vadd.f32 %v1679_v19, %v8944_v54  ;;  %7293 = vmatprep.mubr.f32.mxu0 %v7032_v34  ;;  %v7035_v54 = vld [vmem:[%s13909_s0 + $0x6a] sm:$0xff]  ;;  %v7036_v34 = vld [vmem:[%s13909_s0 + $0x7a] sm:$0xff] }
 0x251   :  { %v1681_v51 = vpop.f32.mrf.mxu0  ;;  %v2064_v11 = vpop.f32.mrf.mxu1 }
 0x252   :  { %v9770_v18 = vadd.f32 %v2064_v11, %v1680_v46 }
 0x253   :  { %v1684_v28 = vpop.f32.mrf.mxu0  ;;  %v2066_v9 = vpop.f32.mrf.mxu1  ;;  %7294 = vmatmul.mubr.f32.gmra.mxu0 %v7033_v39 }
 0x254   :  { %v1685_v55 = vadd.f32 %v1684_v28, %v8961_v2  ;;  %7296 = vmatprep.mubr.f32.mxu0 %v7034_v36  ;;  %v7037_v2 = vld [vmem:[%s13909_s0 + $0x82] sm:$0xff]  ;;  %v7038_v28 = vld [vmem:[%s13909_s0 + $0x92] sm:$0xff] }
 0x255   :  { %v1686_v27 = vpop.f32.mrf.mxu0  ;;  %v2069_v10 = vpop.f32.mrf.mxu1 }
 0x256   :  { %v9779_v19 = vadd.f32 %v2069_v10, %v1685_v55 }
 0x257   :  { %v1689_v46 = vpop.f32.mrf.mxu0  ;;  %v2071_v51 = vpop.f32.mrf.mxu1  ;;  %7297 = vmatmul.mubr.f32.gmra.mxu0 %v7035_v54 }
 0x258   :  { %v1690_v39 = vadd.f32 %v1689_v46, %v8978_v15  ;;  %7299 = vmatprep.mubr.f32.mxu0 %v7036_v34  ;;  %v7039_v15 = vld [vmem:[%s13909_s0 + $0x9a] sm:$0xff]  ;;  %v7040_v46 = vld [vmem:[%s13909_s0 + $0xaa] sm:$0xff] }
 0x259   :  { %v1691_v11 = vpop.f32.mrf.mxu0  ;;  %v2074_v36 = vpop.f32.mrf.mxu1 }
 0x25a   :  { %v9788_v9 = vadd.f32 %v2074_v36, %v1690_v39 }
 0x25b   :  { %v1694_v55 = vpop.f32.mrf.mxu0  ;;  %v2076_v27 = vpop.f32.mrf.mxu1  ;;  %7300 = vmatmul.mubr.f32.gmra.mxu0 %v7037_v2 }
 0x25c   :  { %v1695_v54 = vadd.f32 %v1694_v55, %v8995_v29  ;;  %7302 = vmatprep.mubr.f32.mxu0 %v7038_v28  ;;  %v7041_v29 = vld [vmem:[%s13909_s0 + $0xb2] sm:$0xff]  ;;  %v7042_v55 = vld [vmem:[%s13909_s0 + $0xc2] sm:$0xff] }
 0x25d   :  { %v1696_v10 = vpop.f32.mrf.mxu0  ;;  %v2079_v34 = vpop.f32.mrf.mxu1 }
 0x25e   :  { %v9797_v51 = vadd.f32 %v2079_v34, %v1695_v54 }
 0x25f   :  { %v1699_v39 = vpop.f32.mrf.mxu0  ;;  %v2081_v11 = vpop.f32.mrf.mxu1  ;;  %7303 = vmatmul.mubr.f32.gmra.mxu0 %v7039_v15 }
 0x260   :  { %v1700_v2 = vadd.f32 %v1699_v39, %v9009_v41  ;;  %7305 = vmatprep.mubr.f32.mxu0 %v7040_v46  ;;  %v7043_v41 = vld [vmem:[%s13909_s0 + $0xca] sm:$0xff]  ;;  %v7044_v39 = vld [vmem:[%s13909_s0 + $0xda] sm:$0xff] }
 0x261   :  { %v1701_v36 = vpop.f32.mrf.mxu0  ;;  %v2084_v28 = vpop.f32.mrf.mxu1 }
 0x262   :  { %v9806_v27 = vadd.f32 %v2084_v28, %v1700_v2 }
 0x263   :  { %v1704_v54 = vpop.f32.mrf.mxu0  ;;  %v2086_v10 = vpop.f32.mrf.mxu1  ;;  %7306 = vmatmul.mubr.f32.gmra.mxu0 %v7041_v29 }
 0x264   :  { %v1705_v15 = vadd.f32 %v1704_v54, %v9020_v53  ;;  %7308 = vmatprep.mubr.f32.mxu0 %v7042_v55  ;;  %v7045_v53 = vld [vmem:[%s13909_s0 + $0xe2] sm:$0xff]  ;;  %v7046_v54 = vld [vmem:[%s13909_s0 + $0xf2] sm:$0xff] }
 0x265   :  { %v1706_v34 = vpop.f32.mrf.mxu0  ;;  %v2089_v46 = vpop.f32.mrf.mxu1 }
 0x266   :  { %v9815_v11 = vadd.f32 %v2089_v46, %v1705_v15 }
 0x267   :  { %v1709_v2 = vpop.f32.mrf.mxu0  ;;  %v2091_v36 = vpop.f32.mrf.mxu1  ;;  %7309 = vmatmul.mubr.f32.gmra.mxu0 %v7043_v41 }
 0x268   :  { %v1710_v29 = vadd.f32 %v1709_v2, %v9031_v62  ;;  %7311 = vmatprep.mubr.f32.mxu0 %v7044_v39  ;;  %v7047_v62 = vld [vmem:[%s13909_s0 + $0xfa] sm:$0xff]  ;;  %v7048_v2 = vld [vmem:[%s13909_s0 + $0x10a] sm:$0xff] }
 0x269   :  { %v1711_v28 = vpop.f32.mrf.mxu0  ;;  %v2094_v55 = vpop.f32.mrf.mxu1 }
 0x26a   :  { %v9824_v10 = vadd.f32 %v2094_v55, %v1710_v29 }
 0x26b   :  { %v1714_v15 = vpop.f32.mrf.mxu0  ;;  %v2096_v34 = vpop.f32.mrf.mxu1  ;;  %7312 = vmatmul.mubr.f32.gmra.mxu0 %v7045_v53 }
 0x26c   :  { %v1715_v41 = vadd.f32 %v1714_v15, %v9042_v12  ;;  %7314 = vmatprep.mubr.f32.mxu0 %v7046_v54  ;;  %v7049_v12 = vld [vmem:[%s13909_s0 + $0x112] sm:$0xff]  ;;  %v7050_v15 = vld [vmem:[%s13909_s0 + $0x122] sm:$0xff] }
 0x26d   :  { %v1716_v46 = vpop.f32.mrf.mxu0  ;;  %v2099_v39 = vpop.f32.mrf.mxu1 }
 0x26e   :  { %v9833_v36 = vadd.f32 %v2099_v39, %v1715_v41 }
 0x26f   :  { %v1719_v29 = vpop.f32.mrf.mxu0  ;;  %v2101_v28 = vpop.f32.mrf.mxu1  ;;  %7315 = vmatmul.mubr.f32.gmra.mxu0 %v7047_v62 }
 0x270   :  { %v1720_v53 = vadd.f32 %v1719_v29, %v9056_v24  ;;  %7317 = vmatprep.mubr.f32.mxu0 %v7048_v2  ;;  %v7051_v24 = vld [vmem:[%s13909_s0 + $0x12a] sm:$0xff]  ;;  %v7052_v29 = vld [vmem:[%s13909_s0 + $0x13a] sm:$0xff] }
 0x271   :  { %v1721_v55 = vpop.f32.mrf.mxu0  ;;  %v2104_v54 = vpop.f32.mrf.mxu1 }
 0x272   :  { %v9842_v34 = vadd.f32 %v2104_v54, %v1720_v53 }
 0x273   :  { %v1724_v41 = vpop.f32.mrf.mxu0  ;;  %v2106_v46 = vpop.f32.mrf.mxu1  ;;  %7318 = vmatmul.mubr.f32.gmra.mxu0 %v7049_v12 }
 0x274   :  { %v1725_v62 = vadd.f32 %v1724_v41, %v9067_v37  ;;  %7320 = vmatprep.mubr.f32.mxu0 %v7050_v15  ;;  %v7053_v37 = vld [vmem:[%s13909_s0 + $0x142] sm:$0xff]  ;;  %v7054_v41 = vld [vmem:[%s13909_s0 + $0x152] sm:$0xff] }
 0x275   :  { %v1726_v39 = vpop.f32.mrf.mxu0  ;;  %v2109_v2 = vpop.f32.mrf.mxu1 }
 0x276   :  { %v9851_v28 = vadd.f32 %v2109_v2, %v1725_v62 }
 0x277   :  { %v1729_v53 = vpop.f32.mrf.mxu0  ;;  %v2111_v55 = vpop.f32.mrf.mxu1  ;;  %7321 = vmatmul.mubr.f32.gmra.mxu0 %v7051_v24 }
 0x278   :  { %v1730_v12 = vadd.f32 %v1729_v53, %v9078_v50  ;;  %7323 = vmatprep.mubr.f32.mxu0 %v7052_v29  ;;  %v7055_v50 = vld [vmem:[%s13909_s0 + $0x15a] sm:$0xff]  ;;  %v7056_v53 = vld [vmem:[%s13909_s0 + $0x16a] sm:$0xff] }
 0x279   :  { %v1731_v54 = vpop.f32.mrf.mxu0  ;;  %v2114_v15 = vpop.f32.mrf.mxu1 }
 0x27a   :  { %v9860_v46 = vadd.f32 %v2114_v15, %v1730_v12 }
 0x27b   :  { %v1734_v62 = vpop.f32.mrf.mxu0  ;;  %v2116_v39 = vpop.f32.mrf.mxu1  ;;  %7324 = vmatmul.mubr.f32.gmra.mxu0 %v7053_v37 }
 0x27c   :  { %v1735_v24 = vadd.f32 %v1734_v62, %v9089_v61  ;;  %7326 = vmatprep.mubr.f32.mxu0 %v7054_v41  ;;  %v7057_v61 = vld [vmem:[%s13909_s0 + $0x172] sm:$0xff]  ;;  %v7058_v62 = vld [vmem:[%s13909_s0 + $0x182] sm:$0xff] }
 0x27d   :  { %v1736_v2 = vpop.f32.mrf.mxu0  ;;  %v2119_v29 = vpop.f32.mrf.mxu1 }
 0x27e   :  { %v9869_v55 = vadd.f32 %v2119_v29, %v1735_v24 }
 0x27f   :  { %v1739_v12 = vpop.f32.mrf.mxu0  ;;  %v2121_v54 = vpop.f32.mrf.mxu1  ;;  %7327 = vmatmul.mubr.f32.gmra.mxu0 %v7055_v50 }
 0x280   :  { %v1740_v37 = vadd.f32 %v1739_v12, %v9103_v14  ;;  %7329 = vmatprep.mubr.f32.mxu0 %v7056_v53  ;;  %v7059_v14 = vld [vmem:[%s13909_s0 + $0x18a] sm:$0xff]  ;;  %v7060_v12 = vld [vmem:[%s13909_s0 + $0x19a] sm:$0xff] }
 0x281   :  { %v1741_v15 = vpop.f32.mrf.mxu0  ;;  %v2124_v41 = vpop.f32.mrf.mxu1 }
 0x282   :  { %v9878_v39 = vadd.f32 %v2124_v41, %v1740_v37 }
 0x283   :  { %v1744_v24 = vpop.f32.mrf.mxu0  ;;  %v2126_v2 = vpop.f32.mrf.mxu1  ;;  %7330 = vmatmul.mubr.f32.gmra.mxu0 %v7057_v61 }
 0x284   :  { %v1745_v50 = vadd.f32 %v1744_v24, %v9114_v26  ;;  %7332 = vmatprep.mubr.f32.mxu0 %v7058_v62  ;;  %v7061_v26 = vld [vmem:[%s13909_s0 + $0x1a2] sm:$0xff] }
 0x285   :  { %v1746_v29 = vpop.f32.mrf.mxu0  ;;  %v2129_v53 = vpop.f32.mrf.mxu1  ;;  %v7062_v24 = vld [vmem:[%s13909_s0 + $0x1e2] sm:$0xff] }
 0x286   :  { %v9887_v54 = vadd.f32 %v2129_v53, %v1745_v50 }
 0x287   :  { %v1749_v37 = vpop.f32.mrf.mxu0  ;;  %v2131_v15 = vpop.f32.mrf.mxu1  ;;  %7333 = vmatmul.mubr.f32.gmra.mxu0 %v7059_v14 }
 0x288   :  { %v1750_v61 = vadd.f32 %v1749_v37, %v9125_v44  ;;  %7335 = vmatprep.mubr.f32.mxu0 %v7060_v12  ;;  %v7063_v44 = vld [vmem:[%s13909_s0 + $0x1ea] sm:$0xff]  ;;  %v7064_v37 = vld [vmem:[%s13909_s0 + $0x1fa] sm:$0xff] }
 0x289   :  { %v1751_v41 = vpop.f32.mrf.mxu0  ;;  %v2134_v62 = vpop.f32.mrf.mxu1 }
 0x28a   :  { %v9896_v2 = vadd.f32 %v2134_v62, %v1750_v61 }
 0x28b   :  { %v1754_v50 = vpop.f32.mrf.mxu0  ;;  %v2136_v29 = vpop.f32.mrf.mxu1  ;;  %7336 = vmatmul.mubr.f32.gmra.mxu0 %v7061_v26 }
 0x28c   :  { %v1755_v14 = vadd.f32 %v1754_v50, %v9136_v57  ;;  %7338 = vmatprep.mubr.f32.mxu0 %v7062_v24  ;;  %v7065_v57 = vld [vmem:[%s13909_s0 + $0x202] sm:$0xff]  ;;  %v7066_v50 = vld [vmem:[%s13909_s0 + $0x212] sm:$0xff] }
 0x28d   :  { %v1756_v53 = vpop.f32.mrf.mxu0  ;;  %v2139_v12 = vpop.f32.mrf.mxu1 }
 0x28e   :  { %v9905_v15 = vadd.f32 %v2139_v12, %v1755_v14 }
 0x28f   :  { %v1759_v61 = vpop.f32.mrf.mxu0  ;;  %v2141_v41 = vpop.f32.mrf.mxu1  ;;  %7339 = vmatmul.mubr.f32.gmra.mxu0 %v7063_v44 }
 0x290   :  { %v1760_v26 = vadd.f32 %v1759_v61, %v9150_v8  ;;  %7341 = vmatprep.mubr.f32.mxu0 %v7064_v37  ;;  %v7067_v8 = vld [vmem:[%s13909_s0 + $0x21a] sm:$0xff]  ;;  %v7068_v61 = vld [vmem:[%s13909_s0 + $0x22a] sm:$0xff] }
 0x291   :  { %v1761_v62 = vpop.f32.mrf.mxu0  ;;  %v2144_v24 = vpop.f32.mrf.mxu1 }
 0x292   :  { %v9914_v29 = vadd.f32 %v2144_v24, %v1760_v26 }
 0x293   :  { %v1764_v14 = vpop.f32.mrf.mxu0  ;;  %v2146_v53 = vpop.f32.mrf.mxu1  ;;  %7342 = vmatmul.mubr.f32.gmra.mxu0 %v7065_v57 }
 0x294   :  { %v1765_v44 = vadd.f32 %v1764_v14, %v9161_v23  ;;  %7344 = vmatprep.mubr.f32.mxu0 %v7066_v50  ;;  %v7069_v23 = vld [vmem:[%s13909_s0 + $0x232] sm:$0xff]  ;;  %v7070_v14 = vld [vmem:[%s13909_s0 + $0x242] sm:$0xff] }
 0x295   :  { %v1766_v12 = vpop.f32.mrf.mxu0  ;;  %v2149_v37 = vpop.f32.mrf.mxu1 }
 0x296   :  { %v9923_v41 = vadd.f32 %v2149_v37, %v1765_v44 }
 0x297   :  { %v1769_v26 = vpop.f32.mrf.mxu0  ;;  %v2151_v62 = vpop.f32.mrf.mxu1  ;;  %7345 = vmatmul.mubr.f32.gmra.mxu0 %v7067_v8 }
 0x298   :  { %v1770_v57 = vadd.f32 %v1769_v26, %v9172_v40  ;;  %7347 = vmatprep.mubr.f32.mxu0 %v7068_v61 }
 0x299   :  { %v1771_v24 = vpop.f32.mrf.mxu0  ;;  %v2154_v50 = vpop.f32.mrf.mxu1 }
 0x29a   :  { %v9932_v53 = vadd.f32 %v2154_v50, %v1770_v57 }
 0x29b   :  { %v1774_v44 = vpop.f32.mrf.mxu0  ;;  %v2156_v12 = vpop.f32.mrf.mxu1  ;;  %7348 = vmatmul.mubr.f32.gmra.mxu0 %v7069_v23 }
 0x29c   :  { %14046 = vst [vmem:[#allocation43_spill] sm:$0xff] %v9932_v53  ;;  %v1775_v8 = vadd.f32 %v1774_v44, %v9183_v58  ;;  %7350 = vmatprep.mubr.f32.mxu0 %v7070_v14 }
 0x29d   :  { %v1776_v40 = vpop.f32.mrf.mxu0  ;;  %v2159_v37 = vpop.f32.mrf.mxu1 }
 0x29e   :  { %v9935_v61 = vadd.f32 %v2159_v37, %v1775_v8 }
 0x29f   :  { %v1779_v26 = vpop.f32.mrf.mxu0  ;;  %v2161_v62 = vpop.f32.mrf.mxu1  ;;  %7351 = vmatmul.mubr.f32.gmra.mxu0 %v9440_v20 }
 0x2a0   :  { %v1780_v24 = vadd.f32 %v1779_v26, %v9197_v13  ;;  %7353 = vmatprep.mubr.f32.mxu0 %v9454_v16 }
 0x2a1   :  { %v1781_v57 = vpop.f32.mrf.mxu0  ;;  %v2164_v50 = vpop.f32.mrf.mxu1 }
 0x2a2   :  { %v9940_v53 = vadd.f32 %v2164_v50, %v1780_v24 }
 0x2a3   :  { %v1784_v23 = vpop.f32.mrf.mxu0  ;;  %v2166_v12 = vpop.f32.mrf.mxu1  ;;  %7354 = vmatmul.mubr.f32.gmra.mxu0 %v9468_v59 }
 0x2a4   :  { %v1785_v58 = vadd.f32 %v1784_v23, %v9208_v31  ;;  %7356 = vmatprep.mubr.f32.mxu0 %v9482_v49 }
 0x2a5   :  { %v1786_v14 = vpop.f32.mrf.mxu0  ;;  %v2169_v44 = vpop.f32.mrf.mxu1 }
 0x2a6   :  { %v9945_v8 = vadd.f32 %v2169_v44, %v1785_v58 }
 0x2a7   :  { %v1789_v20 = vpop.f32.mrf.mxu0  ;;  %v2171_v13 = vpop.f32.mrf.mxu1  ;;  %7357 = vmatmul.mubr.f32.gmra.mxu0 %v9496_v47 }
 0x2a8   :  { %v1790_v16 = vadd.f32 %v1789_v20, %v9219_v52  ;;  %7359 = vmatprep.mubr.f32.mxu0 %v9510_v5 }
 0x2a9   :  { %v1791_v40 = vpop.f32.mrf.mxu0  ;;  %v2174_v37 = vpop.f32.mrf.mxu1 }
 0x2aa   :  { %v9950_v26 = vadd.f32 %v2174_v37, %v1790_v16 }
 0x2ab   :  { %v1794_v59 = vpop.f32.mrf.mxu0  ;;  %v2176_v31 = vpop.f32.mrf.mxu1  ;;  %7360 = vmatmul.mubr.f32.gmra.mxu0 %v9524_v22 }
 0x2ac   :  { %v1795_v49 = vadd.f32 %v1794_v59, %v9230_v6  ;;  %7362 = vmatprep.mubr.f32.mxu0 %v9539_v7 }
 0x2ad   :  { %v1796_v62 = vpop.f32.mrf.mxu0  ;;  %v2179_v24 = vpop.f32.mrf.mxu1 }
 0x2ae   :  { %v9955_v57 = vadd.f32 %v2179_v24, %v1795_v49 }
 0x2af   :  { %v1799_v47 = vpop.f32.mrf.mxu0  ;;  %v2181_v52 = vpop.f32.mrf.mxu1  ;;  %7363 = vmatmul.mubr.f32.gmra.mxu0 %v9554_v1 }
 0x2b0   :  { %v1800_v5 = vadd.f32 %v1799_v47, %v9244_v30  ;;  %7365 = vmatprep.mubr.f32.mxu0 %v9569_v32 }
 0x2b1   :  { %v1801_v50 = vpop.f32.mrf.mxu0  ;;  %v2184_v23 = vpop.f32.mrf.mxu1 }
 0x2b2   :  { %v9960_v12 = vadd.f32 %v2184_v23, %v1800_v5 }
 0x2b3   :  { %v1804_v22 = vpop.f32.mrf.mxu0  ;;  %v2186_v6 = vpop.f32.mrf.mxu1  ;;  %7366 = vmatmul.mubr.f32.gmra.mxu0 %v9584_v17 }
 0x2b4   :  { %v1805_v7 = vadd.f32 %v1804_v22, %v9255_v43  ;;  %7368 = vmatprep.mubr.f32.mxu0 %v9599_v45  ;;  %v14049_v22 = vld [vmem:[#allocation11_spill] sm:$0xff] }
 0x2b5   :  { %v1806_v58 = vpop.f32.mrf.mxu0  ;;  %v2189_v14 = vpop.f32.mrf.mxu1 }
 0x2b6   :  { %v9965_v44 = vadd.f32 %v2189_v14, %v1805_v7 }
 0x2b7   :  { %v1809_v1 = vpop.f32.mrf.mxu0  ;;  %v2191_v30 = vpop.f32.mrf.mxu1  ;;  %7369 = vmatmul.mubr.f32.gmra.mxu0 %v9614_v38 }
 0x2b8   :  { %v1810_v32 = vadd.f32 %v1809_v1, %v9266_v4  ;;  %7371 = vmatprep.mubr.f32.mxu0 %v9629_v60  ;;  %v14047_v60 = vld [vmem:[#allocation9_spill] sm:$0xff]  ;;  %v14050_v30 = vld [vmem:[#allocation12_spill] sm:$0xff] }
 0x2b9   :  { %v1811_v20 = vpop.f32.mrf.mxu0  ;;  %v2194_v13 = vpop.f32.mrf.mxu1 }
 0x2ba   :  { %v9970_v16 = vadd.f32 %v2194_v13, %v1810_v32  ;;  %v3971_v20 = vld [vmem:[#allocation3 + $0x78] sm:$0xff] }
 0x2bb   :  { %v1814_v17 = vpop.f32.mrf.mxu0  ;;  %v2196_v43 = vpop.f32.mrf.mxu1  ;;  %7372 = vmatmul.mubr.f32.gmra.mxu0 %v9644_v35  ;;  %4101 = vmatpush1.msra.mxu1 %v3971_v20 }
 0x2bc   :  { %v1815_v45 = vadd.f32 %v1814_v17, %v9277_v33  ;;  %7374 = vmatprep.mubr.f32.mxu0 %v9659_v25  ;;  %v14048_v25 = vld [vmem:[#allocation10_spill] sm:$0xff] }
 0x2bd   :  { %v1816_v40 = vpop.f32.mrf.mxu0  ;;  %v2199_v37 = vpop.f32.mrf.mxu1  ;;  %v10000_v43 = vld [vmem:[#allocation2 + $0x8] sm:$0xff] }
 0x2be   :  { %v9975_v59 = vadd.f32 %v2199_v37, %v1815_v45  ;;  %14051 = vst [vmem:[#allocation9_spill] sm:$0xff] %v10000_v43  ;;  %4102 = vmatprep.subr.mxu1 %v10000_v43  ;;  %v14052_v37 = vld [vmem:[#allocation13_spill] sm:$0xff] }
 0x2bf   :  { %v1819_v38 = vpop.f32.mrf.mxu0  ;;  %v2201_v4 = vpop.f32.mrf.mxu1  ;;  %7375 = vmatmul.mubr.f32.gmra.mxu0 %v9674_v56  ;;  %v7092_v56 = vld [vmem:[%s13909_s0 + $0x34a] sm:$0xff] }
 0x2c0   :  { %v1820_v31 = vadd.f32 %v1819_v38, %v14047_v60  ;;  %7377 = vmatprep.mubr.f32.mxu0 %v9689_v21 }
 0x2c1   :  { %v1821_v49 = vpop.f32.mrf.mxu0  ;;  %v2204_v62 = vpop.f32.mrf.mxu1 }
 0x2c2   :  { %v9980_v24 = vadd.f32 %v2204_v62, %v1820_v31 }
 0x2c3   :  { %v1824_v35 = vpop.f32.mrf.mxu0  ;;  %v2206_v33 = vpop.f32.mrf.mxu1  ;;  %7378 = vmatmul.mubr.f32.gmra.mxu0 %v9704_v48  ;;  %v7093_v48 = vld [vmem:[%s13909_s0 + $0x352] sm:$0xff] }
 0x2c4   :  { %v1825_v47 = vadd.f32 %v1824_v35, %v14048_v25  ;;  %7380 = vmatprep.mubr.f32.mxu0 %v9719_v0  ;;  %v14053_v35 = vld [vmem:[#allocation14_spill] sm:$0xff]  ;;  %v3970_v25 = vld [vmem:[#allocation3 + $0x70] sm:$0xff] }
 0x2c5   :  { %v1826_v52 = vpop.f32.mrf.mxu0  ;;  %v2209_v5 = vpop.f32.mrf.mxu1  ;;  %4103 = vmatpush1.msra.mxu1 %v3970_v25 }
 0x2c6   :  { %v9988_v50 = vadd.f32 %v2209_v5, %v1825_v47  ;;  %4104 = vmatprep.subr.mxu1 %v10000_v43 }
 0x2c7   :  { %v1829_v21 = vpop.f32.mrf.mxu0  ;;  %v2211_v23 = vpop.f32.mrf.mxu1  ;;  %7381 = vmatmul.mubr.f32.gmra.mxu0 %v9734_v42 }
 0x2c8   :  { %v1830_v6 = vadd.f32 %v1829_v21, %v14049_v22  ;;  %7383 = vmatprep.mubr.f32.mxu0 %v7092_v56  ;;  %v14054_v23 = vld [vmem:[#allocation15_spill] sm:$0xff] }
 0x2c9   :  { %v1831_v0 = vpop.f32.mrf.mxu0  ;;  %v2214_v7 = vpop.f32.mrf.mxu1 }
 0x2ca   :  { %v9995_v58 = vadd.f32 %v2214_v7, %v1830_v6 }
 0x2cb   :  { %v1834_v14 = vpop.f32.mrf.mxu0  ;;  %v2216_v1 = vpop.f32.mrf.mxu1  ;;  %7384 = vmatmul.mubr.f32.gmra.mxu0 %v7093_v48 }
 0x2cc   :  { %v1835_v32 = vadd.f32 %v1834_v14, %v14050_v30  ;;  %v14055_v1 = vld [vmem:[#allocation16_spill] sm:$0xff] }
 0x2cd   :  { %v1836_v13 = vpop.f32.mrf.mxu0  ;;  %v2219_v17 = vpop.f32.mrf.mxu1 }
 0x2ce   :  { %v9998_v42 = vadd.f32 %v2219_v17, %v1835_v32  ;;  %v3969_v32 = vld [vmem:[#allocation3 + $0x68] sm:$0xff] }
 0x2cf   :  { %v1839_v45 = vpop.f32.mrf.mxu0  ;;  %v2221_v40 = vpop.f32.mrf.mxu1  ;;  %4105 = vmatpush1.msra.mxu1 %v3969_v32 }
 0x2d0   :  { %v1840_v38 = vadd.f32 %v1839_v45, %v14052_v37  ;;  %4106 = vmatprep.subr.mxu1 %v10000_v43  ;;  %v14056_v37 = vld [vmem:[#allocation17_spill] sm:$0xff] }
 0x2d1   :  { %v1841_v4 = vpop.f32.mrf.mxu0  ;;  %v2224_v60 = vpop.f32.mrf.mxu1 }
 0x2d2   :  { %v10004_v31 = vadd.f32 %v2224_v60, %v1840_v38 }
 0x2d3   :  { %v1844_v49 = vpop.f32.mrf.mxu0  ;;  %v2226_v62 = vpop.f32.mrf.mxu1 }
 0x2d4   :  { %v1845_v33 = vadd.f32 %v1844_v49, %v14053_v35 }
 0x2d5   :  { %v1846_v47 = vpop.f32.mrf.mxu0  ;;  %v2229_v52 = vpop.f32.mrf.mxu1 }
 0x2d6   :  { %v10007_v5 = vadd.f32 %v2229_v52, %v1845_v33  ;;  %v14057_v33 = vld [vmem:[#allocation18_spill] sm:$0xff]  ;;  %v3968_v47 = vld [vmem:[#allocation3 + $0x60] sm:$0xff] }
 0x2d7   :  { %v1849_v56 = vpop.f32.mrf.mxu0  ;;  %v2231_v21 = vpop.f32.mrf.mxu1  ;;  %4107 = vmatpush1.msra.mxu1 %v3968_v47 }
 0x2d8   :  { %v1850_v22 = vadd.f32 %v1849_v56, %v14054_v23  ;;  %4108 = vmatprep.subr.mxu1 %v10000_v43 }
 0x2d9   :  { %v1851_v6 = vpop.f32.mrf.mxu0  ;;  %v2234_v48 = vpop.f32.mrf.mxu1 }
 0x2da   :  { %v10011_v0 = vadd.f32 %v2234_v48, %v1850_v22  ;;  %v14058_v6 = vld [vmem:[#allocation19_spill] sm:$0xff] }
 0x2db   :  { %v1854_v7 = vpop.f32.mrf.mxu0  ;;  %v2236_v14 = vpop.f32.mrf.mxu1 }
 0x2dc   :  { %v1855_v30 = vadd.f32 %v1854_v7, %v14055_v1 }
 0x2dd   :  { %v1856_v20 = vpop.f32.mrf.mxu0  ;;  %v2239_v13 = vpop.f32.mrf.mxu1 }
 0x2de   :  { %v10014_v17 = vadd.f32 %v2239_v13, %v1855_v30  ;;  %v14059_v20 = vld [vmem:[#allocation20_spill] sm:$0xff] }
 0x2df   :  { %v1859_v45 = vpop.f32.mrf.mxu0  ;;  %v2241_v40 = vpop.f32.mrf.mxu1 }
 0x2e0   :  { %v1860_v38 = vadd.f32 %v1859_v45, %v14056_v37  ;;  %v3967_v45 = vld [vmem:[#allocation3 + $0x58] sm:$0xff] }
 0x2e1   :  { %v1861_v4 = vpop.f32.mrf.mxu0  ;;  %v2244_v60 = vpop.f32.mrf.mxu1  ;;  %4109 = vmatpush1.msra.mxu1 %v3967_v45 }
 0x2e2   :  { %v10018_v49 = vadd.f32 %v2244_v60, %v1860_v38  ;;  %4110 = vmatprep.subr.mxu1 %v10000_v43 }
 0x2e3   :  { %v1864_v62 = vpop.f32.mrf.mxu0  ;;  %v2246_v35 = vpop.f32.mrf.mxu1 }
 0x2e4   :  { %v1865_v25 = vadd.f32 %v1864_v62, %v14057_v33  ;;  %v14060_v62 = vld [vmem:[#allocation21_spill] sm:$0xff] }
 0x2e5   :  { %v1866_v52 = vpop.f32.mrf.mxu0  ;;  %v2249_v56 = vpop.f32.mrf.mxu1 }
 0x2e6   :  { %v10021_v21 = vadd.f32 %v2249_v56, %v1865_v25 }
 0x2e7   :  { %v1869_v23 = vpop.f32.mrf.mxu0  ;;  %v2251_v22 = vpop.f32.mrf.mxu1 }
 0x2e8   :  { %v1870_v48 = vadd.f32 %v1869_v23, %v14058_v6  ;;  %v14061_v23 = vld [vmem:[#allocation22_spill] sm:$0xff]  ;;  %v3966_v6 = vld [vmem:[#allocation3 + $0x50] sm:$0xff] }
 0x2e9   :  { %v1871_v7 = vpop.f32.mrf.mxu0  ;;  %v2254_v14 = vpop.f32.mrf.mxu1  ;;  %4111 = vmatpush1.msra.mxu1 %v3966_v6  ;;  %v14064_v6 = vld [vmem:[#allocation25_spill] sm:$0xff] }
 0x2ea   :  { %v10025_v1 = vadd.f32 %v2254_v14, %v1870_v48  ;;  %4112 = vmatprep.subr.mxu1 %v10000_v43 }
 0x2eb   :  { %v1874_v30 = vpop.f32.mrf.mxu0  ;;  %v2256_v32 = vpop.f32.mrf.mxu1 }
 0x2ec   :  { %v1875_v13 = vadd.f32 %v1874_v30, %v14059_v20  ;;  %v14062_v20 = vld [vmem:[#allocation23_spill] sm:$0xff] }
 0x2ed   :  { %v1876_v40 = vpop.f32.mrf.mxu0  ;;  %v2259_v37 = vpop.f32.mrf.mxu1 }
 0x2ee   :  { %v10028_v38 = vadd.f32 %v2259_v37, %v1875_v13 }
 0x2ef   :  { %v1879_v4 = vpop.f32.mrf.mxu0  ;;  %v2261_v60 = vpop.f32.mrf.mxu1 }
 0x2f0   :  { %v1880_v35 = vadd.f32 %v1879_v4, %v14060_v62  ;;  %v14063_v62 = vld [vmem:[#allocation24_spill] sm:$0xff] }
 0x2f1   :  { %v1881_v33 = vpop.f32.mrf.mxu0  ;;  %v2264_v25 = vpop.f32.mrf.mxu1 }
 0x2f2   :  { %v10032_v47 = vadd.f32 %v2264_v25, %v1880_v35  ;;  %v3965_v33 = vld [vmem:[#allocation3 + $0x48] sm:$0xff] }
 0x2f3   :  { %v1884_v52 = vpop.f32.mrf.mxu0  ;;  %v2266_v56 = vpop.f32.mrf.mxu1  ;;  %4113 = vmatpush1.msra.mxu1 %v3965_v33 }
 0x2f4   :  { %v1885_v22 = vadd.f32 %v1884_v52, %v14061_v23  ;;  %4114 = vmatprep.subr.mxu1 %v10000_v43 }
 0x2f5   :  { %v1886_v48 = vpop.f32.mrf.mxu0  ;;  %v2269_v7 = vpop.f32.mrf.mxu1 }
 0x2f6   :  { %v10035_v14 = vadd.f32 %v2269_v7, %v1885_v22 }
 0x2f7   :  { %v1889_v30 = vpop.f32.mrf.mxu0  ;;  %v2271_v32 = vpop.f32.mrf.mxu1 }
 0x2f8   :  { %v1890_v13 = vadd.f32 %v1889_v30, %v14062_v20 }
 0x2f9   :  { %v1891_v45 = vpop.f32.mrf.mxu0  ;;  %v2274_v40 = vpop.f32.mrf.mxu1 }
 0x2fa   :  { %v10039_v37 = vadd.f32 %v2274_v40, %v1890_v13  ;;  %v14066_v45 = vld [vmem:[#allocation26_spill] sm:$0xff] }
 0x2fb   :  { %v1894_v4 = vpop.f32.mrf.mxu0  ;;  %v2276_v60 = vpop.f32.mrf.mxu1 }
 0x2fc   :  { %v1895_v35 = vadd.f32 %v1894_v4, %v14063_v62  ;;  %v3964_v4 = vld [vmem:[#allocation3 + $0x40] sm:$0xff] }
 0x2fd   :  { %v1896_v25 = vpop.f32.mrf.mxu0  ;;  %v2279_v52 = vpop.f32.mrf.mxu1  ;;  %4115 = vmatpush1.msra.mxu1 %v3964_v4 }
 0x2fe   :  { %v10042_v56 = vadd.f32 %v2279_v52, %v1895_v35  ;;  %4116 = vmatprep.subr.mxu1 %v10000_v43  ;;  %v14067_v52 = vld [vmem:[#allocation27_spill] sm:$0xff] }
 0x2ff   :  { %v1899_v23 = vpop.f32.mrf.mxu0  ;;  %v2281_v22 = vpop.f32.mrf.mxu1 }
 0x300   :  { %v1900_v48 = vadd.f32 %v1899_v23, %v14064_v6 }
 0x301   :  { %v1901_v7 = vpop.f32.mrf.mxu0  ;;  %v2284_v30 = vpop.f32.mrf.mxu1 }
 0x302   :  { %v10046_v32 = vadd.f32 %v2284_v30, %v1900_v48 }
 0x303   :  { %v1904_v20 = vpop.f32.mrf.mxu0  ;;  %v2286_v13 = vpop.f32.mrf.mxu1 }
 0x304   :  { %14065 = vst [vmem:[#allocation10_spill] sm:$0xff] %v10046_v32  ;;  %v1905_v40 = vadd.f32 %v1904_v20, %v14066_v45  ;;  %v14069_v13 = vld [vmem:[#allocation28_spill] sm:$0xff] }
 0x305   :  { %v1906_v60 = vpop.f32.mrf.mxu0  ;;  %v2289_v62 = vpop.f32.mrf.mxu1  ;;  %v3963_v45 = vld [vmem:[#allocation3 + $0x38] sm:$0xff] }
 0x306   :  { %v10049_v35 = vadd.f32 %v2289_v62, %v1905_v40  ;;  %4117 = vmatpush1.msra.mxu1 %v3963_v45 }
 0x307   :  { %v1909_v33 = vpop.f32.mrf.mxu0  ;;  %v2291_v25 = vpop.f32.mrf.mxu1  ;;  %4118 = vmatprep.subr.mxu1 %v10000_v43 }
 0x308   :  { %v1910_v23 = vadd.f32 %v1909_v33, %v14067_v52  ;;  %v14071_v33 = vld [vmem:[#allocation29_spill] sm:$0xff] }
 0x309   :  { %v1911_v22 = vpop.f32.mrf.mxu0  ;;  %v2294_v6 = vpop.f32.mrf.mxu1 }
 0x30a   :  { %v10053_v48 = vadd.f32 %v2294_v6, %v1910_v23  ;;  %v14073_v22 = vld [vmem:[#allocation30_spill] sm:$0xff] }
 0x30b   :  { %v1914_v7 = vpop.f32.mrf.mxu0  ;;  %v2296_v30 = vpop.f32.mrf.mxu1 }
 0x30c   :  { %14068 = vst [vmem:[#allocation11_spill] sm:$0xff] %v10053_v48  ;;  %v1915_v20 = vadd.f32 %v1914_v7, %v14069_v13  ;;  %v14075_v13 = vld [vmem:[#allocation31_spill] sm:$0xff] }
 0x30d   :  { %v1916_v60 = vpop.f32.mrf.mxu0  ;;  %v2299_v32 = vpop.f32.mrf.mxu1 }
 0x30e   :  { %v10056_v40 = vadd.f32 %v2299_v32, %v1915_v20  ;;  %v14077_v20 = vld [vmem:[#allocation32_spill] sm:$0xff] }
 0x30f   :  { %v7292_v4 = vpop.f32.mrf.mxu0  ;;  %v2301_v62 = vpop.f32.mrf.mxu1 }
 0x310   :  { %14070 = vst [vmem:[#allocation12_spill] sm:$0xff] %v10056_v40  ;;  %v10063_v6 = vadd.f32 %v7292_v4, %v14073_v22  ;;  %v14081_v22 = vld [vmem:[#allocation34_spill] sm:$0xff] }
 0x311   :  { %v2369_v25 = vpop.f32.mrf.mxu0 }
 0x312   :  { %v10060_v52 = vadd.f32 %v2369_v25, %v14071_v33  ;;  %14074 = vst [vmem:[#allocation14_spill] sm:$0xff] %v10063_v6  ;;  %v14079_v33 = vld [vmem:[#allocation33_spill] sm:$0xff] }
 0x313   :  { %v7295_v23 = vpop.f32.mrf.mxu0 }
 0x314   :  { %14072 = vst [vmem:[#allocation13_spill] sm:$0xff] %v10060_v52  ;;  %v2688_v7 = vadd.f32 %v10063_v6, %v10060_v52  ;;  %v10071_v60 = vadd.f32 %v7295_v23, %v14077_v20 }
 0x315   :  { %v2379_v30 = vpop.f32.mrf.mxu0 }
 0x316   :  { %v10068_v45 = vadd.f32 %v2379_v30, %v14075_v13  ;;  %14078 = vst [vmem:[#allocation16_spill] sm:$0xff] %v10071_v60  ;;  %v14083_v13 = vld [vmem:[#allocation35_spill] sm:$0xff] }
 0x317   :  { %v7298_v32 = vpop.f32.mrf.mxu0 }
 0x318   :  { %14076 = vst [vmem:[#allocation15_spill] sm:$0xff] %v10068_v45  ;;  %v2689_v62 = vadd.f32 %v2688_v7, %v10068_v45  ;;  %v10079_v48 = vadd.f32 %v7298_v32, %v14081_v22  ;;  %v14085_v7 = vld [vmem:[#allocation36_spill] sm:$0xff] }
 0x319   :  { %v2389_v43 = vpop.f32.mrf.mxu0 }
 0x31a   :  { %v2690_v25 = vadd.f32 %v2689_v62, %v10071_v60  ;;  %v10076_v40 = vadd.f32 %v2389_v43, %v14079_v33  ;;  %14082 = vst [vmem:[#allocation18_spill] sm:$0xff] %v10079_v48  ;;  %v14087_v33 = vld [vmem:[#allocation37_spill] sm:$0xff] }
 0x31b   :  { %v7301_v4 = vpop.f32.mrf.mxu0 }
 0x31c   :  { %14080 = vst [vmem:[#allocation17_spill] sm:$0xff] %v10076_v40  ;;  %v2691_v6 = vadd.f32 %v2690_v25, %v10076_v40  ;;  %v10087_v45 = vadd.f32 %v7301_v4, %v14085_v7  ;;  %v14088_v25 = vld [vmem:[#allocation38_spill] sm:$0xff] }
 0x31d   :  { %v2399_v30 = vpop.f32.mrf.mxu0 }
 0x31e   :  { %v10083_v52 = vadd.f32 %v2399_v30, %v14083_v13  ;;  %v2692_v23 = vadd.f32 %v2691_v6, %v10079_v48  ;;  %14086 = vst [vmem:[#allocation20_spill] sm:$0xff] %v10087_v45  ;;  %v14090_v6 = vld [vmem:[#allocation39_spill] sm:$0xff] }
 0x31f   :  { %v7304_v20 = vpop.f32.mrf.mxu0 }
 0x320   :  { %14084 = vst [vmem:[#allocation19_spill] sm:$0xff] %v10083_v52  ;;  %v2693_v62 = vadd.f32 %v2692_v23, %v10083_v52  ;;  %v10095_v40 = vadd.f32 %v7304_v20, %v14088_v25  ;;  %v14091_v23 = vld [vmem:[#allocation40_spill] sm:$0xff] }
 0x321   :  { %v2409_v43 = vpop.f32.mrf.mxu0 }
 0x322   :  { %v10091_v60 = vadd.f32 %v2409_v43, %v14087_v33  ;;  %v2694_v32 = vadd.f32 %v2693_v62, %v10087_v45  ;;  %14089 = vst [vmem:[#allocation21_spill] sm:$0xff] %v10095_v40  ;;  %v14092_v62 = vld [vmem:[#allocation41_spill] sm:$0xff] }
 0x323   :  { %v7307_v22 = vpop.f32.mrf.mxu0 }
 0x324   :  { %v2695_v30 = vadd.f32 %v2694_v32, %v10091_v60  ;;  %v10103_v52 = vadd.f32 %v7307_v22, %v14091_v23 }
 0x325   :  { %v2419_v13 = vpop.f32.mrf.mxu0 }
 0x326   :  { %v10099_v48 = vadd.f32 %v2419_v13, %v14090_v6  ;;  %v2696_v4 = vadd.f32 %v2695_v30, %v10095_v40  ;;  %v14093_v30 = vld [vmem:[#allocation42_spill] sm:$0xff] }
 0x327   :  { %v7310_v7 = vpop.f32.mrf.mxu0 }
 0x328   :  { %v2697_v43 = vadd.f32 %v2696_v4, %v10099_v48  ;;  %v10111_v32 = vadd.f32 %v7310_v7, %v9736_v3 }
 0x329   :  { %v2429_v33 = vpop.f32.mrf.mxu0 }
 0x32a   :  { %v10107_v45 = vadd.f32 %v2429_v33, %v14092_v62  ;;  %v2698_v20 = vadd.f32 %v2697_v43, %v10103_v52 }
 0x32b   :  { %v7313_v25 = vpop.f32.mrf.mxu0 }
 0x32c   :  { %v2699_v13 = vadd.f32 %v2698_v20, %v10107_v45  ;;  %v10119_v4 = vadd.f32 %v7313_v25, %v9761_v63 }
 0x32d   :  { %v2439_v6 = vpop.f32.mrf.mxu0 }
 0x32e   :  { %v10115_v40 = vadd.f32 %v2439_v6, %v14093_v30  ;;  %v2700_v22 = vadd.f32 %v2699_v13, %v10111_v32 }
 0x32f   :  { %v7316_v23 = vpop.f32.mrf.mxu0 }
 0x330   :  { %v2701_v33 = vadd.f32 %v2700_v22, %v10115_v40  ;;  %v10127_v20 = vadd.f32 %v7316_v23, %v9779_v19 }
 0x331   :  { %v2449_v62 = vpop.f32.mrf.mxu0 }
 0x332   :  { %v10123_v43 = vadd.f32 %v2449_v62, %v9770_v18  ;;  %v2702_v3 = vadd.f32 %v2701_v33, %v10119_v4 }
 0x333   :  { %v7319_v7 = vpop.f32.mrf.mxu0 }
 0x334   :  { %v2703_v6 = vadd.f32 %v2702_v3, %v10123_v43  ;;  %v10135_v22 = vadd.f32 %v7319_v7, %v9797_v51 }
 0x335   :  { %v2459_v30 = vpop.f32.mrf.mxu0 }
 0x336   :  { %v10131_v13 = vadd.f32 %v2459_v30, %v9788_v9  ;;  %v2704_v63 = vadd.f32 %v2703_v6, %v10127_v20 }
 0x337   :  { %v7322_v25 = vpop.f32.mrf.mxu0 }
 0x338   :  { %v2705_v18 = vadd.f32 %v2704_v63, %v10131_v13  ;;  %v10143_v3 = vadd.f32 %v7322_v25, %v9815_v11 }
 0x339   :  { %v2469_v62 = vpop.f32.mrf.mxu0 }
 0x33a   :  { %v10139_v33 = vadd.f32 %v2469_v62, %v9806_v27  ;;  %v2706_v19 = vadd.f32 %v2705_v18, %v10135_v22 }
 0x33b   :  { %v7325_v23 = vpop.f32.mrf.mxu0 }
 0x33c   :  { %v2707_v9 = vadd.f32 %v2706_v19, %v10139_v33  ;;  %v10151_v63 = vadd.f32 %v7325_v23, %v9833_v36 }
 0x33d   :  { %v2479_v30 = vpop.f32.mrf.mxu0 }
 0x33e   :  { %v10147_v6 = vadd.f32 %v2479_v30, %v9824_v10  ;;  %v2708_v51 = vadd.f32 %v2707_v9, %v10143_v3 }
 0x33f   :  { %v7328_v7 = vpop.f32.mrf.mxu0 }
 0x340   :  { %v2709_v27 = vadd.f32 %v2708_v51, %v10147_v6  ;;  %v10159_v19 = vadd.f32 %v7328_v7, %v9851_v28 }
 0x341   :  { %v2489_v62 = vpop.f32.mrf.mxu0 }
 0x342   :  { %v10155_v18 = vadd.f32 %v2489_v62, %v9842_v34  ;;  %v2710_v11 = vadd.f32 %v2709_v27, %v10151_v63 }
 0x343   :  { %v7331_v25 = vpop.f32.mrf.mxu0 }
 0x344   :  { %v2711_v10 = vadd.f32 %v2710_v11, %v10155_v18  ;;  %v10167_v51 = vadd.f32 %v7331_v25, %v9869_v55 }
 0x345   :  { %v2499_v30 = vpop.f32.mrf.mxu0 }
 0x346   :  { %v10163_v9 = vadd.f32 %v2499_v30, %v9860_v46  ;;  %v2712_v36 = vadd.f32 %v2711_v10, %v10159_v19 }
 0x347   :  { %v7334_v23 = vpop.f32.mrf.mxu0 }
 0x348   :  { %v2713_v34 = vadd.f32 %v2712_v36, %v10163_v9  ;;  %v10175_v11 = vadd.f32 %v7334_v23, %v9887_v54 }
 0x349   :  { %v2509_v62 = vpop.f32.mrf.mxu0 }
 0x34a   :  { %v10171_v27 = vadd.f32 %v2509_v62, %v9878_v39  ;;  %v2714_v28 = vadd.f32 %v2713_v34, %v10167_v51  ;;  %14094 = vst [vmem:[#allocation22_spill] sm:$0xff] %v10175_v11 }
 0x34b   :  { %v7337_v7 = vpop.f32.mrf.mxu0 }
 0x34c   :  { %v2715_v46 = vadd.f32 %v2714_v28, %v10171_v27  ;;  %v10183_v36 = vadd.f32 %v7337_v7, %v9905_v15 }
 0x34d   :  { %v2519_v30 = vpop.f32.mrf.mxu0 }
 0x34e   :  { %v10179_v10 = vadd.f32 %v2519_v30, %v9896_v2  ;;  %v2716_v55 = vadd.f32 %v2715_v46, %v10175_v11  ;;  %v14095_v46 = vld [vmem:[#allocation43_spill] sm:$0xff] }
 0x34f   :  { %v7340_v25 = vpop.f32.mrf.mxu0 }
 0x350   :  { %v2717_v39 = vadd.f32 %v2716_v55, %v10179_v10  ;;  %v10191_v28 = vadd.f32 %v7340_v25, %v9923_v41 }
 0x351   :  { %v2529_v62 = vpop.f32.mrf.mxu0 }
 0x352   :  { %v10187_v34 = vadd.f32 %v2529_v62, %v9914_v29  ;;  %v2718_v54 = vadd.f32 %v2717_v39, %v10183_v36 }
 0x353   :  { %v7343_v23 = vpop.f32.mrf.mxu0 }
 0x354   :  { %v2719_v2 = vadd.f32 %v2718_v54, %v10187_v34  ;;  %v10199_v55 = vadd.f32 %v7343_v23, %v9935_v61 }
 0x355   :  { %v2539_v30 = vpop.f32.mrf.mxu0 }
 0x356   :  { %v10195_v11 = vadd.f32 %v2539_v30, %v14095_v46  ;;  %v2720_v15 = vadd.f32 %v2719_v2, %v10191_v28  ;;  %14096 = vst [vmem:[#allocation23_spill] sm:$0xff] %v10199_v55 }
 0x357   :  { %v7346_v7 = vpop.f32.mrf.mxu0 }
 0x358   :  { %v2721_v29 = vadd.f32 %v2720_v15, %v10195_v11  ;;  %v10207_v54 = vadd.f32 %v7346_v7, %v9945_v8 }
 0x359   :  { %v2549_v62 = vpop.f32.mrf.mxu0 }
 0x35a   :  { %v10203_v39 = vadd.f32 %v2549_v62, %v9940_v53  ;;  %v2722_v41 = vadd.f32 %v2721_v29, %v10199_v55  ;;  %14098 = vst [vmem:[#allocation25_spill] sm:$0xff] %v10207_v54 }
 0x35b   :  { %v7349_v25 = vpop.f32.mrf.mxu0 }
 0x35c   :  { %14097 = vst [vmem:[#allocation24_spill] sm:$0xff] %v10203_v39  ;;  %v2723_v30 = vadd.f32 %v2722_v41, %v10203_v39  ;;  %v10215_v15 = vadd.f32 %v7349_v25, %v9955_v57 }
 0x35d   :  { %v2559_v46 = vpop.f32.mrf.mxu0 }
 0x35e   :  { %v10211_v2 = vadd.f32 %v2559_v46, %v9950_v26  ;;  %v2724_v61 = vadd.f32 %v2723_v30, %v10207_v54  ;;  %14100 = vst [vmem:[#allocation27_spill] sm:$0xff] %v10215_v15 }
 0x35f   :  { %v7352_v23 = vpop.f32.mrf.mxu0 }
 0x360   :  { %14099 = vst [vmem:[#allocation26_spill] sm:$0xff] %v10211_v2  ;;  %v2725_v53 = vadd.f32 %v2724_v61, %v10211_v2  ;;  %v10223_v41 = vadd.f32 %v7352_v23, %v9965_v44  ;;  %v14107_v2 = vld [vmem:[#allocation11_spill] sm:$0xff] }
 0x361   :  { %v2569_v62 = vpop.f32.mrf.mxu0 }
 0x362   :  { %v10219_v29 = vadd.f32 %v2569_v62, %v9960_v12  ;;  %v2726_v8 = vadd.f32 %v2725_v53, %v10215_v15  ;;  %14102 = vst [vmem:[#allocation29_spill] sm:$0xff] %v10223_v41  ;;  %v14106_v15 = vld [vmem:[#allocation10_spill] sm:$0xff] }
 0x363   :  { %v7355_v7 = vpop.f32.mrf.mxu0 }
 0x364   :  { %14101 = vst [vmem:[#allocation28_spill] sm:$0xff] %v10219_v29  ;;  %v2727_v26 = vadd.f32 %v2726_v8, %v10219_v29  ;;  %v10231_v61 = vadd.f32 %v7355_v7, %v9975_v59 }
 0x365   :  { %v2579_v46 = vpop.f32.mrf.mxu0 }
 0x366   :  { %v10227_v30 = vadd.f32 %v2579_v46, %v9970_v16  ;;  %v2728_v57 = vadd.f32 %v2727_v26, %v10223_v41  ;;  %14104 = vst [vmem:[#allocation31_spill] sm:$0xff] %v10231_v61 }
 0x367   :  { %v7358_v25 = vpop.f32.mrf.mxu0 }
 0x368   :  { %14103 = vst [vmem:[#allocation30_spill] sm:$0xff] %v10227_v30  ;;  %v2729_v12 = vadd.f32 %v2728_v57, %v10227_v30  ;;  %v10239_v8 = vadd.f32 %v7358_v25, %v9988_v50 }
 0x369   :  { %v2589_v62 = vpop.f32.mrf.mxu0 }
 0x36a   :  { %v10235_v53 = vadd.f32 %v2589_v62, %v9980_v24  ;;  %v2730_v44 = vadd.f32 %v2729_v12, %v10231_v61 }
 0x36b   :  { %v7361_v23 = vpop.f32.mrf.mxu0 }
 0x36c   :  { %14105 = vst [vmem:[#allocation32_spill] sm:$0xff] %v10235_v53  ;;  %v2731_v16 = vadd.f32 %v2730_v44, %v10235_v53  ;;  %v2605_v57 = vadd.f32 %v7361_v23, %v9998_v42 }
 0x36d   :  { %v2599_v46 = vpop.f32.mrf.mxu0 }
 0x36e   :  { %v2600_v26 = vadd.f32 %v2599_v46, %v9995_v58  ;;  %v2732_v59 = vadd.f32 %v2731_v16, %v10239_v8 }
 0x36f   :  { %v7364_v7 = vpop.f32.mrf.mxu0 }
 0x370   :  { %v2733_v30 = vadd.f32 %v2732_v59, %v2600_v26  ;;  %v2615_v61 = vadd.f32 %v7364_v7, %v10007_v5 }
 0x371   :  { %v2609_v41 = vpop.f32.mrf.mxu0 }
 0x372   :  { %v2610_v24 = vadd.f32 %v2609_v41, %v10004_v31  ;;  %v2734_v62 = vadd.f32 %v2733_v30, %v2605_v57 }
 0x373   :  { %v7367_v12 = vpop.f32.mrf.mxu0 }
 0x374   :  { %v2735_v50 = vadd.f32 %v2734_v62, %v2610_v24  ;;  %v2625_v58 = vadd.f32 %v7367_v12, %v10014_v17 }
 0x375   :  { %v2619_v25 = vpop.f32.mrf.mxu0 }
 0x376   :  { %v2620_v44 = vadd.f32 %v2619_v25, %v10011_v0  ;;  %v2736_v53 = vadd.f32 %v2735_v50, %v2615_v61 }
 0x377   :  { %v7370_v29 = vpop.f32.mrf.mxu0 }
 0x378   :  { %v2737_v16 = vadd.f32 %v2736_v53, %v2620_v44  ;;  %v2635_v31 = vadd.f32 %v7370_v29, %v10021_v21 }
 0x379   :  { %v2629_v46 = vpop.f32.mrf.mxu0 }
 0x37a   :  { %v2630_v42 = vadd.f32 %v2629_v46, %v10018_v49  ;;  %v2738_v23 = vadd.f32 %v2737_v16, %v2625_v58 }
 0x37b   :  { %v7373_v59 = vpop.f32.mrf.mxu0 }
 0x37c   :  { %v2739_v41 = vadd.f32 %v2738_v23, %v2630_v42  ;;  %v2645_v0 = vadd.f32 %v7373_v59, %v10028_v38 }
 0x37d   :  { %v2639_v30 = vpop.f32.mrf.mxu0 }
 0x37e   :  { %v2640_v5 = vadd.f32 %v2639_v30, %v10025_v1  ;;  %v2740_v7 = vadd.f32 %v2739_v41, %v2635_v31 }
 0x37f   :  { %v7376_v62 = vpop.f32.mrf.mxu0 }
 0x380   :  { %v2741_v50 = vadd.f32 %v2740_v7, %v2640_v5  ;;  %v2655_v49 = vadd.f32 %v7376_v62, %v10035_v14 }
 0x381   :  { %v2649_v25 = vpop.f32.mrf.mxu0 }
 0x382   :  { %v2650_v17 = vadd.f32 %v2649_v25, %v10032_v47  ;;  %v2742_v53 = vadd.f32 %v2741_v50, %v2645_v0 }
 0x383   :  { %v7379_v12 = vpop.f32.mrf.mxu0 }
 0x384   :  { %v2743_v16 = vadd.f32 %v2742_v53, %v2650_v17  ;;  %v2665_v1 = vadd.f32 %v7379_v12, %v10042_v56  ;;  %v14108_v53 = vld [vmem:[#allocation12_spill] sm:$0xff] }
 0x385   :  { %v2659_v46 = vpop.f32.mrf.mxu0 }
 0x386   :  { %v2660_v21 = vadd.f32 %v2659_v46, %v10039_v37  ;;  %v2744_v29 = vadd.f32 %v2743_v16, %v2655_v49 }
 0x387   :  { %v7382_v23 = vpop.f32.mrf.mxu0 }
 0x388   :  { %v2745_v41 = vadd.f32 %v2744_v29, %v2660_v21  ;;  %v2675_v47 = vadd.f32 %v7382_v23, %v10049_v35 }
 0x389   :  { %v2669_v30 = vpop.f32.mrf.mxu0 }
 0x38a   :  { %v2670_v38 = vadd.f32 %v2669_v30, %v14106_v15  ;;  %v2746_v59 = vadd.f32 %v2745_v41, %v2665_v1 }
 0x38b   :  { %v7385_v7 = vpop.f32.mrf.mxu0 }
 0x38c   :  { %v2747_v50 = vadd.f32 %v2746_v59, %v2670_v38  ;;  %v2685_v54 = vadd.f32 %v7385_v7, %v14108_v53 }
 0x38d   :  { %v2679_v25 = vpop.f32.mrf.mxu0 }
 0x38e   :  { %v2680_v14 = vadd.f32 %v2679_v25, %v14107_v2  ;;  %v2748_v62 = vadd.f32 %v2747_v50, %v2675_v47 }
 0x390   :  { %v2749_v37 = vadd.f32 %v2748_v62, %v2680_v14 }
 0x392   :  { %v2750_v16 = vadd.f32 %v2749_v37, %v2685_v54 }
 0x394   :  { %v2751_v46 = vrot.slane %v2750_v16, 4 }
 0x396   :  { %v2752_v39 = vadd.f32 %v2751_v46, %v2750_v16  ;;  %v14118_v16 = vld [vmem:[#allocation18_spill] sm:$0xff] }
 0x398   :  { %v2753_v56 = vrot.slane %v2752_v39, 2 }
 0x39a   :  { %v2754_v12 = vadd.f32 %v2753_v56, %v2752_v39 }
 0x39c   :  { %v2755_v29 = vrot.slane %v2754_v12, 1 }
 0x39e   :  { %v2756_v55 = vadd.f32 %v2755_v29, %v2754_v12  ;;  %v14119_v29 = vld [vmem:[#allocation19_spill] sm:$0xff] }
 0x3a0   :  { %v10261_v15 = vmul.f32 0.001953125, %v2756_v55 }
 0x3a2   :  { %v10265_v35 = vsub.f32 %v10239_v8, %v10261_v15  ;;  %v10268_v23 = vsub.f32 %v2600_v26, %v10261_v15  ;;  %v10271_v2 = vsub.f32 %v2605_v57, %v10261_v15  ;;  %v10274_v41 = vsub.f32 %v2610_v24, %v10261_v15 }
 0x3a3   :  { %v10277_v30 = vsub.f32 %v2615_v61, %v10261_v15  ;;  %v10280_v39 = vsub.f32 %v2620_v44, %v10261_v15  ;;  %v10283_v55 = vsub.f32 %v2625_v58, %v10261_v15  ;;  %v10286_v8 = vsub.f32 %v2630_v42, %v10261_v15 }
 0x3a4   :  { %v10289_v26 = vsub.f32 %v2635_v31, %v10261_v15  ;;  %v10292_v57 = vsub.f32 %v2640_v5, %v10261_v15  ;;  %v10295_v24 = vsub.f32 %v2645_v0, %v10261_v15  ;;  %v10298_v61 = vsub.f32 %v2650_v17, %v10261_v15 }
 0x3a5   :  { %v10301_v44 = vsub.f32 %v2655_v49, %v10261_v15  ;;  %v10304_v58 = vsub.f32 %v2660_v21, %v10261_v15  ;;  %v10307_v42 = vsub.f32 %v2665_v1, %v10261_v15  ;;  %v10310_v31 = vsub.f32 %v2670_v38, %v10261_v15  ;;  %v14112_v49 = vld [vmem:[#allocation13_spill] sm:$0xff]  ;;  %v14113_v21 = vld [vmem:[#allocation14_spill] sm:$0xff]  ;;  %v14114_v38 = vld [vmem:[#allocation15_spill] sm:$0xff] }
 0x3a6   :  { %v10313_v5 = vsub.f32 %v2675_v47, %v10261_v15  ;;  %v10316_v0 = vsub.f32 %v2680_v14, %v10261_v15  ;;  %v10319_v17 = vsub.f32 %v2685_v54, %v10261_v15  ;;  %v10323_v59 = vsub.f32 %v14112_v49, %v10261_v15  ;;  %v14115_v54 = vld [vmem:[#allocation16_spill] sm:$0xff]  ;;  %v14116_v14 = vld [vmem:[#allocation17_spill] sm:$0xff] }
 0x3a7   :  { %14109 = vst [vmem:[#allocation33_spill] sm:$0xff] %v10307_v42  ;;  %14110 = vst [vmem:[#allocation34_spill] sm:$0xff] %v10310_v31  ;;  %v10327_v1 = vsub.f32 %v14113_v21, %v10261_v15  ;;  %v10331_v7 = vsub.f32 %v14114_v38, %v10261_v15  ;;  %v10339_v25 = vsub.f32 %v14115_v54, %v10261_v15  ;;  %v14120_v54 = vld [vmem:[#allocation20_spill] sm:$0xff] }
 0x3a8   :  { %14111 = vst [vmem:[#allocation35_spill] sm:$0xff] %v10313_v5  ;;  %v2823_v47 = vmul.f32 %v10323_v59, %v10323_v59  ;;  %v10343_v62 = vsub.f32 %v14116_v14, %v10261_v15  ;;  %v10349_v46 = vsub.f32 %v14118_v16, %v10261_v15  ;;  %v10355_v49 = vsub.f32 %v14119_v29, %v10261_v15  ;;  %v14121_v29 = vld [vmem:[#allocation21_spill] sm:$0xff] }
 0x3a9   :  { %v2824_v50 = vmul.f32 %v10327_v1, %v10327_v1  ;;  %v2825_v53 = vmul.f32 %v10331_v7, %v10331_v7  ;;  %v2826_v56 = vmul.f32 %v10339_v25, %v10339_v25  ;;  %v10361_v14 = vsub.f32 %v14120_v54, %v10261_v15 }
 0x3aa   :  { %14117 = vst [vmem:[#allocation36_spill] sm:$0xff] %v10343_v62  ;;  %v2827_v21 = vmul.f32 %v10343_v62, %v10343_v62  ;;  %v10367_v16 = vsub.f32 %v10091_v60, %v10261_v15  ;;  %v10373_v62 = vsub.f32 %v14121_v29, %v10261_v15  ;;  %v10379_v54 = vsub.f32 %v10099_v48, %v10261_v15 }
 0x3ab   :  { %v2887_v37 = vadd.f32 %v2824_v50, %v2823_v47  ;;  %v2828_v47 = vmul.f32 %v10349_v46, %v10349_v46  ;;  %v10391_v29 = vsub.f32 %v10107_v45, %v10261_v15 }
 0x3ac   :  { %v2831_v60 = vmul.f32 %v10367_v16, %v10367_v16  ;;  %v2833_v48 = vmul.f32 %v10379_v54, %v10379_v54 }
 0x3ad   :  { %v2888_v12 = vadd.f32 %v2887_v37, %v2825_v53  ;;  %v2829_v53 = vmul.f32 %v10355_v49, %v10355_v49  ;;  %v2835_v45 = vmul.f32 %v10391_v29, %v10391_v29 }
 0x3af   :  { %v2889_v38 = vadd.f32 %v2888_v12, %v2826_v56  ;;  %v2830_v56 = vmul.f32 %v10361_v14, %v10361_v14 }
 0x3b1   :  { %v2890_v50 = vadd.f32 %v2889_v38, %v2827_v21  ;;  %v10385_v38 = vsub.f32 %v10103_v52, %v10261_v15 }
 0x3b3   :  { %v2891_v37 = vadd.f32 %v2890_v50, %v2828_v47  ;;  %v2832_v47 = vmul.f32 %v10373_v62, %v10373_v62  ;;  %v2834_v52 = vmul.f32 %v10385_v38, %v10385_v38 }
 0x3b5   :  { %v2892_v12 = vadd.f32 %v2891_v37, %v2829_v53  ;;  %v10397_v37 = vsub.f32 %v10111_v32, %v10261_v15 }
 0x3b7   :  { %v2893_v21 = vadd.f32 %v2892_v12, %v2830_v56  ;;  %v10403_v12 = vsub.f32 %v10115_v40, %v10261_v15  ;;  %v2836_v32 = vmul.f32 %v10397_v37, %v10397_v37 }
 0x3b9   :  { %v2894_v50 = vadd.f32 %v2893_v21, %v2831_v60  ;;  %v10409_v21 = vsub.f32 %v10119_v4, %v10261_v15  ;;  %v2837_v40 = vmul.f32 %v10403_v12, %v10403_v12 }
 0x3bb   :  { %v2895_v53 = vadd.f32 %v2894_v50, %v2832_v47  ;;  %v10415_v50 = vsub.f32 %v10123_v43, %v10261_v15  ;;  %v2838_v4 = vmul.f32 %v10409_v21, %v10409_v21 }
 0x3bd   :  { %v2896_v56 = vadd.f32 %v2895_v53, %v2833_v48  ;;  %v10421_v53 = vsub.f32 %v10127_v20, %v10261_v15  ;;  %v2839_v43 = vmul.f32 %v10415_v50, %v10415_v50 }
 0x3bf   :  { %v2897_v60 = vadd.f32 %v2896_v56, %v2834_v52  ;;  %v10427_v56 = vsub.f32 %v10131_v13, %v10261_v15  ;;  %v2840_v20 = vmul.f32 %v10421_v53, %v10421_v53 }
 0x3c1   :  { %v2898_v47 = vadd.f32 %v2897_v60, %v2835_v45  ;;  %v10433_v60 = vsub.f32 %v10135_v22, %v10261_v15  ;;  %v2841_v13 = vmul.f32 %v10427_v56, %v10427_v56 }
 0x3c3   :  { %v2899_v48 = vadd.f32 %v2898_v47, %v2836_v32  ;;  %v10439_v47 = vsub.f32 %v10139_v33, %v10261_v15  ;;  %v2842_v22 = vmul.f32 %v10433_v60, %v10433_v60 }
 0x3c5   :  { %v2900_v52 = vadd.f32 %v2899_v48, %v2837_v40  ;;  %14122 = vst [vmem:[#allocation37_spill] sm:$0xff] %v10439_v47  ;;  %v10445_v48 = vsub.f32 %v10143_v3, %v10261_v15  ;;  %v2843_v33 = vmul.f32 %v10439_v47, %v10439_v47  ;;  %v14123_v47 = vld [vmem:[#allocation9_spill] sm:$0xff] }
 0x3c7   :  { %v2901_v45 = vadd.f32 %v2900_v52, %v2838_v4  ;;  %v10451_v52 = vsub.f32 %v10147_v6, %v10261_v15  ;;  %v2844_v3 = vmul.f32 %v10445_v48, %v10445_v48 }
 0x3c9   :  { %v2902_v32 = vadd.f32 %v2901_v45, %v2839_v43  ;;  %v10457_v45 = vsub.f32 %v10151_v63, %v10261_v15  ;;  %v2845_v6 = vmul.f32 %v10451_v52, %v10451_v52  ;;  %v10470_v63 = vsub.f32 %v10159_v19, %v10261_v15  ;;  %v3961_v19 = vld [vmem:[#allocation3 + $0x28] sm:$0xff] }
 0x3cb   :  { %v2903_v40 = vadd.f32 %v2902_v32, %v2840_v20  ;;  %v4003_v32 = vld [vmem:[#allocation3 + $0x178] sm:$0xff] }
 0x3cc   :  { %4486 = vmatpush1.msra.mxu0 %v4003_v32 }
 0x3cd   :  { %v2904_v4 = vadd.f32 %v2903_v40, %v2841_v13  ;;  %v10463_v13 = vsub.f32 %v10155_v18, %v10261_v15  ;;  %4487 = vmatprep.subr.mxu0 %v14123_v47  ;;  %v4001_v18 = vld [vmem:[#allocation3 + $0x168] sm:$0xff] }
 0x3cf   :  { %v2905_v43 = vadd.f32 %v2904_v4, %v2842_v22  ;;  %v4002_v22 = vld [vmem:[#allocation3 + $0x170] sm:$0xff]  ;;  %v2846_v4 = vmul.f32 %v10457_v45, %v10457_v45 }
 0x3d0   :  { %4488 = vmatpush1.msra.mxu0 %v4002_v22 }
 0x3d1   :  { %v2906_v20 = vadd.f32 %v2905_v43, %v2843_v33  ;;  %v3962_v43 = vld [vmem:[#allocation3 + $0x30] sm:$0xff]  ;;  %4489 = vmatprep.subr.mxu0 %v14123_v47 }
 0x3d2   :  { %4119 = vmatpush1.msra.mxu1 %v3962_v43  ;;  %4490 = vmatpush1.msra.mxu0 %v4001_v18  ;;  %v3960_v43 = vld [vmem:[#allocation3 + $0x20] sm:$0xff] }
 0x3d3   :  { %v2907_v40 = vadd.f32 %v2906_v20, %v2844_v3  ;;  %v10477_v3 = vsub.f32 %v10163_v9, %v10261_v15  ;;  %v2847_v20 = vmul.f32 %v10463_v13, %v10463_v13  ;;  %4120 = vmatprep.subr.mxu1 %v14123_v47  ;;  %4491 = vmatprep.subr.mxu0 %v14123_v47 }
 0x3d4   :  { %4121 = vmatpush1.msra.mxu1 %v3961_v19  ;;  %v2848_v9 = vmul.f32 %v10470_v63, %v10470_v63  ;;  %v3959_v19 = vld [vmem:[#allocation3 + $0x18] sm:$0xff] }
 0x3d5   :  { %v2908_v33 = vadd.f32 %v2907_v40, %v2845_v6  ;;  %v4000_v6 = vld [vmem:[#allocation3 + $0x160] sm:$0xff]  ;;  %v10485_v40 = vsub.f32 %v10167_v51, %v10261_v15  ;;  %4122 = vmatprep.subr.mxu1 %v14123_v47  ;;  %v2849_v51 = vmul.f32 %v10477_v3, %v10477_v3 }
 0x3d6   :  { %4492 = vmatpush1.msra.mxu0 %v4000_v6  ;;  %4123 = vmatpush1.msra.mxu1 %v3960_v43 }
 0x3d7   :  { %v2909_v32 = vadd.f32 %v2908_v33, %v2846_v4  ;;  %4493 = vmatprep.subr.mxu0 %v14123_v47  ;;  %v3999_v4 = vld [vmem:[#allocation3 + $0x158] sm:$0xff]  ;;  %v10493_v33 = vsub.f32 %v10171_v27, %v10261_v15  ;;  %4124 = vmatprep.subr.mxu1 %v14123_v47  ;;  %v2850_v27 = vmul.f32 %v10485_v40, %v10485_v40 }
 0x3d8   :  { %4494 = vmatpush1.msra.mxu0 %v3999_v4  ;;  %4125 = vmatpush1.msra.mxu1 %v3959_v19  ;;  %v3958_v4 = vld [vmem:[#allocation3 + $0x10] sm:$0xff] }
 0x3d9   :  { %v2910_v22 = vadd.f32 %v2909_v32, %v2847_v20  ;;  %4495 = vmatprep.subr.mxu0 %v14123_v47  ;;  %v3998_v20 = vld [vmem:[#allocation3 + $0x150] sm:$0xff]  ;;  %v14124_v32 = vld [vmem:[#allocation22_spill] sm:$0xff]  ;;  %4126 = vmatprep.subr.mxu1 %v14123_v47  ;;  %v2851_v19 = vmul.f32 %v10493_v33, %v10493_v33 }
 0x3da   :  { %4496 = vmatpush1.msra.mxu0 %v3998_v20  ;;  %v10501_v6 = vsub.f32 %v14124_v32, %v10261_v15  ;;  %4127 = vmatpush1.msra.mxu1 %v3958_v4  ;;  %v3957_v32 = vld [vmem:[#allocation3 + $0x8] sm:$0xff] }
 0x3db   :  { %v2911_v18 = vadd.f32 %v2910_v22, %v2848_v9  ;;  %4497 = vmatprep.subr.mxu0 %v14123_v47  ;;  %v3997_v9 = vld [vmem:[#allocation3 + $0x148] sm:$0xff]  ;;  %v10509_v22 = vsub.f32 %v10179_v10, %v10261_v15  ;;  %4128 = vmatprep.subr.mxu1 %v14123_v47 }
 0x3dc   :  { %4498 = vmatpush1.msra.mxu0 %v3997_v9  ;;  %4129 = vmatpush1.msra.mxu1 %v3957_v32  ;;  %v2852_v10 = vmul.f32 %v10501_v6, %v10501_v6  ;;  %v3956_v9 = vld [vmem:[#allocation3] sm:$0xff] }
 0x3dd   :  { %v2912_v43 = vadd.f32 %v2911_v18, %v2849_v51  ;;  %4499 = vmatprep.subr.mxu0 %v14123_v47  ;;  %v3996_v51 = vld [vmem:[#allocation3 + $0x140] sm:$0xff]  ;;  %v10517_v18 = vsub.f32 %v10183_v36, %v10261_v15  ;;  %4130 = vmatprep.subr.mxu1 %v14123_v47  ;;  %v2853_v36 = vmul.f32 %v10509_v22, %v10509_v22 }
 0x3de   :  { %4500 = vmatpush1.msra.mxu0 %v3996_v51  ;;  %4131 = vmatpush1.msra.mxu1 %v3956_v9  ;;  %v3987_v51 = vld [vmem:[#allocation3 + $0xf8] sm:$0xff] }
 0x3df   :  { %v2913_v20 = vadd.f32 %v2912_v43, %v2850_v27  ;;  %14125 = vst [vmem:[#allocation38_spill] sm:$0xff] %v10517_v18  ;;  %4501 = vmatprep.subr.mxu0 %v14123_v47  ;;  %v3995_v27 = vld [vmem:[#allocation3 + $0x138] sm:$0xff]  ;;  %v10525_v43 = vsub.f32 %v10187_v34, %v10261_v15  ;;  %4132 = vmatprep.subr.mxu1 %v14123_v47 }
 0x3e0   :  { %4502 = vmatpush1.msra.mxu0 %v3995_v27  ;;  %4133 = vmatpush2.msra.mxu1 %v3987_v51  ;;  %v2854_v34 = vmul.f32 %v10517_v18, %v10517_v18  ;;  %v3986_v27 = vld [vmem:[#allocation3 + $0xf0] sm:$0xff]  ;;  %v10561_v18 = vld [vmem:[#allocation2 + $0x8] sm:$0xff] }
 0x3e1   :  { %v2914_v4 = vadd.f32 %v2913_v20, %v2851_v19  ;;  %14126 = vst [vmem:[#allocation39_spill] sm:$0xff] %v10525_v43  ;;  %4503 = vmatprep.subr.mxu0 %v14123_v47  ;;  %v3994_v19 = vld [vmem:[#allocation3 + $0x130] sm:$0xff]  ;;  %v10533_v20 = vsub.f32 %v10191_v28, %v10261_v15  ;;  %4134 = vmatprep.subr.mxu1 %v14123_v47 }
 0x3e2   :  { %4504 = vmatpush1.msra.mxu0 %v3994_v19  ;;  %4135 = vmatpush2.msra.mxu1 %v3986_v27  ;;  %v2855_v28 = vmul.f32 %v10525_v43, %v10525_v43  ;;  %v3985_v19 = vld [vmem:[#allocation3 + $0xe8] sm:$0xff]  ;;  %v3984_v43 = vld [vmem:[#allocation3 + $0xe0] sm:$0xff] }
 0x3e3   :  { %v2915_v32 = vadd.f32 %v2914_v4, %v2852_v10  ;;  %4505 = vmatprep.subr.mxu0 %v14123_v47  ;;  %v3993_v10 = vld [vmem:[#allocation3 + $0x128] sm:$0xff]  ;;  %v10541_v4 = vsub.f32 %v10195_v11, %v10261_v15  ;;  %4136 = vmatprep.subr.mxu1 %v14123_v47  ;;  %v2856_v11 = vmul.f32 %v10533_v20, %v10533_v20 }
 0x3e4   :  { %4506 = vmatpush1.msra.mxu0 %v3993_v10  ;;  %4137 = vmatpush2.msra.mxu1 %v3985_v19 }
 0x3e5   :  { %v2916_v9 = vadd.f32 %v2915_v32, %v2853_v36  ;;  %14127 = vst [vmem:[#allocation40_spill] sm:$0xff] %v10541_v4  ;;  %4507 = vmatprep.subr.mxu0 %v14123_v47  ;;  %v3992_v36 = vld [vmem:[#allocation3 + $0x120] sm:$0xff]  ;;  %v14128_v32 = vld [vmem:[#allocation23_spill] sm:$0xff]  ;;  %4138 = vmatprep.subr.mxu1 %v14123_v47 }
 0x3e6   :  { %4508 = vmatpush1.msra.mxu0 %v3992_v36  ;;  %v10549_v27 = vsub.f32 %v14128_v32, %v10261_v15  ;;  %4139 = vmatpush2.msra.mxu1 %v3984_v43  ;;  %v2857_v36 = vmul.f32 %v10541_v4, %v10541_v4  ;;  %v14134_v4 = vld [vmem:[#allocation26_spill] sm:$0xff] }
 0x3e7   :  { %v2917_v51 = vadd.f32 %v2916_v9, %v2854_v34  ;;  %4509 = vmatprep.subr.mxu0 %v14123_v47  ;;  %v3991_v34 = vld [vmem:[#allocation3 + $0x118] sm:$0xff]  ;;  %4140 = vmatprep.subr.mxu1 %v10561_v18  ;;  %v14132_v47 = vld [vmem:[#allocation25_spill] sm:$0xff] }
 0x3e8   :  { %14129 = vst [vmem:[#allocation41_spill] sm:$0xff] %v10549_v27  ;;  %4510 = vmatpush1.msra.mxu0 %v3991_v34  ;;  %v14130_v9 = vld [vmem:[#allocation24_spill] sm:$0xff]  ;;  %v10567_v43 = vsub.f32 %v14132_v47, %v10261_v15  ;;  %v2858_v34 = vmul.f32 %v10549_v27, %v10549_v27  ;;  %v3981_v27 = vld [vmem:[#allocation3 + $0xc8] sm:$0xff] }
 0x3e9   :  { %v2918_v10 = vadd.f32 %v2917_v51, %v2855_v28  ;;  %v10557_v19 = vsub.f32 %v14130_v9, %v10261_v15  ;;  %v3983_v28 = vld [vmem:[#allocation3 + $0xd8] sm:$0xff]  ;;  %4511 = vmatprep.subr.mxu0 %v10561_v18  ;;  %v3990_v51 = vld [vmem:[#allocation3 + $0x110] sm:$0xff] }
 0x3ea   :  { %4141 = vmatpush2.msra.mxu1 %v3983_v28  ;;  %4512 = vmatpush1.msra.mxu0 %v3990_v51  ;;  %14133 = vst [vmem:[#allocation43_spill] sm:$0xff] %v10567_v43  ;;  %v10575_v28 = vsub.f32 %v14134_v4, %v10261_v15  ;;  %v2860_v4 = vmul.f32 %v10567_v43, %v10567_v43  ;;  %v3979_v43 = vld [vmem:[#allocation3 + $0xb8] sm:$0xff] }
 0x3eb   :  { %14131 = vst [vmem:[#allocation42_spill] sm:$0xff] %v10557_v19  ;;  %v2919_v32 = vadd.f32 %v2918_v10, %v2856_v11  ;;  %4142 = vmatprep.subr.mxu1 %v10561_v18  ;;  %v3982_v11 = vld [vmem:[#allocation3 + $0xd0] sm:$0xff]  ;;  %4513 = vmatprep.subr.mxu0 %v10561_v18  ;;  %v3989_v10 = vld [vmem:[#allocation3 + $0x108] sm:$0xff]  ;;  %v2859_v51 = vmul.f32 %v10557_v19, %v10557_v19  ;;  %v3980_v19 = vld [vmem:[#allocation3 + $0xc0] sm:$0xff] }
 0x3ec   :  { %4143 = vmatpush2.msra.mxu1 %v3982_v11  ;;  %4514 = vmatpush1.msra.mxu0 %v3989_v10  ;;  %14135 = vst [vmem:[#allocation10_spill] sm:$0xff] %v10575_v28 }
 0x3ed   :  { %v2920_v9 = vadd.f32 %v2919_v32, %v2857_v36  ;;  %4144 = vmatprep.subr.mxu1 %v10561_v18  ;;  %4515 = vmatprep.subr.mxu0 %v10561_v18  ;;  %v3988_v36 = vld [vmem:[#allocation3 + $0x100] sm:$0xff]  ;;  %v14136_v32 = vld [vmem:[#allocation27_spill] sm:$0xff] }
 0x3ee   :  { %4145 = vmatpush2.msra.mxu1 %v3981_v27  ;;  %4516 = vmatpush1.msra.mxu0 %v3988_v36  ;;  %v10583_v11 = vsub.f32 %v14136_v32, %v10261_v15  ;;  %v2861_v36 = vmul.f32 %v10575_v28, %v10575_v28  ;;  %v3978_v28 = vld [vmem:[#allocation3 + $0xb0] sm:$0xff] }
 0x3ef   :  { %v2921_v47 = vadd.f32 %v2920_v9, %v2858_v34  ;;  %4146 = vmatprep.subr.mxu1 %v10561_v18  ;;  %4517 = vmatprep.subr.mxu0 %v10561_v18  ;;  %v4019_v34 = vld [vmem:[#allocation3 + $0x1f8] sm:$0xff] }
 0x3f0   :  { %14137 = vst [vmem:[#allocation11_spill] sm:$0xff] %v10583_v11  ;;  %4147 = vmatpush2.msra.mxu1 %v3980_v19  ;;  %4518 = vmatpush2.msra.mxu0 %v4019_v34  ;;  %v14138_v9 = vld [vmem:[#allocation28_spill] sm:$0xff]  ;;  %v2862_v34 = vmul.f32 %v10583_v11, %v10583_v11  ;;  %v3977_v11 = vld [vmem:[#allocation3 + $0xa8] sm:$0xff] }
 0x3f1   :  { %v2922_v10 = vadd.f32 %v2921_v47, %v2859_v51  ;;  %v10591_v27 = vsub.f32 %v14138_v9, %v10261_v15  ;;  %4148 = vmatprep.subr.mxu1 %v10561_v18  ;;  %4519 = vmatprep.subr.mxu0 %v10561_v18  ;;  %v4018_v51 = vld [vmem:[#allocation3 + $0x1f0] sm:$0xff]  ;;  %v14140_v47 = vld [vmem:[#allocation29_spill] sm:$0xff] }
 0x3f2   :  { %4149 = vmatpush2.msra.mxu1 %v3979_v43  ;;  %4520 = vmatpush2.msra.mxu0 %v4018_v51  ;;  %v10599_v19 = vsub.f32 %v14140_v47, %v10261_v15 }
 0x3f3   :  { %14139 = vst [vmem:[#allocation12_spill] sm:$0xff] %v10591_v27  ;;  %v2923_v32 = vadd.f32 %v2922_v10, %v2860_v4  ;;  %4150 = vmatprep.subr.mxu1 %v10561_v18  ;;  %4521 = vmatprep.subr.mxu0 %v10561_v18  ;;  %v4017_v4 = vld [vmem:[#allocation3 + $0x1e8] sm:$0xff]  ;;  %v2863_v51 = vmul.f32 %v10591_v27, %v10591_v27  ;;  %v3976_v27 = vld [vmem:[#allocation3 + $0xa0] sm:$0xff] }
 0x3f4   :  { %14141 = vst [vmem:[#allocation13_spill] sm:$0xff] %v10599_v19  ;;  %4151 = vmatpush2.msra.mxu1 %v3978_v28  ;;  %4522 = vmatpush2.msra.mxu0 %v4017_v4  ;;  %v14142_v10 = vld [vmem:[#allocation30_spill] sm:$0xff]  ;;  %v2864_v4 = vmul.f32 %v10599_v19, %v10599_v19  ;;  %v3975_v19 = vld [vmem:[#allocation3 + $0x98] sm:$0xff] }
 0x3f5   :  { %v2924_v9 = vadd.f32 %v2923_v32, %v2861_v36  ;;  %v10607_v43 = vsub.f32 %v14142_v10, %v10261_v15  ;;  %4152 = vmatprep.subr.mxu1 %v10561_v18  ;;  %4523 = vmatprep.subr.mxu0 %v10561_v18  ;;  %v4016_v36 = vld [vmem:[#allocation3 + $0x1e0] sm:$0xff]  ;;  %v14143_v32 = vld [vmem:[#allocation31_spill] sm:$0xff] }
 0x3f6   :  { %4153 = vmatpush2.msra.mxu1 %v3977_v11  ;;  %4524 = vmatpush2.msra.mxu0 %v4016_v36  ;;  %v10615_v28 = vsub.f32 %v14143_v32, %v10261_v15 }
 0x3f7   :  { %v2925_v47 = vadd.f32 %v2924_v9, %v2862_v34  ;;  %4154 = vmatprep.subr.mxu1 %v10561_v18  ;;  %4525 = vmatprep.subr.mxu0 %v10561_v18  ;;  %v4015_v34 = vld [vmem:[#allocation3 + $0x1d8] sm:$0xff]  ;;  %v2865_v36 = vmul.f32 %v10607_v43, %v10607_v43 }
 0x3f8   :  { %4155 = vmatpush2.msra.mxu1 %v3976_v27  ;;  %4526 = vmatpush2.msra.mxu0 %v4015_v34  ;;  %v14144_v9 = vld [vmem:[#allocation32_spill] sm:$0xff]  ;;  %v2866_v27 = vmul.f32 %v10615_v28, %v10615_v28  ;;  %v4013_v34 = vld [vmem:[#allocation3 + $0x1c8] sm:$0xff] }
 0x3f9   :  { %v2926_v10 = vadd.f32 %v2925_v47, %v2863_v51  ;;  %v10623_v11 = vsub.f32 %v14144_v9, %v10261_v15  ;;  %4156 = vmatprep.subr.mxu1 %v10561_v18  ;;  %4527 = vmatprep.subr.mxu0 %v10561_v18  ;;  %v4014_v51 = vld [vmem:[#allocation3 + $0x1d0] sm:$0xff]  ;;  %v4012_v9 = vld [vmem:[#allocation3 + $0x1c0] sm:$0xff] }
 0x3fa   :  { %4157 = vmatpush2.msra.mxu1 %v3975_v19  ;;  %4528 = vmatpush2.msra.mxu0 %v4014_v51  ;;  %v3974_v15 = vld [vmem:[#allocation3 + $0x90] sm:$0xff]  ;;  %v3973_v19 = vld [vmem:[#allocation3 + $0x88] sm:$0xff]  ;;  %v3972_v51 = vld [vmem:[#allocation3 + $0x80] sm:$0xff] }
 0x3fb   :  { %14145 = vst [vmem:[#allocation14_spill] sm:$0xff] %v10623_v11  ;;  %v2927_v32 = vadd.f32 %v2926_v10, %v2864_v4  ;;  %4158 = vmatprep.subr.mxu1 %v10561_v18  ;;  %4529 = vmatprep.subr.mxu0 %v10561_v18  ;;  %v2867_v4 = vmul.f32 %v10623_v11, %v10623_v11 }
 0x3fc   :  { %4159 = vmatpush2.msra.mxu1 %v3974_v15  ;;  %4530 = vmatpush2.msra.mxu0 %v4013_v34  ;;  %v4011_v15 = vld [vmem:[#allocation3 + $0x1b8] sm:$0xff]  ;;  %v3443_v34 = vld [vmem:[#allocation2 + $0x1] sm:$0xff] }
 0x3fd   :  { %v2928_v47 = vadd.f32 %v2927_v32, %v2865_v36  ;;  %4160 = vmatprep.subr.mxu1 %v10561_v18  ;;  %4531 = vmatprep.subr.mxu0 %v10561_v18  ;;  %v2868_v36 = vmul.f32 %v10265_v35, %v10265_v35 }
 0x3fe   :  { %4161 = vmatpush2.msra.mxu1 %v3973_v19  ;;  %4532 = vmatpush2.msra.mxu0 %v4012_v9  ;;  %v4010_v19 = vld [vmem:[#allocation3 + $0x1b0] sm:$0xff]  ;;  %v4009_v9 = vld [vmem:[#allocation3 + $0x1a8] sm:$0xff] }
 0x3ff   :  { %v2929_v10 = vadd.f32 %v2928_v47, %v2866_v27  ;;  %4162 = vmatprep.subr.mxu1 %v10561_v18  ;;  %4533 = vmatprep.subr.mxu0 %v10561_v18  ;;  %v3379_v27 = vld [vmem:[#allocation2] sm:$0xff]  ;;  %v2869_v47 = vmul.f32 %v10268_v23, %v10268_v23 }
 0x400   :  { %4163 = vmatpush2.msra.mxu1 %v3972_v51  ;;  %4534 = vmatpush2.msra.mxu0 %v4011_v15  ;;  %v3444_v51 = vld [vmem:[#allocation2 + $0x9] sm:$0xff]  ;;  %v4008_v15 = vld [vmem:[#allocation3 + $0x1a0] sm:$0xff] }
 0x401   :  { %v2930_v32 = vadd.f32 %v2929_v10, %v2867_v4  ;;  %4535 = vmatprep.subr.mxu0 %v10561_v18  ;;  %4164 = vmatprep.mubr.f32.mxu1 %v3443_v34  ;;  %v2870_v4 = vmul.f32 %v10271_v2, %v10271_v2  ;;  %v4007_v34 = vld [vmem:[#allocation3 + $0x198] sm:$0xff] }
 0x402   :  { %4536 = vmatpush2.msra.mxu0 %v4010_v19  ;;  %4165 = vmatmul.mubr.f32.vlgmr.msra.gmra.mxu1 %v3379_v27  ;;  %v4035_v27 = vld [vmem:[#allocation3 + $0x278] sm:$0xff]  ;;  %v4006_v19 = vld [vmem:[#allocation3 + $0x190] sm:$0xff] }
 0x403   :  { %v2931_v11 = vadd.f32 %v2930_v32, %v2868_v36  ;;  %4537 = vmatprep.subr.mxu0 %v10561_v18  ;;  %4870 = vmatprep.subr.mxu1 %v10561_v18  ;;  %v2871_v36 = vmul.f32 %v10274_v41, %v10274_v41 }
 0x404   :  { %4538 = vmatpush2.msra.mxu0 %v4009_v9  ;;  %4169 = vmatprep.mubr.f32.mxu1 %v3444_v51  ;;  %v4005_v51 = vld [vmem:[#allocation3 + $0x188] sm:$0xff] }
 0x405   :  { %v2932_v10 = vadd.f32 %v2931_v11, %v2869_v47  ;;  %4539 = vmatprep.subr.mxu0 %v10561_v18  ;;  %v2872_v11 = vmul.f32 %v10277_v30, %v10277_v30  ;;  %4871 = vmatpush1.msra.mxu1 %v4035_v27  ;;  %v2875_v27 = vmul.f32 %v10286_v8, %v10286_v8 }
 0x406   :  { %4540 = vmatpush2.msra.mxu0 %v4008_v15  ;;  %4170 = vmatmul.mubr.f32.gmra.mxu1 %v10561_v18  ;;  %v4033_v15 = vld [vmem:[#allocation3 + $0x268] sm:$0xff] }
 0x407   :  { %v2933_v32 = vadd.f32 %v2932_v10, %v2870_v4  ;;  %4541 = vmatprep.subr.mxu0 %v10561_v18  ;;  %4872 = vmatprep.subr.mxu1 %v10561_v18  ;;  %v4034_v4 = vld [vmem:[#allocation3 + $0x270] sm:$0xff]  ;;  %v2873_v10 = vmul.f32 %v10280_v39, %v10280_v39 }
 0x408   :  { %4542 = vmatpush2.msra.mxu0 %v4007_v34  ;;  %4873 = vmatpush1.msra.mxu1 %v4034_v4  ;;  %v4004_v34 = vld [vmem:[#allocation3 + $0x180] sm:$0xff]  ;;  %v2877_v4 = vmul.f32 %v10292_v57, %v10292_v57 }
 0x409   :  { %v2934_v47 = vadd.f32 %v2933_v32, %v2871_v36  ;;  %4543 = vmatprep.subr.mxu0 %v10561_v18  ;;  %4874 = vmatprep.subr.mxu1 %v10561_v18  ;;  %v2874_v36 = vmul.f32 %v10283_v55, %v10283_v55 }
 0x40a   :  { %4544 = vmatpush2.msra.mxu0 %v4006_v19  ;;  %4875 = vmatpush1.msra.mxu1 %v4033_v15 }
 0x40b   :  { %v2935_v9 = vadd.f32 %v2934_v47, %v2872_v11  ;;  %4545 = vmatprep.subr.mxu0 %v10561_v18  ;;  %4876 = vmatprep.subr.mxu1 %v10561_v18  ;;  %v2876_v47 = vmul.f32 %v10289_v26, %v10289_v26 }
 0x40c   :  { %4546 = vmatpush2.msra.mxu0 %v4005_v51  ;;  %v2878_v51 = vmul.f32 %v10295_v24, %v10295_v24 }
 0x40d   :  { %v2936_v32 = vadd.f32 %v2935_v9, %v2873_v10  ;;  %4547 = vmatprep.subr.mxu0 %v10561_v18  ;;  %v4032_v9 = vld [vmem:[#allocation3 + $0x260] sm:$0xff] }
 0x40e   :  { %4548 = vmatpush2.msra.mxu0 %v4004_v34  ;;  %4877 = vmatpush1.msra.mxu1 %v4032_v9  ;;  %v2880_v34 = vmul.f32 %v10301_v44, %v10301_v44  ;;  %v2882_v9 = vmul.f32 %v10307_v42, %v10307_v42 }
 0x40f   :  { %v2937_v11 = vadd.f32 %v2936_v32, %v2874_v36  ;;  %5255 = vmatprep.subr.mxu0 %v10561_v18  ;;  %4878 = vmatprep.subr.mxu1 %v10561_v18  ;;  %v2879_v36 = vmul.f32 %v10298_v61, %v10298_v61 }
 0x411   :  { %v2938_v19 = vadd.f32 %v2937_v11, %v2875_v27  ;;  %v2881_v11 = vmul.f32 %v10304_v58, %v10304_v58 }
 0x413   :  { %v2939_v10 = vadd.f32 %v2938_v19, %v2876_v47  ;;  %v4031_v19 = vld [vmem:[#allocation3 + $0x258] sm:$0xff] }
 0x414   :  { %4879 = vmatpush1.msra.mxu1 %v4031_v19  ;;  %v2886_v19 = vmul.f32 %v10319_v17, %v10319_v17 }
 0x415   :  { %v2940_v15 = vadd.f32 %v2939_v10, %v2877_v4  ;;  %4880 = vmatprep.subr.mxu1 %v10561_v18  ;;  %v2883_v10 = vmul.f32 %v10310_v31, %v10310_v31 }
 0x417   :  { %v2941_v32 = vadd.f32 %v2940_v15, %v2878_v51  ;;  %v2884_v15 = vmul.f32 %v10313_v5, %v10313_v5 }
 0x419   :  { %v2942_v27 = vadd.f32 %v2941_v32, %v2879_v36  ;;  %v2885_v32 = vmul.f32 %v10316_v0, %v10316_v0 }
 0x41b   :  { %v2943_v47 = vadd.f32 %v2942_v27, %v2880_v34  ;;  %v4030_v27 = vld [vmem:[#allocation3 + $0x250] sm:$0xff] }
 0x41c   :  { %4881 = vmatpush1.msra.mxu1 %v4030_v27 }
 0x41d   :  { %v2944_v4 = vadd.f32 %v2943_v47, %v2881_v11  ;;  %4882 = vmatprep.subr.mxu1 %v10561_v18 }
 0x41f   :  { %v2945_v51 = vadd.f32 %v2944_v4, %v2882_v9  ;;  %v4029_v9 = vld [vmem:[#allocation3 + $0x248] sm:$0xff] }
 0x420   :  { %4883 = vmatpush1.msra.mxu1 %v4029_v9  ;;  %v10721_v9 = vld [vmem:[%s13912_s3] ss:$0 sm:$0xff] }
 0x421   :  { %v2946_v36 = vadd.f32 %v2945_v51, %v2883_v10  ;;  %4884 = vmatprep.subr.mxu1 %v10561_v18  ;;  %14146 = vst [vmem:[#allocation15_spill] sm:$0xff] %v10721_v9 }
 0x423   :  { %v2947_v34 = vadd.f32 %v2946_v36, %v2884_v15  ;;  %v4028_v15 = vld [vmem:[#allocation3 + $0x240] sm:$0xff] }
 0x424   :  { %4885 = vmatpush1.msra.mxu1 %v4028_v15 }
 0x425   :  { %v2948_v11 = vadd.f32 %v2947_v34, %v2885_v32  ;;  %4886 = vmatprep.subr.mxu1 %v10561_v18  ;;  %v4027_v32 = vld [vmem:[#allocation3 + $0x238] sm:$0xff] }
 0x426   :  { %4887 = vmatpush1.msra.mxu1 %v4027_v32  ;;  %v14148_v32 = vld [vmem:[#allocation37_spill] sm:$0xff] }
 0x427   :  { %v2949_v47 = vadd.f32 %v2948_v11, %v2886_v19  ;;  %4888 = vmatprep.subr.mxu1 %v10561_v18 }
 0x429   :  { %v2950_v42 = vrot.slane %v2949_v47, 4 }
 0x42b   :  { %v2951_v31 = vadd.f32 %v2950_v42, %v2949_v47  ;;  %v4026_v42 = vld [vmem:[#allocation3 + $0x230] sm:$0xff] }
 0x42c   :  { %4889 = vmatpush1.msra.mxu1 %v4026_v42 }
 0x42d   :  { %v2952_v4 = vrot.slane %v2951_v31, 2  ;;  %4890 = vmatprep.subr.mxu1 %v10561_v18 }
 0x42f   :  { %v2953_v10 = vadd.f32 %v2952_v4, %v2951_v31  ;;  %v10702_v31 = vld [vmem:[%s13911_s2] ss:$0 sm:$0xff]  ;;  %v14147_v4 = vld [vmem:[#allocation36_spill] sm:$0xff] }
 0x431   :  { %v2954_v51 = vrot.slane %v2953_v10, 1 }
 0x433   :  { %v2955_v5 = vadd.f32 %v2954_v51, %v2953_v10 }
 0x435   :  { %v2956_v36 = vmul.f32 0.001953125, %v2955_v5 }
 0x437   :  { %v2957_v27 = vadd.f32 1e-05, %v2956_v36 }
 0x439   :  { %7519 = vrsqrt.f32 %v2957_v27 }
 0x446   :  { %v10697_v34 = vpop.eup %7519 }
 0x447   :  { %v3021_v5 = vmul.f32 %v10697_v34, %v10316_v0  ;;  %v10708_v19 = vmul.f32 %v10697_v34, %v10323_v59  ;;  %v10712_v11 = vmul.f32 %v10697_v34, %v10327_v1  ;;  %v10716_v47 = vmul.f32 %v10697_v34, %v10331_v7 }
 0x448   :  { %v10725_v0 = vmul.f32 %v10697_v34, %v10339_v25  ;;  %v10729_v59 = vmul.f32 %v10697_v34, %v14147_v4  ;;  %v10733_v1 = vmul.f32 %v10697_v34, %v10349_v46  ;;  %v10737_v7 = vmul.f32 %v10697_v34, %v10355_v49  ;;  %v14149_v4 = vld [vmem:[#allocation38_spill] sm:$0xff] }
 0x449   :  { %v3092_v10 = vmul.f32 %v10702_v31, %v3021_v5  ;;  %v10742_v51 = vmul.f32 %v10697_v34, %v10361_v14  ;;  %v10746_v25 = vmul.f32 %v10697_v34, %v10367_v16  ;;  %v10750_v15 = vmul.f32 %v10697_v34, %v10373_v62 }
 0x44a   :  { %v10754_v46 = vmul.f32 %v10697_v34, %v10379_v54  ;;  %v10758_v49 = vmul.f32 %v10697_v34, %v10385_v38  ;;  %v10762_v14 = vmul.f32 %v10697_v34, %v10391_v29  ;;  %v10766_v16 = vmul.f32 %v10697_v34, %v10397_v37  ;;  %v4025_v29 = vld [vmem:[#allocation3 + $0x228] sm:$0xff] }
 0x44b   :  { %v3163_v36 = vadd.f32 %v10721_v9, %v3092_v10  ;;  %v10771_v62 = vmul.f32 %v10697_v34, %v10403_v12  ;;  %v10775_v54 = vmul.f32 %v10697_v34, %v10409_v21  ;;  %v10779_v38 = vmul.f32 %v10697_v34, %v10415_v50  ;;  %4891 = vmatpush1.msra.mxu1 %v4025_v29  ;;  %v14150_v10 = vld [vmem:[#allocation39_spill] sm:$0xff]  ;;  %v14154_v29 = vld [vmem:[#allocation41_spill] sm:$0xff]  ;;  %v14158_v9 = vld [vmem:[#allocation10_spill] sm:$0xff] }
 0x44c   :  { %v10783_v27 = vmul.f32 %v10697_v34, %v10421_v53  ;;  %v10787_v37 = vmul.f32 %v10697_v34, %v10427_v56  ;;  %v10791_v12 = vmul.f32 %v10697_v34, %v10433_v60  ;;  %v10795_v21 = vmul.f32 %v10697_v34, %v14148_v32  ;;  %4892 = vmatprep.subr.mxu1 %v10561_v18  ;;  %v14156_v32 = vld [vmem:[#allocation42_spill] sm:$0xff] }
 0x44d   :  { %v3227_v50 = vmax.f32 %v3163_v36, 0.0  ;;  %v10799_v42 = vmul.f32 %v10697_v34, %v10445_v48  ;;  %v10803_v53 = vmul.f32 %v10697_v34, %v10451_v52  ;;  %v10807_v56 = vmul.f32 %v10697_v34, %v10457_v45  ;;  %v14152_v36 = vld [vmem:[#allocation40_spill] sm:$0xff] }
 0x44e   :  { %v10812_v60 = vmul.f32 %v10697_v34, %v10463_v13  ;;  %v10816_v5 = vmul.f32 %v10697_v34, %v10470_v63  ;;  %v10820_v48 = vmul.f32 %v10697_v34, %v10477_v3  ;;  %v10824_v52 = vmul.f32 %v10697_v34, %v10485_v40 }
 0x44f   :  { %3377 = vst [vmem:[#allocation2 + $0x331] sm:$0xff] %v3227_v50  ;;  %v10828_v45 = vmul.f32 %v10697_v34, %v10493_v33  ;;  %v10832_v13 = vmul.f32 %v10697_v34, %v10501_v6  ;;  %v10836_v63 = vmul.f32 %v10697_v34, %v10509_v22  ;;  %v10840_v3 = vmul.f32 %v10697_v34, %v14149_v4  ;;  %v14157_v4 = vld [vmem:[#allocation43_spill] sm:$0xff] }
 0x450   :  { %v10844_v40 = vmul.f32 %v10697_v34, %v14150_v10  ;;  %v10848_v33 = vmul.f32 %v10697_v34, %v10533_v20  ;;  %v10852_v6 = vmul.f32 %v10697_v34, %v14152_v36  ;;  %v10856_v22 = vmul.f32 %v10697_v34, %v14154_v29 }
 0x451   :  { %v10860_v50 = vmul.f32 %v10697_v34, %v14156_v32  ;;  %v10864_v10 = vmul.f32 %v10697_v34, %v14157_v4  ;;  %v10868_v20 = vmul.f32 %v10697_v34, %v14158_v9  ;;  %v10884_v4 = vmul.f32 %v10697_v34, %v10607_v43 }
 0x452   :  { %14151 = vst [vmem:[#allocation16_spill] sm:$0xff] %v10848_v33  ;;  %14153 = vst [vmem:[#allocation17_spill] sm:$0xff] %v10852_v6  ;;  %v14160_v33 = vld [vmem:[#allocation11_spill] sm:$0xff]  ;;  %v14161_v6 = vld [vmem:[#allocation12_spill] sm:$0xff]  ;;  %v10888_v9 = vmul.f32 %v10697_v34, %v10615_v28  ;;  %v10904_v43 = vmul.f32 %v10697_v34, %v10271_v2  ;;  %v10908_v28 = vmul.f32 %v10697_v34, %v10274_v41 }
 0x453   :  { %14155 = vst [vmem:[#allocation18_spill] sm:$0xff] %v10856_v22  ;;  %14159 = vst [vmem:[#allocation19_spill] sm:$0xff] %v10868_v20  ;;  %v10872_v36 = vmul.f32 %v10697_v34, %v14160_v33  ;;  %v10876_v29 = vmul.f32 %v10697_v34, %v14161_v6  ;;  %v14162_v22 = vld [vmem:[#allocation13_spill] sm:$0xff]  ;;  %v14164_v20 = vld [vmem:[#allocation14_spill] sm:$0xff]  ;;  %v10896_v6 = vmul.f32 %v10697_v34, %v10265_v35 }
 0x454   :  { %v10880_v32 = vmul.f32 %v10697_v34, %v14162_v22  ;;  %14163 = vst [vmem:[#allocation20_spill] sm:$0xff] %v10884_v4  ;;  %v10892_v33 = vmul.f32 %v10697_v34, %v14164_v20  ;;  %v10900_v22 = vmul.f32 %v10697_v34, %v10268_v23  ;;  %v4024_v4 = vld [vmem:[#allocation3 + $0x220] sm:$0xff]  ;;  %v10912_v20 = vmul.f32 %v10697_v34, %v10277_v30 }
 0x455   :  { %v10916_v35 = vmul.f32 %v10697_v34, %v10280_v39  ;;  %v10920_v23 = vmul.f32 %v10697_v34, %v10283_v55  ;;  %4893 = vmatpush1.msra.mxu1 %v4024_v4  ;;  %v10924_v2 = vmul.f32 %v10697_v34, %v10286_v8  ;;  %v10928_v41 = vmul.f32 %v10697_v34, %v10289_v26 }
 0x456   :  { %v10932_v30 = vmul.f32 %v10697_v34, %v10292_v57  ;;  %v10936_v39 = vmul.f32 %v10697_v34, %v10295_v24  ;;  %4894 = vmatprep.subr.mxu1 %v10561_v18  ;;  %v10941_v55 = vmul.f32 %v10697_v34, %v10298_v61  ;;  %v10945_v8 = vmul.f32 %v10697_v34, %v10301_v44  ;;  %v14167_v57 = vld [vmem:[#allocation33_spill] sm:$0xff]  ;;  %v14168_v24 = vld [vmem:[#allocation34_spill] sm:$0xff] }
 0x457   :  { %v10949_v26 = vmul.f32 %v10697_v34, %v10304_v58  ;;  %v10953_v4 = vmul.f32 %v10697_v34, %v14167_v57  ;;  %v10965_v44 = vmul.f32 %v10697_v34, %v10319_v17  ;;  %v10969_v58 = vmul.f32 %v10702_v31, %v10708_v19 }
 0x458   :  { %14165 = vst [vmem:[#allocation21_spill] sm:$0xff] %v10932_v30  ;;  %14166 = vst [vmem:[#allocation9_spill] sm:$0xff] %v10936_v39  ;;  %v10957_v39 = vmul.f32 %v10697_v34, %v14168_v24  ;;  %v14169_v30 = vld [vmem:[#allocation35_spill] sm:$0xff]  ;;  %v10973_v57 = vmul.f32 %v10702_v31, %v10712_v11  ;;  %v10977_v24 = vmul.f32 %v10702_v31, %v10716_v47 }
 0x459   :  { %v10961_v61 = vmul.f32 %v10697_v34, %v14169_v30  ;;  %v10981_v30 = vmul.f32 %v10702_v31, %v10725_v0  ;;  %v10985_v17 = vmul.f32 %v10702_v31, %v10729_v59  ;;  %v10989_v34 = vmul.f32 %v10702_v31, %v10733_v1 }
 0x45a   :  { %v10993_v19 = vmul.f32 %v10702_v31, %v10737_v7  ;;  %v10997_v11 = vmul.f32 %v10702_v31, %v10742_v51  ;;  %v11001_v47 = vmul.f32 %v10702_v31, %v10746_v25  ;;  %v11005_v0 = vmul.f32 %v10702_v31, %v10750_v15 }
 0x45b   :  { %v11009_v59 = vmul.f32 %v10702_v31, %v10754_v46  ;;  %v11013_v1 = vmul.f32 %v10702_v31, %v10758_v49  ;;  %v11017_v7 = vmul.f32 %v10702_v31, %v10762_v14  ;;  %v11021_v51 = vmul.f32 %v10702_v31, %v10766_v16  ;;  %v4023_v49 = vld [vmem:[#allocation3 + $0x218] sm:$0xff] }
 0x45c   :  { %v11025_v25 = vmul.f32 %v10702_v31, %v10771_v62  ;;  %v11029_v15 = vmul.f32 %v10702_v31, %v10775_v54  ;;  %v11033_v46 = vmul.f32 %v10702_v31, %v10779_v38  ;;  %v11037_v14 = vmul.f32 %v10702_v31, %v10783_v27  ;;  %4895 = vmatpush1.msra.mxu1 %v4023_v49  ;;  %v14173_v49 = vld [vmem:[#allocation16_spill] sm:$0xff] }
 0x45d   :  { %v11041_v16 = vmul.f32 %v10702_v31, %v10787_v37  ;;  %v11045_v62 = vmul.f32 %v10702_v31, %v10791_v12  ;;  %v11049_v54 = vmul.f32 %v10702_v31, %v10795_v21  ;;  %v11053_v38 = vmul.f32 %v10702_v31, %v10799_v42  ;;  %4896 = vmatprep.subr.mxu1 %v10561_v18 }
 0x45e   :  { %v11057_v27 = vmul.f32 %v10702_v31, %v10803_v53  ;;  %v11061_v37 = vmul.f32 %v10702_v31, %v10807_v56  ;;  %v11065_v12 = vmul.f32 %v10702_v31, %v10812_v60  ;;  %v11070_v21 = vmul.f32 %v10702_v31, %v10816_v5 }
 0x45f   :  { %v11074_v42 = vmul.f32 %v10702_v31, %v10820_v48  ;;  %v11078_v53 = vmul.f32 %v10702_v31, %v10824_v52  ;;  %v11082_v56 = vmul.f32 %v10702_v31, %v10828_v45  ;;  %v11086_v60 = vmul.f32 %v10702_v31, %v10832_v13 }
 0x460   :  { %v11090_v5 = vmul.f32 %v10702_v31, %v10836_v63  ;;  %v11094_v48 = vmul.f32 %v10702_v31, %v10840_v3  ;;  %v11098_v52 = vmul.f32 %v10702_v31, %v10844_v40  ;;  %v11102_v45 = vmul.f32 %v10702_v31, %v14173_v49 }
 0x461   :  { %14170 = vst [vmem:[#allocation22_spill] sm:$0xff] %v11082_v56  ;;  %14171 = vst [vmem:[#allocation23_spill] sm:$0xff] %v11086_v60  ;;  %v14174_v56 = vld [vmem:[#allocation17_spill] sm:$0xff]  ;;  %v14175_v60 = vld [vmem:[#allocation18_spill] sm:$0xff]  ;;  %v11114_v3 = vmul.f32 %v10702_v31, %v10860_v50  ;;  %v11118_v40 = vmul.f32 %v10702_v31, %v10864_v10  ;;  %v11134_v50 = vmul.f32 %v10702_v31, %v10880_v32 }
 0x462   :  { %14172 = vst [vmem:[#allocation24_spill] sm:$0xff] %v11098_v52  ;;  %v11106_v13 = vmul.f32 %v10702_v31, %v14174_v56  ;;  %v11110_v63 = vmul.f32 %v10702_v31, %v14175_v60  ;;  %v14177_v52 = vld [vmem:[#allocation19_spill] sm:$0xff]  ;;  %v11126_v56 = vmul.f32 %v10702_v31, %v10872_v36  ;;  %v11130_v60 = vmul.f32 %v10702_v31, %v10876_v29 }
 0x463   :  { %14176 = vst [vmem:[#allocation25_spill] sm:$0xff] %v11114_v3  ;;  %v11122_v49 = vmul.f32 %v10702_v31, %v14177_v52  ;;  %v14178_v3 = vld [vmem:[#allocation20_spill] sm:$0xff]  ;;  %v11142_v52 = vmul.f32 %v10702_v31, %v10888_v9  ;;  %v11146_v36 = vmul.f32 %v10702_v31, %v10892_v33  ;;  %v11150_v29 = vmul.f32 %v10702_v31, %v10896_v6 }
 0x464   :  { %v11138_v10 = vmul.f32 %v10702_v31, %v14178_v3  ;;  %v11154_v32 = vmul.f32 %v10702_v31, %v10900_v22  ;;  %v11158_v3 = vmul.f32 %v10702_v31, %v10904_v43  ;;  %v11162_v9 = vmul.f32 %v10702_v31, %v10908_v28 }
 0x465   :  { %14179 = vst [vmem:[#allocation26_spill] sm:$0xff] %v11142_v52  ;;  %v4022_v52 = vld [vmem:[#allocation3 + $0x210] sm:$0xff]  ;;  %v11166_v33 = vmul.f32 %v10702_v31, %v10912_v20  ;;  %v11170_v6 = vmul.f32 %v10702_v31, %v10916_v35  ;;  %v11174_v22 = vmul.f32 %v10702_v31, %v10920_v23  ;;  %v11178_v43 = vmul.f32 %v10702_v31, %v10924_v2 }
 0x466   :  { %14180 = vst [vmem:[#allocation27_spill] sm:$0xff] %v11162_v9  ;;  %4897 = vmatpush1.msra.mxu1 %v4022_v52  ;;  %v11182_v28 = vmul.f32 %v10702_v31, %v10928_v41  ;;  %v14182_v9 = vld [vmem:[#allocation21_spill] sm:$0xff]  ;;  %v11194_v23 = vmul.f32 %v10702_v31, %v10941_v55  ;;  %v11199_v2 = vmul.f32 %v10702_v31, %v10945_v8 }
 0x467   :  { %14181 = vst [vmem:[#allocation28_spill] sm:$0xff] %v11166_v33  ;;  %v11186_v20 = vmul.f32 %v10702_v31, %v14182_v9  ;;  %v14183_v33 = vld [vmem:[#allocation9_spill] sm:$0xff]  ;;  %4898 = vmatprep.subr.mxu1 %v10561_v18  ;;  %v11203_v41 = vmul.f32 %v10702_v31, %v10949_v26  ;;  %v11207_v52 = vmul.f32 %v10702_v31, %v10953_v4 }
 0x468   :  { %v11190_v35 = vmul.f32 %v10702_v31, %v14183_v33  ;;  %v11211_v9 = vmul.f32 %v10702_v31, %v10957_v39  ;;  %v11215_v55 = vmul.f32 %v10702_v31, %v10961_v61  ;;  %v11219_v8 = vmul.f32 %v10702_v31, %v10965_v44  ;;  %v14184_v33 = vld [vmem:[#allocation15_spill] sm:$0xff] }
 0x469   :  { %v11223_v26 = vadd.f32 %v14184_v33, %v10969_v58  ;;  %v11227_v4 = vadd.f32 %v14184_v33, %v10973_v57  ;;  %v11231_v39 = vadd.f32 %v14184_v33, %v10977_v24  ;;  %v11235_v61 = vadd.f32 %v14184_v33, %v10981_v30 }
 0x46a   :  { %v11239_v31 = vadd.f32 %v14184_v33, %v10985_v17  ;;  %v11243_v44 = vadd.f32 %v14184_v33, %v10989_v34  ;;  %v11247_v58 = vadd.f32 %v14184_v33, %v10993_v19  ;;  %v11251_v57 = vadd.f32 %v14184_v33, %v10997_v11 }
 0x46b   :  { %v11255_v24 = vadd.f32 %v14184_v33, %v11001_v47  ;;  %v11259_v30 = vadd.f32 %v14184_v33, %v11005_v0  ;;  %v11263_v17 = vadd.f32 %v14184_v33, %v11009_v59  ;;  %v11267_v34 = vadd.f32 %v14184_v33, %v11013_v1 }
 0x46c   :  { %v11271_v19 = vadd.f32 %v14184_v33, %v11017_v7  ;;  %v11275_v11 = vadd.f32 %v14184_v33, %v11021_v51  ;;  %v11279_v47 = vadd.f32 %v14184_v33, %v11025_v25  ;;  %v11283_v0 = vadd.f32 %v14184_v33, %v11029_v15  ;;  %v4021_v7 = vld [vmem:[#allocation3 + $0x208] sm:$0xff] }
 0x46d   :  { %v11287_v59 = vadd.f32 %v14184_v33, %v11033_v46  ;;  %v11291_v1 = vadd.f32 %v14184_v33, %v11037_v14  ;;  %v11295_v51 = vadd.f32 %v14184_v33, %v11041_v16  ;;  %v11299_v25 = vadd.f32 %v14184_v33, %v11045_v62  ;;  %4899 = vmatpush1.msra.mxu1 %v4021_v7 }
 0x46e   :  { %v11303_v15 = vadd.f32 %v14184_v33, %v11049_v54  ;;  %v11307_v46 = vadd.f32 %v14184_v33, %v11053_v38  ;;  %v11311_v14 = vadd.f32 %v14184_v33, %v11057_v27  ;;  %v11315_v16 = vadd.f32 %v14184_v33, %v11061_v37  ;;  %4900 = vmatprep.subr.mxu1 %v10561_v18  ;;  %v14188_v37 = vld [vmem:[#allocation22_spill] sm:$0xff] }
 0x46f   :  { %v11319_v62 = vadd.f32 %v14184_v33, %v11065_v12  ;;  %v11323_v54 = vadd.f32 %v14184_v33, %v11070_v21  ;;  %v11328_v38 = vadd.f32 %v14184_v33, %v11074_v42  ;;  %v11332_v27 = vadd.f32 %v14184_v33, %v11078_v53  ;;  %v14189_v12 = vld [vmem:[#allocation23_spill] sm:$0xff] }
 0x470   :  { %v11336_v7 = vadd.f32 %v14184_v33, %v14188_v37  ;;  %v11344_v21 = vadd.f32 %v14184_v33, %v11090_v5  ;;  %v11348_v42 = vadd.f32 %v14184_v33, %v11094_v48  ;;  %v11356_v37 = vadd.f32 %v14184_v33, %v11102_v45 }
 0x471   :  { %14185 = vst [vmem:[#allocation29_spill] sm:$0xff] %v11319_v62  ;;  %14186 = vst [vmem:[#allocation30_spill] sm:$0xff] %v11323_v54  ;;  %v11340_v62 = vadd.f32 %v14184_v33, %v14189_v12  ;;  %v11360_v12 = vadd.f32 %v14184_v33, %v11106_v13  ;;  %v11364_v5 = vadd.f32 %v14184_v33, %v11110_v63 }
 0x472   :  { %14187 = vst [vmem:[#allocation31_spill] sm:$0xff] %v11328_v38  ;;  %14191 = vst [vmem:[#allocation36_spill] sm:$0xff] %v11344_v21  ;;  %v14192_v38 = vld [vmem:[#allocation24_spill] sm:$0xff]  ;;  %v14193_v21 = vld [vmem:[#allocation25_spill] sm:$0xff]  ;;  %v11376_v45 = vadd.f32 %v14184_v33, %v11122_v49  ;;  %v11380_v13 = vadd.f32 %v14184_v33, %v11126_v56  ;;  %v11384_v63 = vadd.f32 %v14184_v33, %v11130_v60 }
 0x473   :  { %14190 = vst [vmem:[#allocation32_spill] sm:$0xff] %v11340_v62  ;;  %v11352_v53 = vadd.f32 %v14184_v33, %v14192_v38  ;;  %v11368_v48 = vadd.f32 %v14184_v33, %v14193_v21  ;;  %v11372_v38 = vadd.f32 %v14184_v33, %v11118_v40  ;;  %v11388_v21 = vadd.f32 %v14184_v33, %v11134_v50 }
 0x474   :  { %v11392_v40 = vadd.f32 %v14184_v33, %v11138_v10  ;;  %v11400_v56 = vadd.f32 %v14184_v33, %v11146_v36  ;;  %v11404_v60 = vadd.f32 %v14184_v33, %v11150_v29  ;;  %v11408_v50 = vadd.f32 %v14184_v33, %v11154_v32 }
 0x475   :  { %14194 = vst [vmem:[#allocation37_spill] sm:$0xff] %v11372_v38  ;;  %v14196_v38 = vld [vmem:[#allocation26_spill] sm:$0xff]  ;;  %v11412_v10 = vadd.f32 %v14184_v33, %v11158_v3  ;;  %v11424_v29 = vadd.f32 %v14184_v33, %v11170_v6  ;;  %v11428_v32 = vadd.f32 %v14184_v33, %v11174_v22  ;;  %v11432_v3 = vadd.f32 %v14184_v33, %v11178_v43 }
 0x476   :  { %14195 = vst [vmem:[#allocation38_spill] sm:$0xff] %v11392_v40  ;;  %v11396_v49 = vadd.f32 %v14184_v33, %v14196_v38  ;;  %14198 = vst [vmem:[#allocation40_spill] sm:$0xff] %v11400_v56  ;;  %v14199_v40 = vld [vmem:[#allocation27_spill] sm:$0xff]  ;;  %v4020_v56 = vld [vmem:[#allocation3 + $0x200] sm:$0xff]  ;;  %v11444_v6 = vadd.f32 %v14184_v33, %v11190_v35  ;;  %v11448_v22 = vadd.f32 %v14184_v33, %v11194_v23 }
 0x477   :  { %v11416_v38 = vadd.f32 %v14184_v33, %v14199_v40  ;;  %v11436_v40 = vadd.f32 %v14184_v33, %v11182_v28  ;;  %4901 = vmatpush1.msra.mxu1 %v4020_v56  ;;  %v11452_v43 = vadd.f32 %v14184_v33, %v11199_v2  ;;  %v11457_v28 = vadd.f32 %v14184_v33, %v11203_v41 }
 0x478   :  { %14197 = vst [vmem:[#allocation39_spill] sm:$0xff] %v11396_v49  ;;  %v14200_v49 = vld [vmem:[#allocation28_spill] sm:$0xff]  ;;  %4902 = vmatprep.subr.mxu1 %v10561_v18  ;;  %v11465_v35 = vadd.f32 %v14184_v33, %v11211_v9  ;;  %v11469_v23 = vadd.f32 %v14184_v33, %v11215_v55  ;;  %v11473_v2 = vadd.f32 %v14184_v33, %v11219_v8  ;;  %v3165_v56 = vmax.f32 %v11223_v26, 0.0 }
 0x479   :  { %v11420_v36 = vadd.f32 %v14184_v33, %v14200_v49  ;;  %v11440_v49 = vadd.f32 %v14184_v33, %v11186_v20  ;;  %14201 = vst [vmem:[#allocation41_spill] sm:$0xff] %v11457_v28  ;;  %v11461_v20 = vadd.f32 %v14184_v33, %v11207_v52  ;;  %v13960_v41 = vmax.f32 %v11227_v4, 0.0  ;;  %v14216_v55 = vld [vmem:[#allocation36_spill] sm:$0xff] }
 0x47a   :  { %14203 = vst [vmem:[#allocation43_spill] sm:$0xff] %v11465_v35  ;;  %14204 = vst [vmem:[#allocation10_spill] sm:$0xff] %v11469_v23  ;;  %v13959_v28 = vmax.f32 %v11231_v39, 0.0  ;;  %v13961_v52 = vmax.f32 %v11235_v61, 0.0  ;;  %v13962_v9 = vmax.f32 %v11243_v44, 0.0  ;;  %v13965_v8 = vmax.f32 %v11259_v30, 0.0  ;;  %4174 = vmatprep.mubr.f32.mxu1 %v3165_v56 }
 0x47b   :  { %14202 = vst [vmem:[#allocation42_spill] sm:$0xff] %v11461_v20  ;;  %v13963_v20 = vmax.f32 %v11239_v31, 0.0  ;;  %v13964_v33 = vmax.f32 %v11263_v17, 0.0  ;;  %3315 = vst [vmem:[#allocation2 + $0x19] sm:$0xff] %v3165_v56  ;;  %v13966_v26 = vmax.f32 %v11267_v34, 0.0  ;;  %v13967_v56 = vmax.f32 %v11283_v0, 0.0 }
 0x47c   :  { %3316 = vst [vmem:[#allocation2 + $0x21] sm:$0xff] %v13960_v41  ;;  %3317 = vst [vmem:[#allocation2 + $0x31] sm:$0xff] %v13959_v28  ;;  %v14205_v28 = vmax.f32 %v11247_v58, 0.0  ;;  %v14206_v35 = vmax.f32 %v11251_v57, 0.0  ;;  %v14212_v23 = vld [vmem:[#allocation31_spill] sm:$0xff]  ;;  %v3198_v41 = vmax.f32 %v11356_v37, 0.0 }
 0x47d   :  { %3318 = vst [vmem:[#allocation2 + $0x39] sm:$0xff] %v13961_v52  ;;  %3319 = vst [vmem:[#allocation2 + $0x49] sm:$0xff] %v13963_v20  ;;  %v14207_v52 = vmax.f32 %v11255_v24, 0.0  ;;  %v14211_v20 = vld [vmem:[#allocation29_spill] sm:$0xff] }
 0x47e   :  { %3320 = vst [vmem:[#allocation2 + $0x51] sm:$0xff] %v13962_v9  ;;  %3321 = vst [vmem:[#allocation2 + $0x61] sm:$0xff] %v14205_v28  ;;  %v4051_v28 = vld [vmem:[#allocation3 + $0x2f8] sm:$0xff]  ;;  %v3195_v9 = vmax.f32 %v14216_v55, 0.0  ;;  %v3199_v55 = vmax.f32 %v11360_v12, 0.0  ;;  %v14224_v37 = vld [vmem:[#allocation37_spill] sm:$0xff] }
 0x47f   :  { %3322 = vst [vmem:[#allocation2 + $0x69] sm:$0xff] %v14206_v35  ;;  %3323 = vst [vmem:[#allocation2 + $0x79] sm:$0xff] %v14207_v52  ;;  %v14208_v35 = vmax.f32 %v11271_v19, 0.0  ;;  %v14209_v52 = vmax.f32 %v11275_v11, 0.0  ;;  %4903 = vmatpush2.msra.mxu1 %v4051_v28  ;;  %v3202_v28 = vmax.f32 %v14224_v37, 0.0  ;;  %v3203_v12 = vmax.f32 %v11376_v45, 0.0 }
 0x480   :  { %3324 = vst [vmem:[#allocation2 + $0x81] sm:$0xff] %v13965_v8  ;;  %3325 = vst [vmem:[#allocation2 + $0x91] sm:$0xff] %v13964_v33  ;;  %v14210_v33 = vmax.f32 %v11279_v47, 0.0  ;;  %v13968_v8 = vmax.f32 %v11315_v16, 0.0  ;;  %4904 = vmatprep.subr.mxu1 %v10561_v18  ;;  %v3196_v18 = vmax.f32 %v11348_v42, 0.0  ;;  %v3200_v42 = vmax.f32 %v11364_v5, 0.0 }
 0x481   :  { %3326 = vst [vmem:[#allocation2 + $0x99] sm:$0xff] %v13966_v26  ;;  %3327 = vst [vmem:[#allocation2 + $0xa9] sm:$0xff] %v14208_v35  ;;  %v14213_v35 = vmax.f32 %v11287_v59, 0.0  ;;  %v3197_v26 = vmax.f32 %v11352_v53, 0.0  ;;  %v3201_v53 = vmax.f32 %v11368_v48, 0.0  ;;  %v3204_v5 = vmax.f32 %v11380_v13, 0.0 }
 0x482   :  { %3328 = vst [vmem:[#allocation2 + $0xb1] sm:$0xff] %v14209_v52  ;;  %3329 = vst [vmem:[#allocation2 + $0xc1] sm:$0xff] %v14210_v33  ;;  %v14214_v52 = vmax.f32 %v11291_v1, 0.0  ;;  %v14215_v33 = vmax.f32 %v11295_v51, 0.0  ;;  %v3205_v48 = vmax.f32 %v11384_v63, 0.0  ;;  %v3206_v37 = vmax.f32 %v11388_v21, 0.0 }
 0x483   :  { %3330 = vst [vmem:[#allocation2 + $0xc9] sm:$0xff] %v13967_v56  ;;  %3331 = vst [vmem:[#allocation2 + $0xd9] sm:$0xff] %v14213_v35  ;;  %v14217_v56 = vmax.f32 %v11299_v25, 0.0  ;;  %v14218_v35 = vmax.f32 %v11303_v15, 0.0  ;;  %v3211_v13 = vmax.f32 %v11408_v50, 0.0  ;;  %v3572_v63 = vld [vmem:[#allocation2 + $0x20] sm:$0xff] }
 0x484   :  { %3332 = vst [vmem:[#allocation2 + $0xe1] sm:$0xff] %v14214_v52  ;;  %3333 = vst [vmem:[#allocation2 + $0xf1] sm:$0xff] %v14215_v33  ;;  %v14219_v52 = vmax.f32 %v11307_v46, 0.0  ;;  %v14220_v33 = vmax.f32 %v11311_v14, 0.0  ;;  %v3212_v21 = vmax.f32 %v11412_v10, 0.0  ;;  %v3216_v50 = vmax.f32 %v11428_v32, 0.0 }
 0x485   :  { %3334 = vst [vmem:[#allocation2 + $0xf9] sm:$0xff] %v14217_v56  ;;  %3335 = vst [vmem:[#allocation2 + $0x109] sm:$0xff] %v14218_v35  ;;  %v14221_v56 = vmax.f32 %v14211_v20, 0.0  ;;  %v14222_v35 = vmax.f32 %v11323_v54, 0.0  ;;  %v14228_v54 = vld [vmem:[#allocation38_spill] sm:$0xff]  ;;  %v3219_v10 = vmax.f32 %v11440_v49, 0.0 }
 0x486   :  { %3336 = vst [vmem:[#allocation2 + $0x111] sm:$0xff] %v14219_v52  ;;  %3337 = vst [vmem:[#allocation2 + $0x121] sm:$0xff] %v14220_v33  ;;  %v14223_v52 = vmax.f32 %v14212_v23, 0.0  ;;  %v3507_v33 = vld [vmem:[#allocation2 + $0x2] sm:$0xff]  ;;  %v4067_v23 = vld [vmem:[#allocation3 + $0x378] sm:$0xff]  ;;  %v3207_v45 = vmax.f32 %v14228_v54, 0.0 }
 0x487   :  { %3338 = vst [vmem:[#allocation2 + $0x129] sm:$0xff] %v13968_v8  ;;  %3339 = vst [vmem:[#allocation2 + $0x139] sm:$0xff] %v14221_v56  ;;  %v14225_v8 = vmax.f32 %v11332_v27, 0.0  ;;  %v14226_v56 = vmax.f32 %v11336_v7, 0.0  ;;  %v14231_v54 = vmax.f32 %v11227_v4, 0.0  ;;  %v3217_v4 = vmax.f32 %v11432_v3, 0.0 }
 0x488   :  { %3340 = vst [vmem:[#allocation2 + $0x141] sm:$0xff] %v14222_v35  ;;  %3341 = vst [vmem:[#allocation2 + $0x151] sm:$0xff] %v14223_v52  ;;  %v14227_v35 = vmax.f32 %v11340_v62, 0.0  ;;  %v3571_v52 = vld [vmem:[#allocation2 + $0x18] sm:$0xff]  ;;  %v3210_v62 = vmax.f32 %v11404_v60, 0.0  ;;  %v3508_v60 = vld [vmem:[#allocation2 + $0xa] sm:$0xff] }
 0x489   :  { %3342 = vst [vmem:[#allocation2 + $0x159] sm:$0xff] %v14225_v8  ;;  %3343 = vst [vmem:[#allocation2 + $0x169] sm:$0xff] %v14226_v56  ;;  %4549 = vmatprep.mubr.f32.mxu0 %v3571_v52  ;;  %4175 = vmatmul.mubr.f32.gmra.mxu1 %v3571_v52  ;;  %v14229_v8 = vld [vmem:[#allocation39_spill] sm:$0xff]  ;;  %v3222_v32 = vmax.f32 %v11452_v43, 0.0  ;;  %v3509_v43 = vld [vmem:[#allocation2 + $0x1a] sm:$0xff]  ;;  %v14238_v52 = vmax.f32 %v11239_v31, 0.0 }
 0x48a   :  { %3344 = vst [vmem:[#allocation2 + $0x171] sm:$0xff] %v14227_v35  ;;  %3345 = vst [vmem:[#allocation2 + $0x181] sm:$0xff] %v3195_v9  ;;  %v3208_v56 = vmax.f32 %v14229_v8, 0.0  ;;  %v14230_v35 = vld [vmem:[#allocation40_spill] sm:$0xff]  ;;  %4550 = vmatmul.mubr.f32.vlgmr.msra.gmra.mxu0 %v3507_v33  ;;  %4179 = vmatprep.mubr.f32.mxu1 %v14231_v54  ;;  %v14234_v49 = vld [vmem:[#allocation43_spill] sm:$0xff]  ;;  %v14240_v8 = vmax.f32 %v11247_v58, 0.0 }
 0x48b   :  { %3346 = vst [vmem:[#allocation2 + $0x189] sm:$0xff] %v3196_v18  ;;  %3347 = vst [vmem:[#allocation2 + $0x1c9] sm:$0xff] %v3197_v26  ;;  %v3209_v9 = vmax.f32 %v14230_v35, 0.0  ;;  %v3214_v26 = vmax.f32 %v11420_v36, 0.0  ;;  %v3215_v18 = vmax.f32 %v11424_v29, 0.0  ;;  %4554 = vmatprep.mubr.f32.mxu0 %v3572_v63  ;;  %5256 = vmatpush1.msra.mxu0 %v4067_v23  ;;  %v3220_v36 = vmax.f32 %v11444_v6, 0.0 }
 0x48c   :  { %3348 = vst [vmem:[#allocation2 + $0x1d1] sm:$0xff] %v3198_v41  ;;  %3349 = vst [vmem:[#allocation2 + $0x1e1] sm:$0xff] %v3199_v55  ;;  %v3213_v41 = vmax.f32 %v11416_v38, 0.0  ;;  %v11591_v38 = vld [vmem:[#allocation2 + $0x8] sm:$0xff]  ;;  %v3221_v29 = vmax.f32 %v11448_v22, 0.0  ;;  %v14232_v23 = vld [vmem:[#allocation41_spill] sm:$0xff] }
 0x48d   :  { %3350 = vst [vmem:[#allocation2 + $0x1e9] sm:$0xff] %v3200_v42  ;;  %3351 = vst [vmem:[#allocation2 + $0x1f9] sm:$0xff] %v3201_v53  ;;  %5257 = vmatprep.subr.mxu0 %v11591_v38  ;;  %v3223_v3 = vmax.f32 %v14232_v23, 0.0  ;;  %4180 = vmatmul.mubr.f32.gmra.mxu1 %v3572_v63  ;;  %v3225_v55 = vmax.f32 %v14234_v49, 0.0  ;;  %v14235_v33 = vld [vmem:[#allocation10_spill] sm:$0xff]  ;;  %v3228_v53 = vmax.f32 %v11473_v2, 0.0 }
 0x48e   :  { %3352 = vst [vmem:[#allocation2 + $0x201] sm:$0xff] %v3202_v28  ;;  %3353 = vst [vmem:[#allocation2 + $0x211] sm:$0xff] %v3203_v12  ;;  %v3218_v28 = vmax.f32 %v11436_v40, 0.0  ;;  %v14233_v40 = vld [vmem:[#allocation42_spill] sm:$0xff]  ;;  %v3226_v42 = vmax.f32 %v14235_v33, 0.0  ;;  %4555 = vmatmul.mubr.f32.gmra.mxu0 %v3508_v60  ;;  %v14236_v6 = vmax.f32 %v11231_v39, 0.0 }
 0x48f   :  { %3354 = vst [vmem:[#allocation2 + $0x219] sm:$0xff] %v3204_v5  ;;  %3355 = vst [vmem:[#allocation2 + $0x229] sm:$0xff] %v3205_v48  ;;  %v3573_v22 = vld [vmem:[#allocation2 + $0x30] sm:$0xff]  ;;  %v14237_v2 = vmax.f32 %v11235_v61, 0.0  ;;  %v3574_v12 = vld [vmem:[#allocation2 + $0x38] sm:$0xff]  ;;  %v14243_v60 = vmax.f32 %v11259_v30, 0.0 }
 0x490   :  { %3356 = vst [vmem:[#allocation2 + $0x231] sm:$0xff] %v3206_v37  ;;  %3357 = vst [vmem:[#allocation2 + $0x241] sm:$0xff] %v3207_v45  ;;  %4184 = vmatprep.mubr.f32.mxu1 %v14236_v6  ;;  %4559 = vmatprep.mubr.f32.mxu0 %v3573_v22  ;;  %v3510_v39 = vld [vmem:[#allocation2 + $0x22] sm:$0xff]  ;;  %v3511_v48 = vld [vmem:[#allocation2 + $0x32] sm:$0xff]  ;;  %v14239_v37 = vmax.f32 %v11243_v44, 0.0  ;;  %v14245_v23 = vmax.f32 %v11267_v34, 0.0 }
 0x491   :  { %3358 = vst [vmem:[#allocation2 + $0x249] sm:$0xff] %v3208_v56  ;;  %3359 = vst [vmem:[#allocation2 + $0x259] sm:$0xff] %v3209_v9  ;;  %4185 = vmatmul.mubr.f32.gmra.mxu1 %v3573_v22  ;;  %v3575_v5 = vld [vmem:[#allocation2 + $0x48] sm:$0xff]  ;;  %v3576_v45 = vld [vmem:[#allocation2 + $0x50] sm:$0xff]  ;;  %v14246_v49 = vmax.f32 %v11271_v19, 0.0  ;;  %v14247_v33 = vmax.f32 %v11275_v11, 0.0 }
 0x492   :  { %3360 = vst [vmem:[#allocation2 + $0x261] sm:$0xff] %v3210_v62  ;;  %3361 = vst [vmem:[#allocation2 + $0x271] sm:$0xff] %v3211_v13  ;;  %v3224_v62 = vmax.f32 %v14233_v40, 0.0  ;;  %4560 = vmatmul.mubr.f32.gmra.mxu0 %v3509_v43  ;;  %4189 = vmatprep.mubr.f32.mxu1 %v14237_v2  ;;  %v3512_v61 = vld [vmem:[#allocation2 + $0x3a] sm:$0xff]  ;;  %v4050_v31 = vld [vmem:[#allocation3 + $0x2f0] sm:$0xff]  ;;  %v14241_v13 = vmax.f32 %v11251_v57, 0.0 }
 0x493   :  { %3362 = vst [vmem:[#allocation2 + $0x279] sm:$0xff] %v3212_v21  ;;  %3363 = vst [vmem:[#allocation2 + $0x289] sm:$0xff] %v3213_v41  ;;  %4564 = vmatprep.mubr.f32.mxu0 %v3574_v12  ;;  %v3577_v56 = vld [vmem:[#allocation2 + $0x60] sm:$0xff]  ;;  %v3513_v35 = vld [vmem:[#allocation2 + $0x4a] sm:$0xff]  ;;  %4905 = vmatpush2.msra.mxu1 %v4050_v31  ;;  %v14242_v21 = vmax.f32 %v11255_v24, 0.0  ;;  %v14248_v22 = vmax.f32 %v11279_v47, 0.0 }
 0x494   :  { %3364 = vst [vmem:[#allocation2 + $0x291] sm:$0xff] %v3214_v26  ;;  %3365 = vst [vmem:[#allocation2 + $0x2a1] sm:$0xff] %v3215_v18  ;;  %v4066_v9 = vld [vmem:[#allocation3 + $0x370] sm:$0xff]  ;;  %v3578_v44 = vld [vmem:[#allocation2 + $0x68] sm:$0xff]  ;;  %4906 = vmatprep.subr.mxu1 %v11591_v38  ;;  %v14249_v2 = vmax.f32 %v11283_v0, 0.0  ;;  %v14250_v47 = vmax.f32 %v11287_v59, 0.0 }
 0x495   :  { %3366 = vst [vmem:[#allocation2 + $0x2a9] sm:$0xff] %v3216_v50  ;;  %3367 = vst [vmem:[#allocation2 + $0x2b9] sm:$0xff] %v3217_v4  ;;  %4190 = vmatmul.mubr.f32.gmra.mxu1 %v3574_v12  ;;  %5258 = vmatpush1.msra.mxu0 %v4066_v9  ;;  %v4049_v54 = vld [vmem:[#allocation3 + $0x2e8] sm:$0xff]  ;;  %v3514_v58 = vld [vmem:[#allocation2 + $0x52] sm:$0xff]  ;;  %v14252_v31 = vmax.f32 %v11295_v51, 0.0 }
 0x496   :  { %3368 = vst [vmem:[#allocation2 + $0x2c1] sm:$0xff] %v3218_v28  ;;  %3369 = vst [vmem:[#allocation2 + $0x2d1] sm:$0xff] %v3219_v10  ;;  %4565 = vmatmul.mubr.f32.gmra.mxu0 %v3510_v39  ;;  %4194 = vmatprep.mubr.f32.mxu1 %v14238_v52  ;;  %v4065_v63 = vld [vmem:[#allocation3 + $0x368] sm:$0xff]  ;;  %v3579_v41 = vld [vmem:[#allocation2 + $0x78] sm:$0xff]  ;;  %v14244_v10 = vmax.f32 %v11263_v17, 0.0 }
 0x497   :  { %3370 = vst [vmem:[#allocation2 + $0x2d9] sm:$0xff] %v3220_v36  ;;  %3371 = vst [vmem:[#allocation2 + $0x2e9] sm:$0xff] %v3221_v29  ;;  %4569 = vmatprep.mubr.f32.mxu0 %v3575_v5  ;;  %5259 = vmatprep.subr.mxu0 %v11591_v38  ;;  %v4048_v57 = vld [vmem:[#allocation3 + $0x2e0] sm:$0xff]  ;;  %v4047_v24 = vld [vmem:[#allocation3 + $0x2d8] sm:$0xff] }
 0x498   :  { %3372 = vst [vmem:[#allocation2 + $0x2f1] sm:$0xff] %v3222_v32  ;;  %3373 = vst [vmem:[#allocation2 + $0x301] sm:$0xff] %v3223_v3  ;;  %4907 = vmatpush2.msra.mxu1 %v4049_v54  ;;  %5260 = vmatpush1.msra.mxu0 %v4065_v63  ;;  %v3515_v26 = vld [vmem:[#allocation2 + $0x62] sm:$0xff]  ;;  %v3516_v4 = vld [vmem:[#allocation2 + $0x6a] sm:$0xff] }
 0x499   :  { %3374 = vst [vmem:[#allocation2 + $0x309] sm:$0xff] %v3224_v62  ;;  %3375 = vst [vmem:[#allocation2 + $0x319] sm:$0xff] %v3225_v55  ;;  %4195 = vmatmul.mubr.f32.gmra.mxu1 %v3575_v5  ;;  %4908 = vmatprep.subr.mxu1 %v11591_v38  ;;  %v4064_v18 = vld [vmem:[#allocation3 + $0x360] sm:$0xff]  ;;  %v4063_v28 = vld [vmem:[#allocation3 + $0x358] sm:$0xff] }
 0x49a   :  { %3376 = vst [vmem:[#allocation2 + $0x321] sm:$0xff] %v3226_v42  ;;  %3378 = vst [vmem:[#allocation2 + $0x339] sm:$0xff] %v3228_v53  ;;  %4570 = vmatmul.mubr.f32.gmra.mxu0 %v3511_v48  ;;  %4199 = vmatprep.mubr.f32.mxu1 %v14239_v37  ;;  %v3580_v50 = vld [vmem:[#allocation2 + $0x80] sm:$0xff]  ;;  %v3581_v36 = vld [vmem:[#allocation2 + $0x90] sm:$0xff]  ;;  %v14251_v37 = vmax.f32 %v11291_v1, 0.0 }
 0x49b   :  { %4574 = vmatprep.mubr.f32.mxu0 %v3576_v45  ;;  %5261 = vmatprep.subr.mxu0 %v11591_v38  ;;  %v4046_v30 = vld [vmem:[#allocation3 + $0x2d0] sm:$0xff]  ;;  %v3517_v29 = vld [vmem:[#allocation2 + $0x7a] sm:$0xff]  ;;  %v4045_v17 = vld [vmem:[#allocation3 + $0x2c8] sm:$0xff] }
 0x49c   :  { %4909 = vmatpush2.msra.mxu1 %v4048_v57  ;;  %5262 = vmatpush1.msra.mxu0 %v4064_v18  ;;  %v4062_v32 = vld [vmem:[#allocation3 + $0x350] sm:$0xff]  ;;  %v3582_v3 = vld [vmem:[#allocation2 + $0x98] sm:$0xff]  ;;  %v3518_v40 = vld [vmem:[#allocation2 + $0x82] sm:$0xff] }
 0x49d   :  { %4200 = vmatmul.mubr.f32.gmra.mxu1 %v3576_v45  ;;  %4910 = vmatprep.subr.mxu1 %v11591_v38  ;;  %v4061_v62 = vld [vmem:[#allocation3 + $0x348] sm:$0xff]  ;;  %v3519_v34 = vld [vmem:[#allocation2 + $0x92] sm:$0xff]  ;;  %v4044_v53 = vld [vmem:[#allocation3 + $0x2c0] sm:$0xff] }
 0x49e   :  { %4575 = vmatmul.mubr.f32.gmra.mxu0 %v3512_v61  ;;  %4204 = vmatprep.mubr.f32.mxu1 %v14240_v8  ;;  %v3583_v55 = vld [vmem:[#allocation2 + $0xa8] sm:$0xff]  ;;  %v3584_v42 = vld [vmem:[#allocation2 + $0xb0] sm:$0xff]  ;;  %v4060_v6 = vld [vmem:[#allocation3 + $0x340] sm:$0xff] }
 0x49f   :  { %4579 = vmatprep.mubr.f32.mxu0 %v3577_v56  ;;  %5263 = vmatprep.subr.mxu0 %v11591_v38  ;;  %v3520_v19 = vld [vmem:[#allocation2 + $0x9a] sm:$0xff]  ;;  %v3521_v11 = vld [vmem:[#allocation2 + $0xaa] sm:$0xff]  ;;  %v3522_v5 = vld [vmem:[#allocation2 + $0xb2] sm:$0xff] }
 0x4a0   :  { %4911 = vmatpush2.msra.mxu1 %v4047_v24  ;;  %5264 = vmatpush1.msra.mxu0 %v4063_v28  ;;  %v3585_v43 = vld [vmem:[#allocation2 + $0xc0] sm:$0xff]  ;;  %v3586_v12 = vld [vmem:[#allocation2 + $0xc8] sm:$0xff]  ;;  %v4043_v39 = vld [vmem:[#allocation3 + $0x2b8] sm:$0xff]  ;;  %v14256_v24 = vmax.f32 %v11311_v14, 0.0  ;;  %v14257_v28 = vmax.f32 %v11315_v16, 0.0 }
 0x4a1   :  { %4205 = vmatmul.mubr.f32.gmra.mxu1 %v3577_v56  ;;  %4912 = vmatprep.subr.mxu1 %v11591_v38  ;;  %v4059_v52 = vld [vmem:[#allocation3 + $0x338] sm:$0xff]  ;;  %v3523_v0 = vld [vmem:[#allocation2 + $0xc2] sm:$0xff]  ;;  %v4042_v61 = vld [vmem:[#allocation3 + $0x2b0] sm:$0xff] }
 0x4a2   :  { %4580 = vmatmul.mubr.f32.gmra.mxu0 %v3513_v35  ;;  %4209 = vmatprep.mubr.f32.mxu1 %v14241_v13  ;;  %v3587_v48 = vld [vmem:[#allocation2 + $0xd8] sm:$0xff]  ;;  %v3588_v45 = vld [vmem:[#allocation2 + $0xe0] sm:$0xff]  ;;  %v4058_v56 = vld [vmem:[#allocation3 + $0x330] sm:$0xff] }
 0x4a3   :  { %4584 = vmatprep.mubr.f32.mxu0 %v3578_v44  ;;  %5265 = vmatprep.subr.mxu0 %v11591_v38  ;;  %v3524_v59 = vld [vmem:[#allocation2 + $0xca] sm:$0xff]  ;;  %v3525_v13 = vld [vmem:[#allocation2 + $0xda] sm:$0xff] }
 0x4a4   :  { %4913 = vmatpush2.msra.mxu1 %v4046_v30  ;;  %5266 = vmatpush1.msra.mxu0 %v4062_v32  ;;  %v3589_v35 = vld [vmem:[#allocation2 + $0xf0] sm:$0xff]  ;;  %v3590_v54 = vld [vmem:[#allocation2 + $0xf8] sm:$0xff]  ;;  %v4041_v51 = vld [vmem:[#allocation3 + $0x2a8] sm:$0xff]  ;;  %v14258_v32 = vmax.f32 %v14211_v20, 0.0 }
 0x4a5   :  { %4210 = vmatmul.mubr.f32.gmra.mxu1 %v3578_v44  ;;  %4914 = vmatprep.subr.mxu1 %v11591_v38  ;;  %v14253_v44 = vmax.f32 %v11299_v25, 0.0  ;;  %v4057_v63 = vld [vmem:[#allocation3 + $0x328] sm:$0xff]  ;;  %v3527_v25 = vld [vmem:[#allocation2 + $0xf2] sm:$0xff] }
 0x4a6   :  { %4585 = vmatmul.mubr.f32.gmra.mxu0 %v3514_v58  ;;  %4214 = vmatprep.mubr.f32.mxu1 %v14242_v21  ;;  %v3526_v21 = vld [vmem:[#allocation2 + $0xe2] sm:$0xff]  ;;  %v3592_v18 = vld [vmem:[#allocation2 + $0x110] sm:$0xff]  ;;  %v4055_v30 = vld [vmem:[#allocation3 + $0x318] sm:$0xff] }
 0x4a7   :  { %4589 = vmatprep.mubr.f32.mxu0 %v3579_v41  ;;  %5267 = vmatprep.subr.mxu0 %v11591_v38  ;;  %v3591_v57 = vld [vmem:[#allocation2 + $0x108] sm:$0xff]  ;;  %v4054_v14 = vld [vmem:[#allocation3 + $0x310] sm:$0xff] }
 0x4a8   :  { %4915 = vmatpush2.msra.mxu1 %v4045_v17  ;;  %5268 = vmatpush1.msra.mxu0 %v4061_v62  ;;  %v4053_v16 = vld [vmem:[#allocation3 + $0x308] sm:$0xff]  ;;  %v4052_v17 = vld [vmem:[#allocation3 + $0x300] sm:$0xff]  ;;  %v4038_v20 = vld [vmem:[#allocation3 + $0x290] sm:$0xff] }
 0x4a9   :  { %4215 = vmatmul.mubr.f32.gmra.mxu1 %v3579_v41  ;;  %4916 = vmatprep.subr.mxu1 %v11591_v38  ;;  %v14254_v41 = vmax.f32 %v11303_v15, 0.0  ;;  %v3528_v15 = vld [vmem:[#allocation2 + $0xfa] sm:$0xff] }
 0x4aa   :  { %4590 = vmatmul.mubr.f32.gmra.mxu0 %v3515_v26  ;;  %4219 = vmatprep.mubr.f32.mxu1 %v14243_v60  ;;  %v14255_v26 = vmax.f32 %v11307_v46, 0.0  ;;  %v4040_v60 = vld [vmem:[#allocation3 + $0x2a0] sm:$0xff]  ;;  %v3529_v46 = vld [vmem:[#allocation2 + $0x10a] sm:$0xff] }
 0x4ab   :  { %4594 = vmatprep.mubr.f32.mxu0 %v3580_v50  ;;  %5269 = vmatprep.subr.mxu0 %v11591_v38 }
 0x4ac   :  { %4917 = vmatpush2.msra.mxu1 %v4044_v53  ;;  %5270 = vmatpush1.msra.mxu0 %v4060_v6  ;;  %v3597_v53 = vld [vmem:[#allocation2 + $0x150] sm:$0xff] }
 0x4ad   :  { %4220 = vmatmul.mubr.f32.gmra.mxu1 %v3580_v50  ;;  %4918 = vmatprep.subr.mxu1 %v11591_v38  ;;  %v4056_v50 = vld [vmem:[#allocation3 + $0x320] sm:$0xff]  ;;  %v4082_v6 = vld [vmem:[#allocation3 + $0x3f0] sm:$0xff] }
 0x4ae   :  { %4595 = vmatmul.mubr.f32.gmra.mxu0 %v3516_v4  ;;  %4224 = vmatprep.mubr.f32.mxu1 %v14244_v10  ;;  %v3593_v4 = vld [vmem:[#allocation2 + $0x120] sm:$0xff]  ;;  %v3594_v10 = vld [vmem:[#allocation2 + $0x128] sm:$0xff] }
 0x4af   :  { %4599 = vmatprep.mubr.f32.mxu0 %v3581_v36  ;;  %5271 = vmatprep.subr.mxu0 %v11591_v38 }
 0x4b0   :  { %4919 = vmatpush2.msra.mxu1 %v4043_v39  ;;  %5272 = vmatpush1.msra.mxu0 %v4059_v52  ;;  %v3534_v39 = vld [vmem:[#allocation2 + $0x142] sm:$0xff]  ;;  %v14264_v52 = vmax.f32 %v11336_v7, 0.0  ;;  %v3475_v7 = vld [vmem:[#allocation2 + $0x1b1] sm:$0xff] }
 0x4b1   :  { %4225 = vmatmul.mubr.f32.gmra.mxu1 %v3581_v36  ;;  %4920 = vmatprep.subr.mxu1 %v11591_v38  ;;  %v4039_v36 = vld [vmem:[#allocation3 + $0x298] sm:$0xff] }
 0x4b2   :  { %4600 = vmatmul.mubr.f32.gmra.mxu0 %v3517_v29  ;;  %4229 = vmatprep.mubr.f32.mxu1 %v14245_v23  ;;  %v3530_v29 = vld [vmem:[#allocation2 + $0x112] sm:$0xff] }
 0x4b3   :  { %4604 = vmatprep.mubr.f32.mxu0 %v3582_v3  ;;  %5273 = vmatprep.subr.mxu0 %v11591_v38  ;;  %v3595_v23 = vld [vmem:[#allocation2 + $0x138] sm:$0xff] }
 0x4b4   :  { %4921 = vmatpush2.msra.mxu1 %v4042_v61  ;;  %5274 = vmatpush1.msra.mxu0 %v4058_v56  ;;  %v4036_v61 = vld [vmem:[#allocation3 + $0x280] sm:$0xff]  ;;  %v4077_v56 = vld [vmem:[#allocation3 + $0x3c8] sm:$0xff] }
 0x4b5   :  { %4230 = vmatmul.mubr.f32.gmra.mxu1 %v3582_v3  ;;  %4922 = vmatprep.subr.mxu1 %v11591_v38  ;;  %v3531_v3 = vld [vmem:[#allocation2 + $0x122] sm:$0xff] }
 0x4b6   :  { %4605 = vmatmul.mubr.f32.gmra.mxu0 %v3518_v40  ;;  %4234 = vmatprep.mubr.f32.mxu1 %v14246_v49  ;;  %v14259_v40 = vld [vmem:[#allocation30_spill] sm:$0xff]  ;;  %v3596_v49 = vld [vmem:[#allocation2 + $0x140] sm:$0xff] }
 0x4b7   :  { %4609 = vmatprep.mubr.f32.mxu0 %v3583_v55  ;;  %5275 = vmatprep.subr.mxu0 %v11591_v38  ;;  %v14260_v62 = vmax.f32 %v14259_v40, 0.0  ;;  %v3608_v40 = vld [vmem:[#allocation2 + $0x200] sm:$0xff] }
 0x4b8   :  { %4923 = vmatpush2.msra.mxu1 %v4041_v51  ;;  %5276 = vmatpush1.msra.mxu0 %v4057_v63  ;;  %v11699_v51 = vld [vmem:[#allocation3 + $0x478] sm:$0xff]  ;;  %v4074_v63 = vld [vmem:[#allocation3 + $0x3b0] sm:$0xff] }
 0x4b9   :  { %4235 = vmatmul.mubr.f32.gmra.mxu1 %v3583_v55  ;;  %4924 = vmatprep.subr.mxu1 %v11591_v38  ;;  %v4083_v55 = vld [vmem:[#allocation3 + $0x3f8] sm:$0xff] }
 0x4ba   :  { %4610 = vmatmul.mubr.f32.gmra.mxu0 %v3519_v34  ;;  %4239 = vmatprep.mubr.f32.mxu1 %v14247_v33  ;;  %v3532_v34 = vld [vmem:[#allocation2 + $0x12a] sm:$0xff] }
 0x4bb   :  { %4614 = vmatprep.mubr.f32.mxu0 %v3584_v42  ;;  %5277 = vmatprep.subr.mxu0 %v11591_v38  ;;  %v14261_v33 = vld [vmem:[#allocation31_spill] sm:$0xff] }
 0x4bc   :  { %4925 = vmatpush2.msra.mxu1 %v4040_v60  ;;  %5278 = vmatpush1.msra.mxu0 %v4056_v50  ;;  %v4072_v60 = vld [vmem:[#allocation3 + $0x3a0] sm:$0xff]  ;;  %v3604_v50 = vld [vmem:[#allocation2 + $0x1d0] sm:$0xff] }
 0x4bd   :  { %4240 = vmatmul.mubr.f32.gmra.mxu1 %v3584_v42  ;;  %4926 = vmatprep.subr.mxu1 %v11591_v38  ;;  %v14262_v42 = vmax.f32 %v14261_v33, 0.0  ;;  %v3546_v33 = vld [vmem:[#allocation2 + $0x202] sm:$0xff] }
 0x4be   :  { %4615 = vmatmul.mubr.f32.gmra.mxu0 %v3520_v19  ;;  %4244 = vmatprep.mubr.f32.mxu1 %v14248_v22  ;;  %v3533_v19 = vld [vmem:[#allocation2 + $0x13a] sm:$0xff]  ;;  %v4081_v22 = vld [vmem:[#allocation3 + $0x3e8] sm:$0xff] }
 0x4bf   :  { %4619 = vmatprep.mubr.f32.mxu0 %v3585_v43  ;;  %5279 = vmatprep.subr.mxu0 %v11591_v38 }
 0x4c0   :  { %4927 = vmatpush2.msra.mxu1 %v4039_v36  ;;  %5280 = vmatpush1.msra.mxu0 %v4055_v30  ;;  %v3480_v36 = vld [vmem:[#allocation2 + $0x1e9] sm:$0xff] }
 0x4c1   :  { %4245 = vmatmul.mubr.f32.gmra.mxu1 %v3585_v43  ;;  %5281 = vmatprep.subr.mxu0 %v11591_v38  ;;  %v14263_v43 = vmax.f32 %v11332_v27, 0.0  ;;  %v3535_v27 = vld [vmem:[#allocation2 + $0x152] sm:$0xff]  ;;  %v4069_v30 = vld [vmem:[#allocation3 + $0x388] sm:$0xff] }
 0x4c2   :  { %4620 = vmatmul.mubr.f32.gmra.mxu0 %v3521_v11  ;;  %4249 = vmatprep.mubr.f32.mxu1 %v14249_v2  ;;  %v11650_v8 = vpop.f32.mrf.mxu1  ;;  %v3598_v11 = vld [vmem:[#allocation2 + $0x158] sm:$0xff]  ;;  %v4037_v2 = vld [vmem:[#allocation3 + $0x288] sm:$0xff] }
 0x4c3   :  { %4624 = vmatprep.mubr.f32.mxu0 %v3586_v12  ;;  %5282 = vmatpush1.msra.mxu0 %v4054_v14  ;;  %v3606_v14 = vld [vmem:[#allocation2 + $0x1e8] sm:$0xff] }
 0x4c4   :  { %v4168_v9 = vpop.f32.mrf.mxu1  ;;  %5283 = vmatprep.subr.mxu0 %v11591_v38  ;;  %4928 = vmatprep.subr.mxu1 %v11591_v38 }
 0x4c5   :  { %4250 = vmatmul.mubr.f32.gmra.mxu1 %v3586_v12  ;;  %5284 = vmatpush1.msra.mxu0 %v4053_v16  ;;  %v4080_v12 = vld [vmem:[#allocation3 + $0x3e0] sm:$0xff]  ;;  %v3607_v16 = vld [vmem:[#allocation2 + $0x1f8] sm:$0xff] }
 0x4c6   :  { %4625 = vmatmul.mubr.f32.gmra.mxu0 %v3522_v5  ;;  %4254 = vmatprep.mubr.f32.mxu1 %v14250_v47  ;;  %v11655_v1 = vpop.f32.mrf.mxu1  ;;  %v3599_v5 = vld [vmem:[#allocation2 + $0x168] sm:$0xff]  ;;  %v4079_v47 = vld [vmem:[#allocation3 + $0x3d8] sm:$0xff]  ;;  %v4076_v9 = vld [vmem:[#allocation3 + $0x3c0] sm:$0xff] }
 0x4c7   :  { %4629 = vmatprep.mubr.f32.mxu0 %v3587_v48  ;;  %5285 = vmatprep.subr.mxu0 %v11591_v38 }
 0x4c8   :  { %v4173_v58 = vpop.f32.mrf.mxu1  ;;  %5286 = vmatpush1.msra.mxu0 %v4052_v17  ;;  %4929 = vmatpush2.msra.mxu1 %v4038_v20  ;;  %v3482_v17 = vld [vmem:[#allocation2 + $0x201] sm:$0xff]  ;;  %v3609_v20 = vld [vmem:[#allocation2 + $0x210] sm:$0xff] }
 0x4c9   :  { %4255 = vmatmul.mubr.f32.gmra.mxu1 %v3587_v48  ;;  %5287 = vmatprep.subr.mxu0 %v11591_v38  ;;  %v4078_v48 = vld [vmem:[#allocation3 + $0x3d0] sm:$0xff]  ;;  %v3602_v58 = vld [vmem:[#allocation2 + $0x188] sm:$0xff] }
 0x4ca   :  { %4630 = vmatmul.mubr.f32.gmra.mxu0 %v3523_v0  ;;  %4259 = vmatprep.mubr.f32.mxu1 %v14251_v37  ;;  %v14265_v0 = vld [vmem:[#allocation32_spill] sm:$0xff] }
 0x4cb   :  { %4634 = vmatprep.mubr.f32.mxu0 %v3588_v45  ;;  %5288 = vmatpush2.msra.mxu0 %v4083_v55  ;;  %v14266_v37 = vmax.f32 %v14265_v0, 0.0  ;;  %v3484_v55 = vld [vmem:[#allocation2 + $0x219] sm:$0xff]  ;;  %v3490_v0 = vld [vmem:[#allocation2 + $0x261] sm:$0xff] }
 0x4cc   :  { %5289 = vmatprep.subr.mxu0 %v11591_v38  ;;  %4930 = vmatprep.subr.mxu1 %v11591_v38 }
 0x4cd   :  { %4260 = vmatmul.mubr.f32.gmra.mxu1 %v3588_v45  ;;  %5290 = vmatpush2.msra.mxu0 %v4082_v6  ;;  %v3600_v45 = vld [vmem:[#allocation2 + $0x170] sm:$0xff] }
 0x4ce   :  { %4635 = vmatmul.mubr.f32.gmra.mxu0 %v3524_v59  ;;  %4264 = vmatprep.mubr.f32.mxu1 %v14252_v31  ;;  %v3536_v59 = vld [vmem:[#allocation2 + $0x15a] sm:$0xff]  ;;  %v3547_v6 = vld [vmem:[#allocation2 + $0x212] sm:$0xff] }
 0x4cf   :  { %4639 = vmatprep.mubr.f32.mxu0 %v3589_v35  ;;  %5291 = vmatprep.subr.mxu0 %v11591_v38  ;;  %v3601_v31 = vld [vmem:[#allocation2 + $0x180] sm:$0xff] }
 0x4d0   :  { %5292 = vmatpush2.msra.mxu0 %v4081_v22  ;;  %4931 = vmatpush2.msra.mxu1 %v4037_v2  ;;  %v3612_v22 = vld [vmem:[#allocation2 + $0x230] sm:$0xff]  ;;  %v3613_v2 = vld [vmem:[#allocation2 + $0x240] sm:$0xff] }
 0x4d1   :  { %4265 = vmatmul.mubr.f32.gmra.mxu1 %v3589_v35  ;;  %5293 = vmatprep.subr.mxu0 %v11591_v38  ;;  %v3411_v35 = vld [vmem:[#allocation2 + $0x1b0] sm:$0xff] }
 0x4d2   :  { %4640 = vmatmul.mubr.f32.gmra.mxu0 %v3525_v13  ;;  %4269 = vmatprep.mubr.f32.mxu1 %v14253_v44  ;;  %v3476_v13 = vld [vmem:[#allocation2 + $0x1b9] sm:$0xff]  ;;  %v3537_v44 = vld [vmem:[#allocation2 + $0x16a] sm:$0xff] }
 0x4d3   :  { %4644 = vmatprep.mubr.f32.mxu0 %v3590_v54  ;;  %5294 = vmatpush2.msra.mxu0 %v4080_v12  ;;  %v3549_v12 = vld [vmem:[#allocation2 + $0x22a] sm:$0xff] }
 0x4d4   :  { %5295 = vmatprep.subr.mxu0 %v11591_v38  ;;  %4932 = vmatprep.subr.mxu1 %v11591_v38 }
 0x4d5   :  { %4270 = vmatmul.mubr.f32.gmra.mxu1 %v3590_v54  ;;  %5296 = vmatpush2.msra.mxu0 %v4079_v47  ;;  %v4075_v54 = vld [vmem:[#allocation3 + $0x3b8] sm:$0xff] }
 0x4d6   :  { %4645 = vmatmul.mubr.f32.gmra.mxu0 %v3526_v21  ;;  %4274 = vmatprep.mubr.f32.mxu1 %v14254_v41  ;;  %v3538_v21 = vld [vmem:[#allocation2 + $0x172] sm:$0xff]  ;;  %v3477_v41 = vld [vmem:[#allocation2 + $0x1c9] sm:$0xff] }
 0x4d7   :  { %4649 = vmatprep.mubr.f32.mxu0 %v3591_v57  ;;  %5297 = vmatprep.subr.mxu0 %v11591_v38  ;;  %v3489_v47 = vld [vmem:[#allocation2 + $0x259] sm:$0xff] }
 0x4d8   :  { %5298 = vmatpush2.msra.mxu0 %v4078_v48  ;;  %4933 = vmatpush2.msra.mxu1 %v4036_v61  ;;  %v3551_v48 = vld [vmem:[#allocation2 + $0x242] sm:$0xff]  ;;  %v3617_v61 = vld [vmem:[#allocation2 + $0x270] sm:$0xff] }
 0x4d9   :  { %4275 = vmatmul.mubr.f32.gmra.mxu1 %v3591_v57  ;;  %5299 = vmatprep.subr.mxu0 %v11591_v38  ;;  %v3603_v57 = vld [vmem:[#allocation2 + $0x1c8] sm:$0xff] }
 0x4da   :  { %4650 = vmatmul.mubr.f32.gmra.mxu0 %v3527_v25  ;;  %4279 = vmatprep.mubr.f32.mxu1 %v14255_v26  ;;  %v4073_v25 = vld [vmem:[#allocation3 + $0x3a8] sm:$0xff]  ;;  %v3539_v26 = vld [vmem:[#allocation2 + $0x1b2] sm:$0xff] }
 0x4db   :  { %4654 = vmatprep.mubr.f32.mxu0 %v3592_v18  ;;  %5300 = vmatpush2.msra.mxu0 %v4077_v56  ;;  %v3553_v56 = vld [vmem:[#allocation2 + $0x25a] sm:$0xff] }
 0x4dc   :  { %5301 = vmatprep.subr.mxu0 %v11591_v38  ;;  %7386 = vmatprep.subr.mxu1 %v11699_v51 }
 0x4dd   :  { %4280 = vmatmul.mubr.f32.gmra.mxu1 %v3592_v18  ;;  %5302 = vmatpush2.msra.mxu0 %v4076_v9  ;;  %v3478_v18 = vld [vmem:[#allocation2 + $0x1d1] sm:$0xff]  ;;  %v3493_v9 = vld [vmem:[#allocation2 + $0x289] sm:$0xff] }
 0x4de   :  { %4655 = vmatmul.mubr.f32.gmra.mxu0 %v3528_v15  ;;  %4284 = vmatprep.mubr.f32.mxu1 %v14256_v24  ;;  %v3540_v15 = vld [vmem:[#allocation2 + $0x1ba] sm:$0xff] }
 0x4df   :  { %4659 = vmatprep.mubr.f32.mxu0 %v3593_v4  ;;  %5303 = vmatprep.subr.mxu0 %v11591_v38  ;;  %v4071_v24 = vld [vmem:[#allocation3 + $0x398] sm:$0xff] }
 0x4e0   :  { %5304 = vmatpush2.msra.mxu0 %v4075_v54  ;;  %v3555_v54 = vld [vmem:[#allocation2 + $0x272] sm:$0xff] }
 0x4e1   :  { %4285 = vmatmul.mubr.f32.gmra.mxu1 %v3593_v4  ;;  %5305 = vmatprep.subr.mxu0 %v11591_v38  ;;  %v3479_v4 = vld [vmem:[#allocation2 + $0x1e1] sm:$0xff] }
 0x4e2   :  { %4660 = vmatmul.mubr.f32.gmra.mxu0 %v3529_v46  ;;  %4289 = vmatprep.mubr.f32.mxu1 %v14257_v28  ;;  %v3605_v46 = vld [vmem:[#allocation2 + $0x1e0] sm:$0xff]  ;;  %v4070_v28 = vld [vmem:[#allocation3 + $0x390] sm:$0xff] }
 0x4e3   :  { %4664 = vmatprep.mubr.f32.mxu0 %v3594_v10  ;;  %5306 = vmatpush2.msra.mxu0 %v4074_v63 }
 0x4e4   :  { %5307 = vmatprep.subr.mxu0 %v11591_v38 }
 0x4e5   :  { %4290 = vmatmul.mubr.f32.gmra.mxu1 %v3594_v10  ;;  %5308 = vmatpush2.msra.mxu0 %v4073_v25  ;;  %v3541_v10 = vld [vmem:[#allocation2 + $0x1ca] sm:$0xff] }
 0x4e6   :  { %4665 = vmatmul.mubr.f32.gmra.mxu0 %v3530_v29  ;;  %4294 = vmatprep.mubr.f32.mxu1 %v14258_v32  ;;  %v4068_v29 = vld [vmem:[#allocation3 + $0x380] sm:$0xff]  ;;  %v3542_v32 = vld [vmem:[#allocation2 + $0x1d2] sm:$0xff] }
 0x4e7   :  { %4669 = vmatprep.mubr.f32.mxu0 %v3595_v23  ;;  %5309 = vmatprep.subr.mxu0 %v11591_v38 }
 0x4e8   :  { %5310 = vmatpush2.msra.mxu0 %v4072_v60 }
 0x4e9   :  { %4295 = vmatmul.mubr.f32.gmra.mxu1 %v3595_v23  ;;  %5311 = vmatprep.subr.mxu0 %v11591_v38  ;;  %v3481_v23 = vld [vmem:[#allocation2 + $0x1f9] sm:$0xff] }
 0x4ea   :  { %4670 = vmatmul.mubr.f32.gmra.mxu0 %v3531_v3  ;;  %4299 = vmatprep.mubr.f32.mxu1 %v14260_v62  ;;  %v3543_v3 = vld [vmem:[#allocation2 + $0x1e2] sm:$0xff]  ;;  %v3544_v62 = vld [vmem:[#allocation2 + $0x1ea] sm:$0xff] }
 0x4eb   :  { %4674 = vmatprep.mubr.f32.mxu0 %v3596_v49  ;;  %5312 = vmatpush2.msra.mxu0 %v4071_v24 }
 0x4ec   :  { %5313 = vmatprep.subr.mxu0 %v11591_v38 }
 0x4ed   :  { %4300 = vmatmul.mubr.f32.gmra.mxu1 %v3596_v49  ;;  %5314 = vmatpush2.msra.mxu0 %v4070_v28  ;;  %v3483_v49 = vld [vmem:[#allocation2 + $0x211] sm:$0xff]  ;;  %v3496_v28 = vld [vmem:[#allocation2 + $0x2a9] sm:$0xff] }
 0x4ee   :  { %4675 = vmatmul.mubr.f32.gmra.mxu0 %v3532_v34  ;;  %4304 = vmatprep.mubr.f32.mxu1 %v14262_v42  ;;  %v3610_v34 = vld [vmem:[#allocation2 + $0x218] sm:$0xff]  ;;  %v3485_v42 = vld [vmem:[#allocation2 + $0x229] sm:$0xff] }
 0x4ef   :  { %4679 = vmatprep.mubr.f32.mxu0 %v3597_v53  ;;  %5315 = vmatprep.subr.mxu0 %v11591_v38 }
 0x4f0   :  { %5316 = vmatpush2.msra.mxu0 %v4069_v30 }
 0x4f1   :  { %4305 = vmatmul.mubr.f32.gmra.mxu1 %v3597_v53  ;;  %5317 = vmatprep.subr.mxu0 %v11591_v38  ;;  %v3611_v53 = vld [vmem:[#allocation2 + $0x228] sm:$0xff] }
 0x4f2   :  { %4680 = vmatmul.mubr.f32.gmra.mxu0 %v3533_v19  ;;  %4309 = vmatprep.mubr.f32.mxu1 %v14263_v43  ;;  %v3486_v19 = vld [vmem:[#allocation2 + $0x231] sm:$0xff]  ;;  %v3548_v43 = vld [vmem:[#allocation2 + $0x21a] sm:$0xff] }
 0x4f3   :  { %4684 = vmatprep.mubr.f32.mxu0 %v3598_v11  ;;  %5318 = vmatpush2.msra.mxu0 %v4068_v29 }
 0x4f5   :  { %4310 = vmatmul.mubr.f32.gmra.mxu1 %v3598_v11  ;;  %v3487_v11 = vld [vmem:[#allocation2 + $0x241] sm:$0xff] }
 0x4f6   :  { %4685 = vmatmul.mubr.f32.gmra.mxu0 %v3534_v39  ;;  %4314 = vmatprep.mubr.f32.mxu1 %v14264_v52  ;;  %v3488_v39 = vld [vmem:[#allocation2 + $0x249] sm:$0xff] }
 0x4f7   :  { %4689 = vmatprep.mubr.f32.mxu0 %v3599_v5  ;;  %v3614_v52 = vld [vmem:[#allocation2 + $0x248] sm:$0xff] }
 0x4f9   :  { %4315 = vmatmul.mubr.f32.gmra.mxu1 %v3599_v5  ;;  %v3550_v5 = vld [vmem:[#allocation2 + $0x232] sm:$0xff] }
 0x4fa   :  { %4690 = vmatmul.mubr.f32.gmra.mxu0 %v3535_v27  ;;  %4319 = vmatprep.mubr.f32.mxu1 %v14266_v37  ;;  %v3615_v27 = vld [vmem:[#allocation2 + $0x258] sm:$0xff]  ;;  %v3616_v37 = vld [vmem:[#allocation2 + $0x260] sm:$0xff] }
 0x4fb   :  { %4694 = vmatprep.mubr.f32.mxu0 %v3600_v45 }
 0x4fd   :  { %4320 = vmatmul.mubr.f32.gmra.mxu1 %v3600_v45  ;;  %v3552_v45 = vld [vmem:[#allocation2 + $0x24a] sm:$0xff] }
 0x4fe   :  { %4695 = vmatmul.mubr.f32.gmra.mxu0 %v3536_v59  ;;  %4324 = vmatprep.mubr.f32.mxu1 %v3475_v7  ;;  %v3491_v7 = vld [vmem:[#allocation2 + $0x271] sm:$0xff]  ;;  %v3492_v59 = vld [vmem:[#allocation2 + $0x279] sm:$0xff] }
 0x4ff   :  { %4699 = vmatprep.mubr.f32.mxu0 %v3601_v31  ;;  %v3618_v31 = vld [vmem:[#allocation2 + $0x278] sm:$0xff] }
 0x501   :  { %4325 = vmatmul.mubr.f32.gmra.mxu1 %v3411_v35  ;;  %v3554_v35 = vld [vmem:[#allocation2 + $0x262] sm:$0xff] }
 0x502   :  { %4700 = vmatmul.mubr.f32.gmra.mxu0 %v3537_v44  ;;  %4329 = vmatprep.mubr.f32.mxu1 %v3476_v13  ;;  %v3619_v13 = vld [vmem:[#allocation2 + $0x288] sm:$0xff] }
 0x503   :  { %4704 = vmatprep.mubr.f32.mxu0 %v3602_v58  ;;  %v3494_v58 = vld [vmem:[#allocation2 + $0x291] sm:$0xff] }
 0x505   :  { %4330 = vmatmul.mubr.f32.gmra.mxu1 %v11591_v38  ;;  %v3545_v38 = vld [vmem:[#allocation2 + $0x1fa] sm:$0xff] }
 0x506   :  { %4705 = vmatmul.mubr.f32.gmra.mxu0 %v3538_v21  ;;  %4334 = vmatprep.mubr.f32.mxu1 %v3477_v41  ;;  %v3620_v21 = vld [vmem:[#allocation2 + $0x290] sm:$0xff] }
 0x507   :  { %4709 = vmatprep.mubr.f32.mxu0 %v3603_v57 }
 0x509   :  { %4335 = vmatmul.mubr.f32.gmra.mxu1 %v3603_v57 }
 0x50a   :  { %4710 = vmatmul.mubr.f32.gmra.mxu0 %v3539_v26  ;;  %4339 = vmatprep.mubr.f32.mxu1 %v3478_v18  ;;  %v3556_v26 = vld [vmem:[#allocation2 + $0x27a] sm:$0xff] }
 0x50b   :  { %4714 = vmatprep.mubr.f32.mxu0 %v3604_v50  ;;  %v3495_v18 = vld [vmem:[#allocation2 + $0x2a1] sm:$0xff] }
 0x50d   :  { %4340 = vmatmul.mubr.f32.gmra.mxu1 %v3604_v50  ;;  %v3621_v50 = vld [vmem:[#allocation2 + $0x2a0] sm:$0xff] }
 0x50e   :  { %4715 = vmatmul.mubr.f32.gmra.mxu0 %v3540_v15  ;;  %4344 = vmatprep.mubr.f32.mxu1 %v3479_v4 }
 0x50f   :  { %4719 = vmatprep.mubr.f32.mxu0 %v3605_v46 }
 0x511   :  { %4345 = vmatmul.mubr.f32.gmra.mxu1 %v3605_v46  ;;  %v3557_v46 = vld [vmem:[#allocation2 + $0x28a] sm:$0xff] }
 0x512   :  { %4720 = vmatmul.mubr.f32.gmra.mxu0 %v3541_v10  ;;  %4349 = vmatprep.mubr.f32.mxu1 %v3480_v36  ;;  %v3622_v36 = vld [vmem:[#allocation2 + $0x2a8] sm:$0xff] }
 0x513   :  { %4724 = vmatprep.mubr.f32.mxu0 %v3606_v14 }
 0x515   :  { %4350 = vmatmul.mubr.f32.gmra.mxu1 %v3606_v14 }
 0x516   :  { %4725 = vmatmul.mubr.f32.gmra.mxu0 %v3542_v32  ;;  %4354 = vmatprep.mubr.f32.mxu1 %v3481_v23  ;;  %v3558_v23 = vld [vmem:[#allocation2 + $0x292] sm:$0xff] }
 0x517   :  { %4729 = vmatprep.mubr.f32.mxu0 %v3607_v16 }
 0x519   :  { %4355 = vmatmul.mubr.f32.gmra.mxu1 %v3607_v16  ;;  %v3497_v16 = vld [vmem:[#allocation2 + $0x2b9] sm:$0xff] }
 0x51a   :  { %4730 = vmatmul.mubr.f32.gmra.mxu0 %v3543_v3  ;;  %4359 = vmatprep.mubr.f32.mxu1 %v3482_v17  ;;  %v3623_v17 = vld [vmem:[#allocation2 + $0x2b8] sm:$0xff] }
 0x51b   :  { %4734 = vmatprep.mubr.f32.mxu0 %v3608_v40 }
 0x51d   :  { %4360 = vmatmul.mubr.f32.gmra.mxu1 %v3608_v40 }
 0x51e   :  { %4735 = vmatmul.mubr.f32.gmra.mxu0 %v3544_v62  ;;  %4364 = vmatprep.mubr.f32.mxu1 %v3483_v49 }
 0x51f   :  { %4739 = vmatprep.mubr.f32.mxu0 %v3609_v20 }
 0x521   :  { %4365 = vmatmul.mubr.f32.gmra.mxu1 %v3609_v20 }
 0x522   :  { %4740 = vmatmul.mubr.f32.gmra.mxu0 %v3545_v38  ;;  %4369 = vmatprep.mubr.f32.mxu1 %v3484_v55  ;;  %v3559_v38 = vld [vmem:[#allocation2 + $0x2a2] sm:$0xff] }
 0x523   :  { %4744 = vmatprep.mubr.f32.mxu0 %v3610_v34  ;;  %v3498_v55 = vld [vmem:[#allocation2 + $0x2c1] sm:$0xff] }
 0x525   :  { %4370 = vmatmul.mubr.f32.gmra.mxu1 %v3610_v34 }
 0x526   :  { %4745 = vmatmul.mubr.f32.gmra.mxu0 %v3546_v33  ;;  %4374 = vmatprep.mubr.f32.mxu1 %v3485_v42  ;;  %v3624_v33 = vld [vmem:[#allocation2 + $0x2c0] sm:$0xff] }
 0x527   :  { %4749 = vmatprep.mubr.f32.mxu0 %v3611_v53 }
 0x529   :  { %4375 = vmatmul.mubr.f32.gmra.mxu1 %v3611_v53 }
 0x52a   :  { %4750 = vmatmul.mubr.f32.gmra.mxu0 %v3547_v6  ;;  %4379 = vmatprep.mubr.f32.mxu1 %v3486_v19 }
 0x52b   :  { %4754 = vmatprep.mubr.f32.mxu0 %v3612_v22 }
 0x52d   :  { %4380 = vmatmul.mubr.f32.gmra.mxu1 %v3612_v22  ;;  %v3560_v22 = vld [vmem:[#allocation2 + $0x2aa] sm:$0xff] }
 0x52e   :  { %4755 = vmatmul.mubr.f32.gmra.mxu0 %v3548_v43  ;;  %4384 = vmatprep.mubr.f32.mxu1 %v3487_v11  ;;  %v3499_v43 = vld [vmem:[#allocation2 + $0x2d1] sm:$0xff] }
 0x52f   :  { %4759 = vmatprep.mubr.f32.mxu0 %v3613_v2 }
 0x531   :  { %4385 = vmatmul.mubr.f32.gmra.mxu1 %v3613_v2  ;;  %v3625_v2 = vld [vmem:[#allocation2 + $0x2d0] sm:$0xff] }
 0x532   :  { %4760 = vmatmul.mubr.f32.gmra.mxu0 %v3549_v12  ;;  %4389 = vmatprep.mubr.f32.mxu1 %v3488_v39 }
 0x533   :  { %4764 = vmatprep.mubr.f32.mxu0 %v3614_v52 }
 0x535   :  { %4390 = vmatmul.mubr.f32.gmra.mxu1 %v3614_v52 }
 0x536   :  { %4765 = vmatmul.mubr.f32.gmra.mxu0 %v3550_v5  ;;  %4394 = vmatprep.mubr.f32.mxu1 %v3489_v47  ;;  %v3561_v47 = vld [vmem:[#allocation2 + $0x2ba] sm:$0xff] }
 0x537   :  { %4769 = vmatprep.mubr.f32.mxu0 %v3615_v27 }
 0x539   :  { %4395 = vmatmul.mubr.f32.gmra.mxu1 %v3615_v27  ;;  %v3500_v27 = vld [vmem:[#allocation2 + $0x2d9] sm:$0xff] }
 0x53a   :  { %4770 = vmatmul.mubr.f32.gmra.mxu0 %v3551_v48  ;;  %4399 = vmatprep.mubr.f32.mxu1 %v3490_v0  ;;  %v3626_v0 = vld [vmem:[#allocation2 + $0x2d8] sm:$0xff] }
 0x53b   :  { %4774 = vmatprep.mubr.f32.mxu0 %v3616_v37 }
 0x53d   :  { %4400 = vmatmul.mubr.f32.gmra.mxu1 %v3616_v37 }
 0x53e   :  { %4775 = vmatmul.mubr.f32.gmra.mxu0 %v3552_v45  ;;  %4404 = vmatprep.mubr.f32.mxu1 %v3491_v7 }
 0x53f   :  { %4779 = vmatprep.mubr.f32.mxu0 %v3617_v61 }
 0x541   :  { %4405 = vmatmul.mubr.f32.gmra.mxu1 %v3617_v61 }
 0x542   :  { %4780 = vmatmul.mubr.f32.gmra.mxu0 %v3553_v56  ;;  %4409 = vmatprep.mubr.f32.mxu1 %v3492_v59  ;;  %v3562_v56 = vld [vmem:[#allocation2 + $0x2c2] sm:$0xff] }
 0x543   :  { %4784 = vmatprep.mubr.f32.mxu0 %v3618_v31  ;;  %v3501_v59 = vld [vmem:[#allocation2 + $0x2e9] sm:$0xff] }
 0x545   :  { %4410 = vmatmul.mubr.f32.gmra.mxu1 %v3618_v31 }
 0x546   :  { %4785 = vmatmul.mubr.f32.gmra.mxu0 %v3554_v35  ;;  %4414 = vmatprep.mubr.f32.mxu1 %v3493_v9  ;;  %v3627_v35 = vld [vmem:[#allocation2 + $0x2e8] sm:$0xff] }
 0x547   :  { %4789 = vmatprep.mubr.f32.mxu0 %v3619_v13 }
 0x549   :  { %v4176_v44 = vpop.f32.mrf.mxu1  ;;  %4415 = vmatmul.mubr.f32.gmra.mxu1 %v3619_v13 }
 0x54a   :  { %v11710_v63 = vpop.f32.mrf.mxu0  ;;  %4790 = vmatmul.mubr.f32.gmra.mxu0 %v3555_v54  ;;  %4419 = vmatprep.mubr.f32.mxu1 %v3494_v58  ;;  %v3563_v58 = vld [vmem:[#allocation2 + $0x2d2] sm:$0xff] }
 0x54b   :  { %4794 = vmatprep.mubr.f32.mxu0 %v3620_v21  ;;  %v4178_v41 = vpop.f32.mrf.mxu1 }
 0x54c   :  { %v4553_v57 = vpop.f32.mrf.mxu0 }
 0x54d   :  { %v4181_v25 = vpop.f32.mrf.mxu1  ;;  %4420 = vmatmul.mubr.f32.gmra.mxu1 %v3620_v21  ;;  %v3502_v21 = vld [vmem:[#allocation2 + $0x2f1] sm:$0xff] }
 0x54e   :  { %v11712_v60 = vpop.f32.mrf.mxu0  ;;  %4795 = vmatmul.mubr.f32.gmra.mxu0 %v3556_v26  ;;  %4424 = vmatprep.mubr.f32.mxu1 %v3495_v18  ;;  %v3628_v57 = vld [vmem:[#allocation2 + $0x2f0] sm:$0xff] }
 0x54f   :  { %4799 = vmatprep.mubr.f32.mxu0 %v3621_v50  ;;  %v4183_v15 = vpop.f32.mrf.mxu1 }
 0x550   :  { %v4558_v24 = vpop.f32.mrf.mxu0  ;;  %v3564_v15 = vld [vmem:[#allocation2 + $0x2da] sm:$0xff] }
 0x551   :  { %v4186_v4 = vpop.f32.mrf.mxu1  ;;  %4425 = vmatmul.mubr.f32.gmra.mxu1 %v3621_v50  ;;  %v3503_v24 = vld [vmem:[#allocation2 + $0x301] sm:$0xff] }
 0x552   :  { %v4561_v10 = vpop.f32.mrf.mxu0  ;;  %4800 = vmatmul.mubr.f32.gmra.mxu0 %v3557_v46  ;;  %4429 = vmatprep.mubr.f32.mxu1 %v3496_v28  ;;  %v3629_v46 = vld [vmem:[#allocation2 + $0x300] sm:$0xff] }
 0x553   :  { %v11714_v30 = vadd.f32 %v4561_v10, %v4176_v44  ;;  %4804 = vmatprep.mubr.f32.mxu0 %v3622_v36  ;;  %v4188_v14 = vpop.f32.mrf.mxu1 }
 0x554   :  { %v4563_v29 = vpop.f32.mrf.mxu0 }
 0x555   :  { %v4191_v32 = vpop.f32.mrf.mxu1  ;;  %4430 = vmatmul.mubr.f32.gmra.mxu1 %v3622_v36  ;;  %v3565_v29 = vld [vmem:[#allocation2 + $0x2ea] sm:$0xff] }
 0x556   :  { %v4566_v3 = vpop.f32.mrf.mxu0  ;;  %4805 = vmatmul.mubr.f32.gmra.mxu0 %v3558_v23  ;;  %4434 = vmatprep.mubr.f32.mxu1 %v3497_v16  ;;  %v3630_v16 = vld [vmem:[#allocation2 + $0x308] sm:$0xff] }
 0x557   :  { %v11716_v40 = vadd.f32 %v4566_v3, %v4181_v25  ;;  %4809 = vmatprep.mubr.f32.mxu0 %v3623_v17  ;;  %v4193_v62 = vpop.f32.mrf.mxu1 }
 0x558   :  { %v4568_v49 = vpop.f32.mrf.mxu0 }
 0x559   :  { %v4196_v20 = vpop.f32.mrf.mxu1  ;;  %4435 = vmatmul.mubr.f32.gmra.mxu1 %v3623_v17 }
 0x55a   :  { %v4571_v34 = vpop.f32.mrf.mxu0  ;;  %4810 = vmatmul.mubr.f32.gmra.mxu0 %v3559_v38  ;;  %4439 = vmatprep.mubr.f32.mxu1 %v3498_v55  ;;  %v3505_v38 = vld [vmem:[#allocation2 + $0x319] sm:$0xff] }
 0x55b   :  { %v11718_v42 = vadd.f32 %v4571_v34, %v4186_v4  ;;  %4814 = vmatprep.mubr.f32.mxu0 %v3624_v33  ;;  %v4198_v53 = vpop.f32.mrf.mxu1  ;;  %v3631_v34 = vld [vmem:[#allocation2 + $0x318] sm:$0xff] }
 0x55c   :  { %v4573_v6 = vpop.f32.mrf.mxu0 }
 0x55d   :  { %v4201_v19 = vpop.f32.mrf.mxu1  ;;  %4440 = vmatmul.mubr.f32.gmra.mxu1 %v3624_v33 }
 0x55e   :  { %v4576_v11 = vpop.f32.mrf.mxu0  ;;  %4815 = vmatmul.mubr.f32.gmra.mxu0 %v3560_v22  ;;  %4444 = vmatprep.mubr.f32.mxu1 %v3499_v43  ;;  %v3567_v22 = vld [vmem:[#allocation2 + $0x302] sm:$0xff] }
 0x55f   :  { %v11720_v12 = vadd.f32 %v4576_v11, %v4191_v32  ;;  %4819 = vmatprep.mubr.f32.mxu0 %v3625_v2  ;;  %v4203_v39 = vpop.f32.mrf.mxu1  ;;  %v3504_v32 = vld [vmem:[#allocation2 + $0x309] sm:$0xff]  ;;  %v3506_v43 = vld [vmem:[#allocation2 + $0x321] sm:$0xff] }
 0x560   :  { %v4578_v52 = vpop.f32.mrf.mxu0 }
 0x561   :  { %v4206_v5 = vpop.f32.mrf.mxu1  ;;  %4445 = vmatmul.mubr.f32.gmra.mxu1 %v3625_v2  ;;  %v3632_v2 = vld [vmem:[#allocation2 + $0x320] sm:$0xff] }
 0x562   :  { %v4581_v48 = vpop.f32.mrf.mxu0  ;;  %4820 = vmatmul.mubr.f32.gmra.mxu0 %v3561_v47  ;;  %4449 = vmatprep.mubr.f32.mxu1 %v3500_v27  ;;  %v3568_v27 = vld [vmem:[#allocation2 + $0x30a] sm:$0xff] }
 0x563   :  { %v11722_v37 = vadd.f32 %v4581_v48, %v4196_v20  ;;  %4824 = vmatprep.mubr.f32.mxu0 %v3626_v0  ;;  %v4208_v45 = vpop.f32.mrf.mxu1  ;;  %v3566_v20 = vld [vmem:[#allocation2 + $0x2f2] sm:$0xff]  ;;  %v3699_v48 = vld [vmem:[#allocation2 + $0x1a] sm:$0xff] }
 0x564   :  { %v4583_v7 = vpop.f32.mrf.mxu0  ;;  %v3633_v45 = vld [vmem:[#allocation2 + $0x330] sm:$0xff] }
 0x565   :  { %v4211_v61 = vpop.f32.mrf.mxu1  ;;  %4450 = vmatmul.mubr.f32.gmra.mxu1 %v3626_v0 }
 0x566   :  { %v4586_v31 = vpop.f32.mrf.mxu0  ;;  %4825 = vmatmul.mubr.f32.gmra.mxu0 %v3562_v56  ;;  %4454 = vmatprep.mubr.f32.mxu1 %v3501_v59  ;;  %v3635_v59 = vld [vmem:[#allocation2 + $0x19] sm:$0xff] }
 0x567   :  { %v11724_v9 = vadd.f32 %v4586_v31, %v4201_v19  ;;  %4829 = vmatprep.mubr.f32.mxu0 %v3627_v35  ;;  %v4213_v13 = vpop.f32.mrf.mxu1 }
 0x568   :  { %v4588_v44 = vpop.f32.mrf.mxu0  ;;  %v3700_v13 = vld [vmem:[#allocation2 + $0x22] sm:$0xff] }
 0x569   :  { %v4216_v54 = vpop.f32.mrf.mxu1  ;;  %4455 = vmatmul.mubr.f32.gmra.mxu1 %v3627_v35  ;;  %v3569_v35 = vld [vmem:[#allocation2 + $0x31a] sm:$0xff]  ;;  %v4098_v44 = vld [vmem:[#allocation3 + $0x470] sm:$0xff] }
 0x56a   :  { %v4591_v41 = vpop.f32.mrf.mxu0  ;;  %4830 = vmatmul.mubr.f32.gmra.mxu0 %v3563_v58  ;;  %4459 = vmatprep.mubr.f32.mxu1 %v3502_v21  ;;  %v3634_v58 = vld [vmem:[#allocation2 + $0x338] sm:$0xff] }
 0x56b   :  { %v11726_v25 = vadd.f32 %v4591_v41, %v4206_v5  ;;  %4834 = vmatprep.mubr.f32.mxu0 %v3628_v57  ;;  %v4218_v26 = vpop.f32.mrf.mxu1 }
 0x56c   :  { %v4593_v18 = vpop.f32.mrf.mxu0  ;;  %v3636_v26 = vld [vmem:[#allocation2 + $0x21] sm:$0xff] }
 0x56d   :  { %v4221_v50 = vpop.f32.mrf.mxu1  ;;  %4460 = vmatmul.mubr.f32.gmra.mxu1 %v3628_v57 }
 0x56e   :  { %v4596_v4 = vpop.f32.mrf.mxu0  ;;  %4835 = vmatmul.mubr.f32.gmra.mxu0 %v3564_v15  ;;  %4464 = vmatprep.mubr.f32.mxu1 %v3503_v24  ;;  %v3701_v15 = vld [vmem:[#allocation2 + $0x32] sm:$0xff]  ;;  %v4097_v24 = vld [vmem:[#allocation3 + $0x468] sm:$0xff] }
 0x56f   :  { %v11728_v28 = vadd.f32 %v4596_v4, %v4211_v61  ;;  %4839 = vmatprep.mubr.f32.mxu0 %v3629_v46  ;;  %v4223_v10 = vpop.f32.mrf.mxu1 }
 0x570   :  { %v4598_v36 = vpop.f32.mrf.mxu0 }
 0x571   :  { %v4226_v14 = vpop.f32.mrf.mxu1  ;;  %4465 = vmatmul.mubr.f32.gmra.mxu1 %v3629_v46  ;;  %v3828_v46 = vld [vmem:[#allocation2 + $0x31] sm:$0xff] }
 0x572   :  { %v4601_v23 = vpop.f32.mrf.mxu0  ;;  %4840 = vmatmul.mubr.f32.gmra.mxu0 %v3565_v29  ;;  %4469 = vmatprep.mubr.f32.mxu1 %v3504_v32  ;;  %v3764_v29 = vld [vmem:[#allocation2 + $0x30] sm:$0xff]  ;;  %v3702_v32 = vld [vmem:[#allocation2 + $0x3a] sm:$0xff] }
 0x573   :  { %v11730_v3 = vadd.f32 %v4601_v23, %v4216_v54  ;;  %4844 = vmatprep.mubr.f32.mxu0 %v3630_v16  ;;  %v4228_v17 = vpop.f32.mrf.mxu1  ;;  %v4096_v23 = vld [vmem:[#allocation3 + $0x460] sm:$0xff] }
 0x574   :  { %v4603_v62 = vpop.f32.mrf.mxu0  ;;  %v3829_v17 = vld [vmem:[#allocation2 + $0x39] sm:$0xff] }
 0x575   :  { %v4231_v49 = vpop.f32.mrf.mxu1  ;;  %4470 = vmatmul.mubr.f32.gmra.mxu1 %v3630_v16 }
 0x576   :  { %v4606_v55 = vpop.f32.mrf.mxu0  ;;  %4845 = vmatmul.mubr.f32.gmra.mxu0 %v3566_v20  ;;  %4474 = vmatprep.mubr.f32.mxu1 %v3505_v38 }
 0x577   :  { %v11732_v33 = vadd.f32 %v4606_v55, %v4221_v50  ;;  %4849 = vmatprep.mubr.f32.mxu0 %v3631_v34  ;;  %v4233_v53 = vpop.f32.mrf.mxu1  ;;  %v3570_v50 = vld [vmem:[#allocation2 + $0x322] sm:$0xff]  ;;  %v3765_v55 = vld [vmem:[#allocation2 + $0x38] sm:$0xff] }
 0x578   :  { %v4608_v6 = vpop.f32.mrf.mxu0  ;;  %v4095_v53 = vld [vmem:[#allocation3 + $0x458] sm:$0xff] }
 0x579   :  { %v4236_v19 = vpop.f32.mrf.mxu1  ;;  %4475 = vmatmul.mubr.f32.gmra.mxu1 %v3631_v34  ;;  %v3703_v34 = vld [vmem:[#allocation2 + $0x4a] sm:$0xff] }
 0x57a   :  { %v4611_v11 = vpop.f32.mrf.mxu0  ;;  %4850 = vmatmul.mubr.f32.gmra.mxu0 %v3567_v22  ;;  %4479 = vmatprep.mubr.f32.mxu1 %v3506_v43 }
 0x57b   :  { %v11734_v39 = vadd.f32 %v4611_v11, %v4226_v14  ;;  %4854 = vmatprep.mubr.f32.mxu0 %v3632_v2  ;;  %v4238_v52 = vpop.f32.mrf.mxu1 }
 0x57c   :  { %v4613_v5 = vpop.f32.mrf.mxu0  ;;  %v3766_v52 = vld [vmem:[#allocation2 + $0x48] sm:$0xff] }
 0x57d   :  { %v4241_v47 = vpop.f32.mrf.mxu1  ;;  %4480 = vmatmul.mubr.f32.gmra.mxu1 %v3632_v2  ;;  %v3704_v5 = vld [vmem:[#allocation2 + $0x52] sm:$0xff] }
 0x57e   :  { %v4616_v0 = vpop.f32.mrf.mxu0  ;;  %4855 = vmatmul.mubr.f32.gmra.mxu0 %v3568_v27  ;;  %4934 = vmatprep.mubr.f32.mxu1 %v3699_v48  ;;  %v3831_v48 = vld [vmem:[#allocation2 + $0x51] sm:$0xff] }
 0x57f   :  { %v11736_v7 = vadd.f32 %v4616_v0, %v4231_v49  ;;  %4859 = vmatprep.mubr.f32.mxu0 %v3633_v45  ;;  %v4243_v61 = vpop.f32.mrf.mxu1 }
 0x580   :  { %v4618_v56 = vpop.f32.mrf.mxu0 }
 0x581   :  { %v4246_v31 = vpop.f32.mrf.mxu1  ;;  %4935 = vmatmul.mubr.f32.vlgmr.msra.gmra.mxu1 %v3635_v59  ;;  %v3767_v59 = vld [vmem:[#allocation2 + $0x50] sm:$0xff] }
 0x582   :  { %v4621_v54 = vpop.f32.mrf.mxu0  ;;  %4860 = vmatmul.mubr.f32.gmra.mxu0 %v3569_v35  ;;  %4939 = vmatprep.mubr.f32.mxu1 %v3700_v13  ;;  %v4093_v35 = vld [vmem:[#allocation3 + $0x448] sm:$0xff] }
 0x583   :  { %v11738_v21 = vadd.f32 %v4621_v54, %v4236_v19  ;;  %4864 = vmatprep.mubr.f32.mxu0 %v3634_v58  ;;  %7387 = vmatpush3.msra.mxu1 %v11699_v51  ;;  %v4248_v41 = vpop.f32.mrf.mxu1  ;;  %v3830_v19 = vld [vmem:[#allocation2 + $0x49] sm:$0xff] }
 0x584   :  { %v4623_v57 = vpop.f32.mrf.mxu0  ;;  %7388 = vmatprep.subr.mxu1 %v4098_v44 }
 0x585   :  { %v4251_v18 = vpop.f32.mrf.mxu1  ;;  %4940 = vmatmul.mubr.f32.gmra.mxu1 %v3636_v26  ;;  %v3768_v26 = vld [vmem:[#allocation2 + $0x60] sm:$0xff] }
 0x586   :  { %v4626_v4 = vpop.f32.mrf.mxu0  ;;  %4865 = vmatmul.mubr.f32.gmra.mxu0 %v3570_v50  ;;  %4944 = vmatprep.mubr.f32.mxu1 %v3701_v15  ;;  %v4092_v50 = vld [vmem:[#allocation3 + $0x440] sm:$0xff] }
 0x587   :  { %v11741_v10 = vadd.f32 %v4626_v4, %v4241_v47  ;;  %5319 = vmatprep.mubr.f32.mxu0 %v3828_v46  ;;  %v4253_v36 = vpop.f32.mrf.mxu1  ;;  %7389 = vmatpush3.msra.mxu1 %v4098_v44  ;;  %v4094_v47 = vld [vmem:[#allocation3 + $0x450] sm:$0xff]  ;;  %v3832_v44 = vld [vmem:[#allocation2 + $0x61] sm:$0xff] }
 0x588   :  { %v4628_v14 = vpop.f32.mrf.mxu0  ;;  %7390 = vmatprep.subr.mxu1 %v4097_v24 }
 0x589   :  { %v4256_v51 = vpop.f32.mrf.mxu1  ;;  %4945 = vmatmul.mubr.f32.gmra.mxu1 %v3828_v46 }
 0x58a   :  { %v4631_v16 = vpop.f32.mrf.mxu0  ;;  %5320 = vmatmul.mubr.f32.vlgmr.msra.gmra.mxu0 %v3764_v29  ;;  %4949 = vmatprep.mubr.f32.mxu1 %v3702_v32  ;;  %v3707_v29 = vld [vmem:[#allocation2 + $0x7a] sm:$0xff] }
 0x58b   :  { %v11743_v62 = vadd.f32 %v4631_v16, %v4246_v31  ;;  %5324 = vmatprep.mubr.f32.mxu0 %v3829_v17  ;;  %v4258_v49 = vpop.f32.mrf.mxu1  ;;  %7391 = vmatpush3.msra.mxu1 %v4097_v24  ;;  %v3705_v31 = vld [vmem:[#allocation2 + $0x62] sm:$0xff]  ;;  %v4091_v32 = vld [vmem:[#allocation3 + $0x438] sm:$0xff] }
 0x58c   :  { %v4633_v20 = vpop.f32.mrf.mxu0  ;;  %7392 = vmatprep.subr.mxu1 %v4096_v23  ;;  %v3833_v24 = vld [vmem:[#allocation2 + $0x69] sm:$0xff]  ;;  %v3834_v16 = vld [vmem:[#allocation2 + $0x79] sm:$0xff] }
 0x58d   :  { %v4261_v38 = vpop.f32.mrf.mxu1  ;;  %4950 = vmatmul.mubr.f32.gmra.mxu1 %v3829_v17 }
 0x58e   :  { %v4636_v6 = vpop.f32.mrf.mxu0  ;;  %5325 = vmatmul.mubr.f32.gmra.mxu0 %v3765_v55  ;;  %4954 = vmatprep.mubr.f32.mxu1 %v3703_v34  ;;  %v3770_v55 = vld [vmem:[#allocation2 + $0x78] sm:$0xff]  ;;  %v3708_v34 = vld [vmem:[#allocation2 + $0x82] sm:$0xff] }
 0x58f   :  { %v11745_v22 = vadd.f32 %v4636_v6, %v4251_v18  ;;  %5329 = vmatprep.mubr.f32.mxu0 %v3830_v19  ;;  %v4263_v43 = vpop.f32.mrf.mxu1  ;;  %7393 = vmatpush3.msra.mxu1 %v4096_v23  ;;  %v3706_v18 = vld [vmem:[#allocation2 + $0x6a] sm:$0xff] }
 0x590   :  { %v4638_v11 = vpop.f32.mrf.mxu0  ;;  %7394 = vmatprep.subr.mxu1 %v4095_v53 }
 0x591   :  { %v4266_v2 = vpop.f32.mrf.mxu1  ;;  %4955 = vmatmul.mubr.f32.gmra.mxu1 %v3830_v19  ;;  %v3835_v19 = vld [vmem:[#allocation2 + $0x81] sm:$0xff] }
 0x592   :  { %v4641_v27 = vpop.f32.mrf.mxu0  ;;  %5330 = vmatmul.mubr.f32.gmra.mxu0 %v3766_v52  ;;  %4959 = vmatprep.mubr.f32.mxu1 %v3704_v5  ;;  %v3771_v5 = vld [vmem:[#allocation2 + $0x80] sm:$0xff] }
 0x593   :  { %v11747_v0 = vadd.f32 %v4641_v27, %v4256_v51  ;;  %5334 = vmatprep.mubr.f32.mxu0 %v3831_v48  ;;  %v4268_v45 = vpop.f32.mrf.mxu1  ;;  %7395 = vmatpush3.msra.mxu1 %v4095_v53  ;;  %v3769_v51 = vld [vmem:[#allocation2 + $0x68] sm:$0xff]  ;;  %v4090_v53 = vld [vmem:[#allocation3 + $0x430] sm:$0xff] }
 0x594   :  { %v4643_v61 = vpop.f32.mrf.mxu0  ;;  %7396 = vmatprep.subr.mxu1 %v4094_v47  ;;  %v4089_v27 = vld [vmem:[#allocation3 + $0x428] sm:$0xff]  ;;  %v3836_v45 = vld [vmem:[#allocation2 + $0x91] sm:$0xff] }
 0x595   :  { %v4271_v56 = vpop.f32.mrf.mxu1  ;;  %4960 = vmatmul.mubr.f32.gmra.mxu1 %v3831_v48 }
 0x596   :  { %v4646_v13 = vpop.f32.mrf.mxu0  ;;  %5335 = vmatmul.mubr.f32.gmra.mxu0 %v3767_v59  ;;  %4964 = vmatprep.mubr.f32.mxu1 %v3705_v31 }
 0x597   :  { %v11749_v54 = vadd.f32 %v4646_v13, %v4261_v38  ;;  %5339 = vmatprep.mubr.f32.mxu0 %v3832_v44  ;;  %v4273_v58 = vpop.f32.mrf.mxu1  ;;  %7397 = vmatpush3.msra.mxu1 %v4094_v47  ;;  %v3709_v47 = vld [vmem:[#allocation2 + $0x92] sm:$0xff]  ;;  %v3710_v13 = vld [vmem:[#allocation2 + $0x9a] sm:$0xff] }
 0x598   :  { %v4648_v41 = vpop.f32.mrf.mxu0  ;;  %7398 = vmatprep.subr.mxu1 %v4093_v35  ;;  %v3837_v58 = vld [vmem:[#allocation2 + $0x99] sm:$0xff] }
 0x599   :  { %v4276_v57 = vpop.f32.mrf.mxu1  ;;  %4965 = vmatmul.mubr.f32.gmra.mxu1 %v3832_v44 }
 0x59a   :  { %v4651_v15 = vpop.f32.mrf.mxu0  ;;  %5340 = vmatmul.mubr.f32.gmra.mxu0 %v3768_v26  ;;  %4969 = vmatprep.mubr.f32.mxu1 %v3706_v18 }
 0x59b   :  { %v11751_v4 = vadd.f32 %v4651_v15, %v4266_v2  ;;  %5344 = vmatprep.mubr.f32.mxu0 %v3833_v24  ;;  %v4278_v46 = vpop.f32.mrf.mxu1  ;;  %7399 = vmatpush3.msra.mxu1 %v4093_v35  ;;  %v3772_v35 = vld [vmem:[#allocation2 + $0x90] sm:$0xff] }
 0x59c   :  { %v4653_v36 = vpop.f32.mrf.mxu0  ;;  %7400 = vmatprep.subr.mxu1 %v4092_v50  ;;  %v3711_v15 = vld [vmem:[#allocation2 + $0xaa] sm:$0xff] }
 0x59d   :  { %v4281_v14 = vpop.f32.mrf.mxu1  ;;  %4970 = vmatmul.mubr.f32.gmra.mxu1 %v3833_v24  ;;  %v3838_v46 = vld [vmem:[#allocation2 + $0xa9] sm:$0xff] }
 0x59e   :  { %v4656_v23 = vpop.f32.mrf.mxu0  ;;  %5345 = vmatmul.mubr.f32.gmra.mxu0 %v3769_v51  ;;  %4974 = vmatprep.mubr.f32.mxu1 %v3707_v29 }
 0x59f   :  { %v11753_v17 = vadd.f32 %v4656_v23, %v4271_v56  ;;  %5349 = vmatprep.mubr.f32.mxu0 %v3834_v16  ;;  %v4283_v49 = vpop.f32.mrf.mxu1  ;;  %7401 = vmatpush3.msra.mxu1 %v4092_v50  ;;  %v3773_v50 = vld [vmem:[#allocation2 + $0x98] sm:$0xff] }
 0x5a0   :  { %v4658_v20 = vpop.f32.mrf.mxu0  ;;  %7402 = vmatprep.subr.mxu1 %v4091_v32  ;;  %v3712_v23 = vld [vmem:[#allocation2 + $0xb2] sm:$0xff] }
 0x5a1   :  { %v4286_v38 = vpop.f32.mrf.mxu1  ;;  %4975 = vmatmul.mubr.f32.gmra.mxu1 %v3834_v16  ;;  %v3839_v49 = vld [vmem:[#allocation2 + $0xb1] sm:$0xff] }
 0x5a2   :  { %v4661_v6 = vpop.f32.mrf.mxu0  ;;  %5350 = vmatmul.mubr.f32.gmra.mxu0 %v3770_v55  ;;  %4979 = vmatprep.mubr.f32.mxu1 %v3708_v34  ;;  %v4088_v55 = vld [vmem:[#allocation3 + $0x420] sm:$0xff] }
 0x5a3   :  { %v11755_v43 = vadd.f32 %v4661_v6, %v4276_v57  ;;  %5354 = vmatprep.mubr.f32.mxu0 %v3835_v19  ;;  %v4288_v11 = vpop.f32.mrf.mxu1  ;;  %7403 = vmatpush3.msra.mxu1 %v4091_v32  ;;  %v3774_v32 = vld [vmem:[#allocation2 + $0xa8] sm:$0xff]  ;;  %v3775_v6 = vld [vmem:[#allocation2 + $0xb0] sm:$0xff] }
 0x5a4   :  { %v4663_v2 = vpop.f32.mrf.mxu0  ;;  %7404 = vmatprep.subr.mxu1 %v4090_v53 }
 0x5a5   :  { %v4291_v52 = vpop.f32.mrf.mxu1  ;;  %4980 = vmatmul.mubr.f32.gmra.mxu1 %v3835_v19  ;;  %v3713_v19 = vld [vmem:[#allocation2 + $0xc2] sm:$0xff] }
 0x5a6   :  { %v4666_v48 = vpop.f32.mrf.mxu0  ;;  %5355 = vmatmul.mubr.f32.gmra.mxu0 %v3771_v5  ;;  %4984 = vmatprep.mubr.f32.mxu1 %v3709_v47  ;;  %v3840_v2 = vld [vmem:[#allocation2 + $0xc1] sm:$0xff] }
 0x5a7   :  { %v11757_v61 = vadd.f32 %v4666_v48, %v4281_v14  ;;  %5359 = vmatprep.mubr.f32.mxu0 %v3836_v45  ;;  %v4293_v56 = vpop.f32.mrf.mxu1  ;;  %7405 = vmatpush3.msra.mxu1 %v4090_v53  ;;  %v3776_v48 = vld [vmem:[#allocation2 + $0xc0] sm:$0xff] }
 0x5a8   :  { %v4668_v59 = vpop.f32.mrf.mxu0  ;;  %7406 = vmatprep.subr.mxu1 %v4089_v27 }
 0x5a9   :  { %v4296_v31 = vpop.f32.mrf.mxu1  ;;  %4985 = vmatmul.mubr.f32.gmra.mxu1 %v3836_v45  ;;  %v3714_v45 = vld [vmem:[#allocation2 + $0xca] sm:$0xff] }
 0x5aa   :  { %v4671_v44 = vpop.f32.mrf.mxu0  ;;  %5360 = vmatmul.mubr.f32.gmra.mxu0 %v3772_v35  ;;  %4989 = vmatprep.mubr.f32.mxu1 %v3710_v13  ;;  %v3841_v59 = vld [vmem:[#allocation2 + $0xc9] sm:$0xff] }
 0x5ab   :  { %v11759_v41 = vadd.f32 %v4671_v44, %v4286_v38  ;;  %5364 = vmatprep.mubr.f32.mxu0 %v3837_v58  ;;  %v4298_v57 = vpop.f32.mrf.mxu1  ;;  %7407 = vmatpush3.msra.mxu1 %v4089_v27 }
 0x5ac   :  { %v4673_v26 = vpop.f32.mrf.mxu0  ;;  %7408 = vmatprep.subr.mxu1 %v4088_v55  ;;  %v3715_v57 = vld [vmem:[#allocation2 + $0xda] sm:$0xff] }
 0x5ad   :  { %v4301_v18 = vpop.f32.mrf.mxu1  ;;  %4990 = vmatmul.mubr.f32.gmra.mxu1 %v3837_v58  ;;  %v3777_v58 = vld [vmem:[#allocation2 + $0xc8] sm:$0xff] }
 0x5ae   :  { %v4676_v24 = vpop.f32.mrf.mxu0  ;;  %5365 = vmatmul.mubr.f32.gmra.mxu0 %v3773_v50  ;;  %4994 = vmatprep.mubr.f32.mxu1 %v3711_v15 }
 0x5af   :  { %v11761_v36 = vadd.f32 %v4676_v24, %v4291_v52  ;;  %5369 = vmatprep.mubr.f32.mxu0 %v3838_v46  ;;  %v4303_v14 = vpop.f32.mrf.mxu1  ;;  %7409 = vmatpush3.msra.mxu1 %v4088_v55 }
 0x5b0   :  { %v4678_v51 = vpop.f32.mrf.mxu0  ;;  %v3778_v14 = vld [vmem:[#allocation2 + $0xd8] sm:$0xff] }
 0x5b1   :  { %v4306_v29 = vpop.f32.mrf.mxu1  ;;  %4995 = vmatmul.mubr.f32.gmra.mxu1 %v3838_v46  ;;  %v3716_v51 = vld [vmem:[#allocation2 + $0xe2] sm:$0xff] }
 0x5b2   :  { %v4681_v16 = vpop.f32.mrf.mxu0  ;;  %5370 = vmatmul.mubr.f32.gmra.mxu0 %v3774_v32  ;;  %4999 = vmatprep.mubr.f32.mxu1 %v3712_v23  ;;  %v3843_v32 = vld [vmem:[#allocation2 + $0xe1] sm:$0xff] }
 0x5b3   :  { %v11763_v20 = vadd.f32 %v4681_v16, %v4296_v31  ;;  %5374 = vmatprep.mubr.f32.mxu0 %v3839_v49  ;;  %v4308_v38 = vpop.f32.mrf.mxu1 }
 0x5b4   :  { %v4683_v34 = vpop.f32.mrf.mxu0 }
 0x5b5   :  { %v4311_v53 = vpop.f32.mrf.mxu1  ;;  %5000 = vmatmul.mubr.f32.gmra.mxu1 %v3839_v49  ;;  %v4087_v49 = vld [vmem:[#allocation3 + $0x418] sm:$0xff]  ;;  %v3779_v34 = vld [vmem:[#allocation2 + $0xe0] sm:$0xff] }
 0x5b6   :  { %v4686_v11 = vpop.f32.mrf.mxu0  ;;  %5375 = vmatmul.mubr.f32.gmra.mxu0 %v3775_v6  ;;  %5004 = vmatprep.mubr.f32.mxu1 %v3713_v19  ;;  %v3844_v19 = vld [vmem:[#allocation2 + $0xf1] sm:$0xff] }
 0x5b7   :  { %v11765_v52 = vadd.f32 %v4686_v11, %v4301_v18  ;;  %5379 = vmatprep.mubr.f32.mxu0 %v3840_v2  ;;  %v4313_v5 = vpop.f32.mrf.mxu1  ;;  %v3842_v18 = vld [vmem:[#allocation2 + $0xd9] sm:$0xff]  ;;  %7410 = vmatprep.subr.mxu1 %v4087_v49 }
 0x5b8   :  { %v4688_v47 = vpop.f32.mrf.mxu0  ;;  %7411 = vmatpush3.msra.mxu1 %v4087_v49 }
 0x5b9   :  { %v4316_v27 = vpop.f32.mrf.mxu1  ;;  %5005 = vmatmul.mubr.f32.gmra.mxu1 %v3840_v2 }
 0x5ba   :  { %v4691_v56 = vpop.f32.mrf.mxu0  ;;  %5380 = vmatmul.mubr.f32.gmra.mxu0 %v3776_v48  ;;  %5009 = vmatprep.mubr.f32.mxu1 %v3714_v45  ;;  %v3718_v48 = vld [vmem:[#allocation2 + $0xfa] sm:$0xff] }
 0x5bb   :  { %v11767_v31 = vadd.f32 %v4691_v56, %v4306_v29  ;;  %5384 = vmatprep.mubr.f32.mxu0 %v3841_v59  ;;  %v4318_v35 = vpop.f32.mrf.mxu1  ;;  %v3845_v56 = vld [vmem:[#allocation2 + $0xf9] sm:$0xff] }
 0x5bc   :  { %v4693_v13 = vpop.f32.mrf.mxu0 }
 0x5bd   :  { %v4321_v44 = vpop.f32.mrf.mxu1  ;;  %5010 = vmatmul.mubr.f32.gmra.mxu1 %v3841_v59 }
 0x5be   :  { %v4696_v26 = vpop.f32.mrf.mxu0  ;;  %5385 = vmatmul.mubr.f32.gmra.mxu0 %v3777_v58  ;;  %5014 = vmatprep.mubr.f32.mxu1 %v3715_v57  ;;  %v3719_v57 = vld [vmem:[#allocation2 + $0x10a] sm:$0xff] }
 0x5bf   :  { %v11769_v50 = vadd.f32 %v4696_v26, %v4311_v53  ;;  %5389 = vmatprep.mubr.f32.mxu0 %v3842_v18  ;;  %v4323_v15 = vpop.f32.mrf.mxu1  ;;  %v3717_v53 = vld [vmem:[#allocation2 + $0xf2] sm:$0xff] }
 0x5c0   :  { %v4698_v24 = vpop.f32.mrf.mxu0 }
 0x5c1   :  { %v4326_v46 = vpop.f32.mrf.mxu1  ;;  %5015 = vmatmul.mubr.f32.gmra.mxu1 %v3842_v18  ;;  %v3846_v18 = vld [vmem:[#allocation2 + $0x109] sm:$0xff] }
 0x5c2   :  { %v4701_v29 = vpop.f32.mrf.mxu0  ;;  %5390 = vmatmul.mubr.f32.gmra.mxu0 %v3778_v14  ;;  %5019 = vmatprep.mubr.f32.mxu1 %v3716_v51 }
 0x5c3   :  { %v11771_v23 = vadd.f32 %v4701_v29, %v4316_v27  ;;  %5394 = vmatprep.mubr.f32.mxu0 %v3843_v32  ;;  %v4328_v16 = vpop.f32.mrf.mxu1  ;;  %v3780_v27 = vld [vmem:[#allocation2 + $0xf0] sm:$0xff] }
 0x5c4   :  { %v4703_v38 = vpop.f32.mrf.mxu0  ;;  %v3720_v29 = vld [vmem:[#allocation2 + $0x112] sm:$0xff] }
 0x5c5   :  { %v4331_v55 = vpop.f32.mrf.mxu1  ;;  %5020 = vmatmul.mubr.f32.gmra.mxu1 %v3843_v32  ;;  %v3847_v16 = vld [vmem:[#allocation2 + $0x111] sm:$0xff] }
 0x5c6   :  { %v4706_v6 = vpop.f32.mrf.mxu0  ;;  %5395 = vmatmul.mubr.f32.gmra.mxu0 %v3779_v34  ;;  %5024 = vmatprep.mubr.f32.mxu1 %v3717_v53  ;;  %v4086_v34 = vld [vmem:[#allocation3 + $0x410] sm:$0xff] }
 0x5c7   :  { %v11773_v11 = vadd.f32 %v4706_v6, %v4321_v44  ;;  %5399 = vmatprep.mubr.f32.mxu0 %v3844_v19  ;;  %v4333_v2 = vpop.f32.mrf.mxu1  ;;  %v3781_v44 = vld [vmem:[#allocation2 + $0xf8] sm:$0xff]  ;;  %7412 = vmatprep.subr.mxu1 %v4086_v34  ;;  %v3783_v6 = vld [vmem:[#allocation2 + $0x110] sm:$0xff] }
 0x5c8   :  { %v4708_v5 = vpop.f32.mrf.mxu0  ;;  %7413 = vmatpush3.msra.mxu1 %v4086_v34 }
 0x5c9   :  { %v4336_v47 = vpop.f32.mrf.mxu1  ;;  %5025 = vmatmul.mubr.f32.gmra.mxu1 %v3844_v19  ;;  %v3721_v19 = vld [vmem:[#allocation2 + $0x122] sm:$0xff] }
 0x5ca   :  { %v4711_v45 = vpop.f32.mrf.mxu0  ;;  %5400 = vmatmul.mubr.f32.gmra.mxu0 %v3780_v27  ;;  %5029 = vmatprep.mubr.f32.mxu1 %v3718_v48  ;;  %v3848_v5 = vld [vmem:[#allocation2 + $0x121] sm:$0xff] }
 0x5cb   :  { %v11775_v59 = vadd.f32 %v4711_v45, %v4326_v46  ;;  %5404 = vmatprep.mubr.f32.mxu0 %v3845_v56  ;;  %v4338_v35 = vpop.f32.mrf.mxu1  ;;  %v3782_v46 = vld [vmem:[#allocation2 + $0x108] sm:$0xff] }
 0x5cc   :  { %v4713_v13 = vpop.f32.mrf.mxu0  ;;  %v3722_v35 = vld [vmem:[#allocation2 + $0x12a] sm:$0xff] }
 0x5cd   :  { %v4341_v58 = vpop.f32.mrf.mxu1  ;;  %5030 = vmatmul.mubr.f32.gmra.mxu1 %v3845_v56  ;;  %v3784_v56 = vld [vmem:[#allocation2 + $0x120] sm:$0xff] }
 0x5ce   :  { %v4716_v26 = vpop.f32.mrf.mxu0  ;;  %5405 = vmatmul.mubr.f32.gmra.mxu0 %v3781_v44  ;;  %5034 = vmatprep.mubr.f32.mxu1 %v3719_v57  ;;  %v3849_v44 = vld [vmem:[#allocation2 + $0x129] sm:$0xff] }
 0x5cf   :  { %v11777_v15 = vadd.f32 %v4716_v26, %v4331_v55  ;;  %5409 = vmatprep.mubr.f32.mxu0 %v3846_v18  ;;  %v4343_v24 = vpop.f32.mrf.mxu1 }
 0x5d0   :  { %v4718_v14 = vpop.f32.mrf.mxu0 }
 0x5d1   :  { %v4346_v51 = vpop.f32.mrf.mxu1  ;;  %5035 = vmatmul.mubr.f32.gmra.mxu1 %v3846_v18  ;;  %v3723_v14 = vld [vmem:[#allocation2 + $0x13a] sm:$0xff] }
 0x5d2   :  { %v4721_v32 = vpop.f32.mrf.mxu0  ;;  %5410 = vmatmul.mubr.f32.gmra.mxu0 %v3782_v46  ;;  %5039 = vmatprep.mubr.f32.mxu1 %v3720_v29  ;;  %v3850_v29 = vld [vmem:[#allocation2 + $0x139] sm:$0xff] }
 0x5d3   :  { %v11779_v49 = vadd.f32 %v4721_v32, %v4336_v47  ;;  %5414 = vmatprep.mubr.f32.mxu0 %v3847_v16  ;;  %v4348_v38 = vpop.f32.mrf.mxu1 }
 0x5d4   :  { %v4723_v53 = vpop.f32.mrf.mxu0 }
 0x5d5   :  { %v4351_v55 = vpop.f32.mrf.mxu1  ;;  %5040 = vmatmul.mubr.f32.gmra.mxu1 %v3847_v16  ;;  %v3724_v53 = vld [vmem:[#allocation2 + $0x142] sm:$0xff] }
 0x5d6   :  { %v4726_v2 = vpop.f32.mrf.mxu0  ;;  %5415 = vmatmul.mubr.f32.gmra.mxu0 %v3783_v6  ;;  %5044 = vmatprep.mubr.f32.mxu1 %v3721_v19  ;;  %v3851_v19 = vld [vmem:[#allocation2 + $0x141] sm:$0xff] }
 0x5d7   :  { %v11781_v27 = vadd.f32 %v4726_v2, %v4341_v58  ;;  %5419 = vmatprep.mubr.f32.mxu0 %v3848_v5  ;;  %v4353_v48 = vpop.f32.mrf.mxu1  ;;  %v3785_v58 = vld [vmem:[#allocation2 + $0x128] sm:$0xff] }
 0x5d8   :  { %v4728_v47 = vpop.f32.mrf.mxu0  ;;  %v4085_v48 = vld [vmem:[#allocation3 + $0x408] sm:$0xff] }
 0x5d9   :  { %v4356_v45 = vpop.f32.mrf.mxu1  ;;  %5045 = vmatmul.mubr.f32.gmra.mxu1 %v3848_v5  ;;  %7414 = vmatprep.subr.mxu1 %v4085_v48 }
 0x5da   :  { %v4731_v13 = vpop.f32.mrf.mxu0  ;;  %5420 = vmatmul.mubr.f32.gmra.mxu0 %v3784_v56  ;;  %5049 = vmatprep.mubr.f32.mxu1 %v3722_v35  ;;  %v3787_v56 = vld [vmem:[#allocation2 + $0x140] sm:$0xff]  ;;  %v3725_v35 = vld [vmem:[#allocation2 + $0x152] sm:$0xff] }
 0x5db   :  { %v11783_v57 = vadd.f32 %v4731_v13, %v4346_v51  ;;  %5424 = vmatprep.mubr.f32.mxu0 %v3849_v44  ;;  %v4358_v26 = vpop.f32.mrf.mxu1  ;;  %v3786_v51 = vld [vmem:[#allocation2 + $0x138] sm:$0xff]  ;;  %7415 = vmatpush3.msra.mxu1 %v4085_v48  ;;  %v3854_v48 = vld [vmem:[#allocation2 + $0x169] sm:$0xff] }
 0x5dc   :  { %v4733_v18 = vpop.f32.mrf.mxu0 }
 0x5dd   :  { %v4361_v24 = vpop.f32.mrf.mxu1  ;;  %5050 = vmatmul.mubr.f32.gmra.mxu1 %v3849_v44  ;;  %v3852_v44 = vld [vmem:[#allocation2 + $0x151] sm:$0xff] }
 0x5de   :  { %v4736_v46 = vpop.f32.mrf.mxu0  ;;  %5425 = vmatmul.mubr.f32.gmra.mxu0 %v3785_v58  ;;  %5054 = vmatprep.mubr.f32.mxu1 %v3723_v14  ;;  %v3788_v14 = vld [vmem:[#allocation2 + $0x150] sm:$0xff] }
 0x5df   :  { %v11785_v32 = vadd.f32 %v4736_v46, %v4351_v55  ;;  %5429 = vmatprep.mubr.f32.mxu0 %v3850_v29  ;;  %v4363_v16 = vpop.f32.mrf.mxu1  ;;  %v3726_v46 = vld [vmem:[#allocation2 + $0x15a] sm:$0xff] }
 0x5e0   :  { %v4738_v38 = vpop.f32.mrf.mxu0  ;;  %v3853_v16 = vld [vmem:[#allocation2 + $0x159] sm:$0xff] }
 0x5e1   :  { %v4366_v34 = vpop.f32.mrf.mxu1  ;;  %5055 = vmatmul.mubr.f32.gmra.mxu1 %v3850_v29 }
 0x5e2   :  { %v4741_v6 = vpop.f32.mrf.mxu0  ;;  %5430 = vmatmul.mubr.f32.gmra.mxu0 %v3786_v51  ;;  %5059 = vmatprep.mubr.f32.mxu1 %v3724_v53 }
 0x5e3   :  { %v11787_v2 = vadd.f32 %v4741_v6, %v4356_v45  ;;  %5434 = vmatprep.mubr.f32.mxu0 %v3851_v19  ;;  %v4368_v5 = vpop.f32.mrf.mxu1 }
 0x5e4   :  { %v4743_v47 = vpop.f32.mrf.mxu0 }
 0x5e5   :  { %v4371_v55 = vpop.f32.mrf.mxu1  ;;  %5060 = vmatmul.mubr.f32.gmra.mxu1 %v3851_v19  ;;  %v3727_v19 = vld [vmem:[#allocation2 + $0x16a] sm:$0xff] }
 0x5e6   :  { %v4746_v13 = vpop.f32.mrf.mxu0  ;;  %5435 = vmatmul.mubr.f32.gmra.mxu0 %v3787_v56  ;;  %5064 = vmatprep.mubr.f32.mxu1 %v3725_v35 }
 0x5e7   :  { %v11789_v26 = vadd.f32 %v4746_v13, %v4361_v24  ;;  %5439 = vmatprep.mubr.f32.mxu0 %v3852_v44  ;;  %v4373_v18 = vpop.f32.mrf.mxu1  ;;  %v3789_v24 = vld [vmem:[#allocation2 + $0x158] sm:$0xff] }
 0x5e8   :  { %v4748_v45 = vpop.f32.mrf.mxu0 }
 0x5e9   :  { %v4376_v58 = vpop.f32.mrf.mxu1  ;;  %5065 = vmatmul.mubr.f32.gmra.mxu1 %v3852_v44  ;;  %v3728_v44 = vld [vmem:[#allocation2 + $0x172] sm:$0xff] }
 0x5ea   :  { %v4751_v29 = vpop.f32.mrf.mxu0  ;;  %5440 = vmatmul.mubr.f32.gmra.mxu0 %v3788_v14  ;;  %5069 = vmatprep.mubr.f32.mxu1 %v3726_v46  ;;  %v3855_v45 = vld [vmem:[#allocation2 + $0x171] sm:$0xff] }
 0x5eb   :  { %v11791_v38 = vadd.f32 %v4751_v29, %v4366_v34  ;;  %5444 = vmatprep.mubr.f32.mxu0 %v3853_v16  ;;  %v4378_v51 = vpop.f32.mrf.mxu1  ;;  %v3790_v34 = vld [vmem:[#allocation2 + $0x168] sm:$0xff]  ;;  %v4084_v29 = vld [vmem:[#allocation3 + $0x400] sm:$0xff] }
 0x5ec   :  { %v4753_v53 = vpop.f32.mrf.mxu0  ;;  %7416 = vmatprep.subr.mxu1 %v4084_v29  ;;  %v3791_v51 = vld [vmem:[#allocation2 + $0x170] sm:$0xff] }
 0x5ed   :  { %14267 = vst [vmem:[#allocation11_spill] sm:$0xff] %v11791_v38  ;;  %v4381_v6 = vpop.f32.mrf.mxu1  ;;  %5070 = vmatmul.mubr.f32.gmra.mxu1 %v3853_v16  ;;  %v3729_v53 = vld [vmem:[#allocation2 + $0x182] sm:$0xff] }
 0x5ee   :  { %v4756_v5 = vpop.f32.mrf.mxu0  ;;  %5445 = vmatmul.mubr.f32.gmra.mxu0 %v3789_v24  ;;  %5074 = vmatprep.mubr.f32.mxu1 %v3727_v19  ;;  %v3856_v19 = vld [vmem:[#allocation2 + $0x181] sm:$0xff] }
 0x5ef   :  { %v11793_v47 = vadd.f32 %v4756_v5, %v4371_v55  ;;  %5449 = vmatprep.mubr.f32.mxu0 %v3854_v48  ;;  %v4383_v56 = vpop.f32.mrf.mxu1  ;;  %7417 = vmatpush3.msra.mxu1 %v4084_v29 }
 0x5f0   :  { %v4758_v35 = vpop.f32.mrf.mxu0 }
 0x5f1   :  { %14268 = vst [vmem:[#allocation12_spill] sm:$0xff] %v11793_v47  ;;  %v4386_v13 = vpop.f32.mrf.mxu1  ;;  %5075 = vmatmul.mubr.f32.gmra.mxu1 %v3854_v48  ;;  %v3792_v35 = vld [vmem:[#allocation2 + $0x180] sm:$0xff] }
 0x5f2   :  { %v4761_v18 = vpop.f32.mrf.mxu0  ;;  %5450 = vmatmul.mubr.f32.gmra.mxu0 %v3790_v34  ;;  %5079 = vmatprep.mubr.f32.mxu1 %v3728_v44  ;;  %v3730_v34 = vld [vmem:[#allocation2 + $0x18a] sm:$0xff] }
 0x5f3   :  { %v11795_v14 = vadd.f32 %v4761_v18, %v4376_v58  ;;  %5454 = vmatprep.mubr.f32.mxu0 %v3855_v45  ;;  %v4388_v46 = vpop.f32.mrf.mxu1  ;;  %v3857_v18 = vld [vmem:[#allocation2 + $0x189] sm:$0xff] }
 0x5f4   :  { %v4763_v16 = vpop.f32.mrf.mxu0 }
 0x5f5   :  { %14269 = vst [vmem:[#allocation13_spill] sm:$0xff] %v11795_v14  ;;  %v4391_v55 = vpop.f32.mrf.mxu1  ;;  %5080 = vmatmul.mubr.f32.gmra.mxu1 %v3855_v45 }
 0x5f6   :  { %v4766_v24 = vpop.f32.mrf.mxu0  ;;  %5455 = vmatmul.mubr.f32.gmra.mxu0 %v3791_v51  ;;  %5084 = vmatprep.mubr.f32.mxu1 %v3729_v53  ;;  %v3858_v51 = vld [vmem:[#allocation2 + $0x199] sm:$0xff]  ;;  %v3793_v53 = vld [vmem:[#allocation2 + $0x188] sm:$0xff] }
 0x5f7   :  { %v11797_v5 = vadd.f32 %v4766_v24, %v4381_v6  ;;  %5459 = vmatprep.mubr.f32.mxu0 %v3856_v19  ;;  %v4393_v48 = vpop.f32.mrf.mxu1  ;;  %v3731_v24 = vld [vmem:[#allocation2 + $0x1ca] sm:$0xff] }
 0x5f8   :  { %v4768_v58 = vpop.f32.mrf.mxu0 }
 0x5f9   :  { %14270 = vst [vmem:[#allocation14_spill] sm:$0xff] %v11797_v5  ;;  %v4396_v56 = vpop.f32.mrf.mxu1  ;;  %5085 = vmatmul.mubr.f32.gmra.mxu1 %v3856_v19  ;;  %v3794_v58 = vld [vmem:[#allocation2 + $0x198] sm:$0xff] }
 0x5fa   :  { %v4771_v44 = vpop.f32.mrf.mxu0  ;;  %5460 = vmatmul.mubr.f32.gmra.mxu0 %v3792_v35  ;;  %5089 = vmatprep.mubr.f32.mxu1 %v3730_v34  ;;  %v3667_v34 = vld [vmem:[#allocation2 + $0x1c9] sm:$0xff] }
 0x5fb   :  { %v11799_v45 = vadd.f32 %v4771_v44, %v4386_v13  ;;  %5464 = vmatprep.mubr.f32.mxu0 %v3857_v18  ;;  %v4398_v46 = vpop.f32.mrf.mxu1  ;;  %v3859_v13 = vld [vmem:[#allocation2 + $0x1a1] sm:$0xff] }
 0x5fc   :  { %v4773_v16 = vpop.f32.mrf.mxu0  ;;  %v3732_v46 = vld [vmem:[#allocation2 + $0x1d2] sm:$0xff] }
 0x5fd   :  { %14271 = vst [vmem:[#allocation33_spill] sm:$0xff] %v11799_v45  ;;  %v4401_v6 = vpop.f32.mrf.mxu1  ;;  %5090 = vmatmul.mubr.f32.gmra.mxu1 %v3857_v18 }
 0x5fe   :  { %v4776_v29 = vpop.f32.mrf.mxu0  ;;  %5465 = vmatmul.mubr.f32.gmra.mxu0 %v3793_v53  ;;  %5094 = vmatprep.mubr.f32.mxu1 %v3731_v24  ;;  %v3668_v24 = vld [vmem:[#allocation2 + $0x1d1] sm:$0xff] }
 0x5ff   :  { %v11801_v19 = vadd.f32 %v4776_v29, %v4391_v55  ;;  %v4403_v48 = vpop.f32.mrf.mxu1  ;;  %5469 = vmatprep.mubr.f32.mxu0 %v3858_v51  ;;  %v3733_v29 = vld [vmem:[#allocation2 + $0x1e2] sm:$0xff] }
 0x600   :  { %v4778_v35 = vpop.f32.mrf.mxu0  ;;  %v11805_v48 = vld [vmem:[#allocation2 + $0x8] sm:$0xff] }
 0x601   :  { %14272 = vst [vmem:[#allocation34_spill] sm:$0xff] %v11801_v19  ;;  %v4406_v44 = vpop.f32.mrf.mxu1  ;;  %5095 = vmatmul.mubr.f32.gmra.mxu1 %v3667_v34  ;;  %v3860_v35 = vld [vmem:[#allocation2 + $0x1e1] sm:$0xff] }
 0x602   :  { %v4781_v16 = vpop.f32.mrf.mxu0  ;;  %5470 = vmatmul.mubr.f32.gmra.mxu0 %v3794_v58  ;;  %5099 = vmatprep.mubr.f32.mxu1 %v3732_v46 }
 0x603   :  { %v11803_v18 = vadd.f32 %v4781_v16, %v4396_v56  ;;  %v4408_v45 = vpop.f32.mrf.mxu1  ;;  %5474 = vmatprep.mubr.f32.mxu0 %v3859_v13  ;;  %v3734_v13 = vld [vmem:[#allocation2 + $0x1ea] sm:$0xff] }
 0x604   :  { %v4783_v53 = vpop.f32.mrf.mxu0  ;;  %v3796_v45 = vld [vmem:[#allocation2 + $0x1e0] sm:$0xff] }
 0x605   :  { %14273 = vst [vmem:[#allocation35_spill] sm:$0xff] %v11803_v18  ;;  %v4411_v55 = vpop.f32.mrf.mxu1  ;;  %5100 = vmatmul.mubr.f32.gmra.mxu1 %v3668_v24  ;;  %v3861_v53 = vld [vmem:[#allocation2 + $0x1e9] sm:$0xff] }
 0x606   :  { %v4786_v51 = vpop.f32.mrf.mxu0  ;;  %5475 = vmatmul.mubr.f32.gmra.mxu0 %v11805_v48  ;;  %5104 = vmatprep.mubr.f32.mxu1 %v3733_v29 }
 0x607   :  { %v11808_v34 = vadd.f32 %v4786_v51, %v4401_v6  ;;  %5479 = vmatprep.mubr.f32.mxu0 %v3860_v35  ;;  %v4413_v58 = vpop.f32.mrf.mxu1  ;;  %v3797_v6 = vld [vmem:[#allocation2 + $0x1e8] sm:$0xff]  ;;  %v3735_v51 = vld [vmem:[#allocation2 + $0x1fa] sm:$0xff] }
 0x608   :  { %v4788_v56 = vpop.f32.mrf.mxu0  ;;  %v3862_v58 = vld [vmem:[#allocation2 + $0x1f9] sm:$0xff] }
 0x609   :  { %14274 = vst [vmem:[#allocation16_spill] sm:$0xff] %v11808_v34  ;;  %v4416_v46 = vpop.f32.mrf.mxu1  ;;  %5105 = vmatmul.mubr.f32.gmra.mxu1 %v3860_v35 }
 0x60a   :  { %v4791_v16 = vpop.f32.mrf.mxu0  ;;  %5480 = vmatmul.mubr.f32.gmra.mxu0 %v3796_v45  ;;  %5109 = vmatprep.mubr.f32.mxu1 %v3734_v13 }
 0x60b   :  { %v11810_v24 = vadd.f32 %v4791_v16, %v4406_v44  ;;  %5484 = vmatprep.mubr.f32.mxu0 %v3861_v53  ;;  %v4418_v18 = vpop.f32.mrf.mxu1  ;;  %v3798_v44 = vld [vmem:[#allocation2 + $0x1f8] sm:$0xff]  ;;  %v3736_v16 = vld [vmem:[#allocation2 + $0x202] sm:$0xff] }
 0x60c   :  { %v4793_v19 = vpop.f32.mrf.mxu0 }
 0x60d   :  { %14275 = vst [vmem:[#allocation17_spill] sm:$0xff] %v11810_v24  ;;  %v4421_v29 = vpop.f32.mrf.mxu1  ;;  %5110 = vmatmul.mubr.f32.gmra.mxu1 %v3861_v53  ;;  %v3863_v19 = vld [vmem:[#allocation2 + $0x201] sm:$0xff] }
 0x60e   :  { %v4796_v34 = vpop.f32.mrf.mxu0  ;;  %5485 = vmatmul.mubr.f32.gmra.mxu0 %v3797_v6  ;;  %5114 = vmatprep.mubr.f32.mxu1 %v3735_v51 }
 0x60f   :  { %v11812_v35 = vadd.f32 %v4796_v34, %v4411_v55  ;;  %5489 = vmatprep.mubr.f32.mxu0 %v3862_v58  ;;  %v4423_v56 = vpop.f32.mrf.mxu1  ;;  %v3799_v55 = vld [vmem:[#allocation2 + $0x200] sm:$0xff]  ;;  %v3737_v34 = vld [vmem:[#allocation2 + $0x212] sm:$0xff] }
 0x610   :  { %v4798_v45 = vpop.f32.mrf.mxu0  ;;  %v3864_v56 = vld [vmem:[#allocation2 + $0x211] sm:$0xff] }
 0x611   :  { %14276 = vst [vmem:[#allocation18_spill] sm:$0xff] %v11812_v35  ;;  %v4426_v13 = vpop.f32.mrf.mxu1  ;;  %5115 = vmatmul.mubr.f32.gmra.mxu1 %v3862_v58 }
 0x612   :  { %v4801_v24 = vpop.f32.mrf.mxu0  ;;  %5490 = vmatmul.mubr.f32.gmra.mxu0 %v3798_v44  ;;  %5119 = vmatprep.mubr.f32.mxu1 %v3736_v16 }
 0x613   :  { %v11814_v18 = vadd.f32 %v4801_v24, %v4416_v46  ;;  %5494 = vmatprep.mubr.f32.mxu0 %v3863_v19  ;;  %v4428_v53 = vpop.f32.mrf.mxu1  ;;  %v3800_v46 = vld [vmem:[#allocation2 + $0x210] sm:$0xff]  ;;  %v3738_v24 = vld [vmem:[#allocation2 + $0x21a] sm:$0xff] }
 0x614   :  { %v4803_v6 = vpop.f32.mrf.mxu0  ;;  %v3865_v53 = vld [vmem:[#allocation2 + $0x219] sm:$0xff] }
 0x615   :  { %14277 = vst [vmem:[#allocation19_spill] sm:$0xff] %v11814_v18  ;;  %v4431_v51 = vpop.f32.mrf.mxu1  ;;  %5120 = vmatmul.mubr.f32.gmra.mxu1 %v3863_v19 }
 0x616   :  { %v4806_v35 = vpop.f32.mrf.mxu0  ;;  %5495 = vmatmul.mubr.f32.gmra.mxu0 %v3799_v55  ;;  %5124 = vmatprep.mubr.f32.mxu1 %v3737_v34 }
 0x617   :  { %v11816_v58 = vadd.f32 %v4806_v35, %v4421_v29  ;;  %5499 = vmatprep.mubr.f32.mxu0 %v3864_v56  ;;  %v4433_v45 = vpop.f32.mrf.mxu1  ;;  %v3801_v29 = vld [vmem:[#allocation2 + $0x218] sm:$0xff]  ;;  %v3739_v35 = vld [vmem:[#allocation2 + $0x22a] sm:$0xff] }
 0x618   :  { %v4808_v44 = vpop.f32.mrf.mxu0  ;;  %v3866_v45 = vld [vmem:[#allocation2 + $0x229] sm:$0xff] }
 0x619   :  { %14278 = vst [vmem:[#allocation20_spill] sm:$0xff] %v11816_v58  ;;  %v4436_v16 = vpop.f32.mrf.mxu1  ;;  %5125 = vmatmul.mubr.f32.gmra.mxu1 %v3864_v56 }
 0x61a   :  { %v4811_v18 = vpop.f32.mrf.mxu0  ;;  %5500 = vmatmul.mubr.f32.gmra.mxu0 %v3800_v46  ;;  %5129 = vmatprep.mubr.f32.mxu1 %v3738_v24 }
 0x61b   :  { %v11818_v19 = vadd.f32 %v4811_v18, %v4426_v13  ;;  %5504 = vmatprep.mubr.f32.mxu0 %v3865_v53  ;;  %v4438_v6 = vpop.f32.mrf.mxu1  ;;  %v3802_v13 = vld [vmem:[#allocation2 + $0x228] sm:$0xff]  ;;  %v3740_v18 = vld [vmem:[#allocation2 + $0x232] sm:$0xff] }
 0x61c   :  { %v4813_v55 = vpop.f32.mrf.mxu0  ;;  %v3867_v6 = vld [vmem:[#allocation2 + $0x231] sm:$0xff] }
 0x61d   :  { %14279 = vst [vmem:[#allocation21_spill] sm:$0xff] %v11818_v19  ;;  %v4441_v34 = vpop.f32.mrf.mxu1  ;;  %5130 = vmatmul.mubr.f32.gmra.mxu1 %v3865_v53 }
 0x61e   :  { %v4816_v58 = vpop.f32.mrf.mxu0  ;;  %5505 = vmatmul.mubr.f32.gmra.mxu0 %v3801_v29  ;;  %5134 = vmatprep.mubr.f32.mxu1 %v3739_v35 }
 0x61f   :  { %v11820_v56 = vadd.f32 %v4816_v58, %v4431_v51  ;;  %5509 = vmatprep.mubr.f32.mxu0 %v3866_v45  ;;  %v4443_v44 = vpop.f32.mrf.mxu1  ;;  %v3803_v51 = vld [vmem:[#allocation2 + $0x230] sm:$0xff]  ;;  %v3741_v58 = vld [vmem:[#allocation2 + $0x242] sm:$0xff] }
 0x620   :  { %v4818_v46 = vpop.f32.mrf.mxu0  ;;  %v3868_v44 = vld [vmem:[#allocation2 + $0x241] sm:$0xff] }
 0x621   :  { %14280 = vst [vmem:[#allocation9_spill] sm:$0xff] %v11820_v56  ;;  %v4446_v24 = vpop.f32.mrf.mxu1  ;;  %5135 = vmatmul.mubr.f32.gmra.mxu1 %v3866_v45 }
 0x622   :  { %v4821_v19 = vpop.f32.mrf.mxu0  ;;  %5510 = vmatmul.mubr.f32.gmra.mxu0 %v3802_v13  ;;  %5139 = vmatprep.mubr.f32.mxu1 %v3740_v18 }
 0x623   :  { %v11822_v53 = vadd.f32 %v4821_v19, %v4436_v16  ;;  %5514 = vmatprep.mubr.f32.mxu0 %v3867_v6  ;;  %v4448_v55 = vpop.f32.mrf.mxu1  ;;  %v3804_v16 = vld [vmem:[#allocation2 + $0x240] sm:$0xff]  ;;  %v3742_v19 = vld [vmem:[#allocation2 + $0x24a] sm:$0xff] }
 0x624   :  { %v4823_v29 = vpop.f32.mrf.mxu0  ;;  %v3869_v55 = vld [vmem:[#allocation2 + $0x249] sm:$0xff] }
 0x625   :  { %14281 = vst [vmem:[#allocation15_spill] sm:$0xff] %v11822_v53  ;;  %v4451_v35 = vpop.f32.mrf.mxu1  ;;  %5140 = vmatmul.mubr.f32.gmra.mxu1 %v3867_v6 }
 0x626   :  { %v4826_v56 = vpop.f32.mrf.mxu0  ;;  %5515 = vmatmul.mubr.f32.gmra.mxu0 %v3803_v51  ;;  %5144 = vmatprep.mubr.f32.mxu1 %v3741_v58 }
 0x627   :  { %v11824_v45 = vadd.f32 %v4826_v56, %v4441_v34  ;;  %5519 = vmatprep.mubr.f32.mxu0 %v3868_v44  ;;  %v4453_v46 = vpop.f32.mrf.mxu1  ;;  %v3805_v34 = vld [vmem:[#allocation2 + $0x248] sm:$0xff]  ;;  %v11828_v56 = vld [vmem:[#allocation2 + $0x25a] sm:$0xff] }
 0x628   :  { %v4828_v13 = vpop.f32.mrf.mxu0 }
 0x629   :  { %14282 = vst [vmem:[#allocation22_spill] sm:$0xff] %v11824_v45  ;;  %v4456_v18 = vpop.f32.mrf.mxu1  ;;  %5145 = vmatmul.mubr.f32.gmra.mxu1 %v3868_v44  ;;  %v3870_v44 = vld [vmem:[#allocation2 + $0x259] sm:$0xff] }
 0x62a   :  { %v4831_v53 = vpop.f32.mrf.mxu0  ;;  %5520 = vmatmul.mubr.f32.gmra.mxu0 %v3804_v16  ;;  %5149 = vmatprep.mubr.f32.mxu1 %v3742_v19 }
 0x62b   :  { %v11826_v6 = vadd.f32 %v4831_v53, %v4446_v24  ;;  %5524 = vmatprep.mubr.f32.mxu0 %v3869_v55  ;;  %v4458_v29 = vpop.f32.mrf.mxu1  ;;  %v3806_v53 = vld [vmem:[#allocation2 + $0x258] sm:$0xff] }
 0x62c   :  { %v4833_v51 = vpop.f32.mrf.mxu0  ;;  %v11833_v29 = vld [vmem:[#allocation2 + $0x262] sm:$0xff] }
 0x62d   :  { %14283 = vst [vmem:[#allocation23_spill] sm:$0xff] %v11826_v6  ;;  %v4461_v58 = vpop.f32.mrf.mxu1  ;;  %5150 = vmatmul.mubr.f32.gmra.mxu1 %v3869_v55  ;;  %v3871_v55 = vld [vmem:[#allocation2 + $0x261] sm:$0xff] }
 0x62e   :  { %v4836_v46 = vpop.f32.mrf.mxu0  ;;  %5525 = vmatmul.mubr.f32.gmra.mxu0 %v3805_v34  ;;  %5154 = vmatprep.mubr.f32.mxu1 %v11828_v56 }
 0x62f   :  { %v11831_v13 = vadd.f32 %v4836_v46, %v4451_v35  ;;  %5529 = vmatprep.mubr.f32.mxu0 %v3870_v44  ;;  %v4463_v16 = vpop.f32.mrf.mxu1  ;;  %v3807_v46 = vld [vmem:[#allocation2 + $0x260] sm:$0xff] }
 0x630   :  { %v4838_v19 = vpop.f32.mrf.mxu0  ;;  %v11838_v16 = vld [vmem:[#allocation2 + $0x272] sm:$0xff] }
 0x631   :  { %14284 = vst [vmem:[#allocation24_spill] sm:$0xff] %v11831_v13  ;;  %v4466_v24 = vpop.f32.mrf.mxu1  ;;  %5155 = vmatmul.mubr.f32.gmra.mxu1 %v3870_v44  ;;  %v3872_v44 = vld [vmem:[#allocation2 + $0x271] sm:$0xff] }
 0x632   :  { %v4841_v51 = vpop.f32.mrf.mxu0  ;;  %5530 = vmatmul.mubr.f32.gmra.mxu0 %v3806_v53  ;;  %5159 = vmatprep.mubr.f32.mxu1 %v11833_v29 }
 0x633   :  { %v11836_v6 = vadd.f32 %v4841_v51, %v4456_v18  ;;  %5534 = vmatprep.mubr.f32.mxu0 %v3871_v55  ;;  %v4468_v34 = vpop.f32.mrf.mxu1  ;;  %v3808_v51 = vld [vmem:[#allocation2 + $0x270] sm:$0xff] }
 0x634   :  { %v4843_v45 = vpop.f32.mrf.mxu0  ;;  %v11843_v34 = vld [vmem:[#allocation2 + $0x27a] sm:$0xff] }
 0x635   :  { %14285 = vst [vmem:[#allocation25_spill] sm:$0xff] %v11836_v6  ;;  %v4471_v35 = vpop.f32.mrf.mxu1  ;;  %5160 = vmatmul.mubr.f32.gmra.mxu1 %v3871_v55  ;;  %v3873_v55 = vld [vmem:[#allocation2 + $0x279] sm:$0xff] }
 0x636   :  { %v4846_v19 = vpop.f32.mrf.mxu0  ;;  %5535 = vmatmul.mubr.f32.gmra.mxu0 %v3807_v46  ;;  %5164 = vmatprep.mubr.f32.mxu1 %v11838_v16 }
 0x637   :  { %v11841_v13 = vadd.f32 %v4846_v19, %v4461_v58  ;;  %5539 = vmatprep.mubr.f32.mxu0 %v3872_v44  ;;  %v4473_v53 = vpop.f32.mrf.mxu1  ;;  %v3809_v19 = vld [vmem:[#allocation2 + $0x278] sm:$0xff] }
 0x638   :  { %v4848_v5 = vpop.f32.mrf.mxu0  ;;  %v11848_v53 = vld [vmem:[#allocation2 + $0x28a] sm:$0xff] }
 0x639   :  { %14286 = vst [vmem:[#allocation26_spill] sm:$0xff] %v11841_v13  ;;  %v4476_v18 = vpop.f32.mrf.mxu1  ;;  %5165 = vmatmul.mubr.f32.gmra.mxu1 %v3872_v44  ;;  %v3874_v44 = vld [vmem:[#allocation2 + $0x289] sm:$0xff] }
 0x63a   :  { %v4851_v45 = vpop.f32.mrf.mxu0  ;;  %5540 = vmatmul.mubr.f32.gmra.mxu0 %v3808_v51  ;;  %5169 = vmatprep.mubr.f32.mxu1 %v11843_v34 }
 0x63b   :  { %v11846_v6 = vadd.f32 %v4851_v45, %v4466_v24  ;;  %5544 = vmatprep.mubr.f32.mxu0 %v3873_v55  ;;  %v4478_v46 = vpop.f32.mrf.mxu1  ;;  %v4552_v24 = vadd.f32 %v11710_v63, %v11650_v8 }
 0x63c   :  { %v4853_v14 = vpop.f32.mrf.mxu0 }
 0x63d   :  { %14287 = vst [vmem:[#allocation27_spill] sm:$0xff] %v11846_v6  ;;  %v4481_v58 = vpop.f32.mrf.mxu1  ;;  %5170 = vmatmul.mubr.f32.gmra.mxu1 %v3873_v55  ;;  %v3810_v14 = vld [vmem:[#allocation2 + $0x288] sm:$0xff]  ;;  %v11855_v55 = vld [vmem:[#allocation2 + $0x292] sm:$0xff] }
 0x63e   :  { %v4856_v5 = vpop.f32.mrf.mxu0  ;;  %5545 = vmatmul.mubr.f32.gmra.mxu0 %v3809_v19  ;;  %5174 = vmatprep.mubr.f32.mxu1 %v11848_v53  ;;  %v3875_v19 = vld [vmem:[#allocation2 + $0x291] sm:$0xff] }
 0x63f   :  { %v11851_v13 = vadd.f32 %v4856_v5, %v4471_v35  ;;  %5549 = vmatprep.mubr.f32.mxu0 %v3874_v44  ;;  %v4483_v51 = vpop.f32.mrf.mxu1  ;;  %v4557_v5 = vadd.f32 %v11712_v60, %v11655_v1  ;;  %v3812_v1 = vld [vmem:[#allocation2 + $0x2a0] sm:$0xff]  ;;  %v11867_v60 = vld [vmem:[#allocation2 + $0x2aa] sm:$0xff] }
 0x640   :  { %v4858_v45 = vpop.f32.mrf.mxu0  ;;  %v11862_v51 = vld [vmem:[#allocation2 + $0x2a2] sm:$0xff] }
 0x641   :  { %14288 = vst [vmem:[#allocation28_spill] sm:$0xff] %v11851_v13  ;;  %v4936_v46 = vpop.f32.mrf.mxu1  ;;  %5175 = vmatmul.mubr.f32.gmra.mxu1 %v3874_v44  ;;  %v3811_v44 = vld [vmem:[#allocation2 + $0x290] sm:$0xff] }
 0x642   :  { %v4861_v6 = vpop.f32.mrf.mxu0  ;;  %v4937_v47 = vadd.f32 %v4936_v46, %v4552_v24  ;;  %5550 = vmatmul.mubr.f32.gmra.mxu0 %v3810_v14  ;;  %5179 = vmatprep.mubr.f32.mxu1 %v11855_v55  ;;  %v3876_v24 = vld [vmem:[#allocation2 + $0x2a1] sm:$0xff] }
 0x643   :  { %v11858_v38 = vadd.f32 %v4861_v6, %v4476_v18  ;;  %5554 = vmatprep.mubr.f32.mxu0 %v3875_v19  ;;  %v4938_v35 = vpop.f32.mrf.mxu1 }
 0x644   :  { %v4863_v8 = vpop.f32.mrf.mxu0 }
 0x645   :  { %14289 = vst [vmem:[#allocation29_spill] sm:$0xff] %v11858_v38  ;;  %v4941_v63 = vpop.f32.mrf.mxu1  ;;  %5180 = vmatmul.mubr.f32.gmra.mxu1 %v3875_v19 }
 0x646   :  { %v4866_v45 = vpop.f32.mrf.mxu0  ;;  %v4942_v13 = vadd.f32 %v4941_v63, %v4557_v5  ;;  %5555 = vmatmul.mubr.f32.gmra.mxu0 %v3811_v44  ;;  %5184 = vmatprep.mubr.f32.mxu1 %v11862_v51  ;;  %v3877_v5 = vld [vmem:[#allocation2 + $0x2a9] sm:$0xff] }
 0x647   :  { %v11865_v46 = vadd.f32 %v4866_v45, %v4481_v58  ;;  %5559 = vmatprep.mubr.f32.mxu0 %v3876_v24  ;;  %v4943_v6 = vpop.f32.mrf.mxu1  ;;  %v3813_v45 = vld [vmem:[#allocation2 + $0x2a8] sm:$0xff] }
 0x648   :  { %v4868_v18 = vpop.f32.mrf.mxu0  ;;  %v11873_v6 = vld [vmem:[#allocation2 + $0x2ba] sm:$0xff] }
 0x649   :  { %14290 = vst [vmem:[#allocation36_spill] sm:$0xff] %v11865_v46  ;;  %v4946_v14 = vpop.f32.mrf.mxu1  ;;  %5185 = vmatmul.mubr.f32.gmra.mxu1 %v3876_v24 }
 0x64a   :  { %v4947_v19 = vadd.f32 %v4946_v14, %v11714_v30  ;;  %v5321_v35 = vpop.f32.mrf.mxu0  ;;  %5560 = vmatmul.mubr.f32.gmra.mxu0 %v3812_v1  ;;  %5189 = vmatprep.mubr.f32.mxu1 %v11867_v60  ;;  %v3878_v30 = vld [vmem:[#allocation2 + $0x2b9] sm:$0xff] }
 0x64b   :  { %v11871_v8 = vadd.f32 %v5321_v35, %v4937_v47  ;;  %5564 = vmatprep.mubr.f32.mxu0 %v3877_v5  ;;  %v4948_v58 = vpop.f32.mrf.mxu1 }
 0x64c   :  { %v5323_v63 = vpop.f32.mrf.mxu0  ;;  %v3814_v58 = vld [vmem:[#allocation2 + $0x2b8] sm:$0xff] }
 0x64d   :  { %14291 = vst [vmem:[#allocation37_spill] sm:$0xff] %v11871_v8  ;;  %v4951_v44 = vpop.f32.mrf.mxu1  ;;  %5190 = vmatmul.mubr.f32.gmra.mxu1 %v3877_v5  ;;  %v11879_v63 = vld [vmem:[#allocation2 + $0x2c2] sm:$0xff] }
 0x64e   :  { %v4952_v24 = vadd.f32 %v4951_v44, %v11716_v40  ;;  %v5326_v18 = vpop.f32.mrf.mxu0  ;;  %5565 = vmatmul.mubr.f32.gmra.mxu0 %v3813_v45  ;;  %5194 = vmatprep.mubr.f32.mxu1 %v11873_v6  ;;  %v3879_v40 = vld [vmem:[#allocation2 + $0x2c1] sm:$0xff] }
 0x64f   :  { %v11877_v14 = vadd.f32 %v5326_v18, %v4942_v13  ;;  %5569 = vmatprep.mubr.f32.mxu0 %v3878_v30  ;;  %v4953_v47 = vpop.f32.mrf.mxu1 }
 0x650   :  { %v5328_v1 = vpop.f32.mrf.mxu0  ;;  %v3815_v47 = vld [vmem:[#allocation2 + $0x2c0] sm:$0xff] }
 0x651   :  { %14292 = vst [vmem:[#allocation38_spill] sm:$0xff] %v11877_v14  ;;  %v4956_v35 = vpop.f32.mrf.mxu1  ;;  %5195 = vmatmul.mubr.f32.gmra.mxu1 %v3878_v30  ;;  %v11885_v1 = vld [vmem:[#allocation2 + $0x2d2] sm:$0xff] }
 0x652   :  { %v4957_v5 = vadd.f32 %v4956_v35, %v11718_v42  ;;  %v5331_v8 = vpop.f32.mrf.mxu0  ;;  %5570 = vmatmul.mubr.f32.gmra.mxu0 %v3814_v58  ;;  %5199 = vmatprep.mubr.f32.mxu1 %v11879_v63  ;;  %v3880_v42 = vld [vmem:[#allocation2 + $0x2d1] sm:$0xff] }
 0x653   :  { %v11883_v44 = vadd.f32 %v5331_v8, %v4947_v19  ;;  %5574 = vmatprep.mubr.f32.mxu0 %v3879_v40  ;;  %v4958_v13 = vpop.f32.mrf.mxu1 }
 0x654   :  { %v5333_v45 = vpop.f32.mrf.mxu0  ;;  %v3816_v13 = vld [vmem:[#allocation2 + $0x2d0] sm:$0xff] }
 0x655   :  { %14293 = vst [vmem:[#allocation39_spill] sm:$0xff] %v11883_v44  ;;  %v4961_v18 = vpop.f32.mrf.mxu1  ;;  %5200 = vmatmul.mubr.f32.gmra.mxu1 %v3879_v40  ;;  %v11891_v45 = vld [vmem:[#allocation2 + $0x2da] sm:$0xff] }
 0x656   :  { %v4962_v30 = vadd.f32 %v4961_v18, %v11720_v12  ;;  %v5336_v14 = vpop.f32.mrf.mxu0  ;;  %5575 = vmatmul.mubr.f32.gmra.mxu0 %v3815_v47  ;;  %5204 = vmatprep.mubr.f32.mxu1 %v11885_v1  ;;  %v3881_v12 = vld [vmem:[#allocation2 + $0x2d9] sm:$0xff] }
 0x657   :  { %v11889_v35 = vadd.f32 %v5336_v14, %v4952_v24  ;;  %5579 = vmatprep.mubr.f32.mxu0 %v3880_v42  ;;  %v4963_v19 = vpop.f32.mrf.mxu1 }
 0x658   :  { %v5338_v8 = vpop.f32.mrf.mxu0  ;;  %v3817_v19 = vld [vmem:[#allocation2 + $0x2d8] sm:$0xff] }
 0x659   :  { %14294 = vst [vmem:[#allocation40_spill] sm:$0xff] %v11889_v35  ;;  %v4966_v58 = vpop.f32.mrf.mxu1  ;;  %5205 = vmatmul.mubr.f32.gmra.mxu1 %v3880_v42  ;;  %v11897_v8 = vld [vmem:[#allocation2 + $0x2ea] sm:$0xff] }
 0x65a   :  { %v4967_v40 = vadd.f32 %v4966_v58, %v11722_v37  ;;  %v5341_v44 = vpop.f32.mrf.mxu0  ;;  %5580 = vmatmul.mubr.f32.gmra.mxu0 %v3816_v13  ;;  %5209 = vmatprep.mubr.f32.mxu1 %v11891_v45  ;;  %v3882_v37 = vld [vmem:[#allocation2 + $0x2e9] sm:$0xff] }
 0x65b   :  { %v11895_v18 = vadd.f32 %v5341_v44, %v4957_v5  ;;  %5584 = vmatprep.mubr.f32.mxu0 %v3881_v12  ;;  %v4968_v24 = vpop.f32.mrf.mxu1 }
 0x65c   :  { %v5343_v14 = vpop.f32.mrf.mxu0  ;;  %v3818_v24 = vld [vmem:[#allocation2 + $0x2e8] sm:$0xff] }
 0x65d   :  { %14295 = vst [vmem:[#allocation41_spill] sm:$0xff] %v11895_v18  ;;  %v4971_v47 = vpop.f32.mrf.mxu1  ;;  %5210 = vmatmul.mubr.f32.gmra.mxu1 %v3881_v12  ;;  %v11903_v14 = vld [vmem:[#allocation2 + $0x2f2] sm:$0xff] }
 0x65e   :  { %v4972_v42 = vadd.f32 %v4971_v47, %v11724_v9  ;;  %v5346_v35 = vpop.f32.mrf.mxu0  ;;  %5585 = vmatmul.mubr.f32.gmra.mxu0 %v3817_v19  ;;  %5214 = vmatprep.mubr.f32.mxu1 %v11897_v8  ;;  %v3883_v9 = vld [vmem:[#allocation2 + $0x2f1] sm:$0xff] }
 0x65f   :  { %v11901_v58 = vadd.f32 %v5346_v35, %v4962_v30  ;;  %5589 = vmatprep.mubr.f32.mxu0 %v3882_v37  ;;  %v4973_v5 = vpop.f32.mrf.mxu1 }
 0x660   :  { %v5348_v44 = vpop.f32.mrf.mxu0  ;;  %v3819_v5 = vld [vmem:[#allocation2 + $0x2f0] sm:$0xff] }
 0x661   :  { %14296 = vst [vmem:[#allocation42_spill] sm:$0xff] %v11901_v58  ;;  %v4976_v13 = vpop.f32.mrf.mxu1  ;;  %5215 = vmatmul.mubr.f32.gmra.mxu1 %v3882_v37  ;;  %v11909_v44 = vld [vmem:[#allocation2 + $0x302] sm:$0xff] }
 0x662   :  { %v4977_v12 = vadd.f32 %v4976_v13, %v11726_v25  ;;  %v5351_v18 = vpop.f32.mrf.mxu0  ;;  %5590 = vmatmul.mubr.f32.gmra.mxu0 %v3818_v24  ;;  %5219 = vmatprep.mubr.f32.mxu1 %v11903_v14  ;;  %v3884_v25 = vld [vmem:[#allocation2 + $0x301] sm:$0xff] }
 0x663   :  { %v11907_v47 = vadd.f32 %v5351_v18, %v4967_v40  ;;  %5594 = vmatprep.mubr.f32.mxu0 %v3883_v9  ;;  %v4978_v30 = vpop.f32.mrf.mxu1 }
 0x664   :  { %v5353_v35 = vpop.f32.mrf.mxu0  ;;  %v3820_v30 = vld [vmem:[#allocation2 + $0x300] sm:$0xff] }
 0x665   :  { %14297 = vst [vmem:[#allocation43_spill] sm:$0xff] %v11907_v47  ;;  %v4981_v19 = vpop.f32.mrf.mxu1  ;;  %5220 = vmatmul.mubr.f32.gmra.mxu1 %v3883_v9  ;;  %v11915_v35 = vld [vmem:[#allocation2 + $0x30a] sm:$0xff] }
 0x666   :  { %v4982_v37 = vadd.f32 %v4981_v19, %v11728_v28  ;;  %v5356_v58 = vpop.f32.mrf.mxu0  ;;  %5595 = vmatmul.mubr.f32.gmra.mxu0 %v3819_v5  ;;  %5224 = vmatprep.mubr.f32.mxu1 %v11909_v44  ;;  %v3885_v28 = vld [vmem:[#allocation2 + $0x309] sm:$0xff] }
 0x667   :  { %v11913_v13 = vadd.f32 %v5356_v58, %v4972_v42  ;;  %5599 = vmatprep.mubr.f32.mxu0 %v3884_v25  ;;  %v4983_v40 = vpop.f32.mrf.mxu1 }
 0x668   :  { %v5358_v18 = vpop.f32.mrf.mxu0  ;;  %v3821_v40 = vld [vmem:[#allocation2 + $0x308] sm:$0xff] }
 0x669   :  { %14298 = vst [vmem:[#allocation10_spill] sm:$0xff] %v11913_v13  ;;  %v4986_v24 = vpop.f32.mrf.mxu1  ;;  %5225 = vmatmul.mubr.f32.gmra.mxu1 %v3884_v25  ;;  %v11921_v18 = vld [vmem:[#allocation2 + $0x31a] sm:$0xff] }
 0x66a   :  { %v4987_v9 = vadd.f32 %v4986_v24, %v11730_v3  ;;  %v5361_v47 = vpop.f32.mrf.mxu0  ;;  %5600 = vmatmul.mubr.f32.gmra.mxu0 %v3820_v30  ;;  %5229 = vmatprep.mubr.f32.mxu1 %v11915_v35  ;;  %v3886_v3 = vld [vmem:[#allocation2 + $0x319] sm:$0xff] }
 0x66b   :  { %v11919_v19 = vadd.f32 %v5361_v47, %v4977_v12  ;;  %5604 = vmatprep.mubr.f32.mxu0 %v3885_v28  ;;  %v4988_v42 = vpop.f32.mrf.mxu1 }
 0x66c   :  { %v5363_v58 = vpop.f32.mrf.mxu0  ;;  %v3822_v42 = vld [vmem:[#allocation2 + $0x318] sm:$0xff] }
 0x66d   :  { %14299 = vst [vmem:[#allocation30_spill] sm:$0xff] %v11919_v19  ;;  %v4991_v5 = vpop.f32.mrf.mxu1  ;;  %5230 = vmatmul.mubr.f32.gmra.mxu1 %v3885_v28  ;;  %v11927_v58 = vld [vmem:[#allocation2 + $0x322] sm:$0xff] }
 0x66e   :  { %v4992_v25 = vadd.f32 %v4991_v5, %v11732_v33  ;;  %v5366_v13 = vpop.f32.mrf.mxu0  ;;  %5605 = vmatmul.mubr.f32.gmra.mxu0 %v3821_v40  ;;  %5234 = vmatprep.mubr.f32.mxu1 %v11921_v18  ;;  %v3887_v33 = vld [vmem:[#allocation2 + $0x321] sm:$0xff] }
 0x66f   :  { %v11925_v24 = vadd.f32 %v5366_v13, %v4982_v37  ;;  %5609 = vmatprep.mubr.f32.mxu0 %v3886_v3  ;;  %v4993_v12 = vpop.f32.mrf.mxu1 }
 0x670   :  { %v5368_v47 = vpop.f32.mrf.mxu0  ;;  %v3823_v12 = vld [vmem:[#allocation2 + $0x320] sm:$0xff] }
 0x671   :  { %14300 = vst [vmem:[#allocation31_spill] sm:$0xff] %v11925_v24  ;;  %v4996_v30 = vpop.f32.mrf.mxu1  ;;  %5235 = vmatmul.mubr.f32.gmra.mxu1 %v3886_v3  ;;  %v11933_v47 = vld [vmem:[#allocation2 + $0x332] sm:$0xff] }
 0x672   :  { %v4997_v28 = vadd.f32 %v4996_v30, %v11734_v39  ;;  %v5371_v19 = vpop.f32.mrf.mxu0  ;;  %5610 = vmatmul.mubr.f32.gmra.mxu0 %v3822_v42  ;;  %5239 = vmatprep.mubr.f32.mxu1 %v11927_v58  ;;  %v3888_v39 = vld [vmem:[#allocation2 + $0x331] sm:$0xff] }
 0x673   :  { %v11931_v5 = vadd.f32 %v5371_v19, %v4987_v9  ;;  %5614 = vmatprep.mubr.f32.mxu0 %v3887_v33  ;;  %v4998_v37 = vpop.f32.mrf.mxu1 }
 0x674   :  { %v5373_v13 = vpop.f32.mrf.mxu0  ;;  %v3824_v37 = vld [vmem:[#allocation2 + $0x330] sm:$0xff] }
 0x675   :  { %14301 = vst [vmem:[#allocation32_spill] sm:$0xff] %v11931_v5  ;;  %v5001_v40 = vpop.f32.mrf.mxu1  ;;  %5240 = vmatmul.mubr.f32.gmra.mxu1 %v3887_v33  ;;  %v11939_v13 = vld [vmem:[#allocation2 + $0x33a] sm:$0xff] }
 0x676   :  { %v5002_v3 = vadd.f32 %v5001_v40, %v11736_v7  ;;  %v5376_v24 = vpop.f32.mrf.mxu0  ;;  %5615 = vmatmul.mubr.f32.gmra.mxu0 %v3823_v12  ;;  %5244 = vmatprep.mubr.f32.mxu1 %v11933_v47  ;;  %v3889_v7 = vld [vmem:[#allocation2 + $0x339] sm:$0xff]  ;;  %v3890_v12 = vld [vmem:[#allocation2 + $0x349] sm:$0xff] }
 0x677   :  { %v11937_v30 = vadd.f32 %v5376_v24, %v4992_v25  ;;  %5619 = vmatprep.mubr.f32.mxu0 %v3888_v39  ;;  %v5003_v9 = vpop.f32.mrf.mxu1 }
 0x678   :  { %v5378_v19 = vpop.f32.mrf.mxu0 }
 0x679   :  { %14302 = vst [vmem:[#allocation44_spill] sm:$0xff] %v11937_v30  ;;  %v5006_v42 = vpop.f32.mrf.mxu1  ;;  %5245 = vmatmul.mubr.f32.gmra.mxu1 %v3888_v39  ;;  %v3825_v19 = vld [vmem:[#allocation2 + $0x338] sm:$0xff] }
 0x67a   :  { %v5007_v33 = vadd.f32 %v5006_v42, %v11738_v21  ;;  %v5381_v5 = vpop.f32.mrf.mxu0  ;;  %5620 = vmatmul.mubr.f32.gmra.mxu0 %v3824_v37  ;;  %5249 = vmatprep.mubr.f32.mxu1 %v11939_v13  ;;  %v3892_v39 = vld [vmem:[#allocation2 + $0x32] sm:$0xff]  ;;  %v3826_v37 = vld [vmem:[#allocation2 + $0x348] sm:$0xff] }
 0x67b   :  { %v11943_v40 = vadd.f32 %v5381_v5, %v4997_v28  ;;  %5624 = vmatprep.mubr.f32.mxu0 %v3889_v7  ;;  %v5008_v25 = vpop.f32.mrf.mxu1  ;;  %v3893_v5 = vld [vmem:[#allocation2 + $0x3a] sm:$0xff] }
 0x67c   :  { %v5383_v24 = vpop.f32.mrf.mxu0 }
 0x67d   :  { %14303 = vst [vmem:[#allocation45_spill] sm:$0xff] %v11943_v40  ;;  %v5011_v9 = vpop.f32.mrf.mxu1  ;;  %5250 = vmatmul.mubr.f32.gmra.mxu1 %v3889_v7  ;;  %v3891_v40 = vld [vmem:[#allocation2 + $0x351] sm:$0xff] }
 0x67e   :  { %v5012_v30 = vadd.f32 %v5011_v9, %v11741_v10  ;;  %v5386_v46 = vpop.f32.mrf.mxu0  ;;  %5625 = vmatmul.mubr.f32.gmra.mxu0 %v3825_v19  ;;  %7418 = vmatprep.mubr.f32.mxu1 %v3892_v39  ;;  %v3894_v24 = vld [vmem:[#allocation2 + $0x4a] sm:$0xff] }
 0x67f   :  { %v11946_v21 = vadd.f32 %v5386_v46, %v5002_v3  ;;  %v5013_v42 = vpop.f32.mrf.mxu1  ;;  %5629 = vmatprep.mubr.f32.mxu0 %v3890_v12  ;;  %v3895_v3 = vld [vmem:[#allocation2 + $0x52] sm:$0xff]  ;;  %v3896_v12 = vld [vmem:[#allocation2 + $0x62] sm:$0xff] }
 0x680   :  { %v5388_v28 = vpop.f32.mrf.mxu0 }
 0x681   :  { %v5016_v25 = vpop.f32.mrf.mxu1  ;;  %7419 = vmatmul.mubr.f32.vlgmr.msra.gmra.mxu1 %v3893_v5  ;;  %v3897_v5 = vld [vmem:[#allocation2 + $0x6a] sm:$0xff] }
 0x682   :  { %v5017_v7 = vadd.f32 %v5016_v25, %v11743_v62  ;;  %v5391_v38 = vpop.f32.mrf.mxu0  ;;  %5630 = vmatmul.mubr.f32.gmra.mxu0 %v3826_v37  ;;  %7421 = vmatprep.mubr.f32.mxu1 %v3894_v24 }
 0x683   :  { %v11949_v10 = vadd.f32 %v5391_v38, %v5007_v33  ;;  %v5018_v9 = vpop.f32.mrf.mxu1  ;;  %5634 = vmatprep.mubr.f32.mxu0 %v3891_v40  ;;  %v3898_v33 = vld [vmem:[#allocation2 + $0x7a] sm:$0xff] }
 0x684   :  { %v5393_v46 = vpop.f32.mrf.mxu0 }
 0x685   :  { %v5021_v19 = vpop.f32.mrf.mxu1  ;;  %7422 = vmatmul.mubr.f32.gmra.mxu1 %v3895_v3  ;;  %v3899_v46 = vld [vmem:[#allocation2 + $0x82] sm:$0xff] }
 0x686   :  { %v5022_v39 = vadd.f32 %v5021_v19, %v11745_v22  ;;  %v5396_v42 = vpop.f32.mrf.mxu0  ;;  %5635 = vmatmul.mubr.f32.gmra.mxu0 %v11805_v48  ;;  %7424 = vmatprep.mubr.f32.mxu1 %v3896_v12  ;;  %v3900_v48 = vld [vmem:[#allocation2 + $0x92] sm:$0xff] }
 0x687   :  { %v11953_v28 = vadd.f32 %v5396_v42, %v5012_v30  ;;  %v5023_v62 = vpop.f32.mrf.mxu1 }
 0x688   :  { %v5398_v37 = vpop.f32.mrf.mxu0 }
 0x689   :  { %v5026_v38 = vpop.f32.mrf.mxu1  ;;  %7425 = vmatmul.mubr.f32.gmra.mxu1 %v3897_v5  ;;  %v3901_v37 = vld [vmem:[#allocation2 + $0x9a] sm:$0xff]  ;;  %v3902_v5 = vld [vmem:[#allocation2 + $0xaa] sm:$0xff] }
 0x68a   :  { %v5027_v40 = vadd.f32 %v5026_v38, %v11747_v0  ;;  %v5401_v25 = vpop.f32.mrf.mxu0  ;;  %7427 = vmatprep.mubr.f32.mxu1 %v3898_v33 }
 0x68b   :  { %v11956_v24 = vadd.f32 %v5401_v25, %v5017_v7  ;;  %v5028_v9 = vpop.f32.mrf.mxu1 }
 0x68c   :  { %v5403_v22 = vpop.f32.mrf.mxu0 }
 0x68d   :  { %v5031_v3 = vpop.f32.mrf.mxu1  ;;  %7428 = vmatmul.mubr.f32.gmra.mxu1 %v3899_v46  ;;  %v3903_v22 = vld [vmem:[#allocation2 + $0xb2] sm:$0xff]  ;;  %v3904_v46 = vld [vmem:[#allocation2 + $0xc2] sm:$0xff] }
 0x68e   :  { %v5032_v30 = vadd.f32 %v5031_v3, %v11749_v54  ;;  %v5406_v19 = vpop.f32.mrf.mxu0  ;;  %7430 = vmatprep.mubr.f32.mxu1 %v3900_v48 }
 0x68f   :  { %v11959_v12 = vadd.f32 %v5406_v19, %v5022_v39  ;;  %v5033_v42 = vpop.f32.mrf.mxu1 }
 0x690   :  { %v5408_v62 = vpop.f32.mrf.mxu0 }
 0x691   :  { %v5036_v0 = vpop.f32.mrf.mxu1  ;;  %7431 = vmatmul.mubr.f32.gmra.mxu1 %v3901_v37  ;;  %v3905_v62 = vld [vmem:[#allocation2 + $0xca] sm:$0xff]  ;;  %v3906_v37 = vld [vmem:[#allocation2 + $0xda] sm:$0xff] }
 0x692   :  { %v5037_v7 = vadd.f32 %v5036_v0, %v11751_v4  ;;  %v5411_v38 = vpop.f32.mrf.mxu0  ;;  %7433 = vmatprep.mubr.f32.mxu1 %v3902_v5 }
 0x693   :  { %v11962_v33 = vadd.f32 %v5411_v38, %v5027_v40  ;;  %v5038_v25 = vpop.f32.mrf.mxu1 }
 0x694   :  { %v5413_v9 = vpop.f32.mrf.mxu0 }
 0x695   :  { %v5041_v54 = vpop.f32.mrf.mxu1  ;;  %7434 = vmatmul.mubr.f32.gmra.mxu1 %v3903_v22  ;;  %v3907_v9 = vld [vmem:[#allocation2 + $0xe2] sm:$0xff]  ;;  %v3908_v22 = vld [vmem:[#allocation2 + $0xf2] sm:$0xff] }
 0x696   :  { %v5042_v39 = vadd.f32 %v5041_v54, %v11753_v17  ;;  %v5416_v3 = vpop.f32.mrf.mxu0  ;;  %7436 = vmatprep.mubr.f32.mxu1 %v3904_v46 }
 0x697   :  { %v11965_v48 = vadd.f32 %v5416_v3, %v5032_v30  ;;  %v5043_v19 = vpop.f32.mrf.mxu1 }
 0x698   :  { %v5418_v42 = vpop.f32.mrf.mxu0 }
 0x699   :  { %v5046_v4 = vpop.f32.mrf.mxu1  ;;  %7437 = vmatmul.mubr.f32.gmra.mxu1 %v3905_v62  ;;  %v3909_v42 = vld [vmem:[#allocation2 + $0xfa] sm:$0xff]  ;;  %v3910_v62 = vld [vmem:[#allocation2 + $0x10a] sm:$0xff] }
 0x69a   :  { %v5047_v40 = vadd.f32 %v5046_v4, %v11755_v43  ;;  %v5421_v0 = vpop.f32.mrf.mxu0  ;;  %7439 = vmatprep.mubr.f32.mxu1 %v3906_v37 }
 0x69b   :  { %v11968_v5 = vadd.f32 %v5421_v0, %v5037_v7  ;;  %v5048_v38 = vpop.f32.mrf.mxu1 }
 0x69c   :  { %v5423_v25 = vpop.f32.mrf.mxu0 }
 0x69d   :  { %v5051_v17 = vpop.f32.mrf.mxu1  ;;  %7440 = vmatmul.mubr.f32.gmra.mxu1 %v3907_v9  ;;  %v3911_v25 = vld [vmem:[#allocation2 + $0x112] sm:$0xff]  ;;  %v3912_v9 = vld [vmem:[#allocation2 + $0x122] sm:$0xff] }
 0x69e   :  { %v5052_v30 = vadd.f32 %v5051_v17, %v11757_v61  ;;  %v5426_v54 = vpop.f32.mrf.mxu0  ;;  %7442 = vmatprep.mubr.f32.mxu1 %v3908_v22 }
 0x69f   :  { %v11971_v46 = vadd.f32 %v5426_v54, %v5042_v39  ;;  %v5053_v3 = vpop.f32.mrf.mxu1 }
 0x6a0   :  { %v5428_v19 = vpop.f32.mrf.mxu0 }
 0x6a1   :  { %v5056_v43 = vpop.f32.mrf.mxu1  ;;  %7443 = vmatmul.mubr.f32.gmra.mxu1 %v3909_v42  ;;  %v3913_v19 = vld [vmem:[#allocation2 + $0x12a] sm:$0xff]  ;;  %v3914_v42 = vld [vmem:[#allocation2 + $0x13a] sm:$0xff] }
 0x6a2   :  { %v5057_v7 = vadd.f32 %v5056_v43, %v11759_v41  ;;  %v5431_v4 = vpop.f32.mrf.mxu0  ;;  %7445 = vmatprep.mubr.f32.mxu1 %v3910_v62 }
 0x6a3   :  { %v11974_v37 = vadd.f32 %v5431_v4, %v5047_v40  ;;  %v5058_v0 = vpop.f32.mrf.mxu1 }
 0x6a4   :  { %v5433_v38 = vpop.f32.mrf.mxu0 }
 0x6a5   :  { %v5061_v61 = vpop.f32.mrf.mxu1  ;;  %7446 = vmatmul.mubr.f32.gmra.mxu1 %v3911_v25  ;;  %v3915_v38 = vld [vmem:[#allocation2 + $0x142] sm:$0xff]  ;;  %v3916_v25 = vld [vmem:[#allocation2 + $0x152] sm:$0xff] }
 0x6a6   :  { %v5062_v39 = vadd.f32 %v5061_v61, %v11761_v36  ;;  %v5436_v17 = vpop.f32.mrf.mxu0  ;;  %7448 = vmatprep.mubr.f32.mxu1 %v3912_v9 }
 0x6a7   :  { %v11977_v22 = vadd.f32 %v5436_v17, %v5052_v30  ;;  %v5063_v54 = vpop.f32.mrf.mxu1 }
 0x6a8   :  { %v5438_v3 = vpop.f32.mrf.mxu0 }
 0x6a9   :  { %v5066_v41 = vpop.f32.mrf.mxu1  ;;  %7449 = vmatmul.mubr.f32.gmra.mxu1 %v3913_v19  ;;  %v3917_v3 = vld [vmem:[#allocation2 + $0x15a] sm:$0xff]  ;;  %v3918_v19 = vld [vmem:[#allocation2 + $0x16a] sm:$0xff] }
 0x6aa   :  { %v5067_v40 = vadd.f32 %v5066_v41, %v11763_v20  ;;  %v5441_v43 = vpop.f32.mrf.mxu0  ;;  %7451 = vmatprep.mubr.f32.mxu1 %v3914_v42 }
 0x6ab   :  { %v11980_v62 = vadd.f32 %v5441_v43, %v5057_v7  ;;  %v5068_v4 = vpop.f32.mrf.mxu1 }
 0x6ac   :  { %v5443_v0 = vpop.f32.mrf.mxu0 }
 0x6ad   :  { %v5071_v36 = vpop.f32.mrf.mxu1  ;;  %7452 = vmatmul.mubr.f32.gmra.mxu1 %v3915_v38  ;;  %v3919_v0 = vld [vmem:[#allocation2 + $0x172] sm:$0xff]  ;;  %v3920_v38 = vld [vmem:[#allocation2 + $0x182] sm:$0xff] }
 0x6ae   :  { %v5072_v30 = vadd.f32 %v5071_v36, %v11765_v52  ;;  %v5446_v61 = vpop.f32.mrf.mxu0  ;;  %7454 = vmatprep.mubr.f32.mxu1 %v3916_v25 }
 0x6af   :  { %v11983_v9 = vadd.f32 %v5446_v61, %v5062_v39  ;;  %v5073_v17 = vpop.f32.mrf.mxu1 }
 0x6b0   :  { %v5448_v54 = vpop.f32.mrf.mxu0  ;;  %v3922_v17 = vld [vmem:[#allocation2 + $0x19a] sm:$0xff] }
 0x6b1   :  { %v5076_v20 = vpop.f32.mrf.mxu1  ;;  %7455 = vmatmul.mubr.f32.gmra.mxu1 %v3917_v3 }
 0x6b2   :  { %v5077_v7 = vadd.f32 %v5076_v20, %v11767_v31  ;;  %v5451_v41 = vpop.f32.mrf.mxu0  ;;  %7457 = vmatprep.mubr.f32.mxu1 %v3918_v19  ;;  %v3921_v31 = vld [vmem:[#allocation2 + $0x18a] sm:$0xff]  ;;  %v3923_v19 = vld [vmem:[#allocation2 + $0x1a2] sm:$0xff] }
 0x6b3   :  { %v11986_v42 = vadd.f32 %v5451_v41, %v5067_v40  ;;  %v5078_v43 = vpop.f32.mrf.mxu1 }
 0x6b4   :  { %v5453_v4 = vpop.f32.mrf.mxu0 }
 0x6b5   :  { %v5081_v52 = vpop.f32.mrf.mxu1  ;;  %7458 = vmatmul.mubr.f32.gmra.mxu1 %v3919_v0  ;;  %v3924_v0 = vld [vmem:[#allocation2 + $0x1e2] sm:$0xff] }
 0x6b6   :  { %v5082_v39 = vadd.f32 %v5081_v52, %v11769_v50  ;;  %v5456_v36 = vpop.f32.mrf.mxu0  ;;  %7460 = vmatprep.mubr.f32.mxu1 %v3920_v38 }
 0x6b7   :  { %v11989_v25 = vadd.f32 %v5456_v36, %v5072_v30  ;;  %v5083_v61 = vpop.f32.mrf.mxu1 }
 0x6b8   :  { %v5458_v54 = vpop.f32.mrf.mxu0 }
 0x6b9   :  { %v5086_v3 = vpop.f32.mrf.mxu1  ;;  %7461 = vmatmul.mubr.f32.gmra.mxu1 %v3921_v31  ;;  %v3925_v54 = vld [vmem:[#allocation2 + $0x1ea] sm:$0xff] }
 0x6ba   :  { %v5087_v40 = vadd.f32 %v5086_v3, %v11771_v23  ;;  %v5461_v20 = vpop.f32.mrf.mxu0  ;;  %7463 = vmatprep.mubr.f32.mxu1 %v3922_v17  ;;  %v3926_v17 = vld [vmem:[#allocation2 + $0x1fa] sm:$0xff] }
 0x6bb   :  { %v11992_v41 = vadd.f32 %v5461_v20, %v5077_v7  ;;  %v5088_v43 = vpop.f32.mrf.mxu1 }
 0x6bc   :  { %v5463_v4 = vpop.f32.mrf.mxu0  ;;  %v3927_v43 = vld [vmem:[#allocation2 + $0x202] sm:$0xff] }
 0x6bd   :  { %v5091_v50 = vpop.f32.mrf.mxu1  ;;  %7464 = vmatmul.mubr.f32.gmra.mxu1 %v3923_v19  ;;  %v3928_v4 = vld [vmem:[#allocation2 + $0x212] sm:$0xff] }
 0x6be   :  { %v5092_v30 = vadd.f32 %v5091_v50, %v11773_v11  ;;  %v5466_v52 = vpop.f32.mrf.mxu0  ;;  %7466 = vmatprep.mubr.f32.mxu1 %v3924_v0 }
 0x6bf   :  { %v11995_v38 = vadd.f32 %v5466_v52, %v5082_v39  ;;  %v5093_v36 = vpop.f32.mrf.mxu1 }
 0x6c0   :  { %v5468_v61 = vpop.f32.mrf.mxu0 }
 0x6c1   :  { %v5096_v23 = vpop.f32.mrf.mxu1  ;;  %7467 = vmatmul.mubr.f32.gmra.mxu1 %v3925_v54  ;;  %v3929_v61 = vld [vmem:[#allocation2 + $0x21a] sm:$0xff]  ;;  %v3930_v54 = vld [vmem:[#allocation2 + $0x22a] sm:$0xff] }
 0x6c2   :  { %v5097_v7 = vadd.f32 %v5096_v23, %v11775_v59  ;;  %v5471_v31 = vpop.f32.mrf.mxu0  ;;  %7469 = vmatprep.mubr.f32.mxu1 %v3926_v17 }
 0x6c3   :  { %v11998_v3 = vadd.f32 %v5471_v31, %v5087_v40  ;;  %v5098_v20 = vpop.f32.mrf.mxu1 }
 0x6c4   :  { %v5473_v19 = vpop.f32.mrf.mxu0 }
 0x6c5   :  { %v5101_v11 = vpop.f32.mrf.mxu1  ;;  %7470 = vmatmul.mubr.f32.gmra.mxu1 %v3927_v43  ;;  %v3931_v19 = vld [vmem:[#allocation2 + $0x232] sm:$0xff]  ;;  %v3932_v43 = vld [vmem:[#allocation2 + $0x242] sm:$0xff] }
 0x6c6   :  { %v5102_v39 = vadd.f32 %v5101_v11, %v11777_v15  ;;  %v5476_v50 = vpop.f32.mrf.mxu0  ;;  %7472 = vmatprep.mubr.f32.mxu1 %v3928_v4 }
 0x6c7   :  { %v12001_v0 = vadd.f32 %v5476_v50, %v5092_v30  ;;  %v5103_v52 = vpop.f32.mrf.mxu1 }
 0x6c8   :  { %v5478_v36 = vpop.f32.mrf.mxu0 }
 0x6c9   :  { %v5106_v59 = vpop.f32.mrf.mxu1  ;;  %7473 = vmatmul.mubr.f32.gmra.mxu1 %v3929_v61  ;;  %v3933_v36 = vld [vmem:[#allocation2 + $0x24a] sm:$0xff] }
 0x6ca   :  { %v5107_v40 = vadd.f32 %v5106_v59, %v11779_v49  ;;  %v5481_v23 = vpop.f32.mrf.mxu0  ;;  %7475 = vmatprep.mubr.f32.mxu1 %v3930_v54 }
 0x6cb   :  { %v12004_v17 = vadd.f32 %v5481_v23, %v5097_v7  ;;  %v5108_v31 = vpop.f32.mrf.mxu1 }
 0x6cc   :  { %v5483_v20 = vpop.f32.mrf.mxu0 }
 0x6cd   :  { %v5111_v15 = vpop.f32.mrf.mxu1  ;;  %7476 = vmatmul.mubr.f32.gmra.mxu1 %v3931_v19 }
 0x6ce   :  { %v5112_v30 = vadd.f32 %v5111_v15, %v11781_v27  ;;  %v5486_v11 = vpop.f32.mrf.mxu0  ;;  %7478 = vmatprep.mubr.f32.mxu1 %v3932_v43 }
 0x6cf   :  { %v12007_v4 = vadd.f32 %v5486_v11, %v5102_v39  ;;  %v5113_v50 = vpop.f32.mrf.mxu1 }
 0x6d0   :  { %v5488_v52 = vpop.f32.mrf.mxu0 }
 0x6d1   :  { %v5116_v49 = vpop.f32.mrf.mxu1  ;;  %7479 = vmatmul.mubr.f32.gmra.mxu1 %v3933_v36 }
 0x6d2   :  { %v5117_v7 = vadd.f32 %v5116_v49, %v11783_v57  ;;  %v5491_v61 = vpop.f32.mrf.mxu0  ;;  %7481 = vmatprep.mubr.f32.mxu1 %v11828_v56 }
 0x6d3   :  { %v12011_v59 = vadd.f32 %v5491_v61, %v5107_v40  ;;  %v5118_v54 = vpop.f32.mrf.mxu1 }
 0x6d4   :  { %v5493_v23 = vpop.f32.mrf.mxu0 }
 0x6d5   :  { %v5121_v31 = vpop.f32.mrf.mxu1  ;;  %7482 = vmatmul.mubr.f32.gmra.mxu1 %v11833_v29 }
 0x6d6   :  { %v5122_v27 = vadd.f32 %v5121_v31, %v11785_v32  ;;  %v5496_v39 = vpop.f32.mrf.mxu0  ;;  %7484 = vmatprep.mubr.f32.mxu1 %v11838_v16 }
 0x6d7   :  { %v12016_v20 = vadd.f32 %v5496_v39, %v5112_v30  ;;  %v5123_v19 = vpop.f32.mrf.mxu1 }
 0x6d8   :  { %v5498_v15 = vpop.f32.mrf.mxu0 }
 0x6d9   :  { %v5126_v57 = vpop.f32.mrf.mxu1  ;;  %7485 = vmatmul.mubr.f32.gmra.mxu1 %v11843_v34 }
 0x6da   :  { %v5127_v56 = vadd.f32 %v5126_v57, %v11787_v2  ;;  %v5501_v40 = vpop.f32.mrf.mxu0  ;;  %7487 = vmatprep.mubr.f32.mxu1 %v11848_v53  ;;  %v14304_v53 = vld [vmem:[#allocation11_spill] sm:$0xff] }
 0x6db   :  { %v12021_v43 = vadd.f32 %v5501_v40, %v5117_v7  ;;  %v5128_v29 = vpop.f32.mrf.mxu1 }
 0x6dc   :  { %v5503_v11 = vpop.f32.mrf.mxu0 }
 0x6dd   :  { %v5131_v32 = vpop.f32.mrf.mxu1  ;;  %7488 = vmatmul.mubr.f32.gmra.mxu1 %v11855_v55 }
 0x6de   :  { %v5132_v16 = vadd.f32 %v5131_v32, %v11789_v26  ;;  %v5506_v30 = vpop.f32.mrf.mxu0  ;;  %7490 = vmatprep.mubr.f32.mxu1 %v11862_v51  ;;  %v14305_v51 = vld [vmem:[#allocation12_spill] sm:$0xff] }
 0x6df   :  { %v12026_v50 = vadd.f32 %v5506_v30, %v5122_v27  ;;  %v5133_v34 = vpop.f32.mrf.mxu1 }
 0x6e0   :  { %v5508_v52 = vpop.f32.mrf.mxu0 }
 0x6e1   :  { %v5136_v2 = vpop.f32.mrf.mxu1  ;;  %7491 = vmatmul.mubr.f32.gmra.mxu1 %v11867_v60 }
 0x6e2   :  { %v5137_v36 = vadd.f32 %v5136_v2, %v14304_v53  ;;  %v5511_v49 = vpop.f32.mrf.mxu0  ;;  %7493 = vmatprep.mubr.f32.mxu1 %v11873_v6  ;;  %v14306_v6 = vld [vmem:[#allocation13_spill] sm:$0xff] }
 0x6e3   :  { %v12031_v7 = vadd.f32 %v5511_v49, %v5127_v56  ;;  %v5138_v55 = vpop.f32.mrf.mxu1 }
 0x6e4   :  { %v5513_v61 = vpop.f32.mrf.mxu0 }
 0x6e5   :  { %v5141_v26 = vpop.f32.mrf.mxu1  ;;  %7494 = vmatmul.mubr.f32.gmra.mxu1 %v11879_v63 }
 0x6e6   :  { %v5142_v54 = vadd.f32 %v5141_v26, %v14305_v51  ;;  %v5516_v23 = vpop.f32.mrf.mxu0  ;;  %7496 = vmatprep.mubr.f32.mxu1 %v11885_v1  ;;  %v14307_v1 = vld [vmem:[#allocation14_spill] sm:$0xff] }
 0x6e7   :  { %v12036_v31 = vadd.f32 %v5516_v23, %v5132_v16  ;;  %v5143_v60 = vpop.f32.mrf.mxu1  ;;  %v3954_v26 = vld [vmem:[#allocation2 + $0x34a] sm:$0xff] }
 0x6e8   :  { %v5518_v27 = vpop.f32.mrf.mxu0 }
 0x6e9   :  { %v5146_v39 = vpop.f32.mrf.mxu1  ;;  %7497 = vmatmul.mubr.f32.gmra.mxu1 %v11891_v45  ;;  %v3955_v27 = vld [vmem:[#allocation2 + $0x352] sm:$0xff] }
 0x6ea   :  { %v5147_v19 = vadd.f32 %v5146_v39, %v14306_v6  ;;  %v5521_v15 = vpop.f32.mrf.mxu0  ;;  %7499 = vmatprep.mubr.f32.mxu1 %v11897_v8  ;;  %v14308_v8 = vld [vmem:[#allocation33_spill] sm:$0xff] }
 0x6eb   :  { %v12041_v57 = vadd.f32 %v5521_v15, %v5137_v36  ;;  %v5148_v63 = vpop.f32.mrf.mxu1 }
 0x6ec   :  { %v5523_v56 = vpop.f32.mrf.mxu0 }
 0x6ed   :  { %v5151_v40 = vpop.f32.mrf.mxu1  ;;  %7500 = vmatmul.mubr.f32.gmra.mxu1 %v11903_v14 }
 0x6ee   :  { %v5152_v29 = vadd.f32 %v5151_v40, %v14307_v1  ;;  %v5526_v11 = vpop.f32.mrf.mxu0  ;;  %7502 = vmatprep.mubr.f32.mxu1 %v11909_v44  ;;  %v14309_v44 = vld [vmem:[#allocation34_spill] sm:$0xff] }
 0x6ef   :  { %v12046_v32 = vadd.f32 %v5526_v11, %v5142_v54  ;;  %v5153_v45 = vpop.f32.mrf.mxu1 }
 0x6f0   :  { %v5528_v16 = vpop.f32.mrf.mxu0 }
 0x6f1   :  { %v5156_v30 = vpop.f32.mrf.mxu1  ;;  %7503 = vmatmul.mubr.f32.gmra.mxu1 %v11915_v35 }
 0x6f2   :  { %v5157_v34 = vadd.f32 %v5156_v30, %v14308_v8  ;;  %v5531_v52 = vpop.f32.mrf.mxu0  ;;  %7505 = vmatprep.mubr.f32.mxu1 %v11921_v18  ;;  %v14310_v18 = vld [vmem:[#allocation35_spill] sm:$0xff] }
 0x6f3   :  { %v12051_v2 = vadd.f32 %v5531_v52, %v5147_v19  ;;  %v5158_v14 = vpop.f32.mrf.mxu1  ;;  %v14313_v52 = vld [vmem:[#allocation18_spill] sm:$0xff] }
 0x6f4   :  { %v5533_v53 = vpop.f32.mrf.mxu0 }
 0x6f5   :  { %v5161_v36 = vpop.f32.mrf.mxu1  ;;  %7506 = vmatmul.mubr.f32.gmra.mxu1 %v11927_v58 }
 0x6f6   :  { %v5162_v49 = vadd.f32 %v5161_v36, %v14309_v44  ;;  %v5536_v55 = vpop.f32.mrf.mxu0  ;;  %7508 = vmatprep.mubr.f32.mxu1 %v11933_v47  ;;  %v14311_v47 = vld [vmem:[#allocation16_spill] sm:$0xff] }
 0x6f7   :  { %v12056_v61 = vadd.f32 %v5536_v55, %v5152_v29  ;;  %v5163_v35 = vpop.f32.mrf.mxu1 }
 0x6f8   :  { %v5538_v51 = vpop.f32.mrf.mxu0  ;;  %v14314_v35 = vld [vmem:[#allocation19_spill] sm:$0xff] }
 0x6f9   :  { %v5166_v54 = vpop.f32.mrf.mxu1  ;;  %7509 = vmatmul.mubr.f32.gmra.mxu1 %v11939_v13  ;;  %v14312_v13 = vld [vmem:[#allocation17_spill] sm:$0xff] }
 0x6fa   :  { %v5167_v23 = vadd.f32 %v5166_v54, %v14310_v18  ;;  %v5541_v60 = vpop.f32.mrf.mxu0  ;;  %7511 = vmatprep.mubr.f32.mxu1 %v3954_v26 }
 0x6fb   :  { %v12060_v39 = vadd.f32 %v5541_v60, %v5157_v34  ;;  %v5168_v58 = vpop.f32.mrf.mxu1 }
 0x6fc   :  { %v5543_v6 = vpop.f32.mrf.mxu0 }
 0x6fd   :  { %v5171_v19 = vpop.f32.mrf.mxu1  ;;  %7512 = vmatmul.mubr.f32.gmra.mxu1 %v3955_v27  ;;  %v14315_v27 = vld [vmem:[#allocation20_spill] sm:$0xff] }
 0x6fe   :  { %v5172_v15 = vadd.f32 %v5171_v19, %v14311_v47  ;;  %v5546_v63 = vpop.f32.mrf.mxu0 }
 0x6ff   :  { %v12063_v56 = vadd.f32 %v5546_v63, %v5162_v49  ;;  %v5173_v40 = vpop.f32.mrf.mxu1 }
 0x700   :  { %v5548_v1 = vpop.f32.mrf.mxu0  ;;  %v14316_v40 = vld [vmem:[#allocation21_spill] sm:$0xff] }
 0x701   :  { %v5176_v29 = vpop.f32.mrf.mxu1 }
 0x702   :  { %v5177_v11 = vadd.f32 %v5176_v29, %v14312_v13  ;;  %v5551_v45 = vpop.f32.mrf.mxu0 }
 0x703   :  { %v12066_v16 = vadd.f32 %v5551_v45, %v5167_v23  ;;  %v5178_v30 = vpop.f32.mrf.mxu1 }
 0x704   :  { %v5553_v8 = vpop.f32.mrf.mxu0 }
 0x705   :  { %v5181_v34 = vpop.f32.mrf.mxu1  ;;  %v14317_v8 = vld [vmem:[#allocation9_spill] sm:$0xff] }
 0x706   :  { %v5182_v14 = vadd.f32 %v5181_v34, %v14313_v52  ;;  %v5556_v53 = vpop.f32.mrf.mxu0 }
 0x707   :  { %v12069_v36 = vadd.f32 %v5556_v53, %v5172_v15  ;;  %v5183_v44 = vpop.f32.mrf.mxu1 }
 0x708   :  { %v5558_v55 = vpop.f32.mrf.mxu0 }
 0x709   :  { %v5186_v49 = vpop.f32.mrf.mxu1 }
 0x70a   :  { %v5187_v26 = vadd.f32 %v5186_v49, %v14314_v35  ;;  %v5561_v51 = vpop.f32.mrf.mxu0  ;;  %v14318_v49 = vld [vmem:[#allocation15_spill] sm:$0xff] }
 0x70b   :  { %v12072_v54 = vadd.f32 %v5561_v51, %v5177_v11  ;;  %v5188_v18 = vpop.f32.mrf.mxu1 }
 0x70c   :  { %v5563_v60 = vpop.f32.mrf.mxu0 }
 0x70d   :  { %v5191_v23 = vpop.f32.mrf.mxu1 }
 0x70e   :  { %v5192_v58 = vadd.f32 %v5191_v23, %v14315_v27  ;;  %v5566_v6 = vpop.f32.mrf.mxu0  ;;  %v14319_v27 = vld [vmem:[#allocation22_spill] sm:$0xff] }
 0x70f   :  { %v12075_v19 = vadd.f32 %v5566_v6, %v5182_v14  ;;  %v5193_v47 = vpop.f32.mrf.mxu1 }
 0x710   :  { %v5568_v63 = vpop.f32.mrf.mxu0 }
 0x711   :  { %v5196_v15 = vpop.f32.mrf.mxu1 }
 0x712   :  { %v5197_v1 = vadd.f32 %v5196_v15, %v14316_v40  ;;  %v5571_v29 = vpop.f32.mrf.mxu0 }
 0x713   :  { %v12078_v13 = vadd.f32 %v5571_v29, %v5187_v26  ;;  %v5198_v45 = vpop.f32.mrf.mxu1  ;;  %v14320_v29 = vld [vmem:[#allocation23_spill] sm:$0xff] }
 0x714   :  { %v5573_v30 = vpop.f32.mrf.mxu0 }
 0x715   :  { %v5201_v11 = vpop.f32.mrf.mxu1 }
 0x716   :  { %v5202_v34 = vadd.f32 %v5201_v11, %v14317_v8  ;;  %v5576_v52 = vpop.f32.mrf.mxu0 }
 0x717   :  { %v12081_v53 = vadd.f32 %v5576_v52, %v5192_v58  ;;  %v5203_v44 = vpop.f32.mrf.mxu1 }
 0x718   :  { %v5578_v55 = vpop.f32.mrf.mxu0  ;;  %v14321_v44 = vld [vmem:[#allocation24_spill] sm:$0xff] }
 0x719   :  { %v5206_v14 = vpop.f32.mrf.mxu1 }
 0x71a   :  { %v5207_v35 = vadd.f32 %v5206_v14, %v14318_v49  ;;  %v5581_v51 = vpop.f32.mrf.mxu0 }
 0x71b   :  { %v12084_v18 = vadd.f32 %v5581_v51, %v5197_v1  ;;  %v5208_v60 = vpop.f32.mrf.mxu1 }
 0x71c   :  { %v5583_v23 = vpop.f32.mrf.mxu0 }
 0x71d   :  { %v5211_v26 = vpop.f32.mrf.mxu1  ;;  %v14322_v23 = vld [vmem:[#allocation25_spill] sm:$0xff] }
 0x71e   :  { %v5212_v6 = vadd.f32 %v5211_v26, %v14319_v27  ;;  %v5586_v47 = vpop.f32.mrf.mxu0 }
 0x71f   :  { %v12087_v63 = vadd.f32 %v5586_v47, %v5202_v34  ;;  %v5213_v15 = vpop.f32.mrf.mxu1 }
 0x720   :  { %v5588_v40 = vpop.f32.mrf.mxu0 }
 0x721   :  { %v5216_v58 = vpop.f32.mrf.mxu1 }
 0x722   :  { %v5217_v45 = vadd.f32 %v5216_v58, %v14320_v29  ;;  %v5591_v30 = vpop.f32.mrf.mxu0  ;;  %v14324_v58 = vld [vmem:[#allocation26_spill] sm:$0xff] }
 0x723   :  { %v12090_v11 = vadd.f32 %v5591_v30, %v5207_v35  ;;  %v5218_v8 = vpop.f32.mrf.mxu1 }
 0x724   :  { %v5593_v52 = vpop.f32.mrf.mxu0 }
 0x725   :  { %v5221_v1 = vpop.f32.mrf.mxu1 }
 0x726   :  { %v5222_v55 = vadd.f32 %v5221_v1, %v14321_v44  ;;  %v5596_v14 = vpop.f32.mrf.mxu0  ;;  %v14326_v44 = vld [vmem:[#allocation27_spill] sm:$0xff] }
 0x727   :  { %v12093_v49 = vadd.f32 %v5596_v14, %v5212_v6  ;;  %v5223_v51 = vpop.f32.mrf.mxu1 }
 0x728   :  { %v5598_v60 = vpop.f32.mrf.mxu0 }
 0x729   :  { %v5226_v34 = vpop.f32.mrf.mxu1 }
 0x72a   :  { %v5227_v26 = vadd.f32 %v5226_v34, %v14322_v23  ;;  %v5601_v27 = vpop.f32.mrf.mxu0 }
 0x72b   :  { %v12096_v47 = vadd.f32 %v5601_v27, %v5217_v45  ;;  %v5228_v15 = vpop.f32.mrf.mxu1  ;;  %v14328_v27 = vld [vmem:[#allocation28_spill] sm:$0xff] }
 0x72c   :  { %v5603_v40 = vpop.f32.mrf.mxu0 }
 0x72d   :  { %14323 = vst [vmem:[#allocation11_spill] sm:$0xff] %v12096_v47  ;;  %v5231_v35 = vpop.f32.mrf.mxu1 }
 0x72e   :  { %v5232_v29 = vadd.f32 %v5231_v35, %v14324_v58  ;;  %v5606_v30 = vpop.f32.mrf.mxu0 }
 0x72f   :  { %v12099_v8 = vadd.f32 %v5606_v30, %v5222_v55  ;;  %v5233_v52 = vpop.f32.mrf.mxu1  ;;  %v14330_v30 = vld [vmem:[#allocation29_spill] sm:$0xff] }
 0x730   :  { %v5608_v1 = vpop.f32.mrf.mxu0 }
 0x731   :  { %14325 = vst [vmem:[#allocation12_spill] sm:$0xff] %v12099_v8  ;;  %v5236_v6 = vpop.f32.mrf.mxu1 }
 0x732   :  { %v5237_v14 = vadd.f32 %v5236_v6, %v14326_v44  ;;  %v5611_v51 = vpop.f32.mrf.mxu0 }
 0x733   :  { %v12102_v60 = vadd.f32 %v5611_v51, %v5227_v26  ;;  %v5238_v34 = vpop.f32.mrf.mxu1  ;;  %v14331_v51 = vld [vmem:[#allocation36_spill] sm:$0xff] }
 0x734   :  { %v5613_v23 = vpop.f32.mrf.mxu0 }
 0x735   :  { %14327 = vst [vmem:[#allocation13_spill] sm:$0xff] %v12102_v60  ;;  %v5241_v45 = vpop.f32.mrf.mxu1 }
 0x736   :  { %v5242_v15 = vadd.f32 %v5241_v45, %v14328_v27  ;;  %v5616_v40 = vpop.f32.mrf.mxu0 }
 0x737   :  { %v12105_v47 = vadd.f32 %v5616_v40, %v5232_v29  ;;  %v5243_v35 = vpop.f32.mrf.mxu1 }
 0x738   :  { %v5618_v58 = vpop.f32.mrf.mxu0 }
 0x739   :  { %14329 = vst [vmem:[#allocation14_spill] sm:$0xff] %v12105_v47  ;;  %v5246_v55 = vpop.f32.mrf.mxu1 }
 0x73a   :  { %v5247_v52 = vadd.f32 %v5246_v55, %v14330_v30  ;;  %v5621_v1 = vpop.f32.mrf.mxu0  ;;  %v14333_v55 = vld [vmem:[#allocation37_spill] sm:$0xff] }
 0x73b   :  { %v12108_v8 = vadd.f32 %v5621_v1, %v5237_v14  ;;  %v5248_v6 = vpop.f32.mrf.mxu1  ;;  %v14334_v1 = vld [vmem:[#allocation38_spill] sm:$0xff] }
 0x73c   :  { %v5623_v44 = vpop.f32.mrf.mxu0 }
 0x73d   :  { %v5251_v26 = vpop.f32.mrf.mxu1 }
 0x73e   :  { %v5252_v34 = vadd.f32 %v5251_v26, %v14331_v51  ;;  %v5626_v23 = vpop.f32.mrf.mxu0 }
 0x73f   :  { %v12111_v60 = vadd.f32 %v5626_v23, %v5242_v15  ;;  %v5253_v45 = vpop.f32.mrf.mxu1  ;;  %v14337_v23 = vld [vmem:[#allocation39_spill] sm:$0xff] }
 0x740   :  { %v5628_v27 = vpop.f32.mrf.mxu0 }
 0x741   :  { %v7420_v29 = vpop.f32.mrf.mxu1 }
 0x742   :  { %v5631_v40 = vpop.f32.mrf.mxu0  ;;  %v12119_v6 = vadd.f32 %v7420_v29, %v14334_v1  ;;  %v14341_v1 = vld [vmem:[#allocation41_spill] sm:$0xff] }
 0x743   :  { %v12113_v35 = vadd.f32 %v5631_v40, %v5247_v52  ;;  %v5706_v58 = vpop.f32.mrf.mxu1 }
 0x744   :  { %v5633_v47 = vpop.f32.mrf.mxu0  ;;  %v12116_v30 = vadd.f32 %v5706_v58, %v14333_v55  ;;  %14335 = vst [vmem:[#allocation34_spill] sm:$0xff] %v12119_v6 }
 0x745   :  { %14332 = vst [vmem:[#allocation33_spill] sm:$0xff] %v12113_v35  ;;  %v7423_v14 = vpop.f32.mrf.mxu1  ;;  %v14339_v47 = vld [vmem:[#allocation40_spill] sm:$0xff] }
 0x746   :  { %v5636_v44 = vpop.f32.mrf.mxu0  ;;  %v6025_v51 = vadd.f32 %v12119_v6, %v12116_v30  ;;  %v12129_v40 = vadd.f32 %v7423_v14, %v14339_v47 }
 0x747   :  { %v12121_v26 = vadd.f32 %v5636_v44, %v5252_v34  ;;  %v5716_v15 = vpop.f32.mrf.mxu1 }
 0x748   :  { %v12126_v45 = vadd.f32 %v5716_v15, %v14337_v23  ;;  %v5638_v52 = vpop.f32.mrf.mxu0  ;;  %14340 = vst [vmem:[#allocation17_spill] sm:$0xff] %v12129_v40 }
 0x749   :  { %14336 = vst [vmem:[#allocation35_spill] sm:$0xff] %v12121_v26  ;;  %v7426_v27 = vpop.f32.mrf.mxu1  ;;  %v14343_v26 = vld [vmem:[#allocation42_spill] sm:$0xff]  ;;  %v14345_v52 = vld [vmem:[#allocation43_spill] sm:$0xff] }
 0x74a   :  { %14338 = vst [vmem:[#allocation16_spill] sm:$0xff] %v12126_v45  ;;  %v6026_v58 = vadd.f32 %v6025_v51, %v12126_v45  ;;  %v12137_v35 = vadd.f32 %v7426_v27, %v14343_v26  ;;  %v14347_v51 = vld [vmem:[#allocation10_spill] sm:$0xff] }
 0x74b   :  { %v5726_v55 = vpop.f32.mrf.mxu1 }
 0x74c   :  { %v6027_v29 = vadd.f32 %v6026_v58, %v12129_v40  ;;  %v12134_v34 = vadd.f32 %v5726_v55, %v14341_v1  ;;  %14344 = vst [vmem:[#allocation19_spill] sm:$0xff] %v12137_v35  ;;  %v14349_v1 = vld [vmem:[#allocation30_spill] sm:$0xff] }
 0x74d   :  { %v7429_v44 = vpop.f32.mrf.mxu1 }
 0x74e   :  { %14342 = vst [vmem:[#allocation18_spill] sm:$0xff] %v12134_v34  ;;  %v6028_v15 = vadd.f32 %v6027_v29, %v12134_v34  ;;  %v12145_v45 = vadd.f32 %v7429_v44, %v14347_v51  ;;  %v14350_v29 = vld [vmem:[#allocation31_spill] sm:$0xff] }
 0x74f   :  { %v5736_v23 = vpop.f32.mrf.mxu1 }
 0x750   :  { %v12141_v6 = vadd.f32 %v5736_v23, %v14345_v52  ;;  %v6029_v14 = vadd.f32 %v6028_v15, %v12137_v35  ;;  %14348 = vst [vmem:[#allocation21_spill] sm:$0xff] %v12145_v45  ;;  %v14351_v15 = vld [vmem:[#allocation32_spill] sm:$0xff] }
 0x751   :  { %v7432_v47 = vpop.f32.mrf.mxu1 }
 0x752   :  { %14346 = vst [vmem:[#allocation20_spill] sm:$0xff] %v12141_v6  ;;  %v6030_v58 = vadd.f32 %v6029_v14, %v12141_v6  ;;  %v12153_v34 = vadd.f32 %v7432_v47, %v14350_v29  ;;  %v14352_v14 = vld [vmem:[#allocation44_spill] sm:$0xff] }
 0x753   :  { %v5746_v55 = vpop.f32.mrf.mxu1 }
 0x754   :  { %v12149_v40 = vadd.f32 %v5746_v55, %v14349_v1  ;;  %v6031_v26 = vadd.f32 %v6030_v58, %v12145_v45  ;;  %v14353_v58 = vld [vmem:[#allocation45_spill] sm:$0xff] }
 0x755   :  { %v7435_v27 = vpop.f32.mrf.mxu1 }
 0x756   :  { %v6032_v23 = vadd.f32 %v6031_v26, %v12149_v40  ;;  %v12161_v6 = vadd.f32 %v7435_v27, %v14352_v14 }
 0x757   :  { %v5756_v52 = vpop.f32.mrf.mxu1 }
 0x758   :  { %v12157_v35 = vadd.f32 %v5756_v52, %v14351_v15  ;;  %v6033_v44 = vadd.f32 %v6032_v23, %v12153_v34 }
 0x759   :  { %v7438_v51 = vpop.f32.mrf.mxu1 }
 0x75a   :  { %v6034_v55 = vadd.f32 %v6033_v44, %v12157_v35  ;;  %v12169_v26 = vadd.f32 %v7438_v51, %v11946_v21 }
 0x75b   :  { %v5766_v1 = vpop.f32.mrf.mxu1 }
 0x75c   :  { %v12165_v45 = vadd.f32 %v5766_v1, %v14353_v58  ;;  %v6035_v47 = vadd.f32 %v6034_v55, %v12161_v6 }
 0x75d   :  { %v7441_v29 = vpop.f32.mrf.mxu1 }
 0x75e   :  { %v6036_v52 = vadd.f32 %v6035_v47, %v12165_v45  ;;  %v12177_v44 = vadd.f32 %v7441_v29, %v11953_v28 }
 0x75f   :  { %v5776_v15 = vpop.f32.mrf.mxu1 }
 0x760   :  { %v12173_v23 = vadd.f32 %v5776_v15, %v11949_v10  ;;  %v6037_v27 = vadd.f32 %v6036_v52, %v12169_v26 }
 0x761   :  { %v7444_v14 = vpop.f32.mrf.mxu1 }
 0x762   :  { %v6038_v1 = vadd.f32 %v6037_v27, %v12173_v23  ;;  %v12185_v47 = vadd.f32 %v7444_v14, %v11959_v12 }
 0x763   :  { %v5786_v58 = vpop.f32.mrf.mxu1 }
 0x764   :  { %v12181_v55 = vadd.f32 %v5786_v58, %v11956_v24  ;;  %v6039_v21 = vadd.f32 %v6038_v1, %v12177_v44 }
 0x765   :  { %v7447_v51 = vpop.f32.mrf.mxu1 }
 0x766   :  { %v6040_v10 = vadd.f32 %v6039_v21, %v12181_v55  ;;  %v12193_v27 = vadd.f32 %v7447_v51, %v11965_v48 }
 0x767   :  { %v5796_v15 = vpop.f32.mrf.mxu1 }
 0x768   :  { %v12189_v52 = vadd.f32 %v5796_v15, %v11962_v33  ;;  %v6041_v28 = vadd.f32 %v6040_v10, %v12185_v47 }
 0x769   :  { %v7450_v29 = vpop.f32.mrf.mxu1 }
 0x76a   :  { %v6042_v24 = vadd.f32 %v6041_v28, %v12189_v52  ;;  %v12201_v21 = vadd.f32 %v7450_v29, %v11971_v46 }
 0x76b   :  { %v5806_v58 = vpop.f32.mrf.mxu1 }
 0x76c   :  { %v12197_v1 = vadd.f32 %v5806_v58, %v11968_v5  ;;  %v6043_v12 = vadd.f32 %v6042_v24, %v12193_v27 }
 0x76d   :  { %v7453_v14 = vpop.f32.mrf.mxu1 }
 0x76e   :  { %v6044_v33 = vadd.f32 %v6043_v12, %v12197_v1  ;;  %v12209_v28 = vadd.f32 %v7453_v14, %v11977_v22 }
 0x76f   :  { %v5816_v15 = vpop.f32.mrf.mxu1 }
 0x770   :  { %v12205_v10 = vadd.f32 %v5816_v15, %v11974_v37  ;;  %v6045_v48 = vadd.f32 %v6044_v33, %v12201_v21 }
 0x771   :  { %v7456_v51 = vpop.f32.mrf.mxu1 }
 0x772   :  { %v6046_v5 = vadd.f32 %v6045_v48, %v12205_v10  ;;  %v12217_v12 = vadd.f32 %v7456_v51, %v11983_v9 }
 0x773   :  { %v5826_v58 = vpop.f32.mrf.mxu1 }
 0x774   :  { %v12213_v24 = vadd.f32 %v5826_v58, %v11980_v62  ;;  %v6047_v46 = vadd.f32 %v6046_v5, %v12209_v28 }
 0x775   :  { %v7459_v29 = vpop.f32.mrf.mxu1 }
 0x776   :  { %v6048_v37 = vadd.f32 %v6047_v46, %v12213_v24  ;;  %v12225_v48 = vadd.f32 %v7459_v29, %v11989_v25 }
 0x777   :  { %v5836_v15 = vpop.f32.mrf.mxu1 }
 0x778   :  { %v12221_v33 = vadd.f32 %v5836_v15, %v11986_v42  ;;  %v6049_v22 = vadd.f32 %v6048_v37, %v12217_v12 }
 0x779   :  { %v7462_v14 = vpop.f32.mrf.mxu1 }
 0x77a   :  { %v6050_v62 = vadd.f32 %v6049_v22, %v12221_v33  ;;  %v12233_v46 = vadd.f32 %v7462_v14, %v11995_v38 }
 0x77b   :  { %v5846_v58 = vpop.f32.mrf.mxu1 }
 0x77c   :  { %v12229_v5 = vadd.f32 %v5846_v58, %v11992_v41  ;;  %v6051_v9 = vadd.f32 %v6050_v62, %v12225_v48 }
 0x77d   :  { %v7465_v51 = vpop.f32.mrf.mxu1 }
 0x77e   :  { %v6052_v42 = vadd.f32 %v6051_v9, %v12229_v5  ;;  %v12241_v22 = vadd.f32 %v7465_v51, %v12001_v0 }
 0x77f   :  { %v5856_v15 = vpop.f32.mrf.mxu1 }
 0x780   :  { %v12237_v37 = vadd.f32 %v5856_v15, %v11998_v3  ;;  %v6053_v25 = vadd.f32 %v6052_v42, %v12233_v46 }
 0x781   :  { %v7468_v29 = vpop.f32.mrf.mxu1 }
 0x782   :  { %v6054_v41 = vadd.f32 %v6053_v25, %v12237_v37  ;;  %v12249_v9 = vadd.f32 %v7468_v29, %v12007_v4 }
 0x783   :  { %v5866_v58 = vpop.f32.mrf.mxu1 }
 0x784   :  { %v12245_v62 = vadd.f32 %v5866_v58, %v12004_v17  ;;  %v6055_v38 = vadd.f32 %v6054_v41, %v12241_v22  ;;  %14355 = vst [vmem:[#allocation15_spill] sm:$0xff] %v12249_v9 }
 0x785   :  { %v7471_v14 = vpop.f32.mrf.mxu1 }
 0x786   :  { %14354 = vst [vmem:[#allocation9_spill] sm:$0xff] %v12245_v62  ;;  %v6056_v3 = vadd.f32 %v6055_v38, %v12245_v62  ;;  %v12257_v25 = vadd.f32 %v7471_v14, %v12016_v20 }
 0x787   :  { %v5876_v15 = vpop.f32.mrf.mxu1 }
 0x788   :  { %v12253_v42 = vadd.f32 %v5876_v15, %v12011_v59  ;;  %v6057_v0 = vadd.f32 %v6056_v3, %v12249_v9  ;;  %14357 = vst [vmem:[#allocation23_spill] sm:$0xff] %v12257_v25 }
 0x789   :  { %v7474_v51 = vpop.f32.mrf.mxu1 }
 0x78a   :  { %14356 = vst [vmem:[#allocation22_spill] sm:$0xff] %v12253_v42  ;;  %v6058_v17 = vadd.f32 %v6057_v0, %v12253_v42  ;;  %v12265_v38 = vadd.f32 %v7474_v51, %v12026_v50 }
 0x78b   :  { %v5886_v58 = vpop.f32.mrf.mxu1 }
 0x78c   :  { %v12261_v41 = vadd.f32 %v5886_v58, %v12021_v43  ;;  %v6059_v4 = vadd.f32 %v6058_v17, %v12257_v25  ;;  %14359 = vst [vmem:[#allocation25_spill] sm:$0xff] %v12265_v38  ;;  %v14371_v25 = vld [vmem:[#allocation33_spill] sm:$0xff] }
 0x78d   :  { %v7477_v29 = vpop.f32.mrf.mxu1 }
 0x78e   :  { %14358 = vst [vmem:[#allocation24_spill] sm:$0xff] %v12261_v41  ;;  %v6060_v59 = vadd.f32 %v6059_v4, %v12261_v41  ;;  %v12273_v0 = vadd.f32 %v7477_v29, %v12036_v31  ;;  %v14370_v41 = vld [vmem:[#allocation14_spill] sm:$0xff] }
 0x78f   :  { %v5896_v15 = vpop.f32.mrf.mxu1 }
 0x790   :  { %v12269_v3 = vadd.f32 %v5896_v15, %v12031_v7  ;;  %v6061_v20 = vadd.f32 %v6060_v59, %v12265_v38  ;;  %14361 = vst [vmem:[#allocation27_spill] sm:$0xff] %v12273_v0  ;;  %v14369_v38 = vld [vmem:[#allocation13_spill] sm:$0xff] }
 0x791   :  { %v7480_v14 = vpop.f32.mrf.mxu1 }
 0x792   :  { %14360 = vst [vmem:[#allocation26_spill] sm:$0xff] %v12269_v3  ;;  %v6062_v43 = vadd.f32 %v6061_v20, %v12269_v3  ;;  %v12281_v4 = vadd.f32 %v7480_v14, %v12046_v32  ;;  %v14368_v3 = vld [vmem:[#allocation12_spill] sm:$0xff] }
 0x793   :  { %v5906_v58 = vpop.f32.mrf.mxu1 }
 0x794   :  { %v12277_v17 = vadd.f32 %v5906_v58, %v12041_v57  ;;  %v6063_v50 = vadd.f32 %v6062_v43, %v12273_v0  ;;  %14363 = vst [vmem:[#allocation29_spill] sm:$0xff] %v12281_v4  ;;  %v14367_v0 = vld [vmem:[#allocation11_spill] sm:$0xff] }
 0x795   :  { %v7483_v51 = vpop.f32.mrf.mxu1 }
 0x796   :  { %14362 = vst [vmem:[#allocation28_spill] sm:$0xff] %v12277_v17  ;;  %v6064_v7 = vadd.f32 %v6063_v50, %v12277_v17  ;;  %v12289_v20 = vadd.f32 %v7483_v51, %v12056_v61 }
 0x797   :  { %v5916_v15 = vpop.f32.mrf.mxu1 }
 0x798   :  { %v12285_v59 = vadd.f32 %v5916_v15, %v12051_v2  ;;  %v6065_v31 = vadd.f32 %v6064_v7, %v12281_v4  ;;  %14365 = vst [vmem:[#allocation37_spill] sm:$0xff] %v12289_v20 }
 0x799   :  { %v7486_v29 = vpop.f32.mrf.mxu1 }
 0x79a   :  { %14364 = vst [vmem:[#allocation36_spill] sm:$0xff] %v12285_v59  ;;  %v6066_v57 = vadd.f32 %v6065_v31, %v12285_v59  ;;  %v12297_v50 = vadd.f32 %v7486_v29, %v12063_v56 }
 0x79b   :  { %v5926_v58 = vpop.f32.mrf.mxu1 }
 0x79c   :  { %v12293_v43 = vadd.f32 %v5926_v58, %v12060_v39  ;;  %v6067_v32 = vadd.f32 %v6066_v57, %v12289_v20 }
 0x79d   :  { %v7489_v14 = vpop.f32.mrf.mxu1 }
 0x79e   :  { %14366 = vst [vmem:[#allocation38_spill] sm:$0xff] %v12293_v43  ;;  %v6068_v2 = vadd.f32 %v6067_v32, %v12293_v43  ;;  %v5942_v31 = vadd.f32 %v7489_v14, %v12069_v36 }
 0x79f   :  { %v5936_v15 = vpop.f32.mrf.mxu1 }
 0x7a0   :  { %v5937_v7 = vadd.f32 %v5936_v15, %v12066_v16  ;;  %v6069_v61 = vadd.f32 %v6068_v2, %v12297_v50 }
 0x7a1   :  { %v7492_v51 = vpop.f32.mrf.mxu1 }
 0x7a2   :  { %v6070_v59 = vadd.f32 %v6069_v61, %v5937_v7  ;;  %v5952_v20 = vadd.f32 %v7492_v51, %v12075_v19 }
 0x7a3   :  { %v5946_v4 = vpop.f32.mrf.mxu1 }
 0x7a4   :  { %v5947_v39 = vadd.f32 %v5946_v4, %v12072_v54  ;;  %v6071_v58 = vadd.f32 %v6070_v59, %v5942_v31 }
 0x7a5   :  { %v7495_v57 = vpop.f32.mrf.mxu1 }
 0x7a6   :  { %v6072_v56 = vadd.f32 %v6071_v58, %v5947_v39  ;;  %v5962_v16 = vadd.f32 %v7495_v57, %v12081_v53 }
 0x7a7   :  { %v5956_v29 = vpop.f32.mrf.mxu1 }
 0x7a8   :  { %v5957_v32 = vadd.f32 %v5956_v29, %v12078_v13  ;;  %v6073_v43 = vadd.f32 %v6072_v56, %v5952_v20 }
 0x7a9   :  { %v7498_v17 = vpop.f32.mrf.mxu1 }
 0x7aa   :  { %v6074_v2 = vadd.f32 %v6073_v43, %v5957_v32  ;;  %v5972_v54 = vadd.f32 %v7498_v17, %v12087_v63 }
 0x7ab   :  { %v5966_v15 = vpop.f32.mrf.mxu1 }
 0x7ac   :  { %v5967_v36 = vadd.f32 %v5966_v15, %v12084_v18  ;;  %v6075_v14 = vadd.f32 %v6074_v2, %v5962_v16 }
 0x7ad   :  { %v7501_v61 = vpop.f32.mrf.mxu1 }
 0x7ae   :  { %v6076_v4 = vadd.f32 %v6075_v14, %v5967_v36  ;;  %v5982_v13 = vadd.f32 %v7501_v61, %v12093_v49 }
 0x7af   :  { %v5976_v59 = vpop.f32.mrf.mxu1 }
 0x7b0   :  { %v5977_v19 = vadd.f32 %v5976_v59, %v12090_v11  ;;  %v6077_v51 = vadd.f32 %v6076_v4, %v5972_v54 }
 0x7b1   :  { %v7504_v58 = vpop.f32.mrf.mxu1 }
 0x7b2   :  { %v6078_v56 = vadd.f32 %v6077_v51, %v5977_v19  ;;  %v5992_v18 = vadd.f32 %v7504_v58, %v14368_v3 }
 0x7b3   :  { %v5986_v29 = vpop.f32.mrf.mxu1 }
 0x7b4   :  { %v5987_v53 = vadd.f32 %v5986_v29, %v14367_v0  ;;  %v6079_v43 = vadd.f32 %v6078_v56, %v5982_v13 }
 0x7b5   :  { %v7507_v57 = vpop.f32.mrf.mxu1 }
 0x7b6   :  { %v6080_v2 = vadd.f32 %v6079_v43, %v5987_v53  ;;  %v6002_v11 = vadd.f32 %v7507_v57, %v14370_v41  ;;  %v14372_v43 = vld [vmem:[#allocation35_spill] sm:$0xff] }
 0x7b7   :  { %v5996_v15 = vpop.f32.mrf.mxu1 }
 0x7b8   :  { %v5997_v63 = vadd.f32 %v5996_v15, %v14369_v38  ;;  %v6081_v17 = vadd.f32 %v6080_v2, %v5992_v18 }
 0x7b9   :  { %v7510_v14 = vpop.f32.mrf.mxu1 }
 0x7ba   :  { %v6082_v4 = vadd.f32 %v6081_v17, %v5997_v63  ;;  %v6012_v0 = vadd.f32 %v7510_v14, %v12111_v60 }
 0x7bb   :  { %v6006_v59 = vpop.f32.mrf.mxu1 }
 0x7bc   :  { %v6007_v49 = vadd.f32 %v6006_v59, %v12108_v8  ;;  %v6083_v61 = vadd.f32 %v6082_v4, %v6002_v11 }
 0x7bd   :  { %v7513_v51 = vpop.f32.mrf.mxu1 }
 0x7be   :  { %v6084_v56 = vadd.f32 %v6083_v61, %v6007_v49  ;;  %v6022_v42 = vadd.f32 %v7513_v51, %v14372_v43  ;;  %v14382_v43 = vld [vmem:[#allocation19_spill] sm:$0xff] }
 0x7bf   :  { %v6016_v29 = vpop.f32.mrf.mxu1 }
 0x7c0   :  { %v6017_v3 = vadd.f32 %v6016_v29, %v14371_v25  ;;  %v6085_v58 = vadd.f32 %v6084_v56, %v6012_v0 }
 0x7c2   :  { %v6086_v38 = vadd.f32 %v6085_v58, %v6017_v3 }
 0x7c4   :  { %v6087_v2 = vadd.f32 %v6086_v38, %v6022_v42 }
 0x7c6   :  { %v6088_v15 = vrot.slane %v6087_v2, 4 }
 0x7c8   :  { %v6089_v9 = vadd.f32 %v6088_v15, %v6087_v2 }
 0x7ca   :  { %v6090_v41 = vrot.slane %v6089_v9, 2 }
 0x7cc   :  { %v6091_v57 = vadd.f32 %v6090_v41, %v6089_v9  ;;  %v14383_v41 = vld [vmem:[#allocation20_spill] sm:$0xff] }
 0x7ce   :  { %v6092_v17 = vrot.slane %v6091_v57, 1 }
 0x7d0   :  { %v6093_v62 = vadd.f32 %v6092_v17, %v6091_v57 }
 0x7d2   :  { %v12319_v8 = vmul.f32 0.001953125, %v6093_v62 }
 0x7d4   :  { %v12323_v60 = vsub.f32 %v12297_v50, %v12319_v8  ;;  %v12326_v14 = vsub.f32 %v5937_v7, %v12319_v8  ;;  %v12329_v25 = vsub.f32 %v5942_v31, %v12319_v8  ;;  %v12332_v4 = vsub.f32 %v5947_v39, %v12319_v8 }
 0x7d5   :  { %v12335_v59 = vsub.f32 %v5952_v20, %v12319_v8  ;;  %v12338_v9 = vsub.f32 %v5957_v32, %v12319_v8  ;;  %v12341_v62 = vsub.f32 %v5962_v16, %v12319_v8  ;;  %v12344_v50 = vsub.f32 %v5967_v36, %v12319_v8 }
 0x7d6   :  { %v12347_v7 = vsub.f32 %v5972_v54, %v12319_v8  ;;  %v12350_v31 = vsub.f32 %v5977_v19, %v12319_v8  ;;  %v12353_v39 = vsub.f32 %v5982_v13, %v12319_v8  ;;  %v12356_v20 = vsub.f32 %v5987_v53, %v12319_v8 }
 0x7d7   :  { %v12359_v32 = vsub.f32 %v5992_v18, %v12319_v8  ;;  %v12362_v16 = vsub.f32 %v5997_v63, %v12319_v8  ;;  %v12365_v36 = vsub.f32 %v6002_v11, %v12319_v8  ;;  %v12368_v54 = vsub.f32 %v6007_v49, %v12319_v8  ;;  %v14378_v63 = vld [vmem:[#allocation34_spill] sm:$0xff]  ;;  %v14379_v49 = vld [vmem:[#allocation16_spill] sm:$0xff] }
 0x7d8   :  { %v12371_v19 = vsub.f32 %v6012_v0, %v12319_v8  ;;  %v12374_v13 = vsub.f32 %v6017_v3, %v12319_v8  ;;  %v12377_v53 = vsub.f32 %v6022_v42, %v12319_v8  ;;  %v12381_v18 = vsub.f32 %v12116_v30, %v12319_v8  ;;  %v14380_v42 = vld [vmem:[#allocation17_spill] sm:$0xff]  ;;  %v14381_v30 = vld [vmem:[#allocation18_spill] sm:$0xff] }
 0x7d9   :  { %14373 = vst [vmem:[#allocation39_spill] sm:$0xff] %v12359_v32  ;;  %14374 = vst [vmem:[#allocation40_spill] sm:$0xff] %v12362_v16  ;;  %v12385_v11 = vsub.f32 %v14378_v63, %v12319_v8  ;;  %v12389_v61 = vsub.f32 %v14379_v49, %v12319_v8  ;;  %v12397_v56 = vsub.f32 %v14380_v42, %v12319_v8  ;;  %v14384_v49 = vld [vmem:[#allocation21_spill] sm:$0xff] }
 0x7da   :  { %14375 = vst [vmem:[#allocation41_spill] sm:$0xff] %v12365_v36  ;;  %14376 = vst [vmem:[#allocation42_spill] sm:$0xff] %v12368_v54  ;;  %v6159_v51 = vmul.f32 %v12381_v18, %v12381_v18  ;;  %v12401_v29 = vsub.f32 %v14381_v30, %v12319_v8  ;;  %v12407_v38 = vsub.f32 %v14382_v43, %v12319_v8 }
 0x7db   :  { %14377 = vst [vmem:[#allocation43_spill] sm:$0xff] %v12371_v19  ;;  %v6160_v0 = vmul.f32 %v12385_v11, %v12385_v11  ;;  %v6161_v3 = vmul.f32 %v12389_v61, %v12389_v61  ;;  %v6162_v2 = vmul.f32 %v12397_v56, %v12397_v56  ;;  %v12413_v57 = vsub.f32 %v14383_v41, %v12319_v8 }
 0x7dc   :  { %v6163_v17 = vmul.f32 %v12401_v29, %v12401_v29  ;;  %v12419_v42 = vsub.f32 %v14384_v49, %v12319_v8  ;;  %v12425_v30 = vsub.f32 %v12149_v40, %v12319_v8  ;;  %v12431_v43 = vsub.f32 %v12153_v34, %v12319_v8 }
 0x7dd   :  { %v6223_v58 = vadd.f32 %v6160_v0, %v6159_v51  ;;  %v6164_v51 = vmul.f32 %v12407_v38, %v12407_v38  ;;  %v12437_v41 = vsub.f32 %v12157_v35, %v12319_v8 }
 0x7de   :  { %v6167_v40 = vmul.f32 %v12425_v30, %v12425_v30  ;;  %v6168_v34 = vmul.f32 %v12431_v43, %v12431_v43 }
 0x7df   :  { %v6224_v15 = vadd.f32 %v6223_v58, %v6161_v3  ;;  %v6165_v3 = vmul.f32 %v12413_v57, %v12413_v57  ;;  %v6169_v35 = vmul.f32 %v12437_v41, %v12437_v41 }
 0x7e1   :  { %v6225_v63 = vadd.f32 %v6224_v15, %v6162_v2  ;;  %v6166_v2 = vmul.f32 %v12419_v42, %v12419_v42 }
 0x7e3   :  { %v6226_v0 = vadd.f32 %v6225_v63, %v6163_v17  ;;  %v12443_v63 = vsub.f32 %v12161_v6, %v12319_v8 }
 0x7e5   :  { %v6227_v58 = vadd.f32 %v6226_v0, %v6164_v51  ;;  %v12449_v51 = vsub.f32 %v12165_v45, %v12319_v8  ;;  %v6170_v6 = vmul.f32 %v12443_v63, %v12443_v63 }
 0x7e7   :  { %v6228_v15 = vadd.f32 %v6227_v58, %v6165_v3  ;;  %v12455_v3 = vsub.f32 %v12169_v26, %v12319_v8  ;;  %v6171_v45 = vmul.f32 %v12449_v51, %v12449_v51 }
 0x7e9   :  { %v6229_v17 = vadd.f32 %v6228_v15, %v6166_v2  ;;  %v12461_v2 = vsub.f32 %v12173_v23, %v12319_v8  ;;  %v6172_v26 = vmul.f32 %v12455_v3, %v12455_v3 }
 0x7eb   :  { %v6230_v49 = vadd.f32 %v6229_v17, %v6167_v40  ;;  %v12467_v40 = vsub.f32 %v12177_v44, %v12319_v8  ;;  %v6173_v23 = vmul.f32 %v12461_v2, %v12461_v2 }
 0x7ed   :  { %v6231_v0 = vadd.f32 %v6230_v49, %v6168_v34  ;;  %v12473_v34 = vsub.f32 %v12181_v55, %v12319_v8  ;;  %v6174_v44 = vmul.f32 %v12467_v40, %v12467_v40 }
 0x7ef   :  { %v6232_v58 = vadd.f32 %v6231_v0, %v6169_v35  ;;  %v12479_v35 = vsub.f32 %v12185_v47, %v12319_v8  ;;  %v6175_v55 = vmul.f32 %v12473_v34, %v12473_v34 }
 0x7f1   :  { %v6233_v15 = vadd.f32 %v6232_v58, %v6170_v6  ;;  %v12485_v6 = vsub.f32 %v12189_v52, %v12319_v8  ;;  %v6176_v47 = vmul.f32 %v12479_v35, %v12479_v35 }
 0x7f3   :  { %v6234_v17 = vadd.f32 %v6233_v15, %v6171_v45  ;;  %v12491_v45 = vsub.f32 %v12193_v27, %v12319_v8  ;;  %v6177_v52 = vmul.f32 %v12485_v6, %v12485_v6 }
 0x7f5   :  { %v6235_v49 = vadd.f32 %v6234_v17, %v6172_v26  ;;  %v12497_v26 = vsub.f32 %v12197_v1, %v12319_v8  ;;  %v6178_v27 = vmul.f32 %v12491_v45, %v12491_v45 }
 0x7f7   :  { %v6236_v0 = vadd.f32 %v6235_v49, %v6173_v23  ;;  %v12503_v23 = vsub.f32 %v12201_v21, %v12319_v8  ;;  %v6179_v1 = vmul.f32 %v12497_v26, %v12497_v26 }
 0x7f9   :  { %v6237_v58 = vadd.f32 %v6236_v0, %v6174_v44  ;;  %v12509_v44 = vsub.f32 %v12205_v10, %v12319_v8  ;;  %v6180_v21 = vmul.f32 %v12503_v23, %v12503_v23 }
 0x7fb   :  { %v6238_v15 = vadd.f32 %v6237_v58, %v6175_v55  ;;  %v12515_v55 = vsub.f32 %v12209_v28, %v12319_v8  ;;  %v6181_v10 = vmul.f32 %v12509_v44, %v12509_v44 }
 0x7fd   :  { %v6239_v17 = vadd.f32 %v6238_v15, %v6176_v47  ;;  %v12521_v47 = vsub.f32 %v12213_v24, %v12319_v8  ;;  %v6182_v28 = vmul.f32 %v12515_v55, %v12515_v55 }
 0x7ff   :  { %v6240_v49 = vadd.f32 %v6239_v17, %v6177_v52  ;;  %v12527_v52 = vsub.f32 %v12217_v12, %v12319_v8  ;;  %v6183_v24 = vmul.f32 %v12521_v47, %v12521_v47 }
 0x801   :  { %v6241_v0 = vadd.f32 %v6240_v49, %v6178_v27  ;;  %v12533_v27 = vsub.f32 %v12221_v33, %v12319_v8  ;;  %v6184_v12 = vmul.f32 %v12527_v52, %v12527_v52 }
 0x803   :  { %v6242_v58 = vadd.f32 %v6241_v0, %v6179_v1  ;;  %v12539_v1 = vsub.f32 %v12225_v48, %v12319_v8  ;;  %v6185_v33 = vmul.f32 %v12533_v27, %v12533_v27 }
 0x805   :  { %v6243_v15 = vadd.f32 %v6242_v58, %v6180_v21  ;;  %v12545_v21 = vsub.f32 %v12229_v5, %v12319_v8  ;;  %v6186_v48 = vmul.f32 %v12539_v1, %v12539_v1 }
 0x807   :  { %v6244_v17 = vadd.f32 %v6243_v15, %v6181_v10  ;;  %14385 = vst [vmem:[#allocation10_spill] sm:$0xff] %v12545_v21  ;;  %v12551_v10 = vsub.f32 %v12233_v46, %v12319_v8  ;;  %v6187_v5 = vmul.f32 %v12545_v21, %v12545_v21 }
 0x809   :  { %v6245_v49 = vadd.f32 %v6244_v17, %v6182_v28  ;;  %14386 = vst [vmem:[#allocation30_spill] sm:$0xff] %v12551_v10  ;;  %v12557_v28 = vsub.f32 %v12237_v37, %v12319_v8  ;;  %v6188_v46 = vmul.f32 %v12551_v10, %v12551_v10 }
 0x80b   :  { %v6246_v0 = vadd.f32 %v6245_v49, %v6183_v24  ;;  %14387 = vst [vmem:[#allocation31_spill] sm:$0xff] %v12557_v28  ;;  %v12563_v24 = vsub.f32 %v12241_v22, %v12319_v8  ;;  %v6189_v37 = vmul.f32 %v12557_v28, %v12557_v28 }
 0x80d   :  { %v6247_v58 = vadd.f32 %v6246_v0, %v6184_v12  ;;  %14388 = vst [vmem:[#allocation32_spill] sm:$0xff] %v12563_v24  ;;  %v14389_v12 = vld [vmem:[#allocation9_spill] sm:$0xff]  ;;  %v6190_v22 = vmul.f32 %v12563_v24, %v12563_v24 }
 0x80e   :  { %v12569_v0 = vsub.f32 %v14389_v12, %v12319_v8  ;;  %v14395_v12 = vld [vmem:[#allocation23_spill] sm:$0xff] }
 0x80f   :  { %v6248_v15 = vadd.f32 %v6247_v58, %v6185_v33  ;;  %v14391_v58 = vld [vmem:[#allocation15_spill] sm:$0xff]  ;;  %v12587_v28 = vsub.f32 %v14395_v12, %v12319_v8  ;;  %v14401_v12 = vld [vmem:[#allocation26_spill] sm:$0xff] }
 0x810   :  { %14390 = vst [vmem:[#allocation44_spill] sm:$0xff] %v12569_v0  ;;  %v12575_v21 = vsub.f32 %v14391_v58, %v12319_v8  ;;  %v14397_v58 = vld [vmem:[#allocation24_spill] sm:$0xff] }
 0x811   :  { %v6249_v17 = vadd.f32 %v6248_v15, %v6186_v48  ;;  %v14393_v15 = vld [vmem:[#allocation22_spill] sm:$0xff]  ;;  %14396 = vst [vmem:[#allocation12_spill] sm:$0xff] %v12587_v28  ;;  %v12593_v24 = vsub.f32 %v14397_v58, %v12319_v8  ;;  %v14403_v58 = vld [vmem:[#allocation27_spill] sm:$0xff] }
 0x812   :  { %14392 = vst [vmem:[#allocation45_spill] sm:$0xff] %v12575_v21  ;;  %v12581_v10 = vsub.f32 %v14393_v15, %v12319_v8  ;;  %v14399_v15 = vld [vmem:[#allocation25_spill] sm:$0xff] }
 0x813   :  { %v6250_v49 = vadd.f32 %v6249_v17, %v6187_v5  ;;  %v6191_v5 = vmul.f32 %v12569_v0, %v12569_v0  ;;  %14398 = vst [vmem:[#allocation13_spill] sm:$0xff] %v12593_v24  ;;  %v12599_v0 = vsub.f32 %v14399_v15, %v12319_v8  ;;  %v14405_v15 = vld [vmem:[#allocation28_spill] sm:$0xff] }
 0x814   :  { %14394 = vst [vmem:[#allocation11_spill] sm:$0xff] %v12581_v10 }
 0x815   :  { %v6251_v33 = vadd.f32 %v6250_v49, %v6188_v46  ;;  %v6192_v46 = vmul.f32 %v12575_v21, %v12575_v21  ;;  %14400 = vst [vmem:[#allocation14_spill] sm:$0xff] %v12599_v0  ;;  %v12605_v21 = vsub.f32 %v14401_v12, %v12319_v8  ;;  %v14406_v12 = vld [vmem:[#allocation29_spill] sm:$0xff] }
 0x817   :  { %v6252_v48 = vadd.f32 %v6251_v33, %v6189_v37  ;;  %v6193_v37 = vmul.f32 %v12581_v10, %v12581_v10  ;;  %14402 = vst [vmem:[#allocation33_spill] sm:$0xff] %v12605_v21  ;;  %v12611_v10 = vsub.f32 %v14403_v58, %v12319_v8  ;;  %v14408_v58 = vld [vmem:[#allocation36_spill] sm:$0xff] }
 0x819   :  { %v6253_v17 = vadd.f32 %v6252_v48, %v6190_v22  ;;  %v6194_v22 = vmul.f32 %v12587_v28, %v12587_v28  ;;  %14404 = vst [vmem:[#allocation35_spill] sm:$0xff] %v12611_v10  ;;  %v12617_v28 = vsub.f32 %v14405_v15, %v12319_v8  ;;  %v14409_v15 = vld [vmem:[#allocation37_spill] sm:$0xff] }
 0x81b   :  { %v6254_v49 = vadd.f32 %v6253_v17, %v6191_v5  ;;  %v6195_v5 = vmul.f32 %v12593_v24, %v12593_v24  ;;  %v12623_v24 = vsub.f32 %v14406_v12, %v12319_v8  ;;  %v14410_v12 = vld [vmem:[#allocation38_spill] sm:$0xff] }
 0x81d   :  { %v6255_v33 = vadd.f32 %v6254_v49, %v6192_v46  ;;  %v6196_v46 = vmul.f32 %v12599_v0, %v12599_v0  ;;  %14407 = vst [vmem:[#allocation34_spill] sm:$0xff] %v12623_v24  ;;  %v12629_v0 = vsub.f32 %v14408_v58, %v12319_v8 }
 0x81f   :  { %v6256_v48 = vadd.f32 %v6255_v33, %v6193_v37  ;;  %v6197_v37 = vmul.f32 %v12605_v21, %v12605_v21  ;;  %v12635_v21 = vsub.f32 %v14409_v15, %v12319_v8 }
 0x821   :  { %v6257_v17 = vadd.f32 %v6256_v48, %v6194_v22  ;;  %v6198_v22 = vmul.f32 %v12611_v10, %v12611_v10  ;;  %v12641_v10 = vsub.f32 %v14410_v12, %v12319_v8  ;;  %v6202_v58 = vmul.f32 %v12635_v21, %v12635_v21 }
 0x822   :  { %v6205_v8 = vmul.f32 %v12326_v14, %v12326_v14  ;;  %v6206_v12 = vmul.f32 %v12329_v25, %v12329_v25 }
 0x823   :  { %v6258_v49 = vadd.f32 %v6257_v17, %v6195_v5  ;;  %v6199_v5 = vmul.f32 %v12617_v28, %v12617_v28 }
 0x825   :  { %v6259_v33 = vadd.f32 %v6258_v49, %v6196_v46  ;;  %v6200_v46 = vmul.f32 %v12623_v24, %v12623_v24  ;;  %v6204_v24 = vmul.f32 %v12323_v60, %v12323_v60 }
 0x827   :  { %v6260_v48 = vadd.f32 %v6259_v33, %v6197_v37  ;;  %v6201_v37 = vmul.f32 %v12629_v0, %v12629_v0 }
 0x829   :  { %v6261_v17 = vadd.f32 %v6260_v48, %v6198_v22  ;;  %v6203_v48 = vmul.f32 %v12641_v10, %v12641_v10 }
 0x82b   :  { %v6262_v49 = vadd.f32 %v6261_v17, %v6199_v5 }
 0x82d   :  { %v6263_v33 = vadd.f32 %v6262_v49, %v6200_v46  ;;  %v6207_v49 = vmul.f32 %v12332_v4, %v12332_v4 }
 0x82f   :  { %v6264_v22 = vadd.f32 %v6263_v33, %v6201_v37  ;;  %v6208_v33 = vmul.f32 %v12335_v59, %v12335_v59 }
 0x831   :  { %v6265_v15 = vadd.f32 %v6264_v22, %v6202_v58  ;;  %v6209_v22 = vmul.f32 %v12338_v9, %v12338_v9 }
 0x833   :  { %v6266_v5 = vadd.f32 %v6265_v15, %v6203_v48  ;;  %v6210_v15 = vmul.f32 %v12341_v62, %v12341_v62 }
 0x835   :  { %v6267_v17 = vadd.f32 %v6266_v5, %v6204_v24  ;;  %v6211_v5 = vmul.f32 %v12344_v50, %v12344_v50 }
 0x837   :  { %v6268_v46 = vadd.f32 %v6267_v17, %v6205_v8  ;;  %v6212_v17 = vmul.f32 %v12347_v7, %v12347_v7 }
 0x839   :  { %v6269_v37 = vadd.f32 %v6268_v46, %v6206_v12  ;;  %v6213_v46 = vmul.f32 %v12350_v31, %v12350_v31 }
 0x83b   :  { %v6270_v58 = vadd.f32 %v6269_v37, %v6207_v49  ;;  %v6214_v37 = vmul.f32 %v12353_v39, %v12353_v39 }
 0x83d   :  { %v6271_v48 = vadd.f32 %v6270_v58, %v6208_v33  ;;  %v6215_v58 = vmul.f32 %v12356_v20, %v12356_v20 }
 0x83f   :  { %v6272_v24 = vadd.f32 %v6271_v48, %v6209_v22  ;;  %v6216_v48 = vmul.f32 %v12359_v32, %v12359_v32 }
 0x841   :  { %v6273_v8 = vadd.f32 %v6272_v24, %v6210_v15  ;;  %v6217_v24 = vmul.f32 %v12362_v16, %v12362_v16 }
 0x843   :  { %v6274_v12 = vadd.f32 %v6273_v8, %v6211_v5  ;;  %v6218_v8 = vmul.f32 %v12365_v36, %v12365_v36 }
 0x845   :  { %v6275_v49 = vadd.f32 %v6274_v12, %v6212_v17  ;;  %v6219_v12 = vmul.f32 %v12368_v54, %v12368_v54 }
 0x847   :  { %v6276_v33 = vadd.f32 %v6275_v49, %v6213_v46  ;;  %v6220_v49 = vmul.f32 %v12371_v19, %v12371_v19 }
 0x849   :  { %v6277_v22 = vadd.f32 %v6276_v33, %v6214_v37  ;;  %v6221_v33 = vmul.f32 %v12374_v13, %v12374_v13 }
 0x84b   :  { %v6278_v15 = vadd.f32 %v6277_v22, %v6215_v58  ;;  %v6222_v22 = vmul.f32 %v12377_v53, %v12377_v53 }
 0x84d   :  { %v6279_v5 = vadd.f32 %v6278_v15, %v6216_v48 }
 0x84f   :  { %v6280_v17 = vadd.f32 %v6279_v5, %v6217_v24 }
 0x851   :  { %v6281_v46 = vadd.f32 %v6280_v17, %v6218_v8 }
 0x853   :  { %v6282_v37 = vadd.f32 %v6281_v46, %v6219_v12  ;;  %v12692_v12 = vld [vmem:[%s13914_s5] ss:$0 sm:$0xff] }
 0x855   :  { %v6283_v58 = vadd.f32 %v6282_v37, %v6220_v49 }
 0x857   :  { %v6284_v48 = vadd.f32 %v6283_v58, %v6221_v33 }
 0x859   :  { %v6285_v15 = vadd.f32 %v6284_v48, %v6222_v22 }
 0x85b   :  { %v6286_v16 = vrot.slane %v6285_v15, 4 }
 0x85d   :  { %v6287_v36 = vadd.f32 %v6286_v16, %v6285_v15  ;;  %v14412_v15 = vld [vmem:[#allocation10_spill] sm:$0xff] }
 0x85f   :  { %v6288_v24 = vrot.slane %v6287_v36, 2 }
 0x861   :  { %v6289_v5 = vadd.f32 %v6288_v24, %v6287_v36  ;;  %v14413_v24 = vld [vmem:[#allocation30_spill] sm:$0xff] }
 0x863   :  { %v6290_v32 = vrot.slane %v6289_v5, 1 }
 0x865   :  { %v6291_v54 = vadd.f32 %v6290_v32, %v6289_v5  ;;  %v14414_v5 = vld [vmem:[#allocation31_spill] sm:$0xff] }
 0x867   :  { %v6292_v8 = vmul.f32 0.001953125, %v6291_v54  ;;  %v12711_v54 = vld [vmem:[%s13915_s6] ss:$0 sm:$0xff] }
 0x868   :  { %14411 = vst [vmem:[#allocation16_spill] sm:$0xff] %v12711_v54 }
 0x869   :  { %v6293_v17 = vadd.f32 1e-05, %v6292_v8  ;;  %v14415_v8 = vld [vmem:[#allocation32_spill] sm:$0xff] }
 0x86b   :  { %7521 = vrsqrt.f32 %v6293_v17  ;;  %v14416_v17 = vld [vmem:[#allocation44_spill] sm:$0xff] }
 0x878   :  { %v12687_v19 = vpop.eup %7521 }
 0x879   :  { %v6357_v46 = vmul.f32 %v12687_v19, %v12374_v13  ;;  %v12698_v16 = vmul.f32 %v12687_v19, %v12381_v18  ;;  %v12702_v32 = vmul.f32 %v12687_v19, %v12385_v11  ;;  %v12706_v36 = vmul.f32 %v12687_v19, %v12389_v61 }
 0x87a   :  { %v12715_v13 = vmul.f32 %v12687_v19, %v12397_v56  ;;  %v12719_v18 = vmul.f32 %v12687_v19, %v12401_v29  ;;  %v12723_v11 = vmul.f32 %v12687_v19, %v12407_v38  ;;  %v12727_v61 = vmul.f32 %v12687_v19, %v12413_v57 }
 0x87b   :  { %v6428_v49 = vmul.f32 %v12692_v12, %v6357_v46  ;;  %v12732_v37 = vmul.f32 %v12687_v19, %v12419_v42  ;;  %v12736_v56 = vmul.f32 %v12687_v19, %v12425_v30  ;;  %v12740_v29 = vmul.f32 %v12687_v19, %v12431_v43  ;;  %v14417_v46 = vld [vmem:[#allocation45_spill] sm:$0xff] }
 0x87c   :  { %v12744_v38 = vmul.f32 %v12687_v19, %v12437_v41  ;;  %v12748_v57 = vmul.f32 %v12687_v19, %v12443_v63  ;;  %v12752_v42 = vmul.f32 %v12687_v19, %v12449_v51  ;;  %v12756_v30 = vmul.f32 %v12687_v19, %v12455_v3 }
 0x87d   :  { %v6499_v33 = vadd.f32 %v12711_v54, %v6428_v49  ;;  %v12761_v43 = vmul.f32 %v12687_v19, %v12461_v2  ;;  %v12765_v41 = vmul.f32 %v12687_v19, %v12467_v40  ;;  %v12769_v63 = vmul.f32 %v12687_v19, %v12473_v34  ;;  %v7529_v34 = vld [vmem:[%s13909_s0 + $0x331] sm:$0xff]  ;;  %v14423_v54 = vld [vmem:[#allocation33_spill] sm:$0xff] }
 0x87e   :  { %v12773_v51 = vmul.f32 %v12687_v19, %v12479_v35  ;;  %v12777_v3 = vmul.f32 %v12687_v19, %v12485_v6  ;;  %v12781_v2 = vmul.f32 %v12687_v19, %v12491_v45  ;;  %v12785_v40 = vmul.f32 %v12687_v19, %v12497_v26 }
 0x87f   :  { %v6563_v58 = vadd.f32 %v7529_v34, %v6499_v33  ;;  %v12792_v35 = vmul.f32 %v12687_v19, %v12503_v23  ;;  %v12796_v6 = vmul.f32 %v12687_v19, %v12509_v44  ;;  %v12800_v45 = vmul.f32 %v12687_v19, %v12515_v55  ;;  %v14419_v33 = vld [vmem:[#allocation11_spill] sm:$0xff] }
 0x880   :  { %v12804_v26 = vmul.f32 %v12687_v19, %v12521_v47  ;;  %v12808_v22 = vmul.f32 %v12687_v19, %v12527_v52  ;;  %v12812_v23 = vmul.f32 %v12687_v19, %v12533_v27  ;;  %v12816_v44 = vmul.f32 %v12687_v19, %v12539_v1 }
 0x881   :  { %v6627_v48 = vmax.f32 %v6563_v58, 0.0  ;;  %v12820_v55 = vmul.f32 %v12687_v19, %v14412_v15  ;;  %v12824_v47 = vmul.f32 %v12687_v19, %v14413_v24  ;;  %v12828_v52 = vmul.f32 %v12687_v19, %v14414_v5  ;;  %v14420_v58 = vld [vmem:[#allocation12_spill] sm:$0xff]  ;;  %v14421_v24 = vld [vmem:[#allocation13_spill] sm:$0xff] }
 0x882   :  { %v12832_v27 = vmul.f32 %v12687_v19, %v14415_v8  ;;  %v12836_v1 = vmul.f32 %v12687_v19, %v14416_v17  ;;  %v12840_v49 = vmul.f32 %v12687_v19, %v14417_v46  ;;  %v12844_v34 = vmul.f32 %v12687_v19, %v14419_v33  ;;  %v14422_v8 = vld [vmem:[#allocation14_spill] sm:$0xff] }
 0x883   :  { %6691 = vst [vmem:[#allocation6 + $0x1f0] sm:$0xff] %v6627_v48  ;;  %v12848_v15 = vmul.f32 %v12687_v19, %v14420_v58  ;;  %v12852_v5 = vmul.f32 %v12687_v19, %v14421_v24  ;;  %v12856_v17 = vmul.f32 %v12687_v19, %v14422_v8  ;;  %v12860_v46 = vmul.f32 %v12687_v19, %v14423_v54  ;;  %v14425_v58 = vld [vmem:[#allocation34_spill] sm:$0xff] }
 0x884   :  { %14418 = vst [vmem:[#allocation17_spill] sm:$0xff] %v12840_v49  ;;  %v14424_v49 = vld [vmem:[#allocation35_spill] sm:$0xff]  ;;  %v12868_v48 = vmul.f32 %v12687_v19, %v12617_v28  ;;  %v12872_v24 = vmul.f32 %v12687_v19, %v14425_v58  ;;  %v12876_v8 = vmul.f32 %v12687_v19, %v12629_v0  ;;  %v12880_v54 = vmul.f32 %v12687_v19, %v12635_v21 }
 0x885   :  { %v12864_v33 = vmul.f32 %v12687_v19, %v14424_v49  ;;  %v12884_v49 = vmul.f32 %v12687_v19, %v12641_v10  ;;  %v12888_v28 = vmul.f32 %v12687_v19, %v12323_v60  ;;  %v12892_v58 = vmul.f32 %v12687_v19, %v12326_v14 }
 0x886   :  { %v12896_v0 = vmul.f32 %v12687_v19, %v12329_v25  ;;  %v12900_v21 = vmul.f32 %v12687_v19, %v12332_v4  ;;  %v12904_v10 = vmul.f32 %v12687_v19, %v12335_v59  ;;  %v12908_v60 = vmul.f32 %v12687_v19, %v12338_v9 }
 0x887   :  { %v12912_v14 = vmul.f32 %v12687_v19, %v12341_v62  ;;  %v12916_v25 = vmul.f32 %v12687_v19, %v12344_v50  ;;  %v12920_v4 = vmul.f32 %v12687_v19, %v12347_v7  ;;  %v12924_v59 = vmul.f32 %v12687_v19, %v12350_v31 }
 0x888   :  { %v12928_v9 = vmul.f32 %v12687_v19, %v12353_v39  ;;  %v12932_v62 = vmul.f32 %v12687_v19, %v12356_v20 }
 0x889   :  { %14426 = vst [vmem:[#allocation18_spill] sm:$0xff] %v12912_v14  ;;  %14427 = vst [vmem:[#allocation19_spill] sm:$0xff] %v12916_v25  ;;  %v14431_v14 = vld [vmem:[#allocation39_spill] sm:$0xff]  ;;  %v14432_v25 = vld [vmem:[#allocation40_spill] sm:$0xff] }
 0x88a   :  { %14428 = vst [vmem:[#allocation20_spill] sm:$0xff] %v12920_v4  ;;  %14429 = vst [vmem:[#allocation21_spill] sm:$0xff] %v12924_v59  ;;  %v12936_v50 = vmul.f32 %v12687_v19, %v14431_v14  ;;  %v12940_v7 = vmul.f32 %v12687_v19, %v14432_v25  ;;  %v14433_v4 = vld [vmem:[#allocation41_spill] sm:$0xff]  ;;  %v14434_v59 = vld [vmem:[#allocation42_spill] sm:$0xff]  ;;  %v12956_v14 = vmul.f32 %v12687_v19, %v12377_v53 }
 0x88b   :  { %14430 = vst [vmem:[#allocation9_spill] sm:$0xff] %v12928_v9  ;;  %v12944_v31 = vmul.f32 %v12687_v19, %v14433_v4  ;;  %v12948_v39 = vmul.f32 %v12687_v19, %v14434_v59  ;;  %v14435_v9 = vld [vmem:[#allocation43_spill] sm:$0xff]  ;;  %v12960_v25 = vmul.f32 %v12692_v12, %v12698_v16  ;;  %v12964_v4 = vmul.f32 %v12692_v12, %v12702_v32 }
 0x88c   :  { %v12952_v20 = vmul.f32 %v12687_v19, %v14435_v9  ;;  %v12968_v59 = vmul.f32 %v12692_v12, %v12706_v36  ;;  %v12972_v9 = vmul.f32 %v12692_v12, %v12715_v13  ;;  %v12976_v19 = vmul.f32 %v12692_v12, %v12719_v18 }
 0x88d   :  { %v12980_v53 = vmul.f32 %v12692_v12, %v12723_v11  ;;  %v12984_v16 = vmul.f32 %v12692_v12, %v12727_v61  ;;  %v12988_v32 = vmul.f32 %v12692_v12, %v12732_v37  ;;  %v12992_v36 = vmul.f32 %v12692_v12, %v12736_v56 }
 0x88e   :  { %v12996_v13 = vmul.f32 %v12692_v12, %v12740_v29  ;;  %v13000_v18 = vmul.f32 %v12692_v12, %v12744_v38  ;;  %v13004_v11 = vmul.f32 %v12692_v12, %v12748_v57  ;;  %v13008_v61 = vmul.f32 %v12692_v12, %v12752_v42 }
 0x88f   :  { %v13012_v37 = vmul.f32 %v12692_v12, %v12756_v30  ;;  %v13016_v56 = vmul.f32 %v12692_v12, %v12761_v43  ;;  %v13020_v29 = vmul.f32 %v12692_v12, %v12765_v41  ;;  %v13024_v38 = vmul.f32 %v12692_v12, %v12769_v63 }
 0x890   :  { %v13028_v57 = vmul.f32 %v12692_v12, %v12773_v51  ;;  %v13032_v42 = vmul.f32 %v12692_v12, %v12777_v3  ;;  %v13036_v30 = vmul.f32 %v12692_v12, %v12781_v2  ;;  %v13040_v43 = vmul.f32 %v12692_v12, %v12785_v40 }
 0x891   :  { %v13044_v41 = vmul.f32 %v12692_v12, %v12792_v35  ;;  %v13048_v63 = vmul.f32 %v12692_v12, %v12796_v6  ;;  %v13052_v51 = vmul.f32 %v12692_v12, %v12800_v45  ;;  %v13056_v3 = vmul.f32 %v12692_v12, %v12804_v26 }
 0x892   :  { %v13060_v2 = vmul.f32 %v12692_v12, %v12808_v22  ;;  %v13064_v40 = vmul.f32 %v12692_v12, %v12812_v23  ;;  %v13068_v35 = vmul.f32 %v12692_v12, %v12816_v44  ;;  %v13072_v6 = vmul.f32 %v12692_v12, %v12820_v55  ;;  %v14436_v44 = vld [vmem:[#allocation17_spill] sm:$0xff] }
 0x893   :  { %v13076_v45 = vmul.f32 %v12692_v12, %v12824_v47  ;;  %v13080_v26 = vmul.f32 %v12692_v12, %v12828_v52  ;;  %v13084_v22 = vmul.f32 %v12692_v12, %v12832_v27  ;;  %v13088_v23 = vmul.f32 %v12692_v12, %v12836_v1 }
 0x894   :  { %v13092_v55 = vmul.f32 %v12692_v12, %v14436_v44  ;;  %v13096_v47 = vmul.f32 %v12692_v12, %v12844_v34  ;;  %v13100_v52 = vmul.f32 %v12692_v12, %v12848_v15  ;;  %v13104_v27 = vmul.f32 %v12692_v12, %v12852_v5 }
 0x895   :  { %v13108_v1 = vmul.f32 %v12692_v12, %v12856_v17  ;;  %v13112_v44 = vmul.f32 %v12692_v12, %v12860_v46  ;;  %v13116_v34 = vmul.f32 %v12692_v12, %v12864_v33  ;;  %v13120_v15 = vmul.f32 %v12692_v12, %v12868_v48 }
 0x896   :  { %v13124_v5 = vmul.f32 %v12692_v12, %v12872_v24  ;;  %v13128_v17 = vmul.f32 %v12692_v12, %v12876_v8  ;;  %v13132_v46 = vmul.f32 %v12692_v12, %v12880_v54  ;;  %v13136_v33 = vmul.f32 %v12692_v12, %v12884_v49 }
 0x897   :  { %v13140_v48 = vmul.f32 %v12692_v12, %v12888_v28  ;;  %v13144_v24 = vmul.f32 %v12692_v12, %v12892_v58  ;;  %v13148_v8 = vmul.f32 %v12692_v12, %v12896_v0  ;;  %v13152_v54 = vmul.f32 %v12692_v12, %v12900_v21 }
 0x898   :  { %v13156_v49 = vmul.f32 %v12692_v12, %v12904_v10  ;;  %v13160_v28 = vmul.f32 %v12692_v12, %v12908_v60 }
 0x899   :  { %14437 = vst [vmem:[#allocation15_spill] sm:$0xff] %v13140_v48  ;;  %14438 = vst [vmem:[#allocation22_spill] sm:$0xff] %v13144_v24  ;;  %v14442_v48 = vld [vmem:[#allocation18_spill] sm:$0xff]  ;;  %v14443_v24 = vld [vmem:[#allocation19_spill] sm:$0xff] }
 0x89a   :  { %14439 = vst [vmem:[#allocation23_spill] sm:$0xff] %v13148_v8  ;;  %14440 = vst [vmem:[#allocation24_spill] sm:$0xff] %v13152_v54  ;;  %v13164_v58 = vmul.f32 %v12692_v12, %v14442_v48  ;;  %v13168_v0 = vmul.f32 %v12692_v12, %v14443_v24  ;;  %v14444_v8 = vld [vmem:[#allocation20_spill] sm:$0xff]  ;;  %v14445_v54 = vld [vmem:[#allocation21_spill] sm:$0xff]  ;;  %v13184_v48 = vmul.f32 %v12692_v12, %v12932_v62 }
 0x89b   :  { %14441 = vst [vmem:[#allocation25_spill] sm:$0xff] %v13156_v49  ;;  %v13172_v21 = vmul.f32 %v12692_v12, %v14444_v8  ;;  %v13176_v10 = vmul.f32 %v12692_v12, %v14445_v54  ;;  %v14446_v49 = vld [vmem:[#allocation9_spill] sm:$0xff]  ;;  %v13188_v24 = vmul.f32 %v12692_v12, %v12936_v50  ;;  %v13192_v8 = vmul.f32 %v12692_v12, %v12940_v7 }
 0x89c   :  { %v13180_v60 = vmul.f32 %v12692_v12, %v14446_v49  ;;  %v13196_v54 = vmul.f32 %v12692_v12, %v12944_v31  ;;  %v13200_v49 = vmul.f32 %v12692_v12, %v12948_v39  ;;  %v13204_v62 = vmul.f32 %v12692_v12, %v12952_v20 }
 0x89d   :  { %14447 = vst [vmem:[#allocation26_spill] sm:$0xff] %v13188_v24  ;;  %v13208_v50 = vmul.f32 %v12692_v12, %v12956_v14  ;;  %v14448_v24 = vld [vmem:[#allocation16_spill] sm:$0xff] }
 0x89e   :  { %v13212_v7 = vadd.f32 %v14448_v24, %v12960_v25  ;;  %v13216_v31 = vadd.f32 %v14448_v24, %v12964_v4  ;;  %v13220_v39 = vadd.f32 %v14448_v24, %v12968_v59  ;;  %v13224_v20 = vadd.f32 %v14448_v24, %v12972_v9 }
 0x89f   :  { %v13228_v12 = vadd.f32 %v14448_v24, %v12976_v19  ;;  %v13232_v14 = vadd.f32 %v14448_v24, %v12980_v53  ;;  %v13236_v25 = vadd.f32 %v14448_v24, %v12984_v16  ;;  %v13240_v4 = vadd.f32 %v14448_v24, %v12988_v32 }
 0x8a0   :  { %v13244_v59 = vadd.f32 %v14448_v24, %v12992_v36  ;;  %v13248_v9 = vadd.f32 %v14448_v24, %v12996_v13  ;;  %v13252_v19 = vadd.f32 %v14448_v24, %v13000_v18  ;;  %v13256_v53 = vadd.f32 %v14448_v24, %v13004_v11 }
 0x8a1   :  { %v13260_v16 = vadd.f32 %v14448_v24, %v13008_v61  ;;  %v13264_v32 = vadd.f32 %v14448_v24, %v13012_v37  ;;  %v13268_v36 = vadd.f32 %v14448_v24, %v13016_v56  ;;  %v13272_v13 = vadd.f32 %v14448_v24, %v13020_v29 }
 0x8a2   :  { %v13276_v18 = vadd.f32 %v14448_v24, %v13024_v38  ;;  %v13280_v11 = vadd.f32 %v14448_v24, %v13028_v57  ;;  %v13284_v61 = vadd.f32 %v14448_v24, %v13032_v42  ;;  %v13288_v37 = vadd.f32 %v14448_v24, %v13036_v30 }
 0x8a3   :  { %v13292_v56 = vadd.f32 %v14448_v24, %v13040_v43  ;;  %v13296_v29 = vadd.f32 %v14448_v24, %v13044_v41  ;;  %v13300_v38 = vadd.f32 %v14448_v24, %v13048_v63  ;;  %v13304_v57 = vadd.f32 %v14448_v24, %v13052_v51 }
 0x8a4   :  { %v13308_v42 = vadd.f32 %v14448_v24, %v13056_v3  ;;  %v13312_v30 = vadd.f32 %v14448_v24, %v13060_v2  ;;  %v13316_v43 = vadd.f32 %v14448_v24, %v13064_v40  ;;  %v13320_v41 = vadd.f32 %v14448_v24, %v13068_v35 }
 0x8a5   :  { %v13324_v63 = vadd.f32 %v14448_v24, %v13072_v6  ;;  %v13328_v51 = vadd.f32 %v14448_v24, %v13076_v45  ;;  %v13332_v3 = vadd.f32 %v14448_v24, %v13080_v26  ;;  %v13336_v2 = vadd.f32 %v14448_v24, %v13084_v22 }
 0x8a6   :  { %v13340_v40 = vadd.f32 %v14448_v24, %v13088_v23  ;;  %v13344_v35 = vadd.f32 %v14448_v24, %v13092_v55  ;;  %v13348_v6 = vadd.f32 %v14448_v24, %v13096_v47  ;;  %v13352_v45 = vadd.f32 %v14448_v24, %v13100_v52 }
 0x8a7   :  { %v13356_v26 = vadd.f32 %v14448_v24, %v13104_v27  ;;  %v13360_v22 = vadd.f32 %v14448_v24, %v13108_v1  ;;  %v13364_v23 = vadd.f32 %v14448_v24, %v13112_v44  ;;  %v13368_v55 = vadd.f32 %v14448_v24, %v13116_v34  ;;  %v14453_v34 = vld [vmem:[#allocation15_spill] sm:$0xff] }
 0x8a8   :  { %v13372_v47 = vadd.f32 %v14448_v24, %v13120_v15  ;;  %v13376_v52 = vadd.f32 %v14448_v24, %v13124_v5  ;;  %v13380_v27 = vadd.f32 %v14448_v24, %v13128_v17  ;;  %v13384_v1 = vadd.f32 %v14448_v24, %v13132_v46 }
 0x8a9   :  { %v13388_v44 = vadd.f32 %v14448_v24, %v13136_v33  ;;  %v13392_v15 = vadd.f32 %v14448_v24, %v14453_v34  ;;  %v13412_v34 = vadd.f32 %v14448_v24, %v13160_v28  ;;  %v13432_v28 = vadd.f32 %v14448_v24, %v13180_v60 }
 0x8aa   :  { %14449 = vst [vmem:[#allocation27_spill] sm:$0xff] %v13372_v47  ;;  %14450 = vst [vmem:[#allocation28_spill] sm:$0xff] %v13376_v52  ;;  %v14454_v47 = vld [vmem:[#allocation22_spill] sm:$0xff]  ;;  %v14455_v52 = vld [vmem:[#allocation23_spill] sm:$0xff]  ;;  %v13452_v60 = vadd.f32 %v14448_v24, %v13200_v49 }
 0x8ab   :  { %14451 = vst [vmem:[#allocation29_spill] sm:$0xff] %v13380_v27  ;;  %14452 = vst [vmem:[#allocation36_spill] sm:$0xff] %v13384_v1  ;;  %v13396_v5 = vadd.f32 %v14448_v24, %v14454_v47  ;;  %v13400_v17 = vadd.f32 %v14448_v24, %v14455_v52  ;;  %v14456_v27 = vld [vmem:[#allocation24_spill] sm:$0xff]  ;;  %v14457_v1 = vld [vmem:[#allocation25_spill] sm:$0xff]  ;;  %v13416_v47 = vadd.f32 %v14448_v24, %v13164_v58 }
 0x8ac   :  { %v13404_v46 = vadd.f32 %v14448_v24, %v14456_v27  ;;  %v13408_v33 = vadd.f32 %v14448_v24, %v14457_v1  ;;  %v13420_v52 = vadd.f32 %v14448_v24, %v13168_v0  ;;  %v13424_v27 = vadd.f32 %v14448_v24, %v13172_v21 }
 0x8ad   :  { %14458 = vst [vmem:[#allocation37_spill] sm:$0xff] %v13416_v47  ;;  %v13428_v1 = vadd.f32 %v14448_v24, %v13176_v10  ;;  %v13436_v58 = vadd.f32 %v14448_v24, %v13184_v48  ;;  %v14459_v47 = vld [vmem:[#allocation26_spill] sm:$0xff]  ;;  %v13444_v21 = vadd.f32 %v14448_v24, %v13192_v8  ;;  %v13448_v10 = vadd.f32 %v14448_v24, %v13196_v54  ;;  %v7530_v8 = vld [vmem:[%s13909_s0 + $0x19] sm:$0xff] }
 0x8ae   :  { %v13440_v0 = vadd.f32 %v14448_v24, %v14459_v47  ;;  %v13456_v48 = vadd.f32 %v14448_v24, %v13204_v62  ;;  %v13460_v47 = vadd.f32 %v14448_v24, %v13208_v50  ;;  %v7531_v54 = vld [vmem:[%s13909_s0 + $0x21] sm:$0xff]  ;;  %v7532_v62 = vld [vmem:[%s13909_s0 + $0x31] sm:$0xff]  ;;  %v7533_v50 = vld [vmem:[%s13909_s0 + $0x39] sm:$0xff] }
 0x8af   :  { %14460 = vst [vmem:[#allocation38_spill] sm:$0xff] %v13444_v21  ;;  %v13466_v21 = vadd.f32 %v7530_v8, %v13212_v7  ;;  %v13472_v49 = vadd.f32 %v7531_v54, %v13216_v31  ;;  %v13478_v24 = vadd.f32 %v7532_v62, %v13220_v39  ;;  %v13484_v7 = vadd.f32 %v7533_v50, %v13224_v20  ;;  %v7534_v8 = vld [vmem:[%s13909_s0 + $0x49] sm:$0xff]  ;;  %v7535_v54 = vld [vmem:[%s13909_s0 + $0x51] sm:$0xff]  ;;  %v7536_v62 = vld [vmem:[%s13909_s0 + $0x61] sm:$0xff] }
 0x8b0   :  { %v13490_v31 = vadd.f32 %v7534_v8, %v13228_v12  ;;  %v13496_v39 = vadd.f32 %v7535_v54, %v13232_v14  ;;  %v13502_v20 = vadd.f32 %v7536_v62, %v13236_v25  ;;  %v7537_v50 = vld [vmem:[%s13909_s0 + $0x69] sm:$0xff]  ;;  %v7538_v8 = vld [vmem:[%s13909_s0 + $0x79] sm:$0xff]  ;;  %v7539_v54 = vld [vmem:[%s13909_s0 + $0x81] sm:$0xff] }
 0x8b1   :  { %v13508_v12 = vadd.f32 %v7537_v50, %v13240_v4  ;;  %v13514_v14 = vadd.f32 %v7538_v8, %v13244_v59  ;;  %v13520_v25 = vadd.f32 %v7539_v54, %v13248_v9  ;;  %v7540_v62 = vld [vmem:[%s13909_s0 + $0x91] sm:$0xff]  ;;  %v7541_v50 = vld [vmem:[%s13909_s0 + $0x99] sm:$0xff]  ;;  %v7542_v8 = vld [vmem:[%s13909_s0 + $0xa9] sm:$0xff] }
 0x8b2   :  { %v13526_v4 = vadd.f32 %v7540_v62, %v13252_v19  ;;  %v13532_v59 = vadd.f32 %v7541_v50, %v13256_v53  ;;  %v13538_v9 = vadd.f32 %v7542_v8, %v13260_v16  ;;  %v7543_v54 = vld [vmem:[%s13909_s0 + $0xb1] sm:$0xff]  ;;  %v7544_v62 = vld [vmem:[%s13909_s0 + $0xc1] sm:$0xff]  ;;  %v7545_v50 = vld [vmem:[%s13909_s0 + $0xc9] sm:$0xff] }
 0x8b3   :  { %v13544_v19 = vadd.f32 %v7543_v54, %v13264_v32  ;;  %v13550_v53 = vadd.f32 %v7544_v62, %v13268_v36  ;;  %v13556_v16 = vadd.f32 %v7545_v50, %v13272_v13  ;;  %v7546_v8 = vld [vmem:[%s13909_s0 + $0xd9] sm:$0xff]  ;;  %v7547_v54 = vld [vmem:[%s13909_s0 + $0xe1] sm:$0xff]  ;;  %v7548_v62 = vld [vmem:[%s13909_s0 + $0xf1] sm:$0xff] }
 0x8b4   :  { %v13562_v32 = vadd.f32 %v7546_v8, %v13276_v18  ;;  %v13568_v36 = vadd.f32 %v7547_v54, %v13280_v11  ;;  %v13574_v13 = vadd.f32 %v7548_v62, %v13284_v61  ;;  %v7549_v50 = vld [vmem:[%s13909_s0 + $0xf9] sm:$0xff]  ;;  %v7550_v8 = vld [vmem:[%s13909_s0 + $0x109] sm:$0xff]  ;;  %v7551_v54 = vld [vmem:[%s13909_s0 + $0x111] sm:$0xff] }
 0x8b5   :  { %v13580_v18 = vadd.f32 %v7549_v50, %v13288_v37  ;;  %v13586_v11 = vadd.f32 %v7550_v8, %v13292_v56  ;;  %v13592_v61 = vadd.f32 %v7551_v54, %v13296_v29  ;;  %v7552_v62 = vld [vmem:[%s13909_s0 + $0x121] sm:$0xff]  ;;  %v7553_v50 = vld [vmem:[%s13909_s0 + $0x129] sm:$0xff]  ;;  %v7554_v8 = vld [vmem:[%s13909_s0 + $0x139] sm:$0xff] }
 0x8b6   :  { %v13598_v37 = vadd.f32 %v7552_v62, %v13300_v38  ;;  %v13604_v56 = vadd.f32 %v7553_v50, %v13304_v57  ;;  %v13610_v29 = vadd.f32 %v7554_v8, %v13308_v42  ;;  %v7555_v54 = vld [vmem:[%s13909_s0 + $0x141] sm:$0xff]  ;;  %v7556_v62 = vld [vmem:[%s13909_s0 + $0x151] sm:$0xff]  ;;  %v7557_v50 = vld [vmem:[%s13909_s0 + $0x159] sm:$0xff] }
 0x8b7   :  { %v13616_v38 = vadd.f32 %v7555_v54, %v13312_v30  ;;  %v13622_v57 = vadd.f32 %v7556_v62, %v13316_v43  ;;  %v13628_v42 = vadd.f32 %v7557_v50, %v13320_v41  ;;  %v7558_v8 = vld [vmem:[%s13909_s0 + $0x169] sm:$0xff]  ;;  %v7559_v54 = vld [vmem:[%s13909_s0 + $0x171] sm:$0xff]  ;;  %v7560_v62 = vld [vmem:[%s13909_s0 + $0x181] sm:$0xff] }
 0x8b8   :  { %v13634_v30 = vadd.f32 %v7558_v8, %v13324_v63  ;;  %v13640_v43 = vadd.f32 %v7559_v54, %v13328_v51  ;;  %v13646_v41 = vadd.f32 %v7560_v62, %v13332_v3  ;;  %v7561_v50 = vld [vmem:[%s13909_s0 + $0x189] sm:$0xff]  ;;  %v7563_v54 = vld [vmem:[%s13909_s0 + $0x1d1] sm:$0xff]  ;;  %v7564_v62 = vld [vmem:[%s13909_s0 + $0x1e1] sm:$0xff] }
 0x8b9   :  { %v13652_v63 = vadd.f32 %v7561_v50, %v13336_v2  ;;  %v7562_v8 = vld [vmem:[%s13909_s0 + $0x1c9] sm:$0xff]  ;;  %v13664_v3 = vadd.f32 %v7563_v54, %v13344_v35  ;;  %v13670_v2 = vadd.f32 %v7564_v62, %v13348_v6  ;;  %v7567_v54 = vld [vmem:[%s13909_s0 + $0x201] sm:$0xff]  ;;  %v7568_v62 = vld [vmem:[%s13909_s0 + $0x211] sm:$0xff] }
 0x8ba   :  { %v13658_v51 = vadd.f32 %v7562_v8, %v13340_v40  ;;  %v7565_v50 = vld [vmem:[%s13909_s0 + $0x1e9] sm:$0xff]  ;;  %v7566_v8 = vld [vmem:[%s13909_s0 + $0x1f9] sm:$0xff]  ;;  %v13688_v6 = vadd.f32 %v7567_v54, %v13360_v22 }
 0x8bb   :  { %v13676_v40 = vadd.f32 %v7565_v50, %v13352_v45  ;;  %v13682_v35 = vadd.f32 %v7566_v8, %v13356_v26  ;;  %v13694_v45 = vadd.f32 %v7568_v62, %v13364_v23  ;;  %v7569_v50 = vld [vmem:[%s13909_s0 + $0x219] sm:$0xff]  ;;  %v7570_v8 = vld [vmem:[%s13909_s0 + $0x229] sm:$0xff] }
 0x8bc   :  { %14461 = vst [vmem:[#allocation10_spill] sm:$0xff] %v13688_v6  ;;  %v13700_v26 = vadd.f32 %v7569_v50, %v13368_v55  ;;  %v14464_v22 = vld [vmem:[#allocation27_spill] sm:$0xff]  ;;  %v14466_v23 = vld [vmem:[#allocation28_spill] sm:$0xff]  ;;  %v14467_v55 = vld [vmem:[#allocation29_spill] sm:$0xff] }
 0x8bd   :  { %14462 = vst [vmem:[#allocation30_spill] sm:$0xff] %v13694_v45  ;;  %v13706_v54 = vadd.f32 %v7570_v8, %v14464_v22  ;;  %v7571_v6 = vld [vmem:[%s13909_s0 + $0x231] sm:$0xff]  ;;  %v7572_v45 = vld [vmem:[%s13909_s0 + $0x241] sm:$0xff] }
 0x8be   :  { %14463 = vst [vmem:[#allocation31_spill] sm:$0xff] %v13700_v26  ;;  %v13712_v62 = vadd.f32 %v7571_v6, %v14466_v23  ;;  %v13718_v50 = vadd.f32 %v7572_v45, %v14467_v55  ;;  %v7573_v26 = vld [vmem:[%s13909_s0 + $0x249] sm:$0xff]  ;;  %v14468_v8 = vld [vmem:[#allocation36_spill] sm:$0xff]  ;;  %v7575_v23 = vld [vmem:[%s13909_s0 + $0x261] sm:$0xff] }
 0x8bf   :  { %14465 = vst [vmem:[#allocation32_spill] sm:$0xff] %v13706_v54  ;;  %v13724_v22 = vadd.f32 %v7573_v26, %v14468_v8  ;;  %v7574_v54 = vld [vmem:[%s13909_s0 + $0x259] sm:$0xff]  ;;  %v13736_v45 = vadd.f32 %v7575_v23, %v13392_v15  ;;  %v7576_v55 = vld [vmem:[%s13909_s0 + $0x271] sm:$0xff] }
 0x8c0   :  { %v13730_v6 = vadd.f32 %v7574_v54, %v13388_v44  ;;  %v13742_v26 = vadd.f32 %v7576_v55, %v13396_v5  ;;  %v7577_v8 = vld [vmem:[%s13909_s0 + $0x279] sm:$0xff]  ;;  %v7578_v54 = vld [vmem:[%s13909_s0 + $0x289] sm:$0xff]  ;;  %v7579_v23 = vld [vmem:[%s13909_s0 + $0x291] sm:$0xff] }
 0x8c1   :  { %v13748_v44 = vadd.f32 %v7577_v8, %v13400_v17  ;;  %v13754_v15 = vadd.f32 %v7578_v54, %v13404_v46  ;;  %v13760_v5 = vadd.f32 %v7579_v23, %v13408_v33  ;;  %v7580_v55 = vld [vmem:[%s13909_s0 + $0x2a1] sm:$0xff]  ;;  %v7581_v8 = vld [vmem:[%s13909_s0 + $0x2a9] sm:$0xff] }
 0x8c2   :  { %v13766_v17 = vadd.f32 %v7580_v55, %v13412_v34  ;;  %v14470_v46 = vld [vmem:[#allocation37_spill] sm:$0xff]  ;;  %v7584_v55 = vld [vmem:[%s13909_s0 + $0x2d1] sm:$0xff] }
 0x8c3   :  { %14469 = vst [vmem:[#allocation44_spill] sm:$0xff] %v13754_v15  ;;  %v13772_v54 = vadd.f32 %v7581_v8, %v14470_v46  ;;  %v7582_v15 = vld [vmem:[%s13909_s0 + $0x2b9] sm:$0xff]  ;;  %v7583_v23 = vld [vmem:[%s13909_s0 + $0x2c1] sm:$0xff]  ;;  %v13790_v8 = vadd.f32 %v7584_v55, %v13428_v1 }
 0x8c4   :  { %v13778_v33 = vadd.f32 %v7582_v15, %v13420_v52  ;;  %v13784_v34 = vadd.f32 %v7583_v23, %v13424_v27  ;;  %v7585_v46 = vld [vmem:[%s13909_s0 + $0x2d9] sm:$0xff]  ;;  %v7586_v15 = vld [vmem:[%s13909_s0 + $0x2e9] sm:$0xff]  ;;  %v7587_v23 = vld [vmem:[%s13909_s0 + $0x2f1] sm:$0xff] }
 0x8c5   :  { %v13796_v52 = vadd.f32 %v7585_v46, %v13432_v28  ;;  %v13802_v27 = vadd.f32 %v7586_v15, %v13436_v58  ;;  %v13808_v1 = vadd.f32 %v7587_v23, %v13440_v0  ;;  %v7588_v55 = vld [vmem:[%s13909_s0 + $0x301] sm:$0xff]  ;;  %v7590_v15 = vld [vmem:[%s13909_s0 + $0x319] sm:$0xff] }
 0x8c6   :  { %v14472_v28 = vld [vmem:[#allocation38_spill] sm:$0xff]  ;;  %v13826_v0 = vadd.f32 %v7590_v15, %v13452_v60  ;;  %v6567_v60 = vmax.f32 %v13478_v24, 0.0  ;;  %v6568_v15 = vmax.f32 %v13484_v7, 0.0  ;;  %v6577_v24 = vmax.f32 %v13538_v9, 0.0 }
 0x8c7   :  { %14471 = vst [vmem:[#allocation45_spill] sm:$0xff] %v13796_v52  ;;  %v13814_v46 = vadd.f32 %v7588_v55, %v14472_v28  ;;  %v7589_v52 = vld [vmem:[%s13909_s0 + $0x309] sm:$0xff]  ;;  %v7591_v23 = vld [vmem:[%s13909_s0 + $0x321] sm:$0xff]  ;;  %v7592_v28 = vld [vmem:[%s13909_s0 + $0x339] sm:$0xff]  ;;  %v6578_v7 = vmax.f32 %v13544_v19, 0.0  ;;  %v6587_v9 = vmax.f32 %v13598_v37, 0.0 }
 0x8c8   :  { %v13820_v58 = vadd.f32 %v7589_v52, %v13448_v10  ;;  %14475 = vst [vmem:[#allocation13_spill] sm:$0xff] %v13826_v0  ;;  %v13832_v55 = vadd.f32 %v7591_v23, %v13456_v48  ;;  %v13838_v10 = vadd.f32 %v7592_v28, %v13460_v47  ;;  %v6565_v52 = vmax.f32 %v13466_v21, 0.0  ;;  %6631 = vst [vmem:[#allocation6 + $0x10] sm:$0xff] %v6567_v60  ;;  %s7641_s0 = smov [#allocation6]  }
 0x8c9   :  { %14473 = vst [vmem:[#allocation11_spill] sm:$0xff] %v13814_v46  ;;  %v6569_v0 = vmax.f32 %v13490_v31, 0.0  ;;  %v6570_v48 = vmax.f32 %v13496_v39, 0.0  ;;  %v6571_v23 = vmax.f32 %v13502_v20, 0.0  ;;  %v6573_v46 = vmax.f32 %v13514_v14, 0.0  ;;  %6632 = vst [vmem:[#allocation6 + $0x18] sm:$0xff] %v6568_v15 }
 0x8ca   :  { %14474 = vst [vmem:[#allocation12_spill] sm:$0xff] %v13820_v58  ;;  %14476 = vst [vmem:[#allocation14_spill] sm:$0xff] %v13832_v55  ;;  %v6566_v58 = vmax.f32 %v13472_v49, 0.0  ;;  %v6572_v55 = vmax.f32 %v13508_v12, 0.0  ;;  %v6574_v47 = vmax.f32 %v13520_v25, 0.0  ;;  %v6575_v21 = vmax.f32 %v13526_v4, 0.0 }
 0x8cb   :  { %6629 = vst [vmem:[#allocation6] sm:$0xff] %v6565_v52  ;;  %v6576_v49 = vmax.f32 %v13532_v59, 0.0  ;;  %v6579_v31 = vmax.f32 %v13550_v53, 0.0  ;;  %6633 = vst [vmem:[#allocation6 + $0x20] sm:$0xff] %v6569_v0  ;;  %v6580_v39 = vmax.f32 %v13556_v16, 0.0  ;;  %v6581_v20 = vmax.f32 %v13562_v32, 0.0 }
 0x8cc   :  { %6630 = vst [vmem:[#allocation6 + $0x8] sm:$0xff] %v6566_v58  ;;  %6634 = vst [vmem:[#allocation6 + $0x28] sm:$0xff] %v6570_v48  ;;  %v6582_v12 = vmax.f32 %v13568_v36, 0.0  ;;  %v6583_v14 = vmax.f32 %v13574_v13, 0.0  ;;  %v6584_v25 = vmax.f32 %v13580_v18, 0.0  ;;  %v6585_v4 = vmax.f32 %v13586_v11, 0.0 }
 0x8cd   :  { %6635 = vst [vmem:[#allocation6 + $0x30] sm:$0xff] %v6571_v23  ;;  %6636 = vst [vmem:[#allocation6 + $0x38] sm:$0xff] %v6572_v55  ;;  %v6586_v59 = vmax.f32 %v13592_v61, 0.0  ;;  %v6588_v19 = vmax.f32 %v13604_v56, 0.0  ;;  %v6589_v53 = vmax.f32 %v13610_v29, 0.0  ;;  %v6590_v16 = vmax.f32 %v13616_v38, 0.0 }
 0x8ce   :  { %6637 = vst [vmem:[#allocation6 + $0x40] sm:$0xff] %v6573_v46  ;;  %6638 = vst [vmem:[#allocation6 + $0x48] sm:$0xff] %v6574_v47  ;;  %v6591_v32 = vmax.f32 %v13622_v57, 0.0  ;;  %v6592_v36 = vmax.f32 %v13628_v42, 0.0  ;;  %v6593_v13 = vmax.f32 %v13634_v30, 0.0  ;;  %v6594_v18 = vmax.f32 %v13640_v43, 0.0 }
 0x8cf   :  { %6639 = vst [vmem:[#allocation6 + $0x50] sm:$0xff] %v6575_v21  ;;  %6640 = vst [vmem:[#allocation6 + $0x58] sm:$0xff] %v6576_v49  ;;  %v6595_v11 = vmax.f32 %v13646_v41, 0.0  ;;  %v6596_v61 = vmax.f32 %v13652_v63, 0.0  ;;  %v6597_v37 = vmax.f32 %v13658_v51, 0.0  ;;  %v6598_v56 = vmax.f32 %v13664_v3, 0.0 }
 0x8d0   :  { %6641 = vst [vmem:[#allocation6 + $0x60] sm:$0xff] %v6577_v24  ;;  %6642 = vst [vmem:[#allocation6 + $0x68] sm:$0xff] %v6578_v7  ;;  %v6599_v29 = vmax.f32 %v13670_v2, 0.0  ;;  %v6600_v38 = vmax.f32 %v13676_v40, 0.0  ;;  %v6601_v57 = vmax.f32 %v13682_v35, 0.0  ;;  %v14477_v42 = vld [vmem:[#allocation10_spill] sm:$0xff] }
 0x8d1   :  { %6643 = vst [vmem:[#allocation6 + $0x70] sm:$0xff] %v6579_v31  ;;  %6644 = vst [vmem:[#allocation6 + $0x78] sm:$0xff] %v6580_v39  ;;  %v6602_v30 = vmax.f32 %v14477_v42, 0.0  ;;  %v14478_v43 = vld [vmem:[#allocation30_spill] sm:$0xff]  ;;  %v14479_v63 = vld [vmem:[#allocation31_spill] sm:$0xff]  ;;  %v6606_v46 = vmax.f32 %v13712_v62, 0.0 }
 0x8d2   :  { %6645 = vst [vmem:[#allocation6 + $0x80] sm:$0xff] %v6581_v20  ;;  %6646 = vst [vmem:[#allocation6 + $0x88] sm:$0xff] %v6582_v12  ;;  %v6603_v41 = vmax.f32 %v14478_v43, 0.0  ;;  %v6604_v51 = vmax.f32 %v14479_v63, 0.0  ;;  %v14480_v3 = vld [vmem:[#allocation32_spill] sm:$0xff]  ;;  %v6607_v58 = vmax.f32 %v13718_v50, 0.0 }
 0x8d3   :  { %6647 = vst [vmem:[#allocation6 + $0x90] sm:$0xff] %v6583_v14  ;;  %6648 = vst [vmem:[#allocation6 + $0x98] sm:$0xff] %v6584_v25  ;;  %v6605_v2 = vmax.f32 %v14480_v3, 0.0  ;;  %v6608_v40 = vmax.f32 %v13724_v22, 0.0  ;;  %v6609_v35 = vmax.f32 %v13730_v6, 0.0  ;;  %v6610_v0 = vmax.f32 %v13736_v45, 0.0 }
 0x8d4   :  { %6649 = vst [vmem:[#allocation6 + $0xa0] sm:$0xff] %v6585_v4  ;;  %6650 = vst [vmem:[#allocation6 + $0xa8] sm:$0xff] %v6586_v59  ;;  %v6611_v55 = vmax.f32 %v13742_v26, 0.0  ;;  %v6612_v62 = vmax.f32 %v13748_v44, 0.0  ;;  %v14481_v28 = vld [vmem:[#allocation44_spill] sm:$0xff]  ;;  %v6614_v52 = vmax.f32 %v13760_v5, 0.0 }
 0x8d5   :  { %6651 = vst [vmem:[#allocation6 + $0xb0] sm:$0xff] %v6587_v9  ;;  %6652 = vst [vmem:[#allocation6 + $0xb8] sm:$0xff] %v6588_v19  ;;  %v6613_v50 = vmax.f32 %v14481_v28, 0.0  ;;  %v6615_v60 = vmax.f32 %v13766_v17, 0.0  ;;  %s6698_s9 = sshll.u32 %s7641_s0, 4  ;;  %v6616_v22 = vmax.f32 %v13772_v54, 0.0  ;;  %s6699_s9 = int_to_ptr.vmem [resolvable:$true] %s6698_s9 }
 0x8d6   :  { %6653 = vst [vmem:[#allocation6 + $0xc0] sm:$0xff] %v6589_v53  ;;  %6654 = vst [vmem:[#allocation6 + $0xc8] sm:$0xff] %v6590_v16  ;;  %v6617_v6 = vmax.f32 %v13778_v33, 0.0  ;;  %v6618_v45 = vmax.f32 %v13784_v34, 0.0  ;;  %v6619_v26 = vmax.f32 %v13790_v8, 0.0  ;;  %v14482_v44 = vld [vmem:[#allocation45_spill] sm:$0xff]  ;;  %p7618_p6 = scmp.lt.s32.totalorder %s6699_s9, %s6699_s9 }
 0x8d7   :  { %6655 = vst [vmem:[#allocation6 + $0xd0] sm:$0xff] %v6591_v32  ;;  %6656 = vst [vmem:[#allocation6 + $0xd8] sm:$0xff] %v6592_v36  ;;  %v6620_v5 = vmax.f32 %v14482_v44, 0.0  ;;  %v6621_v17 = vmax.f32 %v13802_v27, 0.0  ;;  %v6622_v15 = vmax.f32 %v13808_v1, 0.0  ;;  %v14483_v48 = vld [vmem:[#allocation11_spill] sm:$0xff] }
 0x8d8   :  { %6657 = vst [vmem:[#allocation6 + $0xe0] sm:$0xff] %v6593_v13  ;;  %6658 = vst [vmem:[#allocation6 + $0xe8] sm:$0xff] %v6594_v18  ;;  %v6623_v23 = vmax.f32 %v14483_v48, 0.0  ;;  %v14484_v54 = vld [vmem:[#allocation12_spill] sm:$0xff]  ;;  %v14485_v34 = vld [vmem:[#allocation13_spill] sm:$0xff]  ;;  %v6628_v49 = vmax.f32 %v13838_v10, 0.0 }
 0x8d9   :  { %6659 = vst [vmem:[#allocation6 + $0xf0] sm:$0xff] %v6595_v11  ;;  %6660 = vst [vmem:[#allocation6 + $0xf8] sm:$0xff] %v6596_v61  ;;  %v6624_v33 = vmax.f32 %v14484_v54, 0.0  ;;  %v6625_v8 = vmax.f32 %v14485_v34, 0.0  ;;  %v14486_v47 = vld [vmem:[#allocation14_spill] sm:$0xff]  ;;  %s7613_s10 = scalar_lea.vmem %s6699_s9, 8192 }
 0x8da   :  { %6661 = vst [vmem:[#allocation6 + $0x100] sm:$0xff] %v6597_v37  ;;  %6662 = vst [vmem:[#allocation6 + $0x108] sm:$0xff] %v6598_v56  ;;  %v6626_v21 = vmax.f32 %v14486_v47, 0.0  ;;  %p7614_p5 = scmp.ne.s32.totalorder %s6699_s9, %s7613_s10  ;;  %p7619_p7 = scmp.lt.s32.totalorder %s7613_s10, %s7613_s10 }
 0x8db   :  { %6663 = vst [vmem:[#allocation6 + $0x110] sm:$0xff] %v6599_v29  ;;  %6664 = vst [vmem:[#allocation6 + $0x118] sm:$0xff] %v6600_v38 }
 0x8dc   :  { %6665 = vst [vmem:[#allocation6 + $0x120] sm:$0xff] %v6601_v57  ;;  %6666 = vst [vmem:[#allocation6 + $0x128] sm:$0xff] %v6602_v30  ;;  %p7620_p8 = por %p7619_p7, %p7618_p6 }
 0x8dd   :  { %6667 = vst [vmem:[#allocation6 + $0x130] sm:$0xff] %v6603_v41  ;;  %6668 = vst [vmem:[#allocation6 + $0x138] sm:$0xff] %v6604_v51 }
 0x8de   :  { %6669 = vst [vmem:[#allocation6 + $0x140] sm:$0xff] %v6605_v2  ;;  %6670 = vst [vmem:[#allocation6 + $0x148] sm:$0xff] %v6606_v46  ;;  %p7621_p9 = pnand %p7620_p8, %p7614_p5 }
 0x8df   :  { %6671 = vst [vmem:[#allocation6 + $0x150] sm:$0xff] %v6607_v58  ;;  %6672 = vst [vmem:[#allocation6 + $0x158] sm:$0xff] %v6608_v40 }
 0x8e0   :  { %6673 = vst [vmem:[#allocation6 + $0x160] sm:$0xff] %v6609_v35  ;;  %6674 = vst [vmem:[#allocation6 + $0x168] sm:$0xff] %v6610_v0 }
 0x8e1   :  { %6675 = vst [vmem:[#allocation6 + $0x170] sm:$0xff] %v6611_v55  ;;  %6676 = vst [vmem:[#allocation6 + $0x178] sm:$0xff] %v6612_v62 }
 0x8e2   :  { %6677 = vst [vmem:[#allocation6 + $0x180] sm:$0xff] %v6613_v50  ;;  %6678 = vst [vmem:[#allocation6 + $0x188] sm:$0xff] %v6614_v52 }
 0x8e3   :  { %6679 = vst [vmem:[#allocation6 + $0x190] sm:$0xff] %v6615_v60  ;;  %6680 = vst [vmem:[#allocation6 + $0x198] sm:$0xff] %v6616_v22 }
 0x8e4   :  { %6681 = vst [vmem:[#allocation6 + $0x1a0] sm:$0xff] %v6617_v6  ;;  %6682 = vst [vmem:[#allocation6 + $0x1a8] sm:$0xff] %v6618_v45 }
 0x8e5   :  { %6683 = vst [vmem:[#allocation6 + $0x1b0] sm:$0xff] %v6619_v26  ;;  %6684 = vst [vmem:[#allocation6 + $0x1b8] sm:$0xff] %v6620_v5 }
 0x8e6   :  { %6685 = vst [vmem:[#allocation6 + $0x1c0] sm:$0xff] %v6621_v17  ;;  %6686 = vst [vmem:[#allocation6 + $0x1c8] sm:$0xff] %v6622_v15 }
 0x8e7   :  { %6687 = vst [vmem:[#allocation6 + $0x1d0] sm:$0xff] %v6623_v23  ;;  %6688 = vst [vmem:[#allocation6 + $0x1d8] sm:$0xff] %v6624_v33 }
 0x8e8   :  { %6689 = vst [vmem:[#allocation6 + $0x1e0] sm:$0xff] %v6625_v8  ;;  %6690 = vst [vmem:[#allocation6 + $0x1e8] sm:$0xff] %v6626_v21 }
 0x8e9   :  { %6692 = vst [vmem:[#allocation6 + $0x1f8] sm:$0xff] %v6628_v49 }
 0x8ea   :  { %7624 = shalt.err (!%p7621_p9)
}
 0x8eb   :  { %6704 = dma.vmem_to_hbm [thread:$0]  %s6699_s9, 8192, %s13916_s7, [#allocation5], %s7638_s27, %s7638_s27, %s7639_s28  }
 0x8ec   :  { %7635 = dma.done.wait [#allocation5], 8192  }
 0x8ed   :  { %7636 = vsyncadd [#allocation5], 4294959104 }
 0x8ee   :  { %6708 = vsyncpa [#allocation4], 1 }
 0x8ef   :  { %6709 = vsyncpa [#allocation5], 1 }

</bundles_post_ra>
